<compile_context>
chip_gen: v7x
topology: tpu7x:2x2x1
jax: 0.10.0
libtpu: 0.0.40
codegen_flags: <defaults>
</compile_context>

<pallas_src>
import functools

import jax
import jax.numpy as jnp
from jax.experimental import pallas as pl
from jax.experimental.pallas import tpu as pltpu

OUT_LANES = 128            # lane-dense output slab width (one full 128-lane vreg)
DEFAULT_TILE_BATCH = 1024  # rows per grid step (multiple of 8, VMEM-trivial)


def mlp_kernel(x_ref, w_in_ref, b_in_ref, w_hid_ref, b_hid_ref,
               w_out_t_ref, b_out_ref, out_ref, *,
               n_hidden_layers, input_dim, out_dim):
    x = x_ref[...]                               # (TB, input_dim)
    tb = x.shape[0]

    # ---- input layer (K = input_dim, tiny) on the VPU: broadcast mul-adds ----
    w_in = w_in_ref[...]                         # (input_dim, H), hoisted once
    b_in = b_in_ref[...]                         # (1, H), hoisted once
    h = x[:, 0:1] * w_in[0:1, :] + b_in          # (TB, H)
    for d in range(1, input_dim):
        h = h + x[:, d:d + 1] * w_in[d:d + 1, :]
    h = jnp.tanh(h)

    # ---- hidden layers on the MXU (static unroll; layer count is small) ----
    for k in range(n_hidden_layers - 1):
        h = jnp.tanh(
            jnp.dot(h, w_hid_ref[k], preferred_element_type=jnp.float32)
            + b_hid_ref[k]
        )

    # ---- output layer (N = out_dim, tiny) on VPU + XLU lane reduction ----
    w_out_t = w_out_t_ref[...]                   # (out_dim, H), hoisted once
    b_out = b_out_ref[...]                       # (1, out_dim), hoisted once
    cols = []
    for j in range(out_dim):
        w_j = w_out_t[j:j + 1, :]                # (1, H)
        cols.append(jnp.sum(h * w_j, axis=-1, keepdims=True)
                    + b_out[:, j:j + 1])         # (TB, 1)
    y = cols[0] if out_dim == 1 else jnp.concatenate(cols, axis=-1)

    # ---- lane-dense store: fill the full 128-lane slab (unmasked vst) ----
    if out_dim == 1:
        slab = jnp.broadcast_to(y, (tb, OUT_LANES))
    else:
        slab = jnp.concatenate(
            [y, jnp.zeros((tb, OUT_LANES - out_dim), jnp.float32)], axis=-1)
    out_ref[...] = slab.astype(out_ref.dtype)


def neural_net_forward(x, params, n_hidden_layers, *,
                       tile_batch=DEFAULT_TILE_BATCH):
    w_in, b_in, w_hid, b_hid, w_out, b_out = params
    batch, input_dim = x.shape
    out_dim = w_out.shape[1]

    # Shrink the tile for small batches (avoid wasted padded-row compute),
    # keep it a multiple of 8 (sublane constraint).
    tb = min(tile_batch, pl.cdiv(batch, 8) * 8)
    padded = pl.cdiv(batch, tb) * tb
    if padded != batch:
        x = jnp.pad(x, ((0, padded - batch), (0, 0)))
    n_tiles = padded // tb

    # Output weights stored transposed so the kernel lane-reduces without any
    # in-kernel lane slicing.
    w_out_t = w_out.T                            # (out_dim, H)

    kernel = functools.partial(
        mlp_kernel, n_hidden_layers=n_hidden_layers,
        input_dim=input_dim, out_dim=out_dim)

    rep2 = lambda i: (0, 0)                      # replicated small arrays
    rep3 = lambda i: (0, 0, 0)

    out_padded = pl.pallas_call(
        kernel,
        out_shape=jax.ShapeDtypeStruct((padded, OUT_LANES), jnp.float32),
        grid=(n_tiles,),
        in_specs=[
            pl.BlockSpec((tb, input_dim), lambda i: (i, 0)),   # x tile
            pl.BlockSpec(w_in.shape, rep2),
            pl.BlockSpec(b_in.shape, rep2),
            pl.BlockSpec(w_hid.shape, rep3),
            pl.BlockSpec(b_hid.shape, rep2),
            pl.BlockSpec(w_out_t.shape, rep2),
            pl.BlockSpec(b_out.shape, rep2),
        ],
        out_specs=pl.BlockSpec((tb, OUT_LANES), lambda i: (i, 0)),
        compiler_params=pltpu.CompilerParams(
            dimension_semantics=("parallel",)),
    )(x, w_in, b_in, w_hid, b_hid, w_out_t, b_out)

    # Drop padding rows and lane padding -> (batch, out_dim)
    return out_padded[:batch, :out_dim]


def init_params(key, input_dim, output_dim, n_hidden_layers, neurons):
    """Xavier-uniform with tanh gain (5/3), zero biases — mirrors init_xavier."""
    gain = 5.0 / 3.0  # nn.init.calculate_gain('tanh')

    def xavier(k, fan_in, fan_out):
        limit = gain * float(jnp.sqrt(6.0 / (fan_in + fan_out)))
        # stored already transposed: (in_features, out_features)
        return jax.random.uniform(k, (fan_in, fan_out), jnp.float32,
                                  minval=-limit, maxval=limit)

    keys = jax.random.split(key, n_hidden_layers + 1)
    w_in = xavier(keys[0], input_dim, neurons)
    b_in = jnp.zeros((1, neurons), jnp.float32)
    n_hid = n_hidden_layers - 1
    if n_hid > 0:
        w_hid = jnp.stack(
            [xavier(keys[1 + i], neurons, neurons) for i in range(n_hid)],
            axis=0)                                      # (L-1, H, H)
        b_hid = jnp.zeros((n_hid, neurons), jnp.float32)
    else:
        # dummy (never read: the kernel loop has zero iterations)
        w_hid = jnp.zeros((1, neurons, neurons), jnp.float32)
        b_hid = jnp.zeros((1, neurons), jnp.float32)
    w_out = xavier(keys[-1], neurons, output_dim)
    b_out = jnp.zeros((1, output_dim), jnp.float32)
    return w_in, b_in, w_hid, b_hid, w_out, b_out


def reference_forward(x, params, n_hidden_layers):
    """Pure-JAX reference (matches PyTorch forward semantics)."""
    w_in, b_in, w_hid, b_hid, w_out, b_out = params
    hi = jax.lax.Precision.HIGHEST
    h = jnp.tanh(jnp.dot(x, w_in, precision=hi) + b_in)
    for k in range(n_hidden_layers - 1):
        h = jnp.tanh(jnp.dot(h, w_hid[k], precision=hi) + b_hid[k][None, :])
    return jnp.dot(h, w_out, precision=hi) + b_out


if __name__ == "__main__":
    # Module hyper-params (PINN-style): 2 -> 32 -> 32 -> 32 -> 1
    input_dim, output_dim = 2, 1
    n_hidden_layers, neurons = 4, 32
    batch = 2048          # collocation-point style batch -> grid of 2 tiles

    key = jax.random.PRNGKey(0)
    k_param, k_x = jax.random.split(key)
    params = init_params(k_param, input_dim, output_dim,
                         n_hidden_layers, neurons)
    x = jax.random.normal(k_x, (batch, input_dim), jnp.float32)

    out = neural_net_forward(x, params, n_hidden_layers)
    out = jax.block_until_ready(out)
    ref = reference_forward(x, params, n_hidden_layers)
    assert out.shape == (batch, output_dim)
    assert jnp.allclose(out, ref, atol=2e-5, rtol=2e-5)

    # Ragged batch (not a multiple of the tile) exercises the padding path
    # and the adaptive (shrunken) tile size.
    x_small = jax.random.normal(jax.random.PRNGKey(1), (100, input_dim),
                                jnp.float32)
    out_s = jax.block_until_ready(
        neural_net_forward(x_small, params, n_hidden_layers))
    ref_s = reference_forward(x_small, params, n_hidden_layers)
    assert out_s.shape == (100, output_dim)
    assert jnp.allclose(out_s, ref_s, atol=2e-5, rtol=2e-5)

    print("KERNEL_OK")
</pallas_src>

<mosaic_0001>
module attributes {stable_mosaic.version = 11 : i64} {
  func.func @mlp_kernel(%arg0: i32, %arg1: memref<1024x2xf32, #tpu.memory_space<vmem>>, %arg2: memref<2x32xf32, #tpu.memory_space<vmem>>, %arg3: memref<1x32xf32, #tpu.memory_space<vmem>>, %arg4: memref<3x32x32xf32, #tpu.memory_space<vmem>>, %arg5: memref<3x32xf32, #tpu.memory_space<vmem>>, %arg6: memref<1x32xf32, #tpu.memory_space<vmem>>, %arg7: memref<1x1xf32, #tpu.memory_space<vmem>>, %arg8: memref<1024x128xf32, #tpu.memory_space<vmem>>) attributes {dimension_semantics = [#tpu.dimension_semantics<parallel>], iteration_bounds = array<i64: 2>, scalar_prefetch = 0 : i64, scratch_operands = 0 : i64, tpu.core_type = #tpu.core_type<tc>, window_params = [{transform_indices = @transform_0, window_bounds = array<i64: 1024, 2>}, {pipeline_mode = #tpu.pipeline_mode<synchronous>, transform_indices = @transform_1, window_bounds = array<i64: 2, 32>}, {pipeline_mode = #tpu.pipeline_mode<synchronous>, transform_indices = @transform_2, window_bounds = array<i64: 1, 32>}, {pipeline_mode = #tpu.pipeline_mode<synchronous>, transform_indices = @transform_3, window_bounds = array<i64: 3, 32, 32>}, {pipeline_mode = #tpu.pipeline_mode<synchronous>, transform_indices = @transform_4, window_bounds = array<i64: 3, 32>}, {pipeline_mode = #tpu.pipeline_mode<synchronous>, transform_indices = @transform_5, window_bounds = array<i64: 1, 32>}, {pipeline_mode = #tpu.pipeline_mode<synchronous>, transform_indices = @transform_6, window_bounds = array<i64: 1, 1>}, {transform_indices = @transform_7, window_bounds = array<i64: 1024, 128>}]} {
    %c0 = arith.constant 0 : index
    %c0_0 = arith.constant 0 : index
    %0 = vector.load %arg1[%c0, %c0_0] : memref<1024x2xf32, #tpu.memory_space<vmem>>, vector<1024x2xf32>
    %c0_1 = arith.constant 0 : index
    %c0_2 = arith.constant 0 : index
    %1 = vector.load %arg2[%c0_1, %c0_2] : memref<2x32xf32, #tpu.memory_space<vmem>>, vector<2x32xf32>
    %c0_3 = arith.constant 0 : index
    %c0_4 = arith.constant 0 : index
    %2 = vector.load %arg3[%c0_3, %c0_4] : memref<1x32xf32, #tpu.memory_space<vmem>>, vector<1x32xf32>
    %3 = vector.extract_strided_slice %0 {offsets = [0, 0], sizes = [1024, 1], strides = [1, 1]} : vector<1024x2xf32> to vector<1024x1xf32>
    %4 = vector.extract_strided_slice %1 {offsets = [0, 0], sizes = [1, 32], strides = [1, 1]} : vector<2x32xf32> to vector<1x32xf32>
    %5 = vector.broadcast %3 : vector<1024x1xf32> to vector<1024x32xf32>
    %6 = vector.broadcast %4 : vector<1x32xf32> to vector<1024x32xf32>
    %7 = arith.mulf %5, %6 : vector<1024x32xf32>
    %8 = vector.broadcast %2 : vector<1x32xf32> to vector<1024x32xf32>
    %9 = arith.addf %7, %8 : vector<1024x32xf32>
    %10 = vector.extract_strided_slice %0 {offsets = [0, 1], sizes = [1024, 1], strides = [1, 1]} : vector<1024x2xf32> to vector<1024x1xf32>
    %11 = vector.extract_strided_slice %1 {offsets = [1, 0], sizes = [1, 32], strides = [1, 1]} : vector<2x32xf32> to vector<1x32xf32>
    %12 = vector.broadcast %10 : vector<1024x1xf32> to vector<1024x32xf32>
    %13 = vector.broadcast %11 : vector<1x32xf32> to vector<1024x32xf32>
    %14 = arith.mulf %12, %13 : vector<1024x32xf32>
    %15 = arith.addf %9, %14 : vector<1024x32xf32>
    %16 = math.tanh %15 : vector<1024x32xf32>
    %c0_5 = arith.constant 0 : index
    %c0_6 = arith.constant 0 : index
    %c0_7 = arith.constant 0 : index
    %17 = vector.load %arg4[%c0_5, %c0_6, %c0_7] : memref<3x32x32xf32, #tpu.memory_space<vmem>>, vector<1x32x32xf32>
    %18 = vector.shape_cast %17 : vector<1x32x32xf32> to vector<32x32xf32>
    %cst = arith.constant dense<0.000000e+00> : vector<1024x32xf32>
    %19 = tpu.matmul %16, %18, %cst {dimension_numbers = #tpu.dot_dimension_numbers<[1], [0], [0], [1], [0, 0, 1, 1], [], []>} : vector<1024x32xf32>, vector<32x32xf32>, vector<1024x32xf32> -> vector<1024x32xf32>
    %c0_8 = arith.constant 0 : index
    %c0_9 = arith.constant 0 : index
    %20 = vector.load %arg5[%c0_8, %c0_9] : memref<3x32xf32, #tpu.memory_space<vmem>>, vector<1x32xf32>
    %21 = vector.shape_cast %20 : vector<1x32xf32> to vector<32xf32>
    %22 = vector.shape_cast %21 : vector<32xf32> to vector<1x32xf32>
    %23 = vector.broadcast %22 : vector<1x32xf32> to vector<1024x32xf32>
    %24 = arith.addf %19, %23 : vector<1024x32xf32>
    %25 = math.tanh %24 : vector<1024x32xf32>
    %c1 = arith.constant 1 : index
    %c0_10 = arith.constant 0 : index
    %c0_11 = arith.constant 0 : index
    %26 = vector.load %arg4[%c1, %c0_10, %c0_11] : memref<3x32x32xf32, #tpu.memory_space<vmem>>, vector<1x32x32xf32>
    %27 = vector.shape_cast %26 : vector<1x32x32xf32> to vector<32x32xf32>
    %cst_12 = arith.constant dense<0.000000e+00> : vector<1024x32xf32>
    %28 = tpu.matmul %25, %27, %cst_12 {dimension_numbers = #tpu.dot_dimension_numbers<[1], [0], [0], [1], [0, 0, 1, 1], [], []>} : vector<1024x32xf32>, vector<32x32xf32>, vector<1024x32xf32> -> vector<1024x32xf32>
    %c1_13 = arith.constant 1 : index
    %c0_14 = arith.constant 0 : index
    %29 = vector.load %arg5[%c1_13, %c0_14] : memref<3x32xf32, #tpu.memory_space<vmem>>, vector<1x32xf32>
    %30 = vector.shape_cast %29 : vector<1x32xf32> to vector<32xf32>
    %31 = vector.shape_cast %30 : vector<32xf32> to vector<1x32xf32>
    %32 = vector.broadcast %31 : vector<1x32xf32> to vector<1024x32xf32>
    %33 = arith.addf %28, %32 : vector<1024x32xf32>
    %34 = math.tanh %33 : vector<1024x32xf32>
    %c2 = arith.constant 2 : index
    %c0_15 = arith.constant 0 : index
    %c0_16 = arith.constant 0 : index
    %35 = vector.load %arg4[%c2, %c0_15, %c0_16] : memref<3x32x32xf32, #tpu.memory_space<vmem>>, vector<1x32x32xf32>
    %36 = vector.shape_cast %35 : vector<1x32x32xf32> to vector<32x32xf32>
    %cst_17 = arith.constant dense<0.000000e+00> : vector<1024x32xf32>
    %37 = tpu.matmul %34, %36, %cst_17 {dimension_numbers = #tpu.dot_dimension_numbers<[1], [0], [0], [1], [0, 0, 1, 1], [], []>} : vector<1024x32xf32>, vector<32x32xf32>, vector<1024x32xf32> -> vector<1024x32xf32>
    %c2_18 = arith.constant 2 : index
    %c0_19 = arith.constant 0 : index
    %38 = vector.load %arg5[%c2_18, %c0_19] : memref<3x32xf32, #tpu.memory_space<vmem>>, vector<1x32xf32>
    %39 = vector.shape_cast %38 : vector<1x32xf32> to vector<32xf32>
    %40 = vector.shape_cast %39 : vector<32xf32> to vector<1x32xf32>
    %41 = vector.broadcast %40 : vector<1x32xf32> to vector<1024x32xf32>
    %42 = arith.addf %37, %41 : vector<1024x32xf32>
    %43 = math.tanh %42 : vector<1024x32xf32>
    %c0_20 = arith.constant 0 : index
    %c0_21 = arith.constant 0 : index
    %44 = vector.load %arg6[%c0_20, %c0_21] : memref<1x32xf32, #tpu.memory_space<vmem>>, vector<1x32xf32>
    %c0_22 = arith.constant 0 : index
    %c0_23 = arith.constant 0 : index
    %45 = vector.load %arg7[%c0_22, %c0_23] : memref<1x1xf32, #tpu.memory_space<vmem>>, vector<1x1xf32>
    %46 = vector.broadcast %44 : vector<1x32xf32> to vector<1024x32xf32>
    %47 = arith.mulf %43, %46 : vector<1024x32xf32>
    %cst_24 = arith.constant dense<0.000000e+00> : vector<1024xf32>
    %48 = vector.multi_reduction <add>, %47, %cst_24 [1] : vector<1024x32xf32> to vector<1024xf32>
    %49 = vector.shape_cast %48 : vector<1024xf32> to vector<1024x1xf32>
    %50 = vector.broadcast %45 : vector<1x1xf32> to vector<1024x1xf32>
    %51 = arith.addf %49, %50 : vector<1024x1xf32>
    %52 = vector.shape_cast %51 : vector<1024x1xf32> to vector<1024x1xf32>
    %53 = vector.broadcast %52 : vector<1024x1xf32> to vector<1024x128xf32>
    %c0_25 = arith.constant 0 : index
    %c0_26 = arith.constant 0 : index
    %54 = vector.load %arg8[%c0_25, %c0_26] : memref<1024x128xf32, #tpu.memory_space<vmem>>, vector<1024x128xf32>
    tpu.vector_store %arg8[%c0_25, %c0_26], %53 {strides = array<i32>} : memref<1024x128xf32, #tpu.memory_space<vmem>>, vector<1024x128xf32>,
    return
  }
  func.func @transform_0(%arg0: i32) -> (i32, i32) {
    %c0_i32 = arith.constant 0 : i32
    %c0_i32_0 = arith.constant 0 : i32
    return %arg0, %c0_i32 : i32, i32
  }
  func.func @transform_1(%arg0: i32) -> (i32, i32) {
    %c0_i32 = arith.constant 0 : i32
    %c0_i32_0 = arith.constant 0 : i32
    %c0_i32_1 = arith.constant 0 : i32
    return %c0_i32, %c0_i32_0 : i32, i32
  }
  func.func @transform_2(%arg0: i32) -> (i32, i32) {
    %c0_i32 = arith.constant 0 : i32
    %c0_i32_0 = arith.constant 0 : i32
    %c0_i32_1 = arith.constant 0 : i32
    return %c0_i32, %c0_i32_0 : i32, i32
  }
  func.func @transform_3(%arg0: i32) -> (i32, i32, i32) {
    %c0_i32 = arith.constant 0 : i32
    %c0_i32_0 = arith.constant 0 : i32
    %c0_i32_1 = arith.constant 0 : i32
    %c0_i32_2 = arith.constant 0 : i32
    return %c0_i32, %c0_i32_0, %c0_i32_1 : i32, i32, i32
  }
  func.func @transform_4(%arg0: i32) -> (i32, i32) {
    %c0_i32 = arith.constant 0 : i32
    %c0_i32_0 = arith.constant 0 : i32
    %c0_i32_1 = arith.constant 0 : i32
    return %c0_i32, %c0_i32_0 : i32, i32
  }
  func.func @transform_5(%arg0: i32) -> (i32, i32) {
    %c0_i32 = arith.constant 0 : i32
    %c0_i32_0 = arith.constant 0 : i32
    %c0_i32_1 = arith.constant 0 : i32
    return %c0_i32, %c0_i32_0 : i32, i32
  }
  func.func @transform_6(%arg0: i32) -> (i32, i32) {
    %c0_i32 = arith.constant 0 : i32
    %c0_i32_0 = arith.constant 0 : i32
    %c0_i32_1 = arith.constant 0 : i32
    return %c0_i32, %c0_i32_0 : i32, i32
  }
  func.func @transform_7(%arg0: i32) -> (i32, i32) {
    %c0_i32 = arith.constant 0 : i32
    %c0_i32_0 = arith.constant 0 : i32
    return %arg0, %c0_i32 : i32, i32
  }
}

</mosaic_0001>

<bundles_post_ra>
// kernel: tpu_custom_call.1
= control target key start
LH: loop header
LB: loop body
LE: loop exit
PB: predicated region body
PF: predicated region fallthrough
CT: control target
= control target key end

     0   :  { %s13272_s0 = inlined_call_operand.vmem [shape: f32[2048,2], index: 0, kind: input, shape index: {}]   ;;  %s13273_s1 = inlined_call_operand.vmem [shape: f32[2,32], index: 1, kind: input, shape index: {}]   ;;  %s13274_s2 = inlined_call_operand.vmem [shape: f32[1,32], index: 2, kind: input, shape index: {}]   ;;  %s13275_s3 = inlined_call_operand.vmem [shape: f32[3,32,32], index: 3, kind: input, shape index: {}]   ;;  %s13276_s4 = inlined_call_operand.vmem [shape: f32[3,32], index: 4, kind: input, shape index: {}]   ;;  %s13277_s5 = inlined_call_operand.vmem [shape: f32[1,32], index: 5, kind: input, shape index: {}]   ;;  %s13278_s6 = inlined_call_operand.<no memory space> [shape: f32[1,1], index: 6, kind: input, shape index: {}]   ;;  %s13279_s7 = inlined_call_operand.hbm [shape: f32[2048,128], index: 7, kind: output, shape index: {}]  }
   0x1   :  { %v12_v0 = vstv %s13278_s6 }
   0x2   :  { %13 = vst [vmem:[#allocation2] sm:$0x1] %v12_v0 }
   0x3   :  { %14 = vsyncpa [#allocation4], 0 }
   0x4   :  { %16 = vsyncpa [#allocation4 + $0x1], 0  ;;  %s10025_s26 = smov 0   ;;  %s10027_s27 = smov 0  }
   0x5   :  { %s10029_s28 = smov 0   ;;  %s10031_s29 = smov 0  }
   0x6 LB: > { %s10046_s6 = sadd.s32 4294967295, %s9975_s29   ;;  %s7397_s30 = sadd.s32 4294967294, %s9975_s29   ;;  %s9975_s29 = sphi %s10031_s29, %s13581_s29   ;;  %s9971_s28 = sphi %s10029_s28, %s13580_s28   ;;  %s9967_s27 = sphi %s10027_s27, %s13579_s27   ;;  %s9963_s26 = sphi %s10025_s26, %s13578_s26  }
   0x7   : > { %s10050_s8 = sadd.s32 1, %s9975_s29   ;;  %s181_s9 = sadd.s32 1, %s9971_s28 }
   0x8   : > { %s178_s10 = ssub.s32 %s9975_s29, %s10050_s8  ;;  %p191_p0 = scmp.ne.s32.totalorder %s9971_s28, %s9967_s27 }
   0x9   : > { %p179_p1 = scmp.eq.s32.totalorder %s178_s10, 0  ;;  %p192_p2 = scmp.eq.s32.totalorder %s10046_s6, 1 }
   0xa   : > { %p197_p3 = scmp.ne.s32.totalorder %s9967_s27, %s9963_s26  ;;  %p198_p4 = scmp.eq.s32.totalorder %s7397_s30, 1 }
   0xb   : > { %s10061_s11 = scalar_select %p179_p1, %s9971_s28, %s181_s9  }
   0xc   : > { %p10063_p5 = por %p192_p2, %p191_p0  ;;  %p10067_p6 = por %p198_p4, %p197_p3 }
   0xd   : > { %p7400_p7 = scmp.ge.s32.totalorder %s9975_s29, 1  ;;  %p243_p8 = scmp.lt.s32.totalorder %s9975_s29, 3 }
   0xf   : > { %p244_p9 = pnand %p7400_p7, %p243_p8 }
  0x11   : > { %247 = sbr.rel (%p244_p9) target bundleno = 3039 (0xbdf), region = 48 }
  0x18   : > { %s7402_s14 = sshll.u32 %s10046_s6, 7  ;;  %v13282_v1 = vmov 1   ;;  %v13280_v2 = vmov 0   ;;  %vm2227_vm0 = vcmask 261120  }
  0x19   : > { %8876 = vset.pattern.permute.xlu0 %v13282_v1  ;;  %8875 = vset.pattern.permute.xlu1 %v13280_v2  ;;  %p276_p10 = scmp.lt.s32.totalorder %s7402_s14, 255 }
  0x1b   : > { %s13583_s14 = smov (!%p276_p10, %s7402_s14), 255 }
  0x1c   : > { %s7403_s15 = sshll.u32 %s13583_s14, 3  ;;  %s7807_s14 = sshll.u32 %s10046_s6, 14 }
  0x1d   : > { %s10079_s18 = scalar_lea.vmem %s13272_s0, %s7403_s15  ;;  %s13224_s19 = scalar_lea.hbm %s13279_s7, %s7807_s14 }
  0x1e   : > { %v10082_v3 = vld [vmem:[%s10079_s18 + $0x10] sm:$0xff]  ;;  %v10085_v4 = vld [vmem:[%s10079_s18] sm:$0xff]  ;;  %v285_v5 = vld [vmem:[%s10079_s18 + $0x18] sm:$0xff]  ;;  %s9979_s6 = smov [#allocation3]  }
  0x1f   : > { %424 = vperm.xlu1 %8875, %v10082_v3   ;;  %1319 = vperm.xlu0 %8876, %v10085_v4   ;;  %v287_v6 = vld [vmem:[%s10079_s18 + $0x28] sm:$0xff]  ;;  %v289_v7 = vld [vmem:[%s10079_s18 + $0x38] sm:$0xff]  ;;  %s9917_s22 = sshll.u32 %s9979_s6, 4  ;;  %s9918_s22 = int_to_ptr.vmem [resolvable:$false] %s9917_s22 }
  0x20   : > { %v291_v8 = vld [vmem:[%s10079_s18 + $0x48] sm:$0xff]  ;;  %v293_v9 = vld [vmem:[%s10079_s18 + $0x58] sm:$0xff] }
  0x21   : > { %v295_v10 = vld [vmem:[%s10079_s18 + $0x68] sm:$0xff]  ;;  %v297_v11 = vld [vmem:[%s10079_s18 + $0x78] sm:$0xff] }
  0x22   : > { %v299_v12 = vld [vmem:[%s10079_s18 + $0x88] sm:$0xff]  ;;  %v301_v13 = vld [vmem:[%s10079_s18 + $0x98] sm:$0xff] }
  0x23   : > { %429 = vperm.xlu1 %8875, %v285_v5   ;;  %1331 = vperm.xlu0 %8876, %v285_v5   ;;  %v303_v14 = vld [vmem:[%s10079_s18 + $0xa8] sm:$0xff]  ;;  %v305_v15 = vld [vmem:[%s10079_s18 + $0xb8] sm:$0xff] }
  0x24   : > { %v307_v16 = vld [vmem:[%s10079_s18 + $0xc8] sm:$0xff]  ;;  %v309_v17 = vld [vmem:[%s10079_s18 + $0xd8] sm:$0xff] }
  0x25   : > { %v311_v18 = vld [vmem:[%s10079_s18 + $0xe8] sm:$0xff]  ;;  %v313_v19 = vld [vmem:[%s10079_s18 + $0xf8] sm:$0xff] }
  0x26   : > { %v315_v20 = vld [vmem:[%s10079_s18 + $0x108] sm:$0xff]  ;;  %v317_v21 = vld [vmem:[%s10079_s18 + $0x118] sm:$0xff] }
  0x27   : > { %439 = vperm.xlu1 %8875, %v287_v6   ;;  %1339 = vperm.xlu0 %8876, %v287_v6   ;;  %v319_v22 = vld [vmem:[%s10079_s18 + $0x128] sm:$0xff]  ;;  %v321_v23 = vld [vmem:[%s10079_s18 + $0x138] sm:$0xff] }
  0x28   : > { %v323_v24 = vld [vmem:[%s10079_s18 + $0x148] sm:$0xff]  ;;  %v325_v25 = vld [vmem:[%s10079_s18 + $0x158] sm:$0xff] }
  0x29   : > { %v327_v26 = vld [vmem:[%s10079_s18 + $0x168] sm:$0xff]  ;;  %v329_v27 = vld [vmem:[%s10079_s18 + $0x178] sm:$0xff] }
  0x2a   : > { %v331_v28 = vld [vmem:[%s10079_s18 + $0x188] sm:$0xff]  ;;  %v333_v29 = vld [vmem:[%s10079_s18 + $0x198] sm:$0xff] }
  0x2b   : > { %449 = vperm.xlu1 %8875, %v289_v7   ;;  %1347 = vperm.xlu0 %8876, %v289_v7   ;;  %v335_v30 = vld [vmem:[%s10079_s18 + $0x1a8] sm:$0xff]  ;;  %v337_v31 = vld [vmem:[%s10079_s18 + $0x1b8] sm:$0xff] }
  0x2c   : > { %v339_v32 = vld [vmem:[%s10079_s18 + $0x1c8] sm:$0xff]  ;;  %v341_v33 = vld [vmem:[%s10079_s18 + $0x1d8] sm:$0xff] }
  0x2d   : > { %v343_v34 = vld [vmem:[%s10079_s18 + $0x1e8] sm:$0xff]  ;;  %v345_v35 = vld [vmem:[%s10079_s18 + $0x1f8] sm:$0xff] }
  0x2e   : > { %v347_v36 = vld [vmem:[%s10079_s18 + $0x208] sm:$0xff]  ;;  %v349_v39 = vld [vmem:[%s10079_s18 + $0x218] sm:$0xff] }
  0x2f   : > { %459 = vperm.xlu1 %8875, %v291_v8   ;;  %1355 = vperm.xlu0 %8876, %v291_v8   ;;  %v351_v42 = vld [vmem:[%s10079_s18 + $0x228] sm:$0xff]  ;;  %v353_v45 = vld [vmem:[%s10079_s18 + $0x238] sm:$0xff] }
  0x30   : > { %v355_v48 = vld [vmem:[%s10079_s18 + $0x248] sm:$0xff]  ;;  %v357_v51 = vld [vmem:[%s10079_s18 + $0x258] sm:$0xff] }
  0x31   : > { %v359_v54 = vld [vmem:[%s10079_s18 + $0x268] sm:$0xff]  ;;  %v361_v57 = vld [vmem:[%s10079_s18 + $0x278] sm:$0xff] }
  0x32   : > { %v363_v60 = vld [vmem:[%s10079_s18 + $0x288] sm:$0xff]  ;;  %v365_v63 = vld [vmem:[%s10079_s18 + $0x298] sm:$0xff] }
  0x33   : > { %469 = vperm.xlu1 %8875, %v293_v9   ;;  %1363 = vperm.xlu0 %8876, %v293_v9   ;;  %v367_v6 = vld [vmem:[%s10079_s18 + $0x2a8] sm:$0xff]  ;;  %v369_v9 = vld [vmem:[%s10079_s18 + $0x2b8] sm:$0xff] }
  0x34   : > { %v405_v1 = vld [vmem:[%s10079_s18 + $0x3d8] sm:$0xff] }
  0x37   : > { %479 = vperm.xlu1 %8875, %v295_v10   ;;  %1371 = vperm.xlu0 %8876, %v295_v10  }
  0x3b   : > { %489 = vperm.xlu1 %8875, %v297_v11   ;;  %1379 = vperm.xlu0 %8876, %v297_v11  }
  0x3f   : > { %499 = vperm.xlu1 %8875, %v299_v12   ;;  %1387 = vperm.xlu0 %8876, %v299_v12   ;;  %v371_v12 = vld [vmem:[%s10079_s18 + $0x2c8] sm:$0xff] }
  0x43   : > { %509 = vperm.xlu1 %8875, %v301_v13   ;;  %1395 = vperm.xlu0 %8876, %v301_v13  }
  0x47   : > { %519 = vperm.xlu1 %8875, %v303_v14   ;;  %1403 = vperm.xlu0 %8876, %v303_v14  }
  0x4b   : > { %529 = vperm.xlu1 %8875, %v305_v15   ;;  %1411 = vperm.xlu0 %8876, %v305_v15   ;;  %v373_v15 = vld [vmem:[%s10079_s18 + $0x2d8] sm:$0xff] }
  0x4f   : > { %539 = vperm.xlu1 %8875, %v307_v16   ;;  %1419 = vperm.xlu0 %8876, %v307_v16  }
  0x53   : > { %549 = vperm.xlu1 %8875, %v309_v17   ;;  %1427 = vperm.xlu0 %8876, %v309_v17  }
  0x57   : > { %559 = vperm.xlu1 %8875, %v311_v18   ;;  %1435 = vperm.xlu0 %8876, %v311_v18   ;;  %v375_v18 = vld [vmem:[%s10079_s18 + $0x2e8] sm:$0xff] }
  0x5b   : > { %569 = vperm.xlu1 %8875, %v313_v19   ;;  %1443 = vperm.xlu0 %8876, %v313_v19  }
  0x5f   : > { %579 = vperm.xlu1 %8875, %v315_v20   ;;  %1451 = vperm.xlu0 %8876, %v315_v20  }
  0x63   : > { %589 = vperm.xlu1 %8875, %v317_v21   ;;  %1459 = vperm.xlu0 %8876, %v317_v21   ;;  %v377_v21 = vld [vmem:[%s10079_s18 + $0x2f8] sm:$0xff] }
  0x67   : > { %599 = vperm.xlu1 %8875, %v319_v22   ;;  %1467 = vperm.xlu0 %8876, %v319_v22  }
  0x6b   : > { %609 = vperm.xlu1 %8875, %v321_v23   ;;  %1475 = vperm.xlu0 %8876, %v321_v23  }
  0x6f   : > { %619 = vperm.xlu1 %8875, %v323_v24   ;;  %1483 = vperm.xlu0 %8876, %v323_v24   ;;  %v379_v24 = vld [vmem:[%s10079_s18 + $0x308] sm:$0xff] }
  0x73   : > { %629 = vperm.xlu1 %8875, %v325_v25   ;;  %1491 = vperm.xlu0 %8876, %v325_v25  }
  0x77   : > { %639 = vperm.xlu1 %8875, %v327_v26   ;;  %1499 = vperm.xlu0 %8876, %v327_v26  }
  0x7b   : > { %649 = vperm.xlu1 %8875, %v329_v27   ;;  %1507 = vperm.xlu0 %8876, %v329_v27   ;;  %v381_v27 = vld [vmem:[%s10079_s18 + $0x318] sm:$0xff] }
  0x7f   : > { %659 = vperm.xlu1 %8875, %v331_v28   ;;  %1515 = vperm.xlu0 %8876, %v331_v28  }
  0x83   : > { %669 = vperm.xlu1 %8875, %v333_v29   ;;  %1523 = vperm.xlu0 %8876, %v333_v29  }
  0x87   : > { %679 = vperm.xlu1 %8875, %v335_v30   ;;  %1531 = vperm.xlu0 %8876, %v335_v30   ;;  %v383_v30 = vld [vmem:[%s10079_s18 + $0x328] sm:$0xff] }
  0x8b   : > { %689 = vperm.xlu1 %8875, %v337_v31   ;;  %1539 = vperm.xlu0 %8876, %v337_v31  }
  0x8f   : > { %699 = vperm.xlu1 %8875, %v339_v32   ;;  %1547 = vperm.xlu0 %8876, %v339_v32  }
  0x93   : > { %709 = vperm.xlu1 %8875, %v341_v33   ;;  %1555 = vperm.xlu0 %8876, %v341_v33   ;;  %v385_v33 = vld [vmem:[%s10079_s18 + $0x338] sm:$0xff] }
  0x97   : > { %719 = vperm.xlu1 %8875, %v343_v34   ;;  %1563 = vperm.xlu0 %8876, %v343_v34  }
  0x9b   : > { %729 = vperm.xlu1 %8875, %v345_v35   ;;  %1571 = vperm.xlu0 %8876, %v345_v35  }
  0x9e   : > { %v10121_v37 = vpop.permute.xlu1 %424  ;;  %v10123_v38 = vpop.permute.xlu0 %1319 }
  0x9f   : > { %739 = vperm.xlu1 %8875, %v347_v36   ;;  %1579 = vperm.xlu0 %8876, %v347_v36   ;;  %v387_v36 = vld [vmem:[%s10079_s18 + $0x348] sm:$0xff] }
  0xa2   : > { %v10126_v40 = vpop.permute.xlu1 %429  ;;  %v10128_v41 = vpop.permute.xlu0 %1331 }
  0xa3   : > { %749 = vperm.xlu1 %8875, %v349_v39   ;;  %1587 = vperm.xlu0 %8876, %v349_v39  }
  0xa6   : > { %v10131_v43 = vpop.permute.xlu1 %439  ;;  %v10133_v44 = vpop.permute.xlu0 %1339 }
  0xa7   : > { %759 = vperm.xlu1 %8875, %v351_v42   ;;  %1595 = vperm.xlu0 %8876, %v351_v42  }
  0xaa   : > { %v10136_v46 = vpop.permute.xlu1 %449  ;;  %v10138_v47 = vpop.permute.xlu0 %1347 }
  0xab   : > { %769 = vperm.xlu1 %8875, %v353_v45   ;;  %1603 = vperm.xlu0 %8876, %v353_v45   ;;  %v389_v45 = vld [vmem:[%s10079_s18 + $0x358] sm:$0xff] }
  0xae   : > { %v10141_v49 = vpop.permute.xlu1 %459  ;;  %v10143_v50 = vpop.permute.xlu0 %1355 }
  0xaf   : > { %779 = vperm.xlu1 %8875, %v355_v48   ;;  %1611 = vperm.xlu0 %8876, %v355_v48  }
  0xb2   : > { %v10146_v52 = vpop.permute.xlu1 %469  ;;  %v10148_v53 = vpop.permute.xlu0 %1363 }
  0xb3   : > { %789 = vperm.xlu1 %8875, %v357_v51   ;;  %1619 = vperm.xlu0 %8876, %v357_v51  }
  0xb6   : > { %v10151_v55 = vpop.permute.xlu1 %479  ;;  %v10153_v56 = vpop.permute.xlu0 %1371 }
  0xb7   : > { %799 = vperm.xlu1 %8875, %v359_v54   ;;  %1627 = vperm.xlu0 %8876, %v359_v54   ;;  %v391_v54 = vld [vmem:[%s10079_s18 + $0x368] sm:$0xff] }
  0xba   : > { %v10156_v58 = vpop.permute.xlu1 %489  ;;  %v10158_v59 = vpop.permute.xlu0 %1379 }
  0xbb   : > { %809 = vperm.xlu1 %8875, %v361_v57   ;;  %1635 = vperm.xlu0 %8876, %v361_v57  }
  0xbe   : > { %v10161_v61 = vpop.permute.xlu1 %499  ;;  %v10163_v62 = vpop.permute.xlu0 %1387 }
  0xbf   : > { %819 = vperm.xlu1 %8875, %v363_v60   ;;  %1643 = vperm.xlu0 %8876, %v363_v60  }
  0xc2   : > { %v10166_v0 = vpop.permute.xlu1 %509  ;;  %v10168_v5 = vpop.permute.xlu0 %1395 }
  0xc3   : > { %829 = vperm.xlu1 %8875, %v365_v63   ;;  %1651 = vperm.xlu0 %8876, %v365_v63   ;;  %v393_v63 = vld [vmem:[%s10079_s18 + $0x378] sm:$0xff] }
  0xc6   : > { %v10171_v7 = vpop.permute.xlu1 %519  ;;  %v10173_v8 = vpop.permute.xlu0 %1403 }
  0xc7   : > { %839 = vperm.xlu1 %8875, %v367_v6   ;;  %1659 = vperm.xlu0 %8876, %v367_v6  }
  0xca   : > { %v10176_v10 = vpop.permute.xlu1 %529  ;;  %v10178_v11 = vpop.permute.xlu0 %1411 }
  0xcb   : > { %849 = vperm.xlu1 %8875, %v369_v9   ;;  %1667 = vperm.xlu0 %8876, %v369_v9  }
  0xce   : > { %v10181_v13 = vpop.permute.xlu1 %539  ;;  %v10183_v14 = vpop.permute.xlu0 %1419 }
  0xcf   : > { %859 = vperm.xlu1 %8875, %v371_v12   ;;  %1675 = vperm.xlu0 %8876, %v371_v12   ;;  %v395_v12 = vld [vmem:[%s10079_s18 + $0x388] sm:$0xff] }
  0xd2   : > { %v10186_v16 = vpop.permute.xlu1 %549  ;;  %v10188_v17 = vpop.permute.xlu0 %1427 }
  0xd3   : > { %869 = vperm.xlu1 %8875, %v373_v15   ;;  %1683 = vperm.xlu0 %8876, %v373_v15  }
  0xd6   : > { %v10191_v19 = vpop.permute.xlu1 %559  ;;  %v10193_v20 = vpop.permute.xlu0 %1435 }
  0xd7   : > { %879 = vperm.xlu1 %8875, %v375_v18   ;;  %1691 = vperm.xlu0 %8876, %v375_v18  }
  0xda   : > { %v10196_v22 = vpop.permute.xlu1 %569  ;;  %v10198_v23 = vpop.permute.xlu0 %1443 }
  0xdb   : > { %889 = vperm.xlu1 %8875, %v377_v21   ;;  %1699 = vperm.xlu0 %8876, %v377_v21   ;;  %v397_v21 = vld [vmem:[%s10079_s18 + $0x398] sm:$0xff] }
  0xde   : > { %v10201_v25 = vpop.permute.xlu1 %579  ;;  %v10203_v26 = vpop.permute.xlu0 %1451 }
  0xdf   : > { %899 = vperm.xlu1 %8875, %v379_v24   ;;  %1707 = vperm.xlu0 %8876, %v379_v24  }
  0xe2   : > { %v10206_v28 = vpop.permute.xlu1 %589  ;;  %v10208_v29 = vpop.permute.xlu0 %1459 }
  0xe3   : > { %909 = vperm.xlu1 %8875, %v381_v27   ;;  %1715 = vperm.xlu0 %8876, %v381_v27  }
  0xe6   : > { %v10211_v31 = vpop.permute.xlu1 %599  ;;  %v10213_v32 = vpop.permute.xlu0 %1467 }
  0xe7   : > { %919 = vperm.xlu1 %8875, %v383_v30   ;;  %1723 = vperm.xlu0 %8876, %v383_v30   ;;  %v399_v30 = vld [vmem:[%s10079_s18 + $0x3a8] sm:$0xff] }
  0xea   : > { %v10216_v34 = vpop.permute.xlu1 %609  ;;  %v10218_v35 = vpop.permute.xlu0 %1475 }
  0xeb   : > { %929 = vperm.xlu1 %8875, %v385_v33   ;;  %1731 = vperm.xlu0 %8876, %v385_v33  }
  0xee   : > { %v10221_v39 = vpop.permute.xlu1 %619  ;;  %v10223_v42 = vpop.permute.xlu0 %1483 }
  0xef   : > { %939 = vperm.xlu1 %8875, %v387_v36   ;;  %1739 = vperm.xlu0 %8876, %v387_v36  }
  0xf2   : > { %v10226_v48 = vpop.permute.xlu1 %629  ;;  %v10228_v51 = vpop.permute.xlu0 %1491 }
  0xf3   : > { %949 = vperm.xlu1 %8875, %v389_v45   ;;  %1747 = vperm.xlu0 %8876, %v389_v45   ;;  %v401_v45 = vld [vmem:[%s10079_s18 + $0x3b8] sm:$0xff] }
  0xf6   : > { %v10231_v57 = vpop.permute.xlu1 %639  ;;  %v10233_v60 = vpop.permute.xlu0 %1499 }
  0xf7   : > { %959 = vperm.xlu1 %8875, %v391_v54   ;;  %1755 = vperm.xlu0 %8876, %v391_v54  }
  0xfa   : > { %v10236_v6 = vpop.permute.xlu1 %649  ;;  %v10238_v9 = vpop.permute.xlu0 %1507 }
  0xfb   : > { %13285 = vst [vmem:[#allocation6_spill] sm:$0xff] %v10238_v9  ;;  %969 = vperm.xlu1 %8875, %v393_v63   ;;  %1763 = vperm.xlu0 %8876, %v393_v63  }
  0xfe   : > { %v10241_v15 = vpop.permute.xlu1 %659  ;;  %v10243_v18 = vpop.permute.xlu0 %1515 }
  0xff   : > { %13286 = vst [vmem:[#allocation7_spill] sm:$0xff] %v10241_v15  ;;  %13287 = vst [vmem:[#allocation8_spill] sm:$0xff] %v10243_v18  ;;  %979 = vperm.xlu1 %8875, %v395_v12   ;;  %1771 = vperm.xlu0 %8876, %v395_v12   ;;  %v403_v12 = vld [vmem:[%s10079_s18 + $0x3c8] sm:$0xff] }
 0x102   : > { %v10246_v24 = vpop.permute.xlu1 %669  ;;  %v10248_v27 = vpop.permute.xlu0 %1523 }
 0x103   : > { %13288 = vst [vmem:[#allocation9_spill] sm:$0xff] %v10246_v24  ;;  %13289 = vst [vmem:[#allocation10_spill] sm:$0xff] %v10248_v27  ;;  %989 = vperm.xlu1 %8875, %v397_v21   ;;  %1779 = vperm.xlu0 %8876, %v397_v21   ;;  %v13304_v27 = vmov 1  }
 0x106   : > { %v10251_v33 = vpop.permute.xlu1 %679  ;;  %v10253_v36 = vpop.permute.xlu0 %1531 }
 0x107   : > { %13290 = vst [vmem:[#allocation11_spill] sm:$0xff] %v10251_v33  ;;  %13291 = vst [vmem:[#allocation12_spill] sm:$0xff] %v10253_v36  ;;  %999 = vperm.xlu1 %8875, %v399_v30   ;;  %1787 = vperm.xlu0 %8876, %v399_v30  }
 0x10a   : > { %v10256_v54 = vpop.permute.xlu1 %689  ;;  %v10258_v63 = vpop.permute.xlu0 %1539 }
 0x10b   : > { %13292 = vst [vmem:[#allocation13_spill] sm:$0xff] %v10256_v54  ;;  %13293 = vst [vmem:[#allocation14_spill] sm:$0xff] %v10258_v63  ;;  %1009 = vperm.xlu1 %8875, %v401_v45   ;;  %1795 = vperm.xlu0 %8876, %v401_v45   ;;  %v407_v54 = vld [vmem:[%s10079_s18 + $0x3e8] sm:$0xff] }
 0x10e   : > { %v10261_v2 = vpop.permute.xlu1 %699  ;;  %v10263_v21 = vpop.permute.xlu0 %1547 }
 0x10f   : > { %13294 = vst [vmem:[#allocation15_spill] sm:$0xff] %v10261_v2  ;;  %13295 = vst [vmem:[#allocation16_spill] sm:$0xff] %v10263_v21  ;;  %1019 = vperm.xlu1 %8875, %v403_v12   ;;  %1803 = vperm.xlu0 %8876, %v403_v12   ;;  %v409_v2 = vld [vmem:[%s10079_s18 + $0x3f8] sm:$0xff] }
 0x112   : > { %v10266_v36 = vpop.permute.xlu1 %709  ;;  %v10268_v30 = vpop.permute.xlu0 %1555 }
 0x113   : > { %13296 = vst [vmem:[#allocation17_spill] sm:$0xff] %v10266_v36  ;;  %13297 = vst [vmem:[#allocation18_spill] sm:$0xff] %v10268_v30  ;;  %1029 = vperm.xlu1 %8875, %v405_v1   ;;  %1811 = vperm.xlu0 %8876, %v405_v1   ;;  %v283_v36 = vld [vmem:[%s10079_s18 + $0x8] sm:$0xff] }
 0x116   : > { %v10271_v63 = vpop.permute.xlu1 %719  ;;  %v10273_v45 = vpop.permute.xlu0 %1563 }
 0x117   : > { %13298 = vst [vmem:[#allocation19_spill] sm:$0xff] %v10271_v63  ;;  %13299 = vst [vmem:[#allocation20_spill] sm:$0xff] %v10273_v45  ;;  %1039 = vperm.xlu1 %8875, %v407_v54   ;;  %1819 = vperm.xlu0 %8876, %v407_v54   ;;  %v13305_v63 = vmov 0  }
 0x11a   : > { %v10276_v21 = vpop.permute.xlu1 %729  ;;  %v10278_v12 = vpop.permute.xlu0 %1571 }
 0x11b   : > { %13300 = vst [vmem:[#allocation21_spill] sm:$0xff] %v10276_v21  ;;  %13301 = vst [vmem:[#allocation22_spill] sm:$0xff] %v10278_v12  ;;  %1049 = vperm.xlu1 %8875, %v409_v2   ;;  %1827 = vperm.xlu0 %8876, %v409_v2   ;;  %v286_v2 = vld [vmem:[%s10079_s18 + $0x20] sm:$0xff] }
 0x11e   : > { %v10281_v30 = vpop.permute.xlu1 %739  ;;  %v10283_v1 = vpop.permute.xlu0 %1579 }
 0x11f   : > { %13302 = vst [vmem:[#allocation23_spill] sm:$0xff] %v10281_v30  ;;  %13303 = vst [vmem:[#allocation24_spill] sm:$0xff] %v10283_v1  ;;  %8877 = vset.pattern.permute.xlu1 %v13304_v27  ;;  %8878 = vset.pattern.permute.xlu0 %v13305_v63  ;;  %v288_v27 = vld [vmem:[%s10079_s18 + $0x30] sm:$0xff] }
 0x120   : > { %1323 = vperm.xlu1 %8877, %v283_v36   ;;  %414 = vperm.xlu0 %8878, %v10085_v4   ;;  %v2218_v4 = vld [vmem:[%s13275_s3] sm:$0xff] }
 0x122   : > { %v10288_v54 = vpop.permute.xlu1 %749  ;;  %v10290_v45 = vpop.permute.xlu0 %1587 }
 0x123   : > { %13306 = vst [vmem:[#allocation25_spill] sm:$0xff] %v10288_v54  ;;  %13307 = vst [vmem:[#allocation26_spill] sm:$0xff] %v10290_v45  ;;  %v2221_v45 = vld [vmem:[%s13275_s3 + $0x18] sm:$0xff] }
 0x124   : > { %1327 = vperm.xlu1 %8877, %v10082_v3   ;;  %419 = vperm.xlu0 %8878, %v283_v36   ;;  %v2219_v3 = vld [vmem:[%s13275_s3 + $0x8] sm:$0xff] }
 0x125   : > { %v8804_v36 = vpack.c.bf16 %v2219_v3, %v2218_v4 }
 0x126   : > { %v10294_v12 = vpop.permute.xlu1 %759  ;;  %v10296_v30 = vpop.permute.xlu0 %1595 }
 0x127   : > { %13308 = vst [vmem:[#allocation27_spill] sm:$0xff] %v10294_v12  ;;  %13309 = vst [vmem:[#allocation28_spill] sm:$0xff] %v10296_v30  ;;  %v290_v30 = vld [vmem:[%s10079_s18 + $0x40] sm:$0xff]  ;;  %8805 = vmatprep.subr.bf16.mxu0 %v8804_v36  ;;  %8828 = vmatprep.subr.bf16.mxu1 %v8804_v36 }
 0x128   : > { %1335 = vperm.xlu1 %8877, %v286_v2   ;;  %434 = vperm.xlu0 %8878, %v286_v2  }
 0x129   : > { %8807 = vmatpush3.bf16.msra.mxu0 %v8804_v36  ;;  %8830 = vmatpush3.bf16.msra.mxu1 %v8804_v36 }
 0x12a   : > { %v10299_v1 = vpop.permute.xlu1 %769  ;;  %v10301_v63 = vpop.permute.xlu0 %1603 }
 0x12b   : > { %13310 = vst [vmem:[#allocation29_spill] sm:$0xff] %v10299_v1  ;;  %13311 = vst [vmem:[#allocation30_spill] sm:$0xff] %v10301_v63  ;;  %v2220_v63 = vld [vmem:[%s13275_s3 + $0x10] sm:$0xff] }
 0x12c   : > { %1343 = vperm.xlu1 %8877, %v288_v27   ;;  %444 = vperm.xlu0 %8878, %v288_v27   ;;  %v8808_v4 = vpack.c.bf16 %v2221_v45, %v2220_v63  ;;  %v292_v27 = vld [vmem:[%s10079_s18 + $0x50] sm:$0xff] }
 0x12e   : > { %v10310_v2 = vpop.permute.xlu1 %779  ;;  %v10312_v1 = vpop.permute.xlu0 %1611  ;;  %8809 = vmatprep.subr.bf16.mxu0 %v8808_v4  ;;  %8829 = vmatprep.subr.bf16.mxu1 %v8808_v4 }
 0x12f   : > { %13312 = vst [vmem:[#allocation31_spill] sm:$0xff] %v10310_v2  ;;  %13313 = vst [vmem:[#allocation32_spill] sm:$0xff] %v10312_v1  ;;  %8811 = vmatpush3.bf16.msra.mxu0 %v8808_v4  ;;  %8831 = vmatpush3.bf16.msra.mxu1 %v8808_v4  ;;  %v294_v2 = vld [vmem:[%s10079_s18 + $0x60] sm:$0xff] }
 0x130   : > { %1351 = vperm.xlu1 %8877, %v290_v30   ;;  %454 = vperm.xlu0 %8878, %v290_v30   ;;  %v296_v30 = vld [vmem:[%s10079_s18 + $0x70] sm:$0xff]  ;;  %v298_v4 = vld [vmem:[%s10079_s18 + $0x80] sm:$0xff] }
 0x132   : > { %v10321_v3 = vpop.permute.xlu1 %789  ;;  %v10323_v1 = vpop.permute.xlu0 %1619 }
 0x133   : > { %13314 = vst [vmem:[#allocation33_spill] sm:$0xff] %v10321_v3  ;;  %13315 = vst [vmem:[#allocation34_spill] sm:$0xff] %v10323_v1 }
 0x134   : > { %1359 = vperm.xlu1 %8877, %v292_v27   ;;  %464 = vperm.xlu0 %8878, %v292_v27  }
 0x136   : > { %v10326_v12 = vpop.permute.xlu1 %799  ;;  %v10328_v63 = vpop.permute.xlu0 %1627 }
 0x137   : > { %13316 = vst [vmem:[#allocation35_spill] sm:$0xff] %v10326_v12  ;;  %13317 = vst [vmem:[#allocation36_spill] sm:$0xff] %v10328_v63  ;;  %v300_v63 = vld [vmem:[%s10079_s18 + $0x90] sm:$0xff] }
 0x138   : > { %1367 = vperm.xlu1 %8877, %v294_v2   ;;  %474 = vperm.xlu0 %8878, %v294_v2  }
 0x13a   : > { %v10331_v45 = vpop.permute.xlu1 %809  ;;  %v10333_v36 = vpop.permute.xlu0 %1635 }
 0x13b   : > { %13318 = vst [vmem:[#allocation37_spill] sm:$0xff] %v10331_v45  ;;  %13319 = vst [vmem:[#allocation38_spill] sm:$0xff] %v10333_v36  ;;  %v302_v36 = vld [vmem:[%s10079_s18 + $0xa0] sm:$0xff] }
 0x13c   : > { %1375 = vperm.xlu1 %8877, %v296_v30   ;;  %484 = vperm.xlu0 %8878, %v296_v30  }
 0x13e   : > { %v10336_v1 = vpop.permute.xlu1 %819  ;;  %v10338_v27 = vpop.permute.xlu0 %1643 }
 0x13f   : > { %13320 = vst [vmem:[#allocation39_spill] sm:$0xff] %v10336_v1  ;;  %13321 = vst [vmem:[#allocation40_spill] sm:$0xff] %v10338_v27  ;;  %v304_v27 = vld [vmem:[%s10079_s18 + $0xb0] sm:$0xff] }
 0x140   : > { %1383 = vperm.xlu1 %8877, %v298_v4   ;;  %494 = vperm.xlu0 %8878, %v298_v4  }
 0x142   : > { %v10341_v12 = vpop.permute.xlu1 %829  ;;  %v10343_v2 = vpop.permute.xlu0 %1651 }
 0x143   : > { %13322 = vst [vmem:[#allocation41_spill] sm:$0xff] %v10341_v12  ;;  %13323 = vst [vmem:[#allocation42_spill] sm:$0xff] %v10343_v2  ;;  %v306_v2 = vld [vmem:[%s10079_s18 + $0xc0] sm:$0xff] }
 0x144   : > { %1391 = vperm.xlu1 %8877, %v300_v63   ;;  %504 = vperm.xlu0 %8878, %v300_v63  }
 0x146   : > { %v10346_v45 = vpop.permute.xlu1 %839  ;;  %v10348_v30 = vpop.permute.xlu0 %1659 }
 0x147   : > { %13324 = vst [vmem:[#allocation43_spill] sm:$0xff] %v10346_v45  ;;  %13325 = vst [vmem:[#allocation44_spill] sm:$0xff] %v10348_v30  ;;  %v308_v30 = vld [vmem:[%s10079_s18 + $0xd0] sm:$0xff] }
 0x148   : > { %1399 = vperm.xlu1 %8877, %v302_v36   ;;  %514 = vperm.xlu0 %8878, %v302_v36  }
 0x14a   : > { %v10351_v1 = vpop.permute.xlu1 %849  ;;  %v10353_v4 = vpop.permute.xlu0 %1667 }
 0x14b   : > { %13326 = vst [vmem:[#allocation45_spill] sm:$0xff] %v10351_v1  ;;  %13327 = vst [vmem:[#allocation46_spill] sm:$0xff] %v10353_v4  ;;  %v310_v4 = vld [vmem:[%s10079_s18 + $0xe0] sm:$0xff] }
 0x14c   : > { %1407 = vperm.xlu1 %8877, %v304_v27   ;;  %524 = vperm.xlu0 %8878, %v304_v27  }
 0x14e   : > { %v10356_v12 = vpop.permute.xlu1 %859  ;;  %v10358_v63 = vpop.permute.xlu0 %1675 }
 0x14f   : > { %13328 = vst [vmem:[#allocation47_spill] sm:$0xff] %v10356_v12  ;;  %13329 = vst [vmem:[#allocation48_spill] sm:$0xff] %v10358_v63  ;;  %v312_v63 = vld [vmem:[%s10079_s18 + $0xf0] sm:$0xff] }
 0x150   : > { %1415 = vperm.xlu1 %8877, %v306_v2   ;;  %534 = vperm.xlu0 %8878, %v306_v2  }
 0x152   : > { %v10361_v45 = vpop.permute.xlu1 %869  ;;  %v10363_v36 = vpop.permute.xlu0 %1683 }
 0x153   : > { %13330 = vst [vmem:[#allocation49_spill] sm:$0xff] %v10361_v45  ;;  %13331 = vst [vmem:[#allocation50_spill] sm:$0xff] %v10363_v36  ;;  %v314_v36 = vld [vmem:[%s10079_s18 + $0x100] sm:$0xff] }
 0x154   : > { %1423 = vperm.xlu1 %8877, %v308_v30   ;;  %544 = vperm.xlu0 %8878, %v308_v30  }
 0x156   : > { %v10366_v1 = vpop.permute.xlu1 %879  ;;  %v10368_v27 = vpop.permute.xlu0 %1691 }
 0x157   : > { %13332 = vst [vmem:[#allocation51_spill] sm:$0xff] %v10366_v1  ;;  %13333 = vst [vmem:[#allocation52_spill] sm:$0xff] %v10368_v27  ;;  %v316_v27 = vld [vmem:[%s10079_s18 + $0x110] sm:$0xff] }
 0x158   : > { %1431 = vperm.xlu1 %8877, %v310_v4   ;;  %554 = vperm.xlu0 %8878, %v310_v4  }
 0x15a   : > { %v10371_v12 = vpop.permute.xlu1 %889  ;;  %v10373_v2 = vpop.permute.xlu0 %1699 }
 0x15b   : > { %13334 = vst [vmem:[#allocation53_spill] sm:$0xff] %v10371_v12  ;;  %13335 = vst [vmem:[#allocation54_spill] sm:$0xff] %v10373_v2  ;;  %v318_v2 = vld [vmem:[%s10079_s18 + $0x120] sm:$0xff] }
 0x15c   : > { %1439 = vperm.xlu1 %8877, %v312_v63   ;;  %564 = vperm.xlu0 %8878, %v312_v63  }
 0x15e   : > { %v10376_v45 = vpop.permute.xlu1 %899  ;;  %v10378_v30 = vpop.permute.xlu0 %1707 }
 0x15f   : > { %13336 = vst [vmem:[#allocation55_spill] sm:$0xff] %v10376_v45  ;;  %13337 = vst [vmem:[#allocation56_spill] sm:$0xff] %v10378_v30  ;;  %v320_v30 = vld [vmem:[%s10079_s18 + $0x130] sm:$0xff] }
 0x160   : > { %1447 = vperm.xlu1 %8877, %v314_v36   ;;  %574 = vperm.xlu0 %8878, %v314_v36  }
 0x162   : > { %v10381_v1 = vpop.permute.xlu1 %909  ;;  %v10383_v4 = vpop.permute.xlu0 %1715 }
 0x163   : > { %13338 = vst [vmem:[#allocation57_spill] sm:$0xff] %v10381_v1  ;;  %13339 = vst [vmem:[#allocation58_spill] sm:$0xff] %v10383_v4  ;;  %v322_v4 = vld [vmem:[%s10079_s18 + $0x140] sm:$0xff] }
 0x164   : > { %1455 = vperm.xlu1 %8877, %v316_v27   ;;  %584 = vperm.xlu0 %8878, %v316_v27  }
 0x166   : > { %v10386_v12 = vpop.permute.xlu1 %919  ;;  %v10388_v63 = vpop.permute.xlu0 %1723 }
 0x167   : > { %13340 = vst [vmem:[#allocation59_spill] sm:$0xff] %v10386_v12  ;;  %13341 = vst [vmem:[#allocation60_spill] sm:$0xff] %v10388_v63  ;;  %v324_v63 = vld [vmem:[%s10079_s18 + $0x150] sm:$0xff] }
 0x168   : > { %1463 = vperm.xlu1 %8877, %v318_v2   ;;  %594 = vperm.xlu0 %8878, %v318_v2  }
 0x16a   : > { %v10391_v45 = vpop.permute.xlu1 %929  ;;  %v10393_v36 = vpop.permute.xlu0 %1731 }
 0x16b   : > { %13342 = vst [vmem:[#allocation61_spill] sm:$0xff] %v10391_v45  ;;  %13343 = vst [vmem:[#allocation62_spill] sm:$0xff] %v10393_v36  ;;  %v326_v36 = vld [vmem:[%s10079_s18 + $0x160] sm:$0xff] }
 0x16c   : > { %1471 = vperm.xlu1 %8877, %v320_v30   ;;  %604 = vperm.xlu0 %8878, %v320_v30  }
 0x16e   : > { %v10396_v1 = vpop.permute.xlu1 %939  ;;  %v10398_v27 = vpop.permute.xlu0 %1739 }
 0x16f   : > { %13344 = vst [vmem:[#allocation63_spill] sm:$0xff] %v10396_v1  ;;  %13345 = vst [vmem:[#allocation64_spill] sm:$0xff] %v10398_v27  ;;  %v328_v27 = vld [vmem:[%s10079_s18 + $0x170] sm:$0xff] }
 0x170   : > { %1479 = vperm.xlu1 %8877, %v322_v4   ;;  %614 = vperm.xlu0 %8878, %v322_v4  }
 0x172   : > { %v10401_v12 = vpop.permute.xlu1 %949  ;;  %v10403_v2 = vpop.permute.xlu0 %1747 }
 0x173   : > { %13346 = vst [vmem:[#allocation65_spill] sm:$0xff] %v10401_v12  ;;  %13347 = vst [vmem:[#allocation66_spill] sm:$0xff] %v10403_v2  ;;  %v330_v2 = vld [vmem:[%s10079_s18 + $0x180] sm:$0xff] }
 0x174   : > { %1487 = vperm.xlu1 %8877, %v324_v63   ;;  %624 = vperm.xlu0 %8878, %v324_v63  }
 0x176   : > { %v10406_v45 = vpop.permute.xlu1 %959  ;;  %v10408_v30 = vpop.permute.xlu0 %1755 }
 0x177   : > { %13348 = vst [vmem:[#allocation67_spill] sm:$0xff] %v10406_v45  ;;  %13349 = vst [vmem:[#allocation68_spill] sm:$0xff] %v10408_v30  ;;  %v332_v30 = vld [vmem:[%s10079_s18 + $0x190] sm:$0xff] }
 0x178   : > { %1495 = vperm.xlu1 %8877, %v326_v36   ;;  %634 = vperm.xlu0 %8878, %v326_v36  }
 0x17a   : > { %v10411_v1 = vpop.permute.xlu1 %969  ;;  %v10413_v4 = vpop.permute.xlu0 %1763 }
 0x17b   : > { %13350 = vst [vmem:[#allocation69_spill] sm:$0xff] %v10411_v1  ;;  %13351 = vst [vmem:[#allocation70_spill] sm:$0xff] %v10413_v4  ;;  %v334_v4 = vld [vmem:[%s10079_s18 + $0x1a0] sm:$0xff] }
 0x17c   : > { %1503 = vperm.xlu1 %8877, %v328_v27   ;;  %644 = vperm.xlu0 %8878, %v328_v27  }
 0x17e   : > { %v10416_v12 = vpop.permute.xlu1 %979  ;;  %v10418_v63 = vpop.permute.xlu0 %1771 }
 0x17f   : > { %13352 = vst [vmem:[#allocation71_spill] sm:$0xff] %v10416_v12  ;;  %13353 = vst [vmem:[#allocation72_spill] sm:$0xff] %v10418_v63  ;;  %v336_v12 = vld [vmem:[%s10079_s18 + $0x1b0] sm:$0xff] }
 0x180   : > { %1511 = vperm.xlu1 %8877, %v330_v2   ;;  %654 = vperm.xlu0 %8878, %v330_v2  }
 0x182   : > { %v10421_v45 = vpop.permute.xlu1 %989  ;;  %v10423_v36 = vpop.permute.xlu0 %1779 }
 0x183   : > { %13354 = vst [vmem:[#allocation73_spill] sm:$0xff] %v10421_v45  ;;  %13355 = vst [vmem:[#allocation74_spill] sm:$0xff] %v10423_v36  ;;  %v338_v45 = vld [vmem:[%s10079_s18 + $0x1c0] sm:$0xff] }
 0x184   : > { %1519 = vperm.xlu1 %8877, %v332_v30   ;;  %664 = vperm.xlu0 %8878, %v332_v30  }
 0x186   : > { %v10426_v1 = vpop.permute.xlu1 %999  ;;  %v10428_v27 = vpop.permute.xlu0 %1787 }
 0x187   : > { %13356 = vst [vmem:[#allocation75_spill] sm:$0xff] %v10426_v1  ;;  %13357 = vst [vmem:[#allocation76_spill] sm:$0xff] %v10428_v27  ;;  %v340_v1 = vld [vmem:[%s10079_s18 + $0x1d0] sm:$0xff]  ;;  %v1052_v27 = vlaneseq }
 0x188   : > { %1527 = vperm.xlu1 %8877, %v334_v4   ;;  %674 = vperm.xlu0 %8878, %v334_v4  }
 0x18a   : > { %v10431_v63 = vpop.permute.xlu1 %1009  ;;  %v10433_v2 = vpop.permute.xlu0 %1795 }
 0x18b   : > { %13358 = vst [vmem:[#allocation77_spill] sm:$0xff] %v10431_v63  ;;  %13359 = vst [vmem:[#allocation78_spill] sm:$0xff] %v10433_v2  ;;  %v342_v2 = vld [vmem:[%s10079_s18 + $0x1e0] sm:$0xff]  ;;  %v1053_v63 = vshrl.u32 %v1052_v27, 7 }
 0x18c   : > { %1535 = vperm.xlu1 %8877, %v336_v12   ;;  %684 = vperm.xlu0 %8878, %v336_v12  }
 0x18e   : > { %v10436_v36 = vpop.permute.xlu1 %1019  ;;  %v10438_v30 = vpop.permute.xlu0 %1803 }
 0x18f   : > { %13360 = vst [vmem:[#allocation79_spill] sm:$0xff] %v10436_v36  ;;  %13361 = vst [vmem:[#allocation80_spill] sm:$0xff] %v10438_v30  ;;  %v1054_v30 = vsub.s32 0, %v1053_v63  ;;  %v344_v36 = vld [vmem:[%s10079_s18 + $0x1f0] sm:$0xff] }
 0x190   : > { %1543 = vperm.xlu1 %8877, %v338_v45   ;;  %694 = vperm.xlu0 %8878, %v338_v45   ;;  %v1832_v45 = vsub.s32 1, %v1053_v63 }
 0x192   : > { %v10441_v3 = vpop.permute.xlu1 %1029  ;;  %v10443_v4 = vpop.permute.xlu0 %1811 }
 0x193   : > { %13362 = vst [vmem:[#allocation81_spill] sm:$0xff] %v10441_v3  ;;  %13363 = vst [vmem:[#allocation82_spill] sm:$0xff] %v10443_v4  ;;  %v346_v4 = vld [vmem:[%s10079_s18 + $0x200] sm:$0xff] }
 0x194   : > { %1551 = vperm.xlu1 %8877, %v340_v1   ;;  %704 = vperm.xlu0 %8878, %v340_v1   ;;  %v410_v1 = vld [vmem:[%s13273_s1] sm:$0x3] }
 0x195   : > { %v10458_v27 = vrot.slane %v410_v1, %v1054_v30 }
 0x196   : > { %v10446_v12 = vpop.permute.xlu1 %1039  ;;  %v10448_v54 = vpop.permute.xlu0 %1819 }
 0x197   : > { %13364 = vst [vmem:[#allocation83_spill] sm:$0xff] %v10446_v12  ;;  %13365 = vst [vmem:[#allocation84_spill] sm:$0xff] %v10448_v54  ;;  %v10461_v54 = vrot.slane %v410_v1, %v1832_v45  ;;  %v1059_v30 = vmul.f32 %v10458_v27, %v10126_v40  ;;  %v348_v45 = vld [vmem:[%s10079_s18 + $0x210] sm:$0xff]  ;;  %v1061_v40 = vmul.f32 %v10458_v27, %v10131_v43 }
 0x198   : > { %1559 = vperm.xlu1 %8877, %v342_v2   ;;  %714 = vperm.xlu0 %8878, %v342_v2  }
 0x199   : > { %v1834_v1 = vmul.f32 %v10461_v54, %v10123_v38  ;;  %v350_v38 = vld [vmem:[%s10079_s18 + $0x220] sm:$0xff] }
 0x19a   : > { %v10451_v21 = vpop.permute.xlu1 %1049  ;;  %v10453_v3 = vpop.permute.xlu0 %1827 }
 0x19b   : > { %13366 = vst [vmem:[#allocation85_spill] sm:$0xff] %v10451_v21  ;;  %13367 = vst [vmem:[#allocation86_spill] sm:$0xff] %v10453_v3  ;;  %v10467_v3 = vld [vmem:[%s13274_s2] ss:$0 sm:$0xff] }
 0x19c   : > { %1567 = vperm.xlu1 %8877, %v344_v36   ;;  %724 = vperm.xlu0 %8878, %v344_v36   ;;  %v1058_v36 = vmul.f32 %v10458_v27, %v10121_v37  ;;  %v1193_v9 = vadd.f32 %v10467_v3, %v1059_v30  ;;  %v1195_v43 = vadd.f32 %v10467_v3, %v1061_v40 }
 0x19e   : > { %v1192_v37 = vadd.f32 %v10467_v3, %v1058_v36 }
 0x19f   : > { %v1324_v2 = vpop.permute.xlu1 %1323  ;;  %v415_v12 = vpop.permute.xlu0 %414 }
 0x1a0   : > { %v1056_v63 = vmul.f32 %v10458_v27, %v415_v12  ;;  %1575 = vperm.xlu1 %8877, %v346_v4   ;;  %734 = vperm.xlu0 %8878, %v346_v4  }
 0x1a2   : > { %v1190_v12 = vadd.f32 %v10467_v3, %v1056_v63  ;;  %v1835_v63 = vmul.f32 %v10461_v54, %v1324_v2  ;;  %v1063_v2 = vmul.f32 %v10458_v27, %v10136_v46 }
 0x1a3   : > { %v1328_v21 = vpop.permute.xlu1 %1327  ;;  %v420_v4 = vpop.permute.xlu0 %419 }
 0x1a4   : > { %v1962_v33 = vadd.f32 %v1834_v1, %v1190_v12  ;;  %v1836_v18 = vmul.f32 %v10461_v54, %v1328_v21  ;;  %v1057_v24 = vmul.f32 %v10458_v27, %v420_v4  ;;  %1583 = vperm.xlu1 %8877, %v348_v45   ;;  %744 = vperm.xlu0 %8878, %v348_v45  }
 0x1a5   : > { %v1837_v21 = vmul.f32 %v10461_v54, %v10128_v41  ;;  %v1197_v40 = vadd.f32 %v10467_v3, %v1063_v2 }
 0x1a6   : > { %8880 = vtanh.f32 %v1962_v33  ;;  %v1191_v1 = vadd.f32 %v10467_v3, %v1057_v24  ;;  %v1964_v12 = vadd.f32 %v1836_v18, %v1192_v37  ;;  %v352_v33 = vld [vmem:[%s10079_s18 + $0x230] sm:$0xff]  ;;  %v1839_v18 = vmul.f32 %v10461_v54, %v10133_v44 }
 0x1a7   : > { %v1336_v4 = vpop.permute.xlu1 %1335  ;;  %v435_v45 = vpop.permute.xlu0 %434  ;;  %v1965_v30 = vadd.f32 %v1837_v21, %v1193_v9 }
 0x1a8   : > { %v1963_v15 = vadd.f32 %v1835_v63, %v1191_v1  ;;  %v1060_v36 = vmul.f32 %v10458_v27, %v435_v45  ;;  %1591 = vperm.xlu1 %8877, %v350_v38   ;;  %754 = vperm.xlu0 %8878, %v350_v38   ;;  %v1838_v24 = vmul.f32 %v10461_v54, %v1336_v4  ;;  %v354_v1 = vld [vmem:[%s10079_s18 + $0x240] sm:$0xff] }
 0x1a9   : > { %v1967_v46 = vadd.f32 %v1839_v18, %v1195_v43  ;;  %v1843_v18 = vmul.f32 %v10461_v54, %v10143_v50 }
 0x1aa   : > { %8882 = vtanh.f32 %v1963_v15  ;;  %v1194_v41 = vadd.f32 %v10467_v3, %v1060_v36  ;;  %v1065_v15 = vmul.f32 %v10458_v27, %v10141_v49 }
 0x1ab   : > { %8884 = vtanh.f32 %v1964_v12  ;;  %v1344_v37 = vpop.permute.xlu1 %1343  ;;  %v445_v63 = vpop.permute.xlu0 %444  ;;  %v1841_v12 = vmul.f32 %v10461_v54, %v10138_v47 }
 0x1ac   : > { %v1966_v38 = vadd.f32 %v1838_v24, %v1194_v41  ;;  %v1062_v9 = vmul.f32 %v10458_v27, %v445_v63  ;;  %1599 = vperm.xlu1 %8877, %v352_v33   ;;  %764 = vperm.xlu0 %8878, %v352_v33   ;;  %8886 = vtanh.f32 %v1965_v30  ;;  %v1840_v21 = vmul.f32 %v10461_v54, %v1344_v37  ;;  %v356_v24 = vld [vmem:[%s10079_s18 + $0x250] sm:$0xff] }
 0x1ad   : > { %v1969_v49 = vadd.f32 %v1841_v12, %v1197_v40  ;;  %v1199_v2 = vadd.f32 %v10467_v3, %v1065_v15  ;;  %v1067_v33 = vmul.f32 %v10458_v27, %v10146_v52  ;;  %v7534_v12 = vld [vmem:[%s13275_s3 + $0x20] sm:$0xff] }
 0x1ae   : > { %8888 = vtanh.f32 %v1966_v38  ;;  %v1196_v44 = vadd.f32 %v10467_v3, %v1062_v9 }
 0x1af   : > { %v1352_v4 = vpop.permute.xlu1 %1351  ;;  %v455_v45 = vpop.permute.xlu0 %454  ;;  %8890 = vtanh.f32 %v1967_v46  ;;  %v1971_v40 = vadd.f32 %v1843_v18, %v1199_v2  ;;  %v1201_v15 = vadd.f32 %v10467_v3, %v1067_v33 }
 0x1b0   : > { %v8881_v36 = vpop.eup %8880  ;;  %v1968_v30 = vadd.f32 %v1840_v21, %v1196_v44  ;;  %v1064_v43 = vmul.f32 %v10458_v27, %v455_v45  ;;  %1607 = vperm.xlu1 %8877, %v354_v1   ;;  %774 = vperm.xlu0 %8878, %v354_v1   ;;  %v1842_v47 = vmul.f32 %v10461_v54, %v1352_v4  ;;  %v358_v21 = vld [vmem:[%s10079_s18 + $0x260] sm:$0xff]  ;;  %v7535_v4 = vld [vmem:[%s13275_s3 + $0x28] sm:$0xff] }
 0x1b1   : > { %8212 = vmatprep.mubr.msk.f32.mxu0 %vm2227_vm0, %v8881_v36  ;;  %v1069_v1 = vmul.f32 %v10458_v27, %v10151_v55  ;;  %v1845_v45 = vmul.f32 %v10461_v54, %v10148_v53  ;;  %v360_v53 = vld [vmem:[%s10079_s18 + $0x270] sm:$0xff] }
 0x1b2   : > { %8892 = vtanh.f32 %v1968_v30  ;;  %v1198_v41 = vadd.f32 %v10467_v3, %v1064_v43  ;;  %v10533_v43 = vpack.c.bf16 %v7535_v4, %v7534_v12  ;;  %v1849_v4 = vmul.f32 %v10461_v54, %v10158_v59 }
 0x1b3   : > { %v1360_v37 = vpop.permute.xlu1 %1359  ;;  %v465_v63 = vpop.permute.xlu0 %464  ;;  %8894 = vtanh.f32 %v1969_v49 }
 0x1b4   : > { %v8883_v38 = vpop.eup %8882  ;;  %v1970_v9 = vadd.f32 %v1842_v47, %v1198_v41  ;;  %v1066_v46 = vmul.f32 %v10458_v27, %v465_v63  ;;  %1615 = vperm.xlu1 %8877, %v356_v24   ;;  %784 = vperm.xlu0 %8878, %v356_v24   ;;  %v1844_v50 = vmul.f32 %v10461_v54, %v1360_v37 }
 0x1b5   : > { %v8885_v52 = vpop.eup %8884  ;;  %8213 = vmatmul.mubr.msk.f32.vlgmr.msra.gmra.mrb[0].mxu0 %vm2227_vm0, %v8883_v38  ;;  %v1973_v24 = vadd.f32 %v1845_v45, %v1201_v15  ;;  %v1203_v47 = vadd.f32 %v10467_v3, %v1069_v1  ;;  %v1071_v41 = vmul.f32 %v10458_v27, %v10156_v58  ;;  %8813 = vmatprep.subr.bf16.mxu1 %v10533_v43 }
 0x1b6   : > { %8896 = vtanh.f32 %v1970_v9  ;;  %v1200_v44 = vadd.f32 %v10467_v3, %v1066_v46  ;;  %8215 = vmatprep.mubr.msk.f32.mxu0 %vm2227_vm0, %v8885_v52  ;;  %v8887_v55 = vpop.eup %8886  ;;  %v1847_v38 = vmul.f32 %v10461_v54, %v10153_v56 }
 0x1b7   : > { %v1368_v36 = vpop.permute.xlu1 %1367  ;;  %v475_v30 = vpop.permute.xlu0 %474  ;;  %8898 = vtanh.f32 %v1971_v40  ;;  %v1205_v1 = vadd.f32 %v10467_v3, %v1071_v41 }
 0x1b8   : > { %v8889_v49 = vpop.eup %8888  ;;  %v1972_v2 = vadd.f32 %v1844_v50, %v1200_v44  ;;  %v1068_v33 = vmul.f32 %v10458_v27, %v475_v30  ;;  %1623 = vperm.xlu1 %8877, %v358_v21   ;;  %794 = vperm.xlu0 %8878, %v358_v21   ;;  %v1846_v18 = vmul.f32 %v10461_v54, %v1368_v36  ;;  %v362_v50 = vld [vmem:[%s10079_s18 + $0x280] sm:$0xff] }
 0x1b9   : > { %8216 = vmatmul.mubr.msk.f32.gmra.mrb[2].mxu0 %vm2227_vm0, %v8887_v55  ;;  %v8891_v63 = vpop.eup %8890  ;;  %v1975_v15 = vadd.f32 %v1847_v38, %v1203_v47  ;;  %v1073_v21 = vmul.f32 %v10458_v27, %v10161_v61 }
 0x1ba   : > { %8900 = vtanh.f32 %v1972_v2  ;;  %v1202_v37 = vadd.f32 %v10467_v3, %v1068_v33  ;;  %8218 = vmatprep.mubr.msk.f32.mxu0 %vm2227_vm0, %v8889_v49  ;;  %v1977_v49 = vadd.f32 %v1849_v4, %v1205_v1  ;;  %v1075_v33 = vmul.f32 %v10458_v27, %v10166_v0 }
 0x1bb   : > { %v1376_v9 = vpop.permute.xlu1 %1375  ;;  %v485_v46 = vpop.permute.xlu0 %484  ;;  %8902 = vtanh.f32 %v1973_v24  ;;  %v1207_v2 = vadd.f32 %v10467_v3, %v1073_v21  ;;  %v364_v24 = vld [vmem:[%s10079_s18 + $0x290] sm:$0xff]  ;;  %v1853_v1 = vmul.f32 %v10461_v54, %v10168_v5 }
 0x1bc   : > { %v8893_v58 = vpop.eup %8892  ;;  %v1974_v52 = vadd.f32 %v1846_v18, %v1202_v37  ;;  %v1070_v40 = vmul.f32 %v10458_v27, %v485_v46  ;;  %1631 = vperm.xlu1 %8877, %v360_v53   ;;  %804 = vperm.xlu0 %8878, %v360_v53   ;;  %v1848_v56 = vmul.f32 %v10461_v54, %v1376_v9 }
 0x1bd   : > { %8219 = vmatmul.mubr.msk.f32.gmra.mrb[4].mxu0 %vm2227_vm0, %v8891_v63  ;;  %v8895_v12 = vpop.eup %8894  ;;  %v1851_v53 = vmul.f32 %v10461_v54, %v10163_v62  ;;  %v1209_v46 = vadd.f32 %v10467_v3, %v1075_v33 }
 0x1be   : > { %8904 = vtanh.f32 %v1974_v52  ;;  %v1204_v44 = vadd.f32 %v10467_v3, %v1070_v40  ;;  %8221 = vmatprep.mubr.msk.f32.mxu0 %vm2227_vm0, %v8893_v58  ;;  %v1077_v58 = vmul.f32 %v10458_v27, %v10171_v7  ;;  %v366_v52 = vld [vmem:[%s10079_s18 + $0x2a0] sm:$0xff] }
 0x1bf   : > { %v1384_v55 = vpop.permute.xlu1 %1383  ;;  %v495_v45 = vpop.permute.xlu0 %494  ;;  %8906 = vtanh.f32 %v1975_v15  ;;  %v1979_v9 = vadd.f32 %v1851_v53, %v1207_v2  ;;  %v370_v53 = vld [vmem:[%s10079_s18 + $0x2c0] sm:$0xff] }
 0x1c0   : > { %v8897_v36 = vpop.eup %8896  ;;  %v1976_v30 = vadd.f32 %v1848_v56, %v1204_v44  ;;  %v1072_v61 = vmul.f32 %v10458_v27, %v495_v45  ;;  %1639 = vperm.xlu1 %8877, %v362_v50   ;;  %814 = vperm.xlu0 %8878, %v362_v50   ;;  %v1850_v59 = vmul.f32 %v10461_v54, %v1384_v55  ;;  %v368_v45 = vld [vmem:[%s10079_s18 + $0x2b0] sm:$0xff] }
 0x1c1   : > { %8222 = vmatmul.mubr.msk.f32.gmra.mrb[6].mxu0 %vm2227_vm0, %v8895_v12  ;;  %v8899_v41 = vpop.eup %8898  ;;  %v1981_v12 = vadd.f32 %v1853_v1, %v1209_v46  ;;  %v1211_v4 = vadd.f32 %v10467_v3, %v1077_v58  ;;  %v1079_v55 = vmul.f32 %v10458_v27, %v10176_v10 }
 0x1c2   : > { %8908 = vtanh.f32 %v1976_v30  ;;  %v1206_v47 = vadd.f32 %v10467_v3, %v1072_v61  ;;  %8224 = vmatprep.mubr.msk.f32.mxu0 %vm2227_vm0, %v8897_v36  ;;  %v1855_v61 = vmul.f32 %v10461_v54, %v10173_v8 }
 0x1c3   : > { %v1392_v18 = vpop.permute.xlu1 %1391  ;;  %v505_v37 = vpop.permute.xlu0 %504  ;;  %8910 = vtanh.f32 %v1977_v49 }
 0x1c4   : > { %v8901_v63 = vpop.eup %8900  ;;  %v1978_v38 = vadd.f32 %v1850_v59, %v1206_v47  ;;  %v1074_v0 = vmul.f32 %v10458_v27, %v505_v37  ;;  %1647 = vperm.xlu1 %8877, %v364_v24   ;;  %824 = vperm.xlu0 %8878, %v364_v24   ;;  %v1852_v62 = vmul.f32 %v10461_v54, %v1392_v18 }
 0x1c5   : > { %8225 = vmatmul.mubr.msk.f32.gmra.mrb[8].mxu0 %vm2227_vm0, %v8899_v41  ;;  %v8903_v15 = vpop.eup %8902  ;;  %v1983_v59 = vadd.f32 %v1855_v61, %v1211_v4  ;;  %v1213_v47 = vadd.f32 %v10467_v3, %v1079_v55  ;;  %v1081_v41 = vmul.f32 %v10458_v27, %v10181_v13  ;;  %v1085_v55 = vmul.f32 %v10458_v27, %v10191_v19 }
 0x1c6   : > { %8912 = vtanh.f32 %v1978_v38  ;;  %v1208_v40 = vadd.f32 %v10467_v3, %v1074_v0  ;;  %8227 = vmatprep.mubr.msk.f32.mxu0 %vm2227_vm0, %v8901_v63  ;;  %v1857_v63 = vmul.f32 %v10461_v54, %v10178_v11 }
 0x1c7   : > { %v1400_v21 = vpop.permute.xlu1 %1399  ;;  %v515_v50 = vpop.permute.xlu0 %514  ;;  %8914 = vtanh.f32 %v1979_v9 }
 0x1c8   : > { %v8905_v56 = vpop.eup %8904  ;;  %v1980_v44 = vadd.f32 %v1852_v62, %v1208_v40  ;;  %v1076_v7 = vmul.f32 %v10458_v27, %v515_v50  ;;  %1655 = vperm.xlu1 %8877, %v366_v52   ;;  %834 = vperm.xlu0 %8878, %v366_v52   ;;  %v1854_v5 = vmul.f32 %v10461_v54, %v1400_v21  ;;  %v372_v40 = vld [vmem:[%s10079_s18 + $0x2d0] sm:$0xff] }
 0x1c9   : > { %8228 = vmatmul.mubr.msk.f32.gmra.mrb[10].mxu0 %vm2227_vm0, %v8903_v15  ;;  %v8907_v30 = vpop.eup %8906  ;;  %v1985_v58 = vadd.f32 %v1857_v63, %v1213_v47  ;;  %v1215_v52 = vadd.f32 %v10467_v3, %v1081_v41  ;;  %v1083_v62 = vmul.f32 %v10458_v27, %v10186_v16  ;;  %v1859_v21 = vmul.f32 %v10461_v54, %v10183_v14  ;;  %v376_v47 = vld [vmem:[%s10079_s18 + $0x2f0] sm:$0xff] }
 0x1ca   : > { %8916 = vtanh.f32 %v1980_v44  ;;  %v1210_v36 = vadd.f32 %v10467_v3, %v1076_v7  ;;  %8230 = vmatprep.mubr.msk.f32.mxu0 %vm2227_vm0, %v8905_v56 }
 0x1cb   : > { %v1408_v49 = vpop.permute.xlu1 %1407  ;;  %v525_v2 = vpop.permute.xlu0 %524  ;;  %8918 = vtanh.f32 %v1981_v12  ;;  %v1987_v12 = vadd.f32 %v1859_v21, %v1215_v52  ;;  %v1217_v4 = vadd.f32 %v10467_v3, %v1083_v62  ;;  %v1865_v62 = vmul.f32 %v10461_v54, %v10198_v23 }
 0x1cc   : > { %v8909_v33 = vpop.eup %8908  ;;  %v1982_v24 = vadd.f32 %v1854_v5, %v1210_v36  ;;  %v1078_v10 = vmul.f32 %v10458_v27, %v525_v2  ;;  %1663 = vperm.xlu1 %8877, %v368_v45   ;;  %844 = vperm.xlu0 %8878, %v368_v45   ;;  %v1856_v8 = vmul.f32 %v10461_v54, %v1408_v49  ;;  %v374_v45 = vld [vmem:[%s10079_s18 + $0x2e0] sm:$0xff] }
 0x1cd   : > { %8231 = vmatmul.mubr.msk.f32.gmra.mrb[12].mxu0 %vm2227_vm0, %v8907_v30  ;;  %v8911_v37 = vpop.eup %8910  ;;  %v1861_v30 = vmul.f32 %v10461_v54, %v10188_v17 }
 0x1ce   : > { %8920 = vtanh.f32 %v1982_v24  ;;  %v1212_v18 = vadd.f32 %v10467_v3, %v1078_v10  ;;  %8233 = vmatprep.mubr.msk.f32.mxu0 %vm2227_vm0, %v8909_v33  ;;  %v1219_v10 = vadd.f32 %v10467_v3, %v1085_v55 }
 0x1cf   : > { %v1416_v38 = vpop.permute.xlu1 %1415  ;;  %v535_v0 = vpop.permute.xlu0 %534  ;;  %8922 = vtanh.f32 %v1983_v59  ;;  %v1989_v24 = vadd.f32 %v1861_v30, %v1217_v4  ;;  %v1087_v59 = vmul.f32 %v10458_v27, %v10196_v22  ;;  %v1093_v30 = vmul.f32 %v10458_v27, %v10211_v31 }
 0x1d0   : > { %v8913_v9 = vpop.eup %8912  ;;  %v1984_v46 = vadd.f32 %v1856_v8, %v1212_v18  ;;  %v1080_v13 = vmul.f32 %v10458_v27, %v535_v0  ;;  %1671 = vperm.xlu1 %8877, %v370_v53   ;;  %854 = vperm.xlu0 %8878, %v370_v53   ;;  %v1858_v11 = vmul.f32 %v10461_v54, %v1416_v38 }
 0x1d1   : > { %8234 = vmatmul.mubr.msk.f32.gmra.mrb[14].mxu0 %vm2227_vm0, %v8911_v37  ;;  %v8915_v1 = vpop.eup %8914  ;;  %v1863_v8 = vmul.f32 %v10461_v54, %v10193_v20 }
 0x1d2   : > { %8924 = vtanh.f32 %v1984_v46  ;;  %v1214_v15 = vadd.f32 %v10467_v3, %v1080_v13  ;;  %8236 = vmatprep.mubr.msk.f32.mxu0 %vm2227_vm0, %v8913_v9  ;;  %v1221_v9 = vadd.f32 %v10467_v3, %v1087_v59  ;;  %v1089_v46 = vmul.f32 %v10458_v27, %v10201_v25  ;;  %v378_v13 = vld [vmem:[%s10079_s18 + $0x300] sm:$0xff] }
 0x1d3   : > { %v1424_v50 = vpop.permute.xlu1 %1423  ;;  %v545_v56 = vpop.permute.xlu0 %544  ;;  %8926 = vtanh.f32 %v1985_v58  ;;  %v1991_v0 = vadd.f32 %v1863_v8, %v1219_v10 }
 0x1d4   : > { %v8917_v44 = vpop.eup %8916  ;;  %v1986_v7 = vadd.f32 %v1858_v11, %v1214_v15  ;;  %v1082_v16 = vmul.f32 %v10458_v27, %v545_v56  ;;  %1679 = vperm.xlu1 %8877, %v372_v40   ;;  %864 = vperm.xlu0 %8878, %v372_v40   ;;  %v1860_v14 = vmul.f32 %v10461_v54, %v1424_v50 }
 0x1d5   : > { %8237 = vmatmul.mubr.msk.f32.gmra.mrb[16].mxu0 %vm2227_vm0, %v8915_v1  ;;  %v8919_v36 = vpop.eup %8918  ;;  %v1993_v21 = vadd.f32 %v1865_v62, %v1221_v9  ;;  %v1223_v50 = vadd.f32 %v10467_v3, %v1089_v46  ;;  %v1091_v56 = vmul.f32 %v10458_v27, %v10206_v28  ;;  %v1873_v62 = vmul.f32 %v10461_v54, %v10218_v35 }
 0x1d6   : > { %8928 = vtanh.f32 %v1986_v7  ;;  %v1216_v5 = vadd.f32 %v10467_v3, %v1082_v16  ;;  %8239 = vmatprep.mubr.msk.f32.mxu0 %vm2227_vm0, %v8917_v44  ;;  %v380_v44 = vld [vmem:[%s10079_s18 + $0x310] sm:$0xff] }
 0x1d7   : > { %v1432_v61 = vpop.permute.xlu1 %1431  ;;  %v555_v49 = vpop.permute.xlu0 %554  ;;  %8930 = vtanh.f32 %v1987_v12  ;;  %v1867_v12 = vmul.f32 %v10461_v54, %v10203_v26 }
 0x1d8   : > { %v8921_v2 = vpop.eup %8920  ;;  %v1988_v33 = vadd.f32 %v1860_v14, %v1216_v5  ;;  %v1084_v19 = vmul.f32 %v10458_v27, %v555_v49  ;;  %1687 = vperm.xlu1 %8877, %v374_v45   ;;  %874 = vperm.xlu0 %8878, %v374_v45   ;;  %v1862_v17 = vmul.f32 %v10461_v54, %v1432_v61  ;;  %v382_v61 = vld [vmem:[%s10079_s18 + $0x320] sm:$0xff] }
 0x1d9   : > { %8240 = vmatmul.mubr.msk.f32.gmra.mrb[18].mxu0 %vm2227_vm0, %v8919_v36  ;;  %v8923_v53 = vpop.eup %8922  ;;  %v1995_v5 = vadd.f32 %v1867_v12, %v1223_v50  ;;  %v1225_v36 = vadd.f32 %v10467_v3, %v1091_v56  ;;  %v1099_v50 = vmul.f32 %v10458_v27, %v10226_v48  ;;  %v388_v56 = vld [vmem:[%s10079_s18 + $0x350] sm:$0xff] }
 0x1da   : > { %8932 = vtanh.f32 %v1988_v33  ;;  %v1218_v41 = vadd.f32 %v10467_v3, %v1084_v19  ;;  %8242 = vmatprep.mubr.msk.f32.mxu0 %vm2227_vm0, %v8921_v2  ;;  %v1869_v33 = vmul.f32 %v10461_v54, %v10208_v29 }
 0x1db   : > { %v1440_v18 = vpop.permute.xlu1 %1439  ;;  %v565_v37 = vpop.permute.xlu0 %564  ;;  %8934 = vtanh.f32 %v1989_v24 }
 0x1dc   : > { %v8925_v63 = vpop.eup %8924  ;;  %v1990_v38 = vadd.f32 %v1862_v17, %v1218_v41  ;;  %v1086_v22 = vmul.f32 %v10458_v27, %v565_v37  ;;  %1695 = vperm.xlu1 %8877, %v376_v47   ;;  %884 = vperm.xlu0 %8878, %v376_v47   ;;  %v1864_v20 = vmul.f32 %v10461_v54, %v1440_v18 }
 0x1dd   : > { %8243 = vmatmul.mubr.msk.f32.gmra.mrb[20].mxu0 %vm2227_vm0, %v8923_v53  ;;  %v8927_v52 = vpop.eup %8926  ;;  %v1997_v47 = vadd.f32 %v1869_v33, %v1225_v36  ;;  %v1227_v17 = vadd.f32 %v10467_v3, %v1093_v30  ;;  %v1095_v41 = vmul.f32 %v10458_v27, %v10216_v34  ;;  %v384_v53 = vld [vmem:[%s10079_s18 + $0x330] sm:$0xff]  ;;  %v1871_v37 = vmul.f32 %v10461_v54, %v10213_v32 }
 0x1de   : > { %8936 = vtanh.f32 %v1990_v38  ;;  %v1220_v58 = vadd.f32 %v10467_v3, %v1086_v22  ;;  %8245 = vmatprep.mubr.msk.f32.mxu0 %vm2227_vm0, %v8925_v63 }
 0x1df   : > { %v1448_v40 = vpop.permute.xlu1 %1447  ;;  %v575_v11 = vpop.permute.xlu0 %574  ;;  %8938 = vtanh.f32 %v1991_v0  ;;  %v1999_v9 = vadd.f32 %v1871_v37, %v1227_v17  ;;  %v1229_v46 = vadd.f32 %v10467_v3, %v1095_v41  ;;  %v1879_v17 = vmul.f32 %v10461_v54, %v10233_v60 }
 0x1e0   : > { %v8929_v15 = vpop.eup %8928  ;;  %v1992_v1 = vadd.f32 %v1864_v20, %v1220_v58  ;;  %v1088_v25 = vmul.f32 %v10458_v27, %v575_v11  ;;  %1703 = vperm.xlu1 %8877, %v378_v13   ;;  %894 = vperm.xlu0 %8878, %v378_v13   ;;  %v1866_v23 = vmul.f32 %v10461_v54, %v1448_v40  ;;  %v386_v20 = vld [vmem:[%s10079_s18 + $0x340] sm:$0xff] }
 0x1e1   : > { %8246 = vmatmul.mubr.msk.f32.gmra.mrb[22].mxu0 %vm2227_vm0, %v8927_v52  ;;  %v8931_v16 = vpop.eup %8930  ;;  %v1097_v13 = vmul.f32 %v10458_v27, %v10221_v39 }
 0x1e2   : > { %8940 = vtanh.f32 %v1992_v1  ;;  %v1222_v7 = vadd.f32 %v10467_v3, %v1088_v25  ;;  %8248 = vmatprep.mubr.msk.f32.mxu0 %vm2227_vm0, %v8929_v15  ;;  %v2001_v25 = vadd.f32 %v1873_v62, %v1229_v46 }
 0x1e3   : > { %v1456_v4 = vpop.permute.xlu1 %1455  ;;  %v585_v55 = vpop.permute.xlu0 %584  ;;  %8942 = vtanh.f32 %v1993_v21  ;;  %v1231_v21 = vadd.f32 %v10467_v3, %v1097_v13 }
 0x1e4   : > { %v8933_v45 = vpop.eup %8932  ;;  %v1994_v14 = vadd.f32 %v1866_v23, %v1222_v7  ;;  %v1090_v28 = vmul.f32 %v10458_v27, %v585_v55  ;;  %1711 = vperm.xlu1 %8877, %v380_v44   ;;  %904 = vperm.xlu0 %8878, %v380_v44   ;;  %v1868_v26 = vmul.f32 %v10461_v54, %v1456_v4 }
 0x1e5   : > { %8249 = vmatmul.mubr.msk.f32.gmra.mrb[24].mxu0 %vm2227_vm0, %v8931_v16  ;;  %v8935_v2 = vpop.eup %8934  ;;  %v1875_v7 = vmul.f32 %v10461_v54, %v10223_v42 }
 0x1e6   : > { %8944 = vtanh.f32 %v1994_v14  ;;  %v1224_v49 = vadd.f32 %v10467_v3, %v1090_v28  ;;  %8251 = vmatprep.mubr.msk.f32.mxu0 %vm2227_vm0, %v8933_v45  ;;  %v1233_v14 = vadd.f32 %v10467_v3, %v1099_v50  ;;  %v1101_v28 = vmul.f32 %v10458_v27, %v10231_v57  ;;  %v13371_v50 = vld [vmem:[#allocation8_spill] sm:$0xff] }
 0x1e7   : > { %v1464_v19 = vpop.permute.xlu1 %1463  ;;  %v595_v24 = vpop.permute.xlu0 %594  ;;  %8946 = vtanh.f32 %v1995_v5  ;;  %v2003_v45 = vadd.f32 %v1875_v7, %v1231_v21  ;;  %v390_v5 = vld [vmem:[%s10079_s18 + $0x360] sm:$0xff] }
 0x1e8   : > { %v8937_v10 = vpop.eup %8936  ;;  %v1996_v59 = vadd.f32 %v1868_v26, %v1224_v49  ;;  %v1092_v31 = vmul.f32 %v10458_v27, %v595_v24  ;;  %1719 = vperm.xlu1 %8877, %v382_v61   ;;  %914 = vperm.xlu0 %8878, %v382_v61   ;;  %v1870_v29 = vmul.f32 %v10461_v54, %v1464_v19 }
 0x1e9   : > { %8252 = vmatmul.mubr.msk.f32.gmra.mrb[26].mxu0 %vm2227_vm0, %v8935_v2  ;;  %v8939_v18 = vpop.eup %8938  ;;  %v1877_v61 = vmul.f32 %v10461_v54, %v10228_v51  ;;  %v1235_v24 = vadd.f32 %v10467_v3, %v1101_v28 }
 0x1ea   : > { %8948 = vtanh.f32 %v1996_v59  ;;  %v1226_v8 = vadd.f32 %v10467_v3, %v1092_v31  ;;  %8254 = vmatprep.mubr.msk.f32.mxu0 %vm2227_vm0, %v8937_v10  ;;  %v1103_v10 = vmul.f32 %v10458_v27, %v10236_v6  ;;  %v392_v59 = vld [vmem:[%s10079_s18 + $0x370] sm:$0xff] }
 0x1eb   : > { %v1472_v63 = vpop.permute.xlu1 %1471  ;;  %v605_v38 = vpop.permute.xlu0 %604  ;;  %8950 = vtanh.f32 %v1997_v47  ;;  %v2005_v19 = vadd.f32 %v1877_v61, %v1233_v14 }
 0x1ec   : > { %v8941_v22 = vpop.eup %8940  ;;  %v1998_v0 = vadd.f32 %v1870_v29, %v1226_v8  ;;  %v1094_v34 = vmul.f32 %v10458_v27, %v605_v38  ;;  %1727 = vperm.xlu1 %8877, %v384_v53   ;;  %924 = vperm.xlu0 %8878, %v384_v53   ;;  %v1872_v32 = vmul.f32 %v10461_v54, %v1472_v63  ;;  %v13368_v63 = vld [vmem:[#allocation7_spill] sm:$0xff] }
 0x1ed   : > { %8255 = vmatmul.mubr.msk.f32.gmra.mrb[28].mxu0 %vm2227_vm0, %v8939_v18  ;;  %v8943_v52 = vpop.eup %8942  ;;  %v2007_v18 = vadd.f32 %v1879_v17, %v1235_v24  ;;  %v1237_v37 = vadd.f32 %v10467_v3, %v1103_v10  ;;  %v1105_v38 = vmul.f32 %v10458_v27, %v13368_v63  ;;  %v400_v10 = vld [vmem:[%s10079_s18 + $0x3b0] sm:$0xff] }
 0x1ee   : > { %8952 = vtanh.f32 %v1998_v0  ;;  %v1228_v58 = vadd.f32 %v10467_v3, %v1094_v34  ;;  %8257 = vmatprep.mubr.msk.f32.mxu0 %vm2227_vm0, %v8941_v22  ;;  %v394_v22 = vld [vmem:[%s10079_s18 + $0x380] sm:$0xff]  ;;  %v13376_v63 = vld [vmem:[#allocation15_spill] sm:$0xff] }
 0x1ef   : > { %v1480_v40 = vpop.permute.xlu1 %1479  ;;  %v615_v11 = vpop.permute.xlu0 %614  ;;  %8954 = vtanh.f32 %v1999_v9  ;;  %v13369_v9 = vld [vmem:[#allocation6_spill] sm:$0xff] }
 0x1f0   : > { %v8945_v15 = vpop.eup %8944  ;;  %v2000_v1 = vadd.f32 %v1872_v32, %v1228_v58  ;;  %v1096_v39 = vmul.f32 %v10458_v27, %v615_v11  ;;  %1735 = vperm.xlu1 %8877, %v386_v20   ;;  %934 = vperm.xlu0 %8878, %v386_v20   ;;  %v1874_v35 = vmul.f32 %v10461_v54, %v1480_v40  ;;  %v13370_v11 = vld [vmem:[#allocation9_spill] sm:$0xff] }
 0x1f1   : > { %8258 = vmatmul.mubr.msk.f32.gmra.mrb[30].mxu0 %vm2227_vm0, %v8943_v52  ;;  %v8947_v23 = vpop.eup %8946  ;;  %v1881_v46 = vmul.f32 %v10461_v54, %v13369_v9  ;;  %v1239_v40 = vadd.f32 %v10467_v3, %v1105_v38  ;;  %v1113_v38 = vmul.f32 %v10458_v27, %v13376_v63  ;;  %v13377_v9 = vld [vmem:[#allocation14_spill] sm:$0xff] }
 0x1f2   : > { %8956 = vtanh.f32 %v2000_v1  ;;  %v1230_v44 = vadd.f32 %v10467_v3, %v1096_v39  ;;  %8260 = vmatprep.mubr.msk.f32.mxu0 %vm2227_vm0, %v8945_v15  ;;  %v1107_v15 = vmul.f32 %v10458_v27, %v13370_v11  ;;  %v396_v1 = vld [vmem:[%s10079_s18 + $0x390] sm:$0xff]  ;;  %v13378_v11 = vld [vmem:[#allocation17_spill] sm:$0xff] }
 0x1f3   : > { %v1488_v16 = vpop.permute.xlu1 %1487  ;;  %v625_v12 = vpop.permute.xlu0 %624  ;;  %8958 = vtanh.f32 %v2001_v25  ;;  %v2009_v62 = vadd.f32 %v1881_v46, %v1237_v37  ;;  %v1889_v46 = vmul.f32 %v10461_v54, %v13377_v9 }
 0x1f4   : > { %v8949_v4 = vpop.eup %8948  ;;  %v2002_v55 = vadd.f32 %v1874_v35, %v1230_v44  ;;  %v1098_v48 = vmul.f32 %v10458_v27, %v625_v12  ;;  %1743 = vperm.xlu1 %8877, %v388_v56   ;;  %944 = vperm.xlu0 %8878, %v388_v56   ;;  %v1876_v42 = vmul.f32 %v10461_v54, %v1488_v16 }
 0x1f5   : > { %8261 = vmatmul.mubr.msk.f32.gmra.mrb[32].mxu0 %vm2227_vm0, %v8947_v23  ;;  %v8951_v30 = vpop.eup %8950  ;;  %v1883_v56 = vmul.f32 %v10461_v54, %v13371_v50  ;;  %v13379_v50 = vld [vmem:[#allocation16_spill] sm:$0xff] }
 0x1f6   : > { %8960 = vtanh.f32 %v2002_v55  ;;  %v1232_v36 = vadd.f32 %v10467_v3, %v1098_v48  ;;  %8263 = vmatprep.mubr.msk.f32.mxu0 %vm2227_vm0, %v8949_v4  ;;  %v1241_v4 = vadd.f32 %v10467_v3, %v1107_v15  ;;  %v13372_v55 = vld [vmem:[#allocation11_spill] sm:$0xff]  ;;  %v1115_v15 = vmul.f32 %v10458_v27, %v13378_v11 }
 0x1f7   : > { %v1496_v26 = vpop.permute.xlu1 %1495  ;;  %v635_v49 = vpop.permute.xlu0 %634  ;;  %8962 = vtanh.f32 %v2003_v45  ;;  %v2011_v12 = vadd.f32 %v1883_v56, %v1239_v40  ;;  %v1109_v48 = vmul.f32 %v10458_v27, %v13372_v55  ;;  %v398_v45 = vld [vmem:[%s10079_s18 + $0x3a0] sm:$0xff]  ;;  %v1891_v56 = vmul.f32 %v10461_v54, %v13379_v50  ;;  %v13380_v55 = vld [vmem:[#allocation19_spill] sm:$0xff] }
 0x1f8   : > { %v8953_v2 = vpop.eup %8952  ;;  %v2004_v33 = vadd.f32 %v1876_v42, %v1232_v36  ;;  %v1100_v57 = vmul.f32 %v10458_v27, %v635_v49  ;;  %1751 = vperm.xlu1 %8877, %v390_v5   ;;  %954 = vperm.xlu0 %8878, %v390_v5   ;;  %v1878_v51 = vmul.f32 %v10461_v54, %v1496_v26  ;;  %v13373_v42 = vld [vmem:[#allocation10_spill] sm:$0xff]  ;;  %v13387_v11 = vmov 0  }
 0x1f9   : > { %8264 = vmatmul.mubr.msk.f32.gmra.mrb[34].mxu0 %vm2227_vm0, %v8951_v30  ;;  %v8955_v47 = vpop.eup %8954  ;;  %v1885_v36 = vmul.f32 %v10461_v54, %v13373_v42  ;;  %v13381_v42 = vld [vmem:[#allocation18_spill] sm:$0xff] }
 0x1fa   : > { %8964 = vtanh.f32 %v2004_v33  ;;  %v1234_v31 = vadd.f32 %v10467_v3, %v1100_v57  ;;  %8266 = vmatprep.mubr.msk.f32.mxu0 %vm2227_vm0, %v8953_v2  ;;  %v1243_v57 = vadd.f32 %v10467_v3, %v1109_v48  ;;  %v1117_v48 = vmul.f32 %v10458_v27, %v13380_v55 }
 0x1fb   : > { %v1504_v41 = vpop.permute.xlu1 %1503  ;;  %v645_v53 = vpop.permute.xlu0 %644  ;;  %8966 = vtanh.f32 %v2005_v19  ;;  %v2013_v33 = vadd.f32 %v1885_v36, %v1241_v4  ;;  %v13374_v19 = vld [vmem:[#allocation13_spill] sm:$0xff]  ;;  %v1893_v36 = vmul.f32 %v10461_v54, %v13381_v42 }
 0x1fc   : > { %v8957_v29 = vpop.eup %8956  ;;  %v2006_v8 = vadd.f32 %v1878_v51, %v1234_v31  ;;  %v1102_v6 = vmul.f32 %v10458_v27, %v645_v53  ;;  %1759 = vperm.xlu1 %8877, %v392_v59   ;;  %964 = vperm.xlu0 %8878, %v392_v59   ;;  %v1880_v60 = vmul.f32 %v10461_v54, %v1504_v41 }
 0x1fd   : > { %8267 = vmatmul.mubr.msk.f32.gmra.mrb[36].mxu0 %vm2227_vm0, %v8955_v47  ;;  %v8959_v34 = vpop.eup %8958  ;;  %v1111_v24 = vmul.f32 %v10458_v27, %v13374_v19  ;;  %v13375_v47 = vld [vmem:[#allocation12_spill] sm:$0xff]  ;;  %v13382_v19 = vld [vmem:[#allocation21_spill] sm:$0xff] }
 0x1fe   : > { %8968 = vtanh.f32 %v2006_v8  ;;  %v1236_v0 = vadd.f32 %v10467_v3, %v1102_v6  ;;  %8269 = vmatprep.mubr.msk.f32.mxu0 %vm2227_vm0, %v8957_v29  ;;  %v1887_v17 = vmul.f32 %v10461_v54, %v13375_v47  ;;  %v13383_v47 = vld [vmem:[#allocation20_spill] sm:$0xff] }
 0x1ff   : > { %v1512_v13 = vpop.permute.xlu1 %1511  ;;  %v655_v20 = vpop.permute.xlu0 %654  ;;  %8970 = vtanh.f32 %v2007_v18  ;;  %v1245_v37 = vadd.f32 %v10467_v3, %v1111_v24  ;;  %v1119_v24 = vmul.f32 %v10458_v27, %v13382_v19  ;;  %v13392_v19 = vld [vmem:[#allocation28_spill] sm:$0xff] }
 0x200   : > { %v8961_v32 = vpop.eup %8960  ;;  %v2008_v58 = vadd.f32 %v1880_v60, %v1236_v0  ;;  %v1104_v52 = vmul.f32 %v10458_v27, %v655_v20  ;;  %1767 = vperm.xlu1 %8877, %v394_v22   ;;  %974 = vperm.xlu0 %8878, %v394_v22   ;;  %v1882_v39 = vmul.f32 %v10461_v54, %v1512_v13  ;;  %v402_v22 = vld [vmem:[%s10079_s18 + $0x3c0] sm:$0xff] }
 0x201   : > { %8270 = vmatmul.mubr.msk.f32.gmra.mrb[38].mxu0 %vm2227_vm0, %v8959_v34  ;;  %v8963_v21 = vpop.eup %8962  ;;  %v2015_v18 = vadd.f32 %v1887_v17, %v1243_v57  ;;  %v1895_v17 = vmul.f32 %v10461_v54, %v13383_v47 }
 0x202   : > { %8972 = vtanh.f32 %v2008_v58  ;;  %v1238_v25 = vadd.f32 %v10467_v3, %v1104_v52  ;;  %8272 = vmatprep.mubr.msk.f32.mxu0 %vm2227_vm0, %v8961_v32 }
 0x203   : > { %v1520_v35 = vpop.permute.xlu1 %1519  ;;  %v665_v44 = vpop.permute.xlu0 %664  ;;  %8974 = vtanh.f32 %v2009_v62  ;;  %v2017_v62 = vadd.f32 %v1889_v46, %v1245_v37 }
 0x204   : > { %v8965_v23 = vpop.eup %8964  ;;  %v2010_v7 = vadd.f32 %v1882_v39, %v1238_v25  ;;  %v1106_v16 = vmul.f32 %v10458_v27, %v665_v44  ;;  %1775 = vperm.xlu1 %8877, %v396_v1   ;;  %984 = vperm.xlu0 %8878, %v396_v1   ;;  %v1884_v14 = vmul.f32 %v10461_v54, %v1520_v35  ;;  %v404_v1 = vld [vmem:[%s10079_s18 + $0x3d0] sm:$0xff] }
 0x205   : > { %8273 = vmatmul.mubr.msk.f32.gmra.mrb[40].mxu0 %vm2227_vm0, %v8963_v21  ;;  %v8967_v5 = vpop.eup %8966 }
 0x206   : > { %8976 = vtanh.f32 %v2010_v7  ;;  %v1240_v28 = vadd.f32 %v10467_v3, %v1106_v16  ;;  %8275 = vmatprep.mubr.msk.f32.mxu0 %vm2227_vm0, %v8965_v23 }
 0x207   : > { %v1528_v30 = vpop.permute.xlu1 %1527  ;;  %v675_v61 = vpop.permute.xlu0 %674  ;;  %8978 = vtanh.f32 %v2011_v12 }
 0x208   : > { %v8969_v26 = vpop.eup %8968  ;;  %v2012_v49 = vadd.f32 %v1884_v14, %v1240_v28  ;;  %v1108_v2 = vmul.f32 %v10458_v27, %v675_v61  ;;  %1783 = vperm.xlu1 %8877, %v398_v45   ;;  %994 = vperm.xlu0 %8878, %v398_v45   ;;  %v1886_v59 = vmul.f32 %v10461_v54, %v1528_v30  ;;  %v406_v45 = vld [vmem:[%s10079_s18 + $0x3e0] sm:$0xff] }
 0x209   : > { %8276 = vmatmul.mubr.msk.f32.gmra.mrb[42].mxu0 %vm2227_vm0, %v8967_v5  ;;  %v8971_v31 = vpop.eup %8970 }
 0x20a   : > { %8980 = vtanh.f32 %v2012_v49  ;;  %v1242_v51 = vadd.f32 %v10467_v3, %v1108_v2  ;;  %8278 = vmatprep.mubr.msk.f32.mxu0 %vm2227_vm0, %v8969_v26 }
 0x20b   : > { %v1536_v41 = vpop.permute.xlu1 %1535  ;;  %v685_v53 = vpop.permute.xlu0 %684  ;;  %8982 = vtanh.f32 %v2013_v33 }
 0x20c   : > { %v8973_v29 = vpop.eup %8972  ;;  %v2014_v8 = vadd.f32 %v1886_v59, %v1242_v51  ;;  %v1110_v6 = vmul.f32 %v10458_v27, %v685_v53  ;;  %1791 = vperm.xlu1 %8877, %v400_v10   ;;  %1004 = vperm.xlu0 %8878, %v400_v10   ;;  %v1888_v60 = vmul.f32 %v10461_v54, %v1536_v41  ;;  %v408_v10 = vld [vmem:[%s10079_s18 + $0x3f0] sm:$0xff]  ;;  %s272_s18 = sand.u32 1, %s9967_s27  }
 0x20d   : > { %8279 = vmatmul.mubr.msk.f32.gmra.mrb[44].mxu0 %vm2227_vm0, %v8971_v31  ;;  %v8975_v34 = vpop.eup %8974  ;;  %v13384_v41 = vld [vmem:[#allocation23_spill] sm:$0xff]  ;;  %s7401_s23 = sshll.u32 %s272_s18, 10  ;;  %s13231_s20 = scalar_lea.sflag [#allocation4], %s272_s18 }
 0x20e   : > { %8984 = vtanh.f32 %v2014_v8  ;;  %v1244_v0 = vadd.f32 %v10467_v3, %v1110_v6  ;;  %8281 = vmatprep.mubr.msk.f32.mxu0 %vm2227_vm0, %v8973_v29  ;;  %v10782_v3 = vld [vmem:[%s13274_s2] ss:$0 sm:$0xff]  ;;  %v1121_v53 = vmul.f32 %v10458_v27, %v13384_v41  ;;  %s12554_s24 = scalar_lea.vmem [#allocation3], %s7401_s23  ;;  %s9919_s23 = scalar_lea.vmem %s9918_s22, 32768 }
 0x20f   : > { %v1544_v13 = vpop.permute.xlu1 %1543  ;;  %v695_v20 = vpop.permute.xlu0 %694  ;;  %8986 = vtanh.f32 %v2015_v18  ;;  %v1247_v40 = vadd.f32 %v10782_v3, %v1113_v38  ;;  %v1249_v4 = vadd.f32 %v10782_v3, %v1115_v15  ;;  %v1251_v57 = vadd.f32 %v10782_v3, %v1117_v48  ;;  %v13390_v48 = vld [vmem:[#allocation26_spill] sm:$0xff]  ;;  %s7335_s15 = sshll.u32 %s12554_s24, 4  ;;  %s13226_s15 = int_to_ptr.vmem [resolvable:$true] %s7335_s15 }
 0x210   : > { %v8977_v32 = vpop.eup %8976  ;;  %v2016_v58 = vadd.f32 %v1888_v60, %v1244_v0  ;;  %v1112_v52 = vmul.f32 %v10458_v27, %v695_v20  ;;  %1799 = vperm.xlu1 %8877, %v402_v22   ;;  %1014 = vperm.xlu0 %8878, %v402_v22   ;;  %v1890_v39 = vmul.f32 %v10461_v54, %v1544_v13  ;;  %v13386_v13 = vld [vmem:[#allocation25_spill] sm:$0xff]  ;;  %s9913_s21 = scalar_lea.vmem %s13226_s15, 16384  ;;  %p9920_p0 = scmp.lt.s32.totalorder %s13226_s15, %s9918_s22 }
 0x211   : > { %8282 = vmatmul.mubr.msk.f32.gmra.mrb[46].mxu0 %vm2227_vm0, %v8975_v34  ;;  %v8979_v21 = vpop.eup %8978  ;;  %v2019_v12 = vadd.f32 %v1891_v56, %v1247_v40  ;;  %v2021_v33 = vadd.f32 %v1893_v36, %v1249_v4  ;;  %v2023_v63 = vadd.f32 %v1895_v17, %v1251_v57  ;;  %v1253_v38 = vadd.f32 %v10782_v3, %v1119_v24  ;;  %v13385_v34 = vld [vmem:[#allocation22_spill] sm:$0xff]  ;;  %v13393_v17 = vld [vmem:[#allocation31_spill] sm:$0xff]  ;;  %p9914_p11 = scmp.ne.s32.totalorder %s13226_s15, %s9913_s21  ;;  %p9921_p1 = scmp.lt.s32.totalorder %s9919_s23, %s9913_s21 }
 0x212   : > { %8988 = vtanh.f32 %v2016_v58  ;;  %v1246_v25 = vadd.f32 %v10782_v3, %v1112_v52  ;;  %8284 = vmatprep.mubr.msk.f32.mxu0 %vm2227_vm0, %v8977_v32  ;;  %v1897_v9 = vmul.f32 %v10461_v54, %v13385_v34  ;;  %v1255_v46 = vadd.f32 %v10782_v3, %v1121_v53 }
 0x213   : > { %v1552_v35 = vpop.permute.xlu1 %1551  ;;  %v705_v44 = vpop.permute.xlu0 %704  ;;  %8990 = vtanh.f32 %v2017_v62  ;;  %v1123_v20 = vmul.f32 %v10458_v27, %v13386_v13  ;;  %v1903_v24 = vmul.f32 %v10461_v54, %v13392_v19  ;;  %v1129_v41 = vmul.f32 %v10458_v27, %v13393_v17  ;;  %v13395_v13 = vld [vmem:[#allocation33_spill] sm:$0xff]  ;;  %p9915_p12 = pnand %p9914_p11, %p10063_p5  ;;  %p9922_p2 = por %p9921_p1, %p9920_p0 }
 0x214   : > { %v8981_v23 = vpop.eup %8980  ;;  %v2018_v7 = vadd.f32 %v1890_v39, %v1246_v25  ;;  %v1114_v16 = vmul.f32 %v10458_v27, %v705_v44  ;;  %1807 = vperm.xlu1 %8877, %v404_v1   ;;  %1024 = vperm.xlu0 %8878, %v404_v1   ;;  %v1892_v14 = vmul.f32 %v10461_v54, %v1552_v35  ;;  %v13388_v1 = vld [vmem:[#allocation24_spill] sm:$0xff]  ;;  %v13389_v44 = vld [vmem:[#allocation27_spill] sm:$0xff] }
 0x215   : > { %8285 = vmatmul.mubr.msk.f32.gmra.mrb[48].mxu0 %vm2227_vm0, %v8979_v21  ;;  %v8983_v5 = vpop.eup %8982  ;;  %v2025_v15 = vadd.f32 %v1897_v9, %v1253_v38  ;;  %v1899_v39 = vmul.f32 %v10461_v54, %v13388_v1  ;;  %v1257_v35 = vadd.f32 %v10782_v3, %v1123_v20  ;;  %v7536_v38 = vld [vmem:[%s13275_s3 + $0x30] sm:$0xff]  ;;  %v1131_v20 = vmul.f32 %v10458_v27, %v13395_v13  ;;  %p9916_p13 = pneg %p9915_p12 }
 0x216   : > { %8992 = vtanh.f32 %v2018_v7  ;;  %v1248_v28 = vadd.f32 %v10782_v3, %v1114_v16  ;;  %8287 = vmatprep.mubr.msk.f32.mxu0 %vm2227_vm0, %v8981_v23  ;;  %v1125_v23 = vmul.f32 %v10458_v27, %v13389_v44  ;;  %v13396_v1 = vld [vmem:[#allocation32_spill] sm:$0xff] }
 0x217   : > { %v1560_v30 = vpop.permute.xlu1 %1559  ;;  %v715_v61 = vpop.permute.xlu0 %714  ;;  %8994 = vtanh.f32 %v2019_v12  ;;  %v2027_v56 = vadd.f32 %v1899_v39, %v1255_v46  ;;  %v1263_v46 = vadd.f32 %v10782_v3, %v1129_v41  ;;  %v1907_v39 = vmul.f32 %v10461_v54, %v13396_v1  ;;  %p9923_p3 = pnand %p9922_p2, %p9916_p13 }
 0x218   : > { %v8985_v26 = vpop.eup %8984  ;;  %v2020_v49 = vadd.f32 %v1892_v14, %v1248_v28  ;;  %v1116_v2 = vmul.f32 %v10458_v27, %v715_v61  ;;  %1815 = vperm.xlu1 %8877, %v406_v45   ;;  %1034 = vperm.xlu0 %8878, %v406_v45   ;;  %v1894_v59 = vmul.f32 %v10461_v54, %v1560_v30  ;;  %v13391_v30 = vld [vmem:[#allocation29_spill] sm:$0xff] }
 0x219   : > { %8288 = vmatmul.mubr.msk.f32.gmra.mrb[50].mxu0 %vm2227_vm0, %v8983_v5  ;;  %v8987_v31 = vpop.eup %8986  ;;  %v1901_v45 = vmul.f32 %v10461_v54, %v13390_v48  ;;  %v1259_v36 = vadd.f32 %v10782_v3, %v1125_v23  ;;  %v1127_v61 = vmul.f32 %v10458_v27, %v13391_v30  ;;  %v13398_v48 = vld [vmem:[#allocation34_spill] sm:$0xff] }
 0x21a   : > { %8996 = vtanh.f32 %v2020_v49  ;;  %v1250_v51 = vadd.f32 %v10782_v3, %v1116_v2  ;;  %8290 = vmatprep.mubr.msk.f32.mxu0 %vm2227_vm0, %v8985_v26 }
 0x21b   : > { %v1568_v29 = vpop.permute.xlu1 %1567  ;;  %v725_v8 = vpop.permute.xlu0 %724  ;;  %8998 = vtanh.f32 %v2021_v33  ;;  %v2029_v42 = vadd.f32 %v1901_v45, %v1257_v35  ;;  %v1261_v47 = vadd.f32 %v10782_v3, %v1127_v61  ;;  %v13397_v35 = vld [vmem:[#allocation35_spill] sm:$0xff]  ;;  %v1909_v45 = vmul.f32 %v10461_v54, %v13398_v48 }
 0x21c   : > { %v8989_v6 = vpop.eup %8988  ;;  %v2022_v18 = vadd.f32 %v1894_v59, %v1250_v51  ;;  %v1118_v37 = vmul.f32 %v10458_v27, %v725_v8  ;;  %1823 = vperm.xlu1 %8877, %v408_v10   ;;  %1044 = vperm.xlu0 %8878, %v408_v10   ;;  %v1896_v22 = vmul.f32 %v10461_v54, %v1568_v29 }
 0x21d   : > { %8291 = vmatmul.mubr.msk.f32.gmra.mrb[52].mxu0 %vm2227_vm0, %v8987_v31  ;;  %v8991_v0 = vpop.eup %8990  ;;  %v2031_v31 = vadd.f32 %v1903_v24, %v1259_v36  ;;  %v1133_v44 = vmul.f32 %v10458_v27, %v13397_v35 }
 0x21e   : > { %9000 = vtanh.f32 %v2022_v18  ;;  %v1252_v60 = vadd.f32 %v10782_v3, %v1118_v37  ;;  %8293 = vmatprep.mubr.msk.f32.mxu0 %vm2227_vm0, %v8989_v6  ;;  %v13394_v37 = vld [vmem:[#allocation30_spill] sm:$0xff] }
 0x21f   : > { %v1576_v32 = vpop.permute.xlu1 %1575  ;;  %v735_v58 = vpop.permute.xlu0 %734  ;;  %9002 = vtanh.f32 %v2023_v63  ;;  %v1905_v63 = vmul.f32 %v10461_v54, %v13394_v37 }
 0x220   : > { %v8993_v52 = vpop.eup %8992  ;;  %v2024_v62 = vadd.f32 %v1896_v22, %v1252_v60  ;;  %v1120_v40 = vmul.f32 %v10458_v27, %v735_v58  ;;  %8879 = vset.pattern.permute.xlu1 %v13387_v11  ;;  %v1898_v25 = vmul.f32 %v10461_v54, %v1576_v32  ;;  %v7537_v22 = vld [vmem:[%s13275_s3 + $0x38] sm:$0xff] }
 0x221   : > { %8294 = vmatmul.mubr.msk.f32.gmra.mrb[54].mxu0 %vm2227_vm0, %v8991_v0  ;;  %v8995_v50 = vpop.eup %8994  ;;  %v2033_v9 = vadd.f32 %v1905_v63, %v1261_v47  ;;  %v8816_v11 = vpack.c.bf16 %v7537_v22, %v7536_v38 }
 0x222   : > { %9004 = vtanh.f32 %v2024_v62  ;;  %v1254_v21 = vadd.f32 %v10782_v3, %v1120_v40  ;;  %8296 = vmatprep.mubr.msk.f32.mxu0 %vm2227_vm0, %v8993_v52 }
 0x223   : > { %v1584_v7 = vpop.permute.xlu1 %1583  ;;  %v745_v16 = vpop.permute.xlu0 %744  ;;  %9006 = vtanh.f32 %v2025_v15 }
 0x224   : > { %v8997_v12 = vpop.eup %8996  ;;  %v2026_v4 = vadd.f32 %v1898_v25, %v1254_v21  ;;  %v1122_v55 = vmul.f32 %v10458_v27, %v745_v16  ;;  %v1900_v14 = vmul.f32 %v10461_v54, %v1584_v7 }
 0x225   : > { %8297 = vmatmul.mubr.msk.f32.gmra.mrb[56].mxu0 %vm2227_vm0, %v8995_v50  ;;  %v8999_v5 = vpop.eup %8998  ;;  %v2035_v50 = vadd.f32 %v1907_v39, %v1263_v46  ;;  %v13405_v39 = vld [vmem:[#allocation43_spill] sm:$0xff] }
 0x226   : > { %9008 = vtanh.f32 %v2026_v4  ;;  %v1256_v28 = vadd.f32 %v10782_v3, %v1122_v55  ;;  %8299 = vmatprep.mubr.msk.f32.mxu0 %vm2227_vm0, %v8997_v12 }
 0x227   : > { %9010 = vtanh.f32 %v2027_v56  ;;  %v1592_v26 = vpop.permute.xlu1 %1591  ;;  %v755_v49 = vpop.permute.xlu0 %754  ;;  %v1265_v56 = vadd.f32 %v10782_v3, %v1131_v20 }
 0x228   : > { %v9001_v2 = vpop.eup %9000  ;;  %v2028_v33 = vadd.f32 %v1900_v14, %v1256_v28  ;;  %v1124_v57 = vmul.f32 %v10458_v27, %v755_v49  ;;  %v1902_v10 = vmul.f32 %v10461_v54, %v1592_v26 }
 0x229   : > { %8300 = vmatmul.mubr.msk.f32.gmra.mrb[58].mxu0 %vm2227_vm0, %v8999_v5  ;;  %v9003_v51 = vpop.eup %9002  ;;  %v1267_v5 = vadd.f32 %v10782_v3, %v1133_v44 }
 0x22a   : > { %9012 = vtanh.f32 %v2028_v33  ;;  %v1258_v59 = vadd.f32 %v10782_v3, %v1124_v57  ;;  %8302 = vmatprep.mubr.msk.f32.mxu0 %vm2227_vm0, %v9001_v2  ;;  %v13400_v57 = vld [vmem:[#allocation36_spill] sm:$0xff] }
 0x22b   : > { %9014 = vtanh.f32 %v2029_v42  ;;  %v1600_v53 = vpop.permute.xlu1 %1599  ;;  %v765_v29 = vpop.permute.xlu0 %764  ;;  %v13399_v42 = vld [vmem:[#allocation37_spill] sm:$0xff]  ;;  %v1911_v19 = vmul.f32 %v10461_v54, %v13400_v57 }
 0x22c   : > { %v9005_v8 = vpop.eup %9004  ;;  %v2030_v6 = vadd.f32 %v1902_v10, %v1258_v59  ;;  %v1126_v18 = vmul.f32 %v10458_v27, %v765_v29  ;;  %v1904_v60 = vmul.f32 %v10461_v54, %v1600_v53  ;;  %v1135_v36 = vmul.f32 %v10458_v27, %v13399_v42 }
 0x22d   : > { %8303 = vmatmul.mubr.msk.f32.gmra.mrb[60].mxu0 %vm2227_vm0, %v9003_v51  ;;  %v9007_v34 = vpop.eup %9006  ;;  %v2039_v59 = vadd.f32 %v1911_v19, %v1267_v5  ;;  %v13409_v19 = vld [vmem:[#allocation47_spill] sm:$0xff] }
 0x22e   : > { %9016 = vtanh.f32 %v2030_v6  ;;  %v1260_v0 = vadd.f32 %v10782_v3, %v1126_v18  ;;  %8305 = vmatprep.mubr.msk.f32.mxu0 %vm2227_vm0, %v9005_v8  ;;  %v1269_v51 = vadd.f32 %v10782_v3, %v1135_v36  ;;  %v13402_v18 = vld [vmem:[#allocation38_spill] sm:$0xff] }
 0x22f   : > { %9018 = vtanh.f32 %v2031_v31  ;;  %v1608_v32 = vpop.permute.xlu1 %1607  ;;  %v775_v58 = vpop.permute.xlu0 %774  ;;  %v13401_v31 = vld [vmem:[#allocation39_spill] sm:$0xff]  ;;  %v1913_v37 = vmul.f32 %v10461_v54, %v13402_v18 }
 0x230   : > { %v9009_v52 = vpop.eup %9008  ;;  %v2032_v62 = vadd.f32 %v1904_v60, %v1260_v0  ;;  %v1128_v40 = vmul.f32 %v10458_v27, %v775_v58  ;;  %v1906_v25 = vmul.f32 %v10461_v54, %v1608_v32  ;;  %v1137_v47 = vmul.f32 %v10458_v27, %v13401_v31  ;;  %v13403_v0 = vld [vmem:[#allocation41_spill] sm:$0xff] }
 0x231   : > { %v9011_v15 = vpop.eup %9010  ;;  %8306 = vmatmul.mubr.msk.f32.gmra.mrb[62].mxu0 %vm2227_vm0, %v9007_v34  ;;  %8308 = vmatprep.mubr.msk.f32.mxu1 %vm2227_vm0, %v9009_v52  ;;  %v2041_v22 = vadd.f32 %v1913_v37, %v1269_v51  ;;  %v1139_v34 = vmul.f32 %v10458_v27, %v13403_v0  ;;  %v13404_v52 = vld [vmem:[#allocation40_spill] sm:$0xff]  ;;  %v13411_v37 = vld [vmem:[#allocation49_spill] sm:$0xff] }
 0x232   : > { %9020 = vtanh.f32 %v2032_v62  ;;  %v1262_v21 = vadd.f32 %v10782_v3, %v1128_v40  ;;  %8309 = vmatmul.mubr.msk.f32.vlgmr.msra.gmra.mrb[0].mxu1 %vm2227_vm0, %v9011_v15  ;;  %v1271_v60 = vadd.f32 %v10782_v3, %v1137_v47  ;;  %v1915_v62 = vmul.f32 %v10461_v54, %v13404_v52 }
 0x233   : > { %9022 = vtanh.f32 %v2033_v9  ;;  %8815 = vmatpush3.bf16.msra.mxu1 %v10533_v43  ;;  %v1616_v23 = vpop.permute.xlu1 %1615  ;;  %v785_v7 = vpop.permute.xlu0 %784  ;;  %v2037_v43 = vadd.f32 %v1909_v45, %v1265_v56  ;;  %v1273_v1 = vadd.f32 %v10782_v3, %v1139_v34  ;;  %v13407_v45 = vld [vmem:[#allocation45_spill] sm:$0xff] }
 0x234   : > { %v9013_v16 = vpop.eup %9012  ;;  %v2034_v12 = vadd.f32 %v1906_v25, %v1262_v21  ;;  %v1130_v4 = vmul.f32 %v10458_v27, %v785_v7  ;;  %8817 = vmatprep.subr.bf16.mxu1 %v8816_v11  ;;  %v1908_v14 = vmul.f32 %v10461_v54, %v1616_v23  ;;  %v2043_v15 = vadd.f32 %v1915_v62, %v1271_v60  ;;  %v13406_v7 = vld [vmem:[#allocation42_spill] sm:$0xff]  ;;  %v13413_v62 = vld [vmem:[#allocation51_spill] sm:$0xff] }
 0x235   : > { %v9015_v55 = vpop.eup %9014  ;;  %8311 = vmatprep.mubr.msk.f32.mxu1 %vm2227_vm0, %v9013_v16  ;;  %v1141_v25 = vmul.f32 %v10458_v27, %v13405_v39  ;;  %v1917_v16 = vmul.f32 %v10461_v54, %v13406_v7 }
 0x236   : > { %9024 = vtanh.f32 %v2034_v12  ;;  %v1264_v28 = vadd.f32 %v10782_v3, %v1130_v4  ;;  %8312 = vmatmul.mubr.msk.f32.gmra.mrb[2].mxu1 %vm2227_vm0, %v9015_v55 }
 0x237   : > { %9026 = vtanh.f32 %v2035_v50  ;;  %v1624_v30 = vpop.permute.xlu1 %1623  ;;  %v795_v61 = vpop.permute.xlu0 %794  ;;  %8819 = vmatpush3.bf16.msra.mxu1 %v8816_v11  ;;  %v2045_v55 = vadd.f32 %v1917_v16, %v1273_v1  ;;  %v1275_v48 = vadd.f32 %v10782_v3, %v1141_v25  ;;  %v13415_v16 = vld [vmem:[#allocation53_spill] sm:$0xff] }
 0x238   : > { %v9017_v26 = vpop.eup %9016  ;;  %v2036_v49 = vadd.f32 %v1908_v14, %v1264_v28  ;;  %v1132_v2 = vmul.f32 %v10458_v27, %v795_v61  ;;  %v1910_v24 = vmul.f32 %v10461_v54, %v1624_v30  ;;  %v1143_v14 = vmul.f32 %v10458_v27, %v13407_v45  ;;  %v13408_v61 = vld [vmem:[#allocation44_spill] sm:$0xff] }
 0x239   : > { %v9019_v33 = vpop.eup %9018  ;;  %8314 = vmatprep.mubr.msk.f32.mxu1 %vm2227_vm0, %v9017_v26  ;;  %v1919_v26 = vmul.f32 %v10461_v54, %v13408_v61 }
 0x23a   : > { %9028 = vtanh.f32 %v2036_v49  ;;  %v1266_v10 = vadd.f32 %v10782_v3, %v1132_v2  ;;  %8315 = vmatmul.mubr.msk.f32.gmra.mrb[4].mxu1 %vm2227_vm0, %v9019_v33  ;;  %v1277_v57 = vadd.f32 %v10782_v3, %v1143_v14 }
 0x23b   : > { %9030 = vtanh.f32 %v2037_v43  ;;  %v1632_v17 = vpop.permute.xlu1 %1631  ;;  %v805_v41 = vpop.permute.xlu0 %804  ;;  %v2047_v33 = vadd.f32 %v1919_v26, %v1275_v48  ;;  %v13417_v26 = vld [vmem:[#allocation55_spill] sm:$0xff] }
 0x23c   : > { %v9021_v53 = vpop.eup %9020  ;;  %v2038_v29 = vadd.f32 %v1910_v24, %v1266_v10  ;;  %v1134_v8 = vmul.f32 %v10458_v27, %v805_v41  ;;  %v1912_v63 = vmul.f32 %v10461_v54, %v1632_v17  ;;  %v1145_v24 = vmul.f32 %v10458_v27, %v13409_v19  ;;  %v13410_v41 = vld [vmem:[#allocation46_spill] sm:$0xff] }
 0x23d   : > { %v9023_v6 = vpop.eup %9022  ;;  %8317 = vmatprep.mubr.msk.f32.mxu1 %vm2227_vm0, %v9021_v53  ;;  %v1921_v53 = vmul.f32 %v10461_v54, %v13410_v41 }
 0x23e   : > { %9032 = vtanh.f32 %v2038_v29  ;;  %v1268_v38 = vadd.f32 %v10782_v3, %v1134_v8  ;;  %8318 = vmatmul.mubr.msk.f32.gmra.mrb[6].mxu1 %vm2227_vm0, %v9023_v6  ;;  %v1279_v18 = vadd.f32 %v10782_v3, %v1145_v24 }
 0x23f   : > { %9034 = vtanh.f32 %v2039_v59  ;;  %v1640_v9 = vpop.permute.xlu1 %1639  ;;  %v815_v46 = vpop.permute.xlu0 %814  ;;  %v2049_v6 = vadd.f32 %v1921_v53, %v1277_v57  ;;  %v13419_v53 = vld [vmem:[#allocation57_spill] sm:$0xff] }
 0x240   : > { %v9025_v13 = vpop.eup %9024  ;;  %v2040_v20 = vadd.f32 %v1912_v63, %v1268_v38  ;;  %v1136_v32 = vmul.f32 %v10458_v27, %v815_v46  ;;  %v1914_v40 = vmul.f32 %v10461_v54, %v1640_v9  ;;  %v1147_v63 = vmul.f32 %v10458_v27, %v13411_v37  ;;  %v13412_v46 = vld [vmem:[#allocation48_spill] sm:$0xff] }
 0x241   : > { %v9027_v58 = vpop.eup %9026  ;;  %8320 = vmatprep.mubr.msk.f32.mxu1 %vm2227_vm0, %v9025_v13  ;;  %v1923_v13 = vmul.f32 %v10461_v54, %v13412_v46 }
 0x242   : > { %9036 = vtanh.f32 %v2040_v20  ;;  %v1270_v11 = vadd.f32 %v10782_v3, %v1136_v32  ;;  %8321 = vmatmul.mubr.msk.f32.gmra.mrb[8].mxu1 %vm2227_vm0, %v9027_v58  ;;  %v1281_v52 = vadd.f32 %v10782_v3, %v1147_v63 }
 0x243   : > { %9038 = vtanh.f32 %v2041_v22  ;;  %v1648_v21 = vpop.permute.xlu1 %1647  ;;  %v825_v50 = vpop.permute.xlu0 %824  ;;  %v2051_v58 = vadd.f32 %v1923_v13, %v1279_v18  ;;  %v13421_v13 = vld [vmem:[#allocation59_spill] sm:$0xff] }
 0x244   : > { %v9029_v56 = vpop.eup %9028  ;;  %v2042_v35 = vadd.f32 %v1914_v40, %v1270_v11  ;;  %v1138_v44 = vmul.f32 %v10458_v27, %v825_v50  ;;  %v1916_v12 = vmul.f32 %v10461_v54, %v1648_v21  ;;  %v1149_v40 = vmul.f32 %v10458_v27, %v13413_v62  ;;  %v13414_v50 = vld [vmem:[#allocation50_spill] sm:$0xff] }
 0x245   : > { %v9031_v23 = vpop.eup %9030  ;;  %8323 = vmatprep.mubr.msk.f32.mxu1 %vm2227_vm0, %v9029_v56  ;;  %v1925_v56 = vmul.f32 %v10461_v54, %v13414_v50 }
 0x246   : > { %9040 = vtanh.f32 %v2042_v35  ;;  %v1272_v4 = vadd.f32 %v10782_v3, %v1138_v44  ;;  %8324 = vmatmul.mubr.msk.f32.gmra.mrb[10].mxu1 %vm2227_vm0, %v9031_v23  ;;  %v1283_v7 = vadd.f32 %v10782_v3, %v1149_v40 }
 0x247   : > { %9042 = vtanh.f32 %v2043_v15  ;;  %v1656_v28 = vpop.permute.xlu1 %1655  ;;  %v835_v43 = vpop.permute.xlu0 %834  ;;  %v2053_v23 = vadd.f32 %v1925_v56, %v1281_v52  ;;  %v13423_v56 = vld [vmem:[#allocation61_spill] sm:$0xff] }
 0x248   : > { %v9033_v5 = vpop.eup %9032  ;;  %v2044_v42 = vadd.f32 %v1916_v12, %v1272_v4  ;;  %v1140_v36 = vmul.f32 %v10458_v27, %v835_v43  ;;  %v1918_v49 = vmul.f32 %v10461_v54, %v1656_v28  ;;  %v1151_v12 = vmul.f32 %v10458_v27, %v13415_v16  ;;  %v13416_v43 = vld [vmem:[#allocation52_spill] sm:$0xff] }
 0x249   : > { %v9035_v30 = vpop.eup %9034  ;;  %8326 = vmatprep.mubr.msk.f32.mxu1 %vm2227_vm0, %v9033_v5  ;;  %v1927_v5 = vmul.f32 %v10461_v54, %v13416_v43 }
 0x24a   : > { %9044 = vtanh.f32 %v2044_v42  ;;  %v1274_v2 = vadd.f32 %v10782_v3, %v1140_v36  ;;  %8327 = vmatmul.mubr.msk.f32.gmra.mrb[12].mxu1 %vm2227_vm0, %v9035_v30  ;;  %v1285_v61 = vadd.f32 %v10782_v3, %v1151_v12 }
 0x24b   : > { %9046 = vtanh.f32 %v2045_v55  ;;  %v1664_v10 = vpop.permute.xlu1 %1663  ;;  %v845_v59 = vpop.permute.xlu0 %844  ;;  %v2055_v30 = vadd.f32 %v1927_v5, %v1283_v7  ;;  %v13425_v5 = vld [vmem:[#allocation63_spill] sm:$0xff] }
 0x24c   : > { %v9037_v51 = vpop.eup %9036  ;;  %v2046_v31 = vadd.f32 %v1918_v49, %v1274_v2  ;;  %v1142_v47 = vmul.f32 %v10458_v27, %v845_v59  ;;  %v1920_v29 = vmul.f32 %v10461_v54, %v1664_v10  ;;  %v1153_v49 = vmul.f32 %v10458_v27, %v13417_v26  ;;  %v13418_v59 = vld [vmem:[#allocation54_spill] sm:$0xff] }
 0x24d   : > { %v9039_v17 = vpop.eup %9038  ;;  %8329 = vmatprep.mubr.msk.f32.mxu1 %vm2227_vm0, %v9037_v51  ;;  %v1929_v51 = vmul.f32 %v10461_v54, %v13418_v59 }
 0x24e   : > { %9048 = vtanh.f32 %v2046_v31  ;;  %v1276_v8 = vadd.f32 %v10782_v3, %v1142_v47  ;;  %8330 = vmatmul.mubr.msk.f32.gmra.mrb[14].mxu1 %vm2227_vm0, %v9039_v17  ;;  %v1287_v41 = vadd.f32 %v10782_v3, %v1153_v49 }
 0x24f   : > { %9050 = vtanh.f32 %v2047_v33  ;;  %v1672_v38 = vpop.permute.xlu1 %1671  ;;  %v855_v22 = vpop.permute.xlu0 %854  ;;  %v2057_v17 = vadd.f32 %v1929_v51, %v1285_v61  ;;  %v13427_v51 = vld [vmem:[#allocation65_spill] sm:$0xff] }
 0x250   : > { %v9041_v60 = vpop.eup %9040  ;;  %v2048_v0 = vadd.f32 %v1920_v29, %v1276_v8  ;;  %v1144_v34 = vmul.f32 %v10458_v27, %v855_v22  ;;  %v1922_v20 = vmul.f32 %v10461_v54, %v1672_v38  ;;  %v1155_v29 = vmul.f32 %v10458_v27, %v13419_v53  ;;  %v13420_v22 = vld [vmem:[#allocation56_spill] sm:$0xff] }
 0x251   : > { %v9043_v9 = vpop.eup %9042  ;;  %8332 = vmatprep.mubr.msk.f32.mxu1 %vm2227_vm0, %v9041_v60  ;;  %v1931_v60 = vmul.f32 %v10461_v54, %v13420_v22 }
 0x252   : > { %9052 = vtanh.f32 %v2048_v0  ;;  %v1278_v32 = vadd.f32 %v10782_v3, %v1144_v34  ;;  %8333 = vmatmul.mubr.msk.f32.gmra.mrb[16].mxu1 %vm2227_vm0, %v9043_v9  ;;  %v1289_v46 = vadd.f32 %v10782_v3, %v1155_v29 }
 0x253   : > { %9054 = vtanh.f32 %v2049_v6  ;;  %v1680_v11 = vpop.permute.xlu1 %1679  ;;  %v865_v15 = vpop.permute.xlu0 %864  ;;  %v2059_v9 = vadd.f32 %v1931_v60, %v1287_v41  ;;  %v13429_v60 = vld [vmem:[#allocation67_spill] sm:$0xff] }
 0x254   : > { %v9045_v1 = vpop.eup %9044  ;;  %v2050_v39 = vadd.f32 %v1922_v20, %v1278_v32  ;;  %v1146_v25 = vmul.f32 %v10458_v27, %v865_v15  ;;  %v1924_v35 = vmul.f32 %v10461_v54, %v1680_v11  ;;  %v1157_v20 = vmul.f32 %v10458_v27, %v13421_v13  ;;  %v13422_v15 = vld [vmem:[#allocation58_spill] sm:$0xff] }
 0x255   : > { %v9047_v21 = vpop.eup %9046  ;;  %8335 = vmatprep.mubr.msk.f32.mxu1 %vm2227_vm0, %v9045_v1  ;;  %v1933_v1 = vmul.f32 %v10461_v54, %v13422_v15 }
 0x256   : > { %9056 = vtanh.f32 %v2050_v39  ;;  %v1280_v44 = vadd.f32 %v10782_v3, %v1146_v25  ;;  %8336 = vmatmul.mubr.msk.f32.gmra.mrb[18].mxu1 %vm2227_vm0, %v9047_v21  ;;  %v1291_v50 = vadd.f32 %v10782_v3, %v1157_v20 }
 0x257   : > { %9058 = vtanh.f32 %v2051_v58  ;;  %v1688_v4 = vpop.permute.xlu1 %1687  ;;  %v875_v55 = vpop.permute.xlu0 %874  ;;  %v2061_v21 = vadd.f32 %v1933_v1, %v1289_v46  ;;  %v13431_v1 = vld [vmem:[#allocation69_spill] sm:$0xff] }
 0x258   : > { %v9049_v48 = vpop.eup %9048  ;;  %v2052_v45 = vadd.f32 %v1924_v35, %v1280_v44  ;;  %v1148_v14 = vmul.f32 %v10458_v27, %v875_v55  ;;  %v1926_v42 = vmul.f32 %v10461_v54, %v1688_v4  ;;  %v1159_v35 = vmul.f32 %v10458_v27, %v13423_v56  ;;  %v13424_v55 = vld [vmem:[#allocation60_spill] sm:$0xff] }
 0x259   : > { %v9051_v28 = vpop.eup %9050  ;;  %8338 = vmatprep.mubr.msk.f32.mxu1 %vm2227_vm0, %v9049_v48  ;;  %v1935_v48 = vmul.f32 %v10461_v54, %v13424_v55 }
 0x25a   : > { %9060 = vtanh.f32 %v2052_v45  ;;  %v1282_v36 = vadd.f32 %v10782_v3, %v1148_v14  ;;  %8339 = vmatmul.mubr.msk.f32.gmra.mrb[20].mxu1 %vm2227_vm0, %v9051_v28  ;;  %v1293_v43 = vadd.f32 %v10782_v3, %v1159_v35 }
 0x25b   : > { %9062 = vtanh.f32 %v2053_v23  ;;  %v1696_v2 = vpop.permute.xlu1 %1695  ;;  %v885_v33 = vpop.permute.xlu0 %884  ;;  %v2063_v28 = vadd.f32 %v1935_v48, %v1291_v50  ;;  %v13433_v48 = vld [vmem:[#allocation71_spill] sm:$0xff] }
 0x25c   : > { %v9053_v57 = vpop.eup %9052  ;;  %v2054_v19 = vadd.f32 %v1926_v42, %v1282_v36  ;;  %v1150_v24 = vmul.f32 %v10458_v27, %v885_v33  ;;  %v1928_v31 = vmul.f32 %v10461_v54, %v1696_v2  ;;  %v1161_v42 = vmul.f32 %v10458_v27, %v13425_v5  ;;  %v13426_v33 = vld [vmem:[#allocation62_spill] sm:$0xff] }
 0x25d   : > { %v9055_v10 = vpop.eup %9054  ;;  %8341 = vmatprep.mubr.msk.f32.mxu1 %vm2227_vm0, %v9053_v57  ;;  %v1937_v57 = vmul.f32 %v10461_v54, %v13426_v33 }
 0x25e   : > { %9064 = vtanh.f32 %v2054_v19  ;;  %v1284_v47 = vadd.f32 %v10782_v3, %v1150_v24  ;;  %8342 = vmatmul.mubr.msk.f32.gmra.mrb[22].mxu1 %vm2227_vm0, %v9055_v10  ;;  %v1295_v59 = vadd.f32 %v10782_v3, %v1161_v42 }
 0x25f   : > { %9066 = vtanh.f32 %v2055_v30  ;;  %v1704_v8 = vpop.permute.xlu1 %1703  ;;  %v895_v6 = vpop.permute.xlu0 %894  ;;  %v2065_v10 = vadd.f32 %v1937_v57, %v1293_v43  ;;  %v13435_v57 = vld [vmem:[#allocation73_spill] sm:$0xff] }
 0x260   : > { %v9057_v18 = vpop.eup %9056  ;;  %v2056_v37 = vadd.f32 %v1928_v31, %v1284_v47  ;;  %v1152_v63 = vmul.f32 %v10458_v27, %v895_v6  ;;  %v1930_v0 = vmul.f32 %v10461_v54, %v1704_v8  ;;  %v1163_v31 = vmul.f32 %v10458_v27, %v13427_v51  ;;  %v13428_v6 = vld [vmem:[#allocation64_spill] sm:$0xff] }
 0x261   : > { %v9059_v38 = vpop.eup %9058  ;;  %8344 = vmatprep.mubr.msk.f32.mxu1 %vm2227_vm0, %v9057_v18  ;;  %v1939_v18 = vmul.f32 %v10461_v54, %v13428_v6 }
 0x262   : > { %9068 = vtanh.f32 %v2056_v37  ;;  %v1286_v34 = vadd.f32 %v10782_v3, %v1152_v63  ;;  %8345 = vmatmul.mubr.msk.f32.gmra.mrb[24].mxu1 %vm2227_vm0, %v9059_v38  ;;  %v1297_v22 = vadd.f32 %v10782_v3, %v1163_v31 }
 0x263   : > { %9070 = vtanh.f32 %v2057_v17  ;;  %v1712_v32 = vpop.permute.xlu1 %1711  ;;  %v905_v58 = vpop.permute.xlu0 %904  ;;  %v2067_v38 = vadd.f32 %v1939_v18, %v1295_v59  ;;  %v13437_v18 = vld [vmem:[#allocation75_spill] sm:$0xff] }
 0x264   : > { %v9061_v52 = vpop.eup %9060  ;;  %v2058_v62 = vadd.f32 %v1930_v0, %v1286_v34  ;;  %v1154_v40 = vmul.f32 %v10458_v27, %v905_v58  ;;  %v1932_v39 = vmul.f32 %v10461_v54, %v1712_v32  ;;  %v1165_v0 = vmul.f32 %v10458_v27, %v13429_v60  ;;  %v13430_v58 = vld [vmem:[#allocation66_spill] sm:$0xff] }
 0x265   : > { %v9063_v11 = vpop.eup %9062  ;;  %8347 = vmatprep.mubr.msk.f32.mxu1 %vm2227_vm0, %v9061_v52  ;;  %v1941_v52 = vmul.f32 %v10461_v54, %v13430_v58 }
 0x266   : > { %9072 = vtanh.f32 %v2058_v62  ;;  %v1288_v25 = vadd.f32 %v10782_v3, %v1154_v40  ;;  %8348 = vmatmul.mubr.msk.f32.gmra.mrb[26].mxu1 %vm2227_vm0, %v9063_v11  ;;  %v1299_v15 = vadd.f32 %v10782_v3, %v1165_v0 }
 0x267   : > { %9074 = vtanh.f32 %v2059_v9  ;;  %v1720_v44 = vpop.permute.xlu1 %1719  ;;  %v915_v23 = vpop.permute.xlu0 %914  ;;  %v2069_v11 = vadd.f32 %v1941_v52, %v1297_v22  ;;  %v13439_v52 = vld [vmem:[#allocation77_spill] sm:$0xff] }
 0x268   : > { %v9065_v7 = vpop.eup %9064  ;;  %v2060_v16 = vadd.f32 %v1932_v39, %v1288_v25  ;;  %v1156_v12 = vmul.f32 %v10458_v27, %v915_v23  ;;  %v1934_v45 = vmul.f32 %v10461_v54, %v1720_v44  ;;  %v1167_v39 = vmul.f32 %v10458_v27, %v13431_v1  ;;  %v13432_v23 = vld [vmem:[#allocation68_spill] sm:$0xff] }
 0x269   : > { %v9067_v4 = vpop.eup %9066  ;;  %8350 = vmatprep.mubr.msk.f32.mxu1 %vm2227_vm0, %v9065_v7  ;;  %v1943_v7 = vmul.f32 %v10461_v54, %v13432_v23 }
 0x26a   : > { %9076 = vtanh.f32 %v2060_v16  ;;  %v1290_v14 = vadd.f32 %v10782_v3, %v1156_v12  ;;  %8351 = vmatmul.mubr.msk.f32.gmra.mrb[28].mxu1 %vm2227_vm0, %v9067_v4  ;;  %v1301_v55 = vadd.f32 %v10782_v3, %v1167_v39 }
 0x26b   : > { %9078 = vtanh.f32 %v2061_v21  ;;  %v1728_v36 = vpop.permute.xlu1 %1727  ;;  %v925_v30 = vpop.permute.xlu0 %924  ;;  %v2071_v4 = vadd.f32 %v1943_v7, %v1299_v15 }
 0x26c   : > { %v9069_v61 = vpop.eup %9068  ;;  %v2062_v26 = vadd.f32 %v1934_v45, %v1290_v14  ;;  %v1158_v49 = vmul.f32 %v10458_v27, %v925_v30  ;;  %v1936_v19 = vmul.f32 %v10461_v54, %v1728_v36  ;;  %v1169_v45 = vmul.f32 %v10458_v27, %v13433_v48  ;;  %v13434_v30 = vld [vmem:[#allocation70_spill] sm:$0xff] }
 0x26d   : > { %v9071_v2 = vpop.eup %9070  ;;  %8353 = vmatprep.mubr.msk.f32.mxu1 %vm2227_vm0, %v9069_v61  ;;  %v1945_v61 = vmul.f32 %v10461_v54, %v13434_v30 }
 0x26e   : > { %9080 = vtanh.f32 %v2062_v26  ;;  %v1292_v24 = vadd.f32 %v10782_v3, %v1158_v49  ;;  %8354 = vmatmul.mubr.msk.f32.gmra.mrb[30].mxu1 %vm2227_vm0, %v9071_v2  ;;  %v1303_v33 = vadd.f32 %v10782_v3, %v1169_v45 }
 0x26f   : > { %9082 = vtanh.f32 %v2063_v28  ;;  %v1736_v47 = vpop.permute.xlu1 %1735  ;;  %v935_v17 = vpop.permute.xlu0 %934  ;;  %v2073_v2 = vadd.f32 %v1945_v61, %v1301_v55  ;;  %v11124_v61 = vld [vmem:[%s13274_s2] ss:$0 sm:$0xff] }
 0x270   : > { %v9073_v41 = vpop.eup %9072  ;;  %v2064_v53 = vadd.f32 %v1936_v19, %v1292_v24  ;;  %v1160_v29 = vmul.f32 %v10458_v27, %v935_v17  ;;  %v1938_v37 = vmul.f32 %v10461_v54, %v1736_v47  ;;  %v1171_v19 = vmul.f32 %v10458_v27, %v13435_v57  ;;  %v13436_v17 = vld [vmem:[#allocation72_spill] sm:$0xff] }
 0x271   : > { %v9075_v8 = vpop.eup %9074  ;;  %8356 = vmatprep.mubr.msk.f32.mxu1 %vm2227_vm0, %v9073_v41  ;;  %v1947_v41 = vmul.f32 %v10461_v54, %v13436_v17  ;;  %v13444_v17 = vld [vmem:[#allocation80_spill] sm:$0xff] }
 0x272   : > { %9084 = vtanh.f32 %v2064_v53  ;;  %v1294_v63 = vadd.f32 %v10782_v3, %v1160_v29  ;;  %8357 = vmatmul.mubr.msk.f32.gmra.mrb[32].mxu1 %vm2227_vm0, %v9075_v8  ;;  %v1305_v6 = vadd.f32 %v10782_v3, %v1171_v19 }
 0x273   : > { %9086 = vtanh.f32 %v2065_v10  ;;  %v1744_v34 = vpop.permute.xlu1 %1743  ;;  %v945_v9 = vpop.permute.xlu0 %944  ;;  %v2075_v8 = vadd.f32 %v1947_v41, %v1303_v33  ;;  %v13443_v33 = vld [vmem:[#allocation81_spill] sm:$0xff]  ;;  %v1955_v41 = vmul.f32 %v10461_v54, %v13444_v17 }
 0x274   : > { %v9077_v46 = vpop.eup %9076  ;;  %v2066_v13 = vadd.f32 %v1938_v37, %v1294_v63  ;;  %v1162_v20 = vmul.f32 %v10458_v27, %v945_v9  ;;  %v1940_v62 = vmul.f32 %v10461_v54, %v1744_v34  ;;  %v1173_v37 = vmul.f32 %v10458_v27, %v13437_v18  ;;  %v13438_v9 = vld [vmem:[#allocation74_spill] sm:$0xff] }
 0x275   : > { %v9079_v32 = vpop.eup %9078  ;;  %8359 = vmatprep.mubr.msk.f32.mxu1 %vm2227_vm0, %v9077_v46  ;;  %v1949_v46 = vmul.f32 %v10461_v54, %v13438_v9  ;;  %v1179_v57 = vmul.f32 %v10458_v27, %v13443_v33 }
 0x276   : > { %9088 = vtanh.f32 %v2066_v13  ;;  %v1296_v40 = vadd.f32 %v10782_v3, %v1162_v20  ;;  %8360 = vmatmul.mubr.msk.f32.gmra.mrb[34].mxu1 %vm2227_vm0, %v9079_v32  ;;  %v1307_v58 = vadd.f32 %v10782_v3, %v1173_v37  ;;  %v13445_v37 = vld [vmem:[#allocation83_spill] sm:$0xff] }
 0x277   : > { %9090 = vtanh.f32 %v2067_v38  ;;  %v1752_v25 = vpop.permute.xlu1 %1751  ;;  %v955_v21 = vpop.permute.xlu0 %954  ;;  %v2077_v32 = vadd.f32 %v1949_v46, %v1305_v6  ;;  %v1313_v18 = vadd.f32 %v11124_v61, %v1179_v57  ;;  %v13449_v57 = vld [vmem:[#allocation86_spill] sm:$0xff] }
 0x278   : > { %v9081_v50 = vpop.eup %9080  ;;  %v2068_v56 = vadd.f32 %v1940_v62, %v1296_v40  ;;  %v1164_v35 = vmul.f32 %v10458_v27, %v955_v21  ;;  %v1942_v16 = vmul.f32 %v10461_v54, %v1752_v25  ;;  %v1175_v62 = vmul.f32 %v10458_v27, %v13439_v52  ;;  %v7668_v52 = vld [vmem:[%s13275_s3 + $0x48] sm:$0xff] }
 0x279   : > { %v9083_v44 = vpop.eup %9082  ;;  %8362 = vmatprep.mubr.msk.f32.mxu1 %vm2227_vm0, %v9081_v50  ;;  %v13440_v50 = vld [vmem:[#allocation76_spill] sm:$0xff] }
 0x27a   : > { %9092 = vtanh.f32 %v2068_v56  ;;  %v1298_v12 = vadd.f32 %v10782_v3, %v1164_v35  ;;  %8363 = vmatmul.mubr.msk.f32.gmra.mrb[36].mxu1 %vm2227_vm0, %v9083_v44  ;;  %v1951_v56 = vmul.f32 %v10461_v54, %v13440_v50 }
 0x27b   : > { %9094 = vtanh.f32 %v2069_v11  ;;  %v1760_v14 = vpop.permute.xlu1 %1759  ;;  %v965_v28 = vpop.permute.xlu0 %964 }
 0x27c   : > { %v9085_v43 = vpop.eup %9084  ;;  %v2070_v5 = vadd.f32 %v1942_v16, %v1298_v12  ;;  %v1166_v42 = vmul.f32 %v10458_v27, %v965_v28  ;;  %v1944_v26 = vmul.f32 %v10461_v54, %v1760_v14  ;;  %v2079_v7 = vadd.f32 %v1951_v56, %v1307_v58  ;;  %v13441_v12 = vld [vmem:[#allocation79_spill] sm:$0xff]  ;;  %v7667_v58 = vld [vmem:[%s13275_s3 + $0x40] sm:$0xff] }
 0x27d   : > { %v9087_v36 = vpop.eup %9086  ;;  %8365 = vmatprep.mubr.msk.f32.mxu1 %vm2227_vm0, %v9085_v43  ;;  %v1309_v16 = vadd.f32 %v10782_v3, %v1175_v62 }
 0x27e   : > { %9096 = vtanh.f32 %v2070_v5  ;;  %v1300_v49 = vadd.f32 %v10782_v3, %v1166_v42  ;;  %8366 = vmatmul.mubr.msk.f32.gmra.mrb[38].mxu1 %vm2227_vm0, %v9087_v36  ;;  %v13442_v42 = vld [vmem:[#allocation78_spill] sm:$0xff] }
 0x27f   : > { %9098 = vtanh.f32 %v2071_v4  ;;  %v1768_v24 = vpop.permute.xlu1 %1767  ;;  %v975_v10 = vpop.permute.xlu0 %974  ;;  %v1177_v4 = vmul.f32 %v10458_v27, %v13441_v12  ;;  %v1953_v36 = vmul.f32 %v10461_v54, %v13442_v42 }
 0x280   : > { %v9089_v59 = vpop.eup %9088  ;;  %v2072_v51 = vadd.f32 %v1944_v26, %v1300_v49  ;;  %v1168_v31 = vmul.f32 %v10458_v27, %v975_v10  ;;  %v1946_v53 = vmul.f32 %v10461_v54, %v1768_v24 }
 0x281   : > { %v9091_v47 = vpop.eup %9090  ;;  %8368 = vmatprep.mubr.msk.f32.mxu1 %vm2227_vm0, %v9089_v59  ;;  %v2081_v49 = vadd.f32 %v1953_v36, %v1309_v16 }
 0x282   : > { %9100 = vtanh.f32 %v2072_v51  ;;  %v1302_v29 = vadd.f32 %v10782_v3, %v1168_v31  ;;  %8369 = vmatmul.mubr.msk.f32.gmra.mrb[40].mxu1 %vm2227_vm0, %v9091_v47 }
 0x283   : > { %9102 = vtanh.f32 %v2073_v2  ;;  %v1776_v63 = vpop.permute.xlu1 %1775  ;;  %v985_v38 = vpop.permute.xlu0 %984  ;;  %v1311_v2 = vadd.f32 %v11124_v61, %v1177_v4  ;;  %v13448_v4 = vld [vmem:[#allocation84_spill] sm:$0xff] }
 0x284   : > { %v9093_v22 = vpop.eup %9092  ;;  %v2074_v60 = vadd.f32 %v1946_v53, %v1302_v29  ;;  %v1170_v0 = vmul.f32 %v10458_v27, %v985_v38  ;;  %v1948_v13 = vmul.f32 %v10461_v54, %v1776_v63  ;;  %v1181_v63 = vmul.f32 %v10458_v27, %v13445_v37 }
 0x285   : > { %v9095_v34 = vpop.eup %9094  ;;  %8371 = vmatprep.mubr.msk.f32.mxu1 %vm2227_vm0, %v9093_v22  ;;  %v2083_v6 = vadd.f32 %v1955_v41, %v1311_v2 }
 0x286   : > { %9104 = vtanh.f32 %v2074_v60  ;;  %v1304_v20 = vadd.f32 %v10782_v3, %v1170_v0  ;;  %8372 = vmatmul.mubr.msk.f32.gmra.mrb[42].mxu1 %vm2227_vm0, %v9095_v34 }
 0x287   : > { %9106 = vtanh.f32 %v2075_v8  ;;  %v1784_v40 = vpop.permute.xlu1 %1783  ;;  %v995_v11 = vpop.permute.xlu0 %994 }
 0x288   : > { %v9097_v15 = vpop.eup %9096  ;;  %v2076_v1 = vadd.f32 %v1948_v13, %v1304_v20  ;;  %v1172_v39 = vmul.f32 %v10458_v27, %v995_v11  ;;  %v11099_v25 = vpop.f32.mrb[0].mxu0  ;;  %v1950_v44 = vmul.f32 %v10461_v54, %v1784_v40  ;;  %v13446_v13 = vld [vmem:[#allocation82_spill] sm:$0xff]  ;;  %v8820_v11 = vpack.c.bf16 %v7668_v52, %v7667_v58 }
 0x289   : > { %v9099_v21 = vpop.eup %9098  ;;  %v11103_v35 = vpop.f32.mrb[1].mxu0  ;;  %8374 = vmatprep.mubr.msk.f32.mxu1 %vm2227_vm0, %v9097_v15  ;;  %v1957_v20 = vmul.f32 %v10461_v54, %v13446_v13 }
 0x28a   : > { %9108 = vtanh.f32 %v2076_v1  ;;  %v1306_v23 = vadd.f32 %v10782_v3, %v1172_v39  ;;  %8375 = vmatmul.mubr.msk.f32.gmra.mrb[44].mxu1 %vm2227_vm0, %v9099_v21  ;;  %v1315_v1 = vadd.f32 %v11124_v61, %v1181_v63  ;;  %v13447_v39 = vld [vmem:[#allocation85_spill] sm:$0xff]  ;;  %8821 = vmatprep.subr.bf16.mxu0 %v8820_v11 }
 0x28b   : > { %9110 = vtanh.f32 %v2077_v32  ;;  %v1792_v55 = vpop.permute.xlu1 %1791  ;;  %v1005_v48 = vpop.permute.xlu0 %1004  ;;  %v2085_v15 = vadd.f32 %v1957_v20, %v1313_v18  ;;  %v1183_v21 = vmul.f32 %v10458_v27, %v13447_v39  ;;  %8823 = vmatpush3.bf16.msra.mxu0 %v8820_v11 }
 0x28c   : > { %v9101_v45 = vpop.eup %9100  ;;  %v2078_v14 = vadd.f32 %v1950_v44, %v1306_v23  ;;  %v1174_v28 = vmul.f32 %v10458_v27, %v1005_v48  ;;  %v11113_v43 = vpop.f32.mrb[2].mxu0  ;;  %v1952_v3 = vmul.f32 %v10461_v54, %v1792_v55  ;;  %v1959_v55 = vmul.f32 %v10461_v54, %v13448_v4 }
 0x28d   : > { %v9103_v5 = vpop.eup %9102  ;;  %v11117_v30 = vpop.f32.mrb[3].mxu0  ;;  %8377 = vmatprep.mubr.msk.f32.mxu1 %vm2227_vm0, %v9101_v45 }
 0x28e   : > { %9112 = vtanh.f32 %v2078_v14  ;;  %v1308_v26 = vadd.f32 %v11124_v61, %v1174_v28  ;;  %8378 = vmatmul.mubr.msk.f32.gmra.mrb[46].mxu1 %vm2227_vm0, %v9103_v5  ;;  %v2087_v28 = vadd.f32 %v1959_v55, %v1315_v1  ;;  %v1317_v5 = vadd.f32 %v11124_v61, %v1183_v21 }
 0x28f   : > { %9114 = vtanh.f32 %v2079_v7  ;;  %v1800_v19 = vpop.permute.xlu1 %1799  ;;  %v1015_v24 = vpop.permute.xlu0 %1014 }
 0x290   : > { %v9105_v10 = vpop.eup %9104  ;;  %v2080_v59 = vadd.f32 %v1952_v3, %v1308_v26  ;;  %v1176_v51 = vmul.f32 %v10458_v27, %v1015_v24  ;;  %v11132_v31 = vpop.f32.mrb[4].mxu0  ;;  %v1954_v29 = vmul.f32 %v10461_v54, %v1800_v19  ;;  %v1961_v19 = vmul.f32 %v10461_v54, %v13449_v57  ;;  %v11185_v24 = vld [vmem:[%s13276_s4] ss:$0 sm:$0xff] }
 0x291   : > { %v9107_v47 = vpop.eup %9106  ;;  %v11136_v53 = vpop.f32.mrb[5].mxu0  ;;  %8380 = vmatprep.mubr.msk.f32.mxu1 %vm2227_vm0, %v9105_v10  ;;  %v2679_v17 = vadd.f32 %v11185_v24, %v11103_v35  ;;  %v2689_v18 = vadd.f32 %v11185_v24, %v11117_v30 }
 0x292   : > { %9116 = vtanh.f32 %v2080_v59  ;;  %v1310_v8 = vadd.f32 %v11124_v61, %v1176_v51  ;;  %8381 = vmatmul.mubr.msk.f32.gmra.mrb[48].mxu1 %vm2227_vm0, %v9107_v47 }
 0x293   : > { %9118 = vtanh.f32 %v2081_v49  ;;  %v1808_v38 = vpop.permute.xlu1 %1807  ;;  %v1025_v22 = vpop.permute.xlu0 %1024 }
 0x294   : > { %v9109_v60 = vpop.eup %9108  ;;  %v2082_v0 = vadd.f32 %v1954_v29, %v1310_v8  ;;  %v1178_v34 = vmul.f32 %v10458_v27, %v1025_v22  ;;  %v11146_v9 = vpop.f32.mrb[6].mxu0  ;;  %v1956_v62 = vmul.f32 %v10461_v54, %v1808_v38  ;;  %v2694_v38 = vadd.f32 %v11113_v43, %v11185_v24 }
 0x295   : > { %v9111_v46 = vpop.eup %9110  ;;  %v11150_v32 = vpop.f32.mrb[7].mxu0  ;;  %8383 = vmatprep.mubr.msk.f32.mxu1 %vm2227_vm0, %v9109_v60  ;;  %v2714_v52 = vadd.f32 %v11146_v9, %v11185_v24 }
 0x296   : > { %9120 = vtanh.f32 %v2082_v0  ;;  %v1312_v40 = vadd.f32 %v11124_v61, %v1178_v34  ;;  %8384 = vmatmul.mubr.msk.f32.gmra.mrb[50].mxu1 %vm2227_vm0, %v9111_v46  ;;  %v2704_v34 = vadd.f32 %v11132_v31, %v11185_v24  ;;  %v2709_v43 = vadd.f32 %v11185_v24, %v11150_v32 }
 0x297   : > { %9122 = vtanh.f32 %v2083_v6  ;;  %v1816_v50 = vpop.permute.xlu1 %1815  ;;  %v1035_v56 = vpop.permute.xlu0 %1034 }
 0x298   : > { %v9113_v44 = vpop.eup %9112  ;;  %v2084_v23 = vadd.f32 %v1956_v62, %v1312_v40  ;;  %v1180_v7 = vmul.f32 %v10458_v27, %v1035_v56  ;;  %v11166_v16 = vpop.f32.mrb[8].mxu0  ;;  %v1958_v45 = vmul.f32 %v10461_v54, %v1816_v50 }
 0x299   : > { %v9115_v12 = vpop.eup %9114  ;;  %v11170_v48 = vpop.f32.mrb[9].mxu0  ;;  %8386 = vmatprep.mubr.msk.f32.mxu1 %vm2227_vm0, %v9113_v44 }
 0x29a   : > { %9124 = vtanh.f32 %v2084_v23  ;;  %v1314_v14 = vadd.f32 %v11124_v61, %v1180_v7  ;;  %8387 = vmatmul.mubr.msk.f32.gmra.mrb[52].mxu1 %vm2227_vm0, %v9115_v12  ;;  %v2719_v31 = vadd.f32 %v11185_v24, %v11170_v48 }
 0x29b   : > { %9126 = vtanh.f32 %v2085_v15  ;;  %v1824_v42 = vpop.permute.xlu1 %1823  ;;  %v1045_v36 = vpop.permute.xlu0 %1044  ;;  %v2724_v15 = vadd.f32 %v11166_v16, %v11185_v24 }
 0x29c   : > { %v9117_v3 = vpop.eup %9116  ;;  %v2086_v26 = vadd.f32 %v1958_v45, %v1314_v14  ;;  %v1182_v49 = vmul.f32 %v10458_v27, %v1045_v36  ;;  %v11178_v2 = vpop.f32.mrb[10].mxu0  ;;  %v1960_v59 = vmul.f32 %v10461_v54, %v1824_v42  ;;  %v2089_v27 = vadd.f32 %v1961_v19, %v1317_v5 }
 0x29d   : > { %v9119_v33 = vpop.eup %9118  ;;  %v2728_v10 = vpop.f32.mrb[11].mxu0  ;;  %8389 = vmatprep.mubr.msk.f32.mxu1 %vm2227_vm0, %v9117_v3  ;;  %v2684_v54 = vadd.f32 %v11099_v25, %v11185_v24  ;;  %v2699_v25 = vadd.f32 %v11185_v24, %v11136_v53  ;;  %v2734_v56 = vadd.f32 %v11178_v2, %v11185_v24 }
 0x29e   : > { %9128 = vtanh.f32 %v2086_v26  ;;  %v1316_v51 = vadd.f32 %v11124_v61, %v1182_v49  ;;  %8390 = vmatmul.mubr.msk.f32.gmra.mrb[54].mxu1 %vm2227_vm0, %v9119_v33  ;;  %v2729_v9 = vadd.f32 %v11185_v24, %v2728_v10 }
 0x29f   : > { %9130 = vtanh.f32 %v2087_v28 }
 0x2a0   : > { %v9121_v47 = vpop.eup %9120  ;;  %v2088_v41 = vadd.f32 %v1960_v59, %v1316_v51  ;;  %v11193_v29 = vpop.f32.mrb[12].mxu0 }
 0x2a1   : > { %v9123_v8 = vpop.eup %9122  ;;  %v2738_v6 = vpop.f32.mrb[13].mxu0  ;;  %8392 = vmatprep.mubr.msk.f32.mxu1 %vm2227_vm0, %v9121_v47  ;;  %v2744_v4 = vadd.f32 %v11193_v29, %v11185_v24 }
 0x2a2   : > { %9132 = vtanh.f32 %v2088_v41  ;;  %8393 = vmatmul.mubr.msk.f32.gmra.mrb[56].mxu1 %vm2227_vm0, %v9123_v8  ;;  %v2739_v44 = vadd.f32 %v11185_v24, %v2738_v6 }
 0x2a3   : > { %9134 = vtanh.f32 %v2089_v27 }
 0x2a4   : > { %v9125_v61 = vpop.eup %9124  ;;  %9136 = vtanh.f32 %v2679_v17  ;;  %v11201_v35 = vpop.f32.mrb[14].mxu0 }
 0x2a5   : > { %v9127_v37 = vpop.eup %9126  ;;  %v2748_v63 = vpop.f32.mrb[15].mxu0  ;;  %8395 = vmatprep.mubr.msk.f32.mxu1 %vm2227_vm0, %v9125_v61  ;;  %9138 = vtanh.f32 %v2684_v54  ;;  %v2754_v5 = vadd.f32 %v11201_v35, %v11185_v24 }
 0x2a6   : > { %8396 = vmatmul.mubr.msk.f32.gmra.mrb[58].mxu1 %vm2227_vm0, %v9127_v37  ;;  %9140 = vtanh.f32 %v2689_v18  ;;  %v2749_v55 = vadd.f32 %v11185_v24, %v2748_v63 }
 0x2a7   : > { %9142 = vtanh.f32 %v2694_v38 }
 0x2a8   : > { %v9129_v22 = vpop.eup %9128  ;;  %v11209_v60 = vpop.f32.mrb[16].mxu0  ;;  %9144 = vtanh.f32 %v2699_v25 }
 0x2a9   : > { %v9131_v30 = vpop.eup %9130  ;;  %v2758_v0 = vpop.f32.mrb[17].mxu0  ;;  %8398 = vmatprep.mubr.msk.f32.mxu1 %vm2227_vm0, %v9129_v22  ;;  %9146 = vtanh.f32 %v2704_v34  ;;  %v2764_v2 = vadd.f32 %v11209_v60, %v11185_v24 }
 0x2aa   : > { %8399 = vmatmul.mubr.msk.f32.gmra.mrb[60].mxu1 %vm2227_vm0, %v9131_v30  ;;  %9148 = vtanh.f32 %v2709_v43  ;;  %v2759_v42 = vadd.f32 %v11185_v24, %v2758_v0 }
 0x2ab   : > { %9150 = vtanh.f32 %v2714_v52 }
 0x2ac   : > { %v9133_v46 = vpop.eup %9132  ;;  %v11217_v13 = vpop.f32.mrb[18].mxu0  ;;  %9152 = vtanh.f32 %v2719_v31 }
 0x2ad   : > { %v9135_v53 = vpop.eup %9134  ;;  %v2768_v20 = vpop.f32.mrb[19].mxu0  ;;  %8401 = vmatprep.mubr.msk.f32.mxu1 %vm2227_vm0, %v9133_v46  ;;  %9154 = vtanh.f32 %v2724_v15  ;;  %v2774_v51 = vadd.f32 %v11217_v13, %v11185_v24  ;;  %v7669_v13 = vld [vmem:[%s13275_s3 + $0x50] sm:$0xff] }
 0x2ae   : > { %v9137_v58 = vpop.eup %9136  ;;  %8402 = vmatmul.mubr.msk.f32.gmra.mrb[62].mxu1 %vm2227_vm0, %v9135_v53  ;;  %9156 = vtanh.f32 %v2729_v9  ;;  %v2769_v33 = vadd.f32 %v11185_v24, %v2768_v20  ;;  %v7670_v53 = vld [vmem:[%s13275_s3 + $0x58] sm:$0xff] }
 0x2af   : > { %8412 = vmatprep.mubr.msk.f32.mxu1 %vm2227_vm0, %v9137_v58  ;;  %v9139_v62 = vpop.eup %9138  ;;  %9158 = vtanh.f32 %v2734_v56  ;;  %v8824_v58 = vpack.c.bf16 %v7670_v53, %v7669_v13 }
 0x2b0   : > { %v11226_v32 = vpop.f32.mrb[20].mxu0  ;;  %v9141_v11 = vpop.eup %9140  ;;  %9160 = vtanh.f32 %v2739_v44 }
 0x2b1   : > { %v2778_v40 = vpop.f32.mrb[21].mxu0  ;;  %v9143_v39 = vpop.eup %9142  ;;  %9162 = vtanh.f32 %v2744_v4  ;;  %v2784_v8 = vadd.f32 %v11226_v32, %v11185_v24  ;;  %8825 = vmatprep.subr.bf16.mxu0 %v8824_v58 }
 0x2b2   : > { %8413 = vmatmul.mubr.msk.f32.vlgmr.msra.gmra.mrb[64].mxu1 %vm2227_vm0, %v9139_v62  ;;  %v9145_v50 = vpop.eup %9144  ;;  %9164 = vtanh.f32 %v2749_v55  ;;  %v2779_v27 = vadd.f32 %v11185_v24, %v2778_v40  ;;  %8827 = vmatpush3.bf16.msra.mxu0 %v8824_v58 }
 0x2b3   : > { %8415 = vmatprep.mubr.msk.f32.mxu1 %vm2227_vm0, %v9141_v11  ;;  %v9147_v7 = vpop.eup %9146  ;;  %9166 = vtanh.f32 %v2754_v5 }
 0x2b4   : > { %v11233_v1 = vpop.f32.mrb[22].mxu0  ;;  %v9149_v12 = vpop.eup %9148  ;;  %9168 = vtanh.f32 %v2759_v42 }
 0x2b5   : > { %v2788_v21 = vpop.f32.mrb[23].mxu0  ;;  %v9151_v45 = vpop.eup %9150  ;;  %9170 = vtanh.f32 %v2764_v2  ;;  %v2794_v37 = vadd.f32 %v11233_v1, %v11185_v24 }
 0x2b6   : > { %8416 = vmatmul.mubr.msk.f32.gmra.mrb[66].mxu1 %vm2227_vm0, %v9143_v39  ;;  %v9153_v28 = vpop.eup %9152  ;;  %9172 = vtanh.f32 %v2769_v33  ;;  %v2789_v6 = vadd.f32 %v11185_v24, %v2788_v21 }
 0x2b7   : > { %8418 = vmatprep.mubr.msk.f32.mxu1 %vm2227_vm0, %v9145_v50  ;;  %v9155_v3 = vpop.eup %9154  ;;  %9174 = vtanh.f32 %v2774_v51 }
 0x2b8   : > { %v11240_v23 = vpop.f32.mrb[24].mxu0  ;;  %v9157_v49 = vpop.eup %9156  ;;  %9176 = vtanh.f32 %v2779_v27 }
 0x2b9   : > { %v2798_v16 = vpop.f32.mrb[25].mxu0  ;;  %v9159_v19 = vpop.eup %9158  ;;  %9178 = vtanh.f32 %v2784_v8  ;;  %v2804_v30 = vadd.f32 %v11240_v23, %v11185_v24 }
 0x2ba   : > { %8419 = vmatmul.mubr.msk.f32.gmra.mrb[68].mxu1 %vm2227_vm0, %v9147_v7  ;;  %v9161_v59 = vpop.eup %9160  ;;  %9180 = vtanh.f32 %v2789_v6  ;;  %v2799_v63 = vadd.f32 %v11185_v24, %v2798_v16 }
 0x2bb   : > { %8421 = vmatprep.mubr.msk.f32.mxu1 %vm2227_vm0, %v9149_v12  ;;  %v9163_v17 = vpop.eup %9162  ;;  %9182 = vtanh.f32 %v2794_v37 }
 0x2bc   : > { %v11247_v48 = vpop.f32.mrb[26].mxu0  ;;  %v9165_v29 = vpop.eup %9164  ;;  %9184 = vtanh.f32 %v2799_v63 }
 0x2bd   : > { %v2808_v14 = vpop.f32.mrb[27].mxu0  ;;  %v9167_v61 = vpop.eup %9166  ;;  %9186 = vtanh.f32 %v2804_v30  ;;  %v2814_v52 = vadd.f32 %v11247_v48, %v11185_v24 }
 0x2be   : > { %8422 = vmatmul.mubr.msk.f32.gmra.mrb[70].mxu1 %vm2227_vm0, %v9151_v45  ;;  %v9169_v35 = vpop.eup %9168  ;;  %v2809_v0 = vadd.f32 %v11185_v24, %v2808_v14 }
 0x2bf   : > { %8424 = vmatprep.mubr.msk.f32.mxu1 %vm2227_vm0, %v9153_v28  ;;  %v9171_v22 = vpop.eup %9170 }
 0x2c0   : > { %v11254_v36 = vpop.f32.mrb[28].mxu0  ;;  %v9173_v60 = vpop.eup %9172  ;;  %9188 = vtanh.f32 %v2809_v0 }
 0x2c1   : > { %v2818_v26 = vpop.f32.mrb[29].mxu0  ;;  %v9175_v46 = vpop.eup %9174  ;;  %9190 = vtanh.f32 %v2814_v52  ;;  %v2824_v15 = vadd.f32 %v11254_v36, %v11185_v24 }
 0x2c2   : > { %8425 = vmatmul.mubr.msk.f32.gmra.mrb[72].mxu1 %vm2227_vm0, %v9155_v3  ;;  %v9177_v20 = vpop.eup %9176  ;;  %v2819_v31 = vadd.f32 %v11185_v24, %v2818_v26 }
 0x2c3   : > { %8427 = vmatprep.mubr.msk.f32.mxu1 %vm2227_vm0, %v9157_v49  ;;  %v9179_v62 = vpop.eup %9178 }
 0x2c4   : > { %v11261_v57 = vpop.f32.mrb[30].mxu0  ;;  %v9181_v11 = vpop.eup %9180  ;;  %9192 = vtanh.f32 %v2819_v31 }
 0x2c5   : > { %v2828_v10 = vpop.f32.mrb[31].mxu0  ;;  %v9183_v39 = vpop.eup %9182  ;;  %9194 = vtanh.f32 %v2824_v15  ;;  %v2834_v56 = vadd.f32 %v11261_v57, %v11185_v24 }
 0x2c6   : > { %8428 = vmatmul.mubr.msk.f32.gmra.mrb[74].mxu1 %vm2227_vm0, %v9159_v19  ;;  %v2829_v9 = vadd.f32 %v11185_v24, %v2828_v10  ;;  %v9185_v50 = vpop.eup %9184 }
 0x2c7   : > { %8430 = vmatprep.mubr.msk.f32.mxu1 %vm2227_vm0, %v9161_v59  ;;  %v9187_v7 = vpop.eup %9186 }
 0x2c8   : > { %v11268_v47 = vpop.f32.mrb[32].mxu0  ;;  %9196 = vtanh.f32 %v2829_v9 }
 0x2c9   : > { %v2838_v41 = vpop.f32.mrb[33].mxu0  ;;  %9198 = vtanh.f32 %v2834_v56  ;;  %v2844_v4 = vadd.f32 %v11268_v47, %v11185_v24 }
 0x2ca   : > { %8431 = vmatmul.mubr.msk.f32.gmra.mrb[76].mxu1 %vm2227_vm0, %v9163_v17  ;;  %v2839_v44 = vadd.f32 %v11185_v24, %v2838_v41  ;;  %v9189_v12 = vpop.eup %9188 }
 0x2cb   : > { %8433 = vmatprep.mubr.msk.f32.mxu1 %vm2227_vm0, %v9165_v29  ;;  %v9191_v45 = vpop.eup %9190 }
 0x2cc   : > { %v11275_v54 = vpop.f32.mrb[34].mxu0  ;;  %9200 = vtanh.f32 %v2839_v44 }
 0x2cd   : > { %v2848_v18 = vpop.f32.mrb[35].mxu0  ;;  %9202 = vtanh.f32 %v2844_v4  ;;  %v2854_v5 = vadd.f32 %v11275_v54, %v11185_v24 }
 0x2ce   : > { %8434 = vmatmul.mubr.msk.f32.gmra.mrb[78].mxu1 %vm2227_vm0, %v9167_v61  ;;  %v2849_v55 = vadd.f32 %v11185_v24, %v2848_v18  ;;  %v9193_v28 = vpop.eup %9192 }
 0x2cf   : > { %8436 = vmatprep.mubr.msk.f32.mxu1 %vm2227_vm0, %v9169_v35  ;;  %v9195_v3 = vpop.eup %9194 }
 0x2d0   : > { %v11282_v38 = vpop.f32.mrb[36].mxu0  ;;  %9204 = vtanh.f32 %v2849_v55 }
 0x2d1   : > { %v2858_v25 = vpop.f32.mrb[37].mxu0  ;;  %9206 = vtanh.f32 %v2854_v5  ;;  %v2864_v2 = vadd.f32 %v11282_v38, %v11185_v24 }
 0x2d2   : > { %8437 = vmatmul.mubr.msk.f32.gmra.mrb[80].mxu1 %vm2227_vm0, %v9171_v22  ;;  %v2859_v42 = vadd.f32 %v11185_v24, %v2858_v25  ;;  %v9197_v49 = vpop.eup %9196 }
 0x2d3   : > { %8439 = vmatprep.mubr.msk.f32.mxu1 %vm2227_vm0, %v9173_v60  ;;  %v9199_v19 = vpop.eup %9198 }
 0x2d4   : > { %v11289_v34 = vpop.f32.mrb[38].mxu0  ;;  %9208 = vtanh.f32 %v2859_v42 }
 0x2d5   : > { %v2868_v43 = vpop.f32.mrb[39].mxu0  ;;  %9210 = vtanh.f32 %v2864_v2  ;;  %v2874_v51 = vadd.f32 %v11289_v34, %v11185_v24 }
 0x2d6   : > { %8440 = vmatmul.mubr.msk.f32.gmra.mrb[82].mxu1 %vm2227_vm0, %v9175_v46  ;;  %v2869_v33 = vadd.f32 %v11185_v24, %v2868_v43  ;;  %v9201_v59 = vpop.eup %9200 }
 0x2d7   : > { %8442 = vmatprep.mubr.msk.f32.mxu1 %vm2227_vm0, %v9177_v20  ;;  %v9203_v17 = vpop.eup %9202 }
 0x2d8   : > { %v11302_v32 = vpop.f32.mrb[40].mxu0  ;;  %9212 = vtanh.f32 %v2869_v33 }
 0x2d9   : > { %v2878_v40 = vpop.f32.mrb[41].mxu0  ;;  %9214 = vtanh.f32 %v2874_v51  ;;  %v2884_v8 = vadd.f32 %v11302_v32, %v11185_v24 }
 0x2da   : > { %8443 = vmatmul.mubr.msk.f32.gmra.mrb[84].mxu1 %vm2227_vm0, %v9179_v62  ;;  %v2879_v27 = vadd.f32 %v11185_v24, %v2878_v40  ;;  %v9205_v29 = vpop.eup %9204 }
 0x2db   : > { %8445 = vmatprep.mubr.msk.f32.mxu1 %vm2227_vm0, %v9181_v11  ;;  %v9207_v61 = vpop.eup %9206 }
 0x2dc   : > { %v11309_v1 = vpop.f32.mrb[42].mxu0  ;;  %9216 = vtanh.f32 %v2879_v27 }
 0x2dd   : > { %v2888_v21 = vpop.f32.mrb[43].mxu0  ;;  %9218 = vtanh.f32 %v2884_v8  ;;  %v2894_v37 = vadd.f32 %v11309_v1, %v11185_v24 }
 0x2de   : > { %8446 = vmatmul.mubr.msk.f32.gmra.mrb[86].mxu1 %vm2227_vm0, %v9183_v39  ;;  %v2889_v6 = vadd.f32 %v11185_v24, %v2888_v21  ;;  %v9209_v35 = vpop.eup %9208 }
 0x2df   : > { %8448 = vmatprep.mubr.msk.f32.mxu1 %vm2227_vm0, %v9185_v50  ;;  %v9211_v22 = vpop.eup %9210 }
 0x2e0   : > { %v11316_v23 = vpop.f32.mrb[44].mxu0  ;;  %9220 = vtanh.f32 %v2889_v6 }
 0x2e1   : > { %v2898_v16 = vpop.f32.mrb[45].mxu0  ;;  %9222 = vtanh.f32 %v2894_v37  ;;  %v2904_v30 = vadd.f32 %v11316_v23, %v11185_v24 }
 0x2e2   : > { %8449 = vmatmul.mubr.msk.f32.gmra.mrb[88].mxu1 %vm2227_vm0, %v9187_v7  ;;  %v2899_v63 = vadd.f32 %v11185_v24, %v2898_v16  ;;  %v9213_v60 = vpop.eup %9212 }
 0x2e3   : > { %8451 = vmatprep.mubr.msk.f32.mxu1 %vm2227_vm0, %v9189_v12  ;;  %v9215_v46 = vpop.eup %9214 }
 0x2e4   : > { %v11323_v48 = vpop.f32.mrb[46].mxu0  ;;  %9224 = vtanh.f32 %v2899_v63 }
 0x2e5   : > { %v2908_v14 = vpop.f32.mrb[47].mxu0  ;;  %9226 = vtanh.f32 %v2904_v30  ;;  %v2914_v53 = vadd.f32 %v11323_v48, %v11185_v24 }
 0x2e6   : > { %8452 = vmatmul.mubr.msk.f32.gmra.mrb[90].mxu1 %vm2227_vm0, %v9191_v45  ;;  %v2909_v0 = vadd.f32 %v11185_v24, %v2908_v14  ;;  %v9217_v13 = vpop.eup %9216 }
 0x2e7   : > { %8454 = vmatprep.mubr.msk.f32.mxu1 %vm2227_vm0, %v9193_v28  ;;  %v9219_v52 = vpop.eup %9218 }
 0x2e8   : > { %v11330_v36 = vpop.f32.mrb[48].mxu0  ;;  %9228 = vtanh.f32 %v2909_v0 }
 0x2e9   : > { %v2918_v26 = vpop.f32.mrb[49].mxu0  ;;  %9230 = vtanh.f32 %v2914_v53  ;;  %v2924_v62 = vadd.f32 %v11330_v36, %v11185_v24 }
 0x2ea   : > { %8455 = vmatmul.mubr.msk.f32.gmra.mrb[92].mxu1 %vm2227_vm0, %v9195_v3  ;;  %v2919_v20 = vadd.f32 %v11185_v24, %v2918_v26  ;;  %v9221_v32 = vpop.eup %9220 }
 0x2eb   : > { %8457 = vmatprep.mubr.msk.f32.mxu1 %vm2227_vm0, %v9197_v49  ;;  %v9223_v15 = vpop.eup %9222 }
 0x2ec   : > { %v11337_v57 = vpop.f32.mrb[50].mxu0  ;;  %9232 = vtanh.f32 %v2919_v20 }
 0x2ed   : > { %v2928_v10 = vpop.f32.mrb[51].mxu0  ;;  %9234 = vtanh.f32 %v2924_v62  ;;  %v2934_v50 = vadd.f32 %v11337_v57, %v11185_v24 }
 0x2ee   : > { %8458 = vmatmul.mubr.msk.f32.gmra.mrb[94].mxu1 %vm2227_vm0, %v9199_v19  ;;  %v2929_v40 = vadd.f32 %v11185_v24, %v2928_v10  ;;  %v9225_v39 = vpop.eup %9224 }
 0x2ef   : > { %8460 = vmatprep.mubr.msk.f32.mxu1 %vm2227_vm0, %v9201_v59  ;;  %v9227_v44 = vpop.eup %9226 }
 0x2f0   : > { %v11344_v47 = vpop.f32.mrb[52].mxu0  ;;  %9236 = vtanh.f32 %v2929_v40 }
 0x2f1   : > { %v2938_v41 = vpop.f32.mrb[53].mxu0  ;;  %9238 = vtanh.f32 %v2934_v50  ;;  %v2944_v12 = vadd.f32 %v11344_v47, %v11185_v24 }
 0x2f2   : > { %8461 = vmatmul.mubr.msk.f32.gmra.mrb[96].mxu1 %vm2227_vm0, %v9203_v17  ;;  %v2939_v56 = vadd.f32 %v11185_v24, %v2938_v41  ;;  %v9229_v7 = vpop.eup %9228 }
 0x2f3   : > { %8463 = vmatprep.mubr.msk.f32.mxu1 %vm2227_vm0, %v9205_v29  ;;  %v9231_v55 = vpop.eup %9230 }
 0x2f4   : > { %v11351_v54 = vpop.f32.mrb[54].mxu0  ;;  %9240 = vtanh.f32 %v2939_v56 }
 0x2f5   : > { %v2948_v18 = vpop.f32.mrb[55].mxu0  ;;  %9242 = vtanh.f32 %v2944_v12  ;;  %v2954_v28 = vadd.f32 %v11351_v54, %v11185_v24 }
 0x2f6   : > { %8464 = vmatmul.mubr.msk.f32.gmra.mrb[98].mxu1 %vm2227_vm0, %v9207_v61  ;;  %v2949_v4 = vadd.f32 %v11185_v24, %v2948_v18  ;;  %v9233_v45 = vpop.eup %9232 }
 0x2f7   : > { %8466 = vmatprep.mubr.msk.f32.mxu1 %vm2227_vm0, %v9209_v35  ;;  %v9235_v42 = vpop.eup %9234 }
 0x2f8   : > { %v11358_v38 = vpop.f32.mrb[56].mxu0  ;;  %9244 = vtanh.f32 %v2949_v4 }
 0x2f9   : > { %v2958_v25 = vpop.f32.mrb[57].mxu0  ;;  %9246 = vtanh.f32 %v2954_v28  ;;  %v2964_v49 = vadd.f32 %v11358_v38, %v11185_v24 }
 0x2fa   : > { %8467 = vmatmul.mubr.msk.f32.gmra.mrb[100].mxu1 %vm2227_vm0, %v9211_v22  ;;  %v2959_v5 = vadd.f32 %v11185_v24, %v2958_v25  ;;  %v9237_v3 = vpop.eup %9236 }
 0x2fb   : > { %8469 = vmatprep.mubr.msk.f32.mxu1 %vm2227_vm0, %v9213_v60  ;;  %v9239_v33 = vpop.eup %9238 }
 0x2fc   : > { %v11365_v34 = vpop.f32.mrb[58].mxu0  ;;  %9248 = vtanh.f32 %v2959_v5 }
 0x2fd   : > { %v2968_v43 = vpop.f32.mrb[59].mxu0  ;;  %9250 = vtanh.f32 %v2964_v49  ;;  %v2974_v59 = vadd.f32 %v11365_v34, %v11185_v24 }
 0x2fe   : > { %8470 = vmatmul.mubr.msk.f32.gmra.mrb[102].mxu1 %vm2227_vm0, %v9215_v46  ;;  %v2969_v2 = vadd.f32 %v11185_v24, %v2968_v43  ;;  %v9241_v19 = vpop.eup %9240 }
 0x2ff   : > { %8472 = vmatprep.mubr.msk.f32.mxu1 %vm2227_vm0, %v9217_v13  ;;  %v9243_v27 = vpop.eup %9242 }
 0x300   : > { %v11372_v58 = vpop.f32.mrb[60].mxu0  ;;  %9252 = vtanh.f32 %v2969_v2 }
 0x301   : > { %v2978_v31 = vpop.f32.mrb[61].mxu0  ;;  %9254 = vtanh.f32 %v2974_v59  ;;  %v2984_v29 = vadd.f32 %v11372_v58, %v11185_v24 }
 0x302   : > { %8473 = vmatmul.mubr.msk.f32.gmra.mrb[104].mxu1 %vm2227_vm0, %v9219_v52  ;;  %v2979_v51 = vadd.f32 %v11185_v24, %v2978_v31  ;;  %v9245_v17 = vpop.eup %9244 }
 0x303   : > { %8475 = vmatprep.mubr.msk.f32.mxu1 %vm2227_vm0, %v9221_v32  ;;  %v9247_v6 = vpop.eup %9246 }
 0x304   : > { %v11379_v11 = vpop.f32.mrb[62].mxu0  ;;  %9256 = vtanh.f32 %v2979_v51 }
 0x305   : > { %v2988_v9 = vpop.f32.mrb[63].mxu0  ;;  %v11381_v1 = vpop.f32.mrb[0].mxu1  ;;  %9258 = vtanh.f32 %v2984_v29  ;;  %v2994_v35 = vadd.f32 %v11379_v11, %v11185_v24 }
 0x306   : > { %v11383_v21 = vpop.f32.mrb[1].mxu1  ;;  %8476 = vmatmul.mubr.msk.f32.gmra.mrb[106].mxu1 %vm2227_vm0, %v9223_v15  ;;  %v2989_v8 = vadd.f32 %v11185_v24, %v2988_v9  ;;  %v9249_v61 = vpop.eup %9248  ;;  %v3004_v60 = vadd.f32 %v11381_v1, %v11185_v24 }
 0x307   : > { %8478 = vmatprep.mubr.msk.f32.mxu1 %vm2227_vm0, %v9225_v39  ;;  %v2999_v37 = vadd.f32 %v11185_v24, %v11383_v21  ;;  %v9251_v63 = vpop.eup %9250 }
 0x308   : > { %9260 = vtanh.f32 %v2989_v8 }
 0x309   : > { %v11390_v23 = vpop.f32.mrb[2].mxu1  ;;  %9262 = vtanh.f32 %v2994_v35 }
 0x30a   : > { %v11392_v16 = vpop.f32.mrb[3].mxu1  ;;  %8479 = vmatmul.mubr.msk.f32.gmra.mrb[108].mxu1 %vm2227_vm0, %v9227_v44  ;;  %v9253_v22 = vpop.eup %9252  ;;  %9264 = vtanh.f32 %v2999_v37  ;;  %v3014_v13 = vadd.f32 %v11390_v23, %v11185_v24 }
 0x30b   : > { %8481 = vmatprep.mubr.msk.f32.mxu1 %vm2227_vm0, %v9229_v7  ;;  %v3009_v30 = vadd.f32 %v11185_v24, %v11392_v16  ;;  %v9255_v0 = vpop.eup %9254  ;;  %9266 = vtanh.f32 %v3004_v60 }
 0x30d   : > { %v11399_v48 = vpop.f32.mrb[4].mxu1  ;;  %9268 = vtanh.f32 %v3009_v30 }
 0x30e   : > { %v11401_v14 = vpop.f32.mrb[5].mxu1  ;;  %8482 = vmatmul.mubr.msk.f32.gmra.mrb[110].mxu1 %vm2227_vm0, %v9231_v55  ;;  %v9257_v46 = vpop.eup %9256  ;;  %9270 = vtanh.f32 %v3014_v13  ;;  %v3024_v32 = vadd.f32 %v11399_v48, %v11185_v24 }
 0x30f   : > { %8484 = vmatprep.mubr.msk.f32.mxu1 %vm2227_vm0, %v9233_v45  ;;  %v3019_v53 = vadd.f32 %v11185_v24, %v11401_v14  ;;  %v9259_v20 = vpop.eup %9258 }
 0x311   : > { %v11408_v36 = vpop.f32.mrb[6].mxu1  ;;  %9272 = vtanh.f32 %v3019_v53 }
 0x312   : > { %v11410_v26 = vpop.f32.mrb[7].mxu1  ;;  %8485 = vmatmul.mubr.msk.f32.gmra.mrb[112].mxu1 %vm2227_vm0, %v9235_v42  ;;  %v9261_v52 = vpop.eup %9260  ;;  %9274 = vtanh.f32 %v3024_v32  ;;  %v3034_v1 = vadd.f32 %v11408_v36, %v11185_v24 }
 0x313   : > { %8487 = vmatprep.mubr.msk.f32.mxu1 %vm2227_vm0, %v9237_v3  ;;  %v3029_v62 = vadd.f32 %v11185_v24, %v11410_v26  ;;  %v9263_v40 = vpop.eup %9262 }
 0x314   : > { %v9265_v15 = vpop.eup %9264 }
 0x315   : > { %v11417_v57 = vpop.f32.mrb[8].mxu1  ;;  %9276 = vtanh.f32 %v3029_v62  ;;  %v9267_v21 = vpop.eup %9266 }
 0x316   : > { %v11419_v10 = vpop.f32.mrb[9].mxu1  ;;  %8488 = vmatmul.mubr.msk.f32.gmra.mrb[114].mxu1 %vm2227_vm0, %v9239_v33  ;;  %9278 = vtanh.f32 %v3034_v1  ;;  %v3044_v23 = vadd.f32 %v11417_v57, %v11185_v24 }
 0x317   : > { %8490 = vmatprep.mubr.msk.f32.mxu1 %vm2227_vm0, %v9241_v19  ;;  %v3039_v39 = vadd.f32 %v11185_v24, %v11419_v10  ;;  %v9269_v56 = vpop.eup %9268 }
 0x318   : > { %v9271_v16 = vpop.eup %9270 }
 0x319   : > { %v11426_v47 = vpop.f32.mrb[10].mxu1  ;;  %9280 = vtanh.f32 %v3039_v39 }
 0x31a   : > { %v11428_v41 = vpop.f32.mrb[11].mxu1  ;;  %8491 = vmatmul.mubr.msk.f32.gmra.mrb[116].mxu1 %vm2227_vm0, %v9243_v27  ;;  %9282 = vtanh.f32 %v3044_v23  ;;  %v3054_v48 = vadd.f32 %v11426_v47, %v11185_v24 }
 0x31b   : > { %8493 = vmatprep.mubr.msk.f32.mxu1 %vm2227_vm0, %v9245_v17  ;;  %v3049_v7 = vadd.f32 %v11185_v24, %v11428_v41  ;;  %v9273_v4 = vpop.eup %9272 }
 0x31c   : > { %v9275_v14 = vpop.eup %9274 }
 0x31d   : > { %v11435_v54 = vpop.f32.mrb[12].mxu1  ;;  %9284 = vtanh.f32 %v3049_v7 }
 0x31e   : > { %v11437_v18 = vpop.f32.mrb[13].mxu1  ;;  %8494 = vmatmul.mubr.msk.f32.gmra.mrb[118].mxu1 %vm2227_vm0, %v9247_v6  ;;  %9286 = vtanh.f32 %v3054_v48  ;;  %v3064_v36 = vadd.f32 %v11435_v54, %v11185_v24 }
 0x31f   : > { %8496 = vmatprep.mubr.msk.f32.mxu1 %vm2227_vm0, %v9249_v61  ;;  %v3059_v45 = vadd.f32 %v11185_v24, %v11437_v18  ;;  %v9277_v5 = vpop.eup %9276 }
 0x320   : > { %v9279_v26 = vpop.eup %9278 }
 0x321   : > { %v11445_v38 = vpop.f32.mrb[14].mxu1  ;;  %9288 = vtanh.f32 %v3059_v45 }
 0x322   : > { %v11447_v25 = vpop.f32.mrb[15].mxu1  ;;  %8497 = vmatmul.mubr.msk.f32.gmra.mrb[120].mxu1 %vm2227_vm0, %v9251_v63  ;;  %9290 = vtanh.f32 %v3064_v36  ;;  %v3074_v57 = vadd.f32 %v11445_v38, %v11185_v24 }
 0x323   : > { %8499 = vmatprep.mubr.msk.f32.mxu1 %vm2227_vm0, %v9253_v22  ;;  %v3069_v3 = vadd.f32 %v11185_v24, %v11447_v25  ;;  %v9281_v2 = vpop.eup %9280 }
 0x324   : > { %v9283_v10 = vpop.eup %9282 }
 0x325   : > { %v11455_v34 = vpop.f32.mrb[16].mxu1  ;;  %9292 = vtanh.f32 %v3069_v3 }
 0x326   : > { %v11457_v43 = vpop.f32.mrb[17].mxu1  ;;  %8500 = vmatmul.mubr.msk.f32.gmra.mrb[122].mxu1 %vm2227_vm0, %v9255_v0  ;;  %9294 = vtanh.f32 %v3074_v57  ;;  %v3084_v47 = vadd.f32 %v11455_v34, %v11185_v24 }
 0x327   : > { %8502 = vmatprep.mubr.msk.f32.mxu1 %vm2227_vm0, %v9257_v46  ;;  %v3079_v19 = vadd.f32 %v11185_v24, %v11457_v43  ;;  %v9285_v51 = vpop.eup %9284 }
 0x328   : > { %v9287_v41 = vpop.eup %9286 }
 0x329   : > { %v11465_v58 = vpop.f32.mrb[18].mxu1  ;;  %9296 = vtanh.f32 %v3079_v19 }
 0x32a   : > { %v11467_v31 = vpop.f32.mrb[19].mxu1  ;;  %8503 = vmatmul.mubr.msk.f32.gmra.mrb[124].mxu1 %vm2227_vm0, %v9259_v20  ;;  %9298 = vtanh.f32 %v3084_v47  ;;  %v3094_v54 = vadd.f32 %v11465_v58, %v11185_v24 }
 0x32b   : > { %8505 = vmatprep.mubr.msk.f32.mxu1 %vm2227_vm0, %v9261_v52  ;;  %v3089_v17 = vadd.f32 %v11185_v24, %v11467_v31  ;;  %v9289_v8 = vpop.eup %9288 }
 0x32c   : > { %v9291_v18 = vpop.eup %9290 }
 0x32d   : > { %v11475_v11 = vpop.f32.mrb[20].mxu1  ;;  %9300 = vtanh.f32 %v3089_v17 }
 0x32e   : > { %v11477_v9 = vpop.f32.mrb[21].mxu1  ;;  %8506 = vmatmul.mubr.msk.f32.gmra.mrb[126].mxu1 %vm2227_vm0, %v9263_v40  ;;  %9302 = vtanh.f32 %v3094_v54  ;;  %v3104_v38 = vadd.f32 %v11475_v11, %v11185_v24 }
 0x32f   : > { %8508 = vmatprep.mubr.msk.f32.mxu1 %vm2227_vm0, %v9265_v15  ;;  %v3099_v61 = vadd.f32 %v11185_v24, %v11477_v9  ;;  %v9293_v37 = vpop.eup %9292 }
 0x330   : > { %v9295_v25 = vpop.eup %9294 }
 0x331   : > { %v11485_v50 = vpop.f32.mrb[22].mxu1  ;;  %9304 = vtanh.f32 %v3099_v61 }
 0x332   : > { %v11487_v44 = vpop.f32.mrb[23].mxu1  ;;  %8509 = vmatmul.mubr.msk.f32.gmra.mrb[128].mxu1 %vm2227_vm0, %v9267_v21  ;;  %9306 = vtanh.f32 %v3104_v38  ;;  %v3114_v34 = vadd.f32 %v11485_v50, %v11185_v24 }
 0x333   : > { %8511 = vmatprep.mubr.msk.f32.mxu1 %vm2227_vm0, %v9269_v56  ;;  %v3109_v22 = vadd.f32 %v11185_v24, %v11487_v44  ;;  %v9297_v30 = vpop.eup %9296 }
 0x334   : > { %v9299_v43 = vpop.eup %9298 }
 0x335   : > { %v11495_v12 = vpop.f32.mrb[24].mxu1  ;;  %9308 = vtanh.f32 %v3109_v22 }
 0x336   : > { %v11497_v55 = vpop.f32.mrb[25].mxu1  ;;  %8512 = vmatmul.mubr.msk.f32.gmra.mrb[130].mxu1 %vm2227_vm0, %v9271_v16  ;;  %9310 = vtanh.f32 %v3114_v34  ;;  %v3124_v58 = vadd.f32 %v11495_v12, %v11185_v24 }
 0x337   : > { %8514 = vmatprep.mubr.msk.f32.mxu1 %vm2227_vm0, %v9273_v4  ;;  %v3119_v46 = vadd.f32 %v11185_v24, %v11497_v55  ;;  %v9301_v53 = vpop.eup %9300 }
 0x338   : > { %v9303_v31 = vpop.eup %9302 }
 0x339   : > { %v11505_v28 = vpop.f32.mrb[26].mxu1  ;;  %9312 = vtanh.f32 %v3119_v46 }
 0x33a   : > { %v11507_v42 = vpop.f32.mrb[27].mxu1  ;;  %8515 = vmatmul.mubr.msk.f32.gmra.mrb[132].mxu1 %vm2227_vm0, %v9275_v14  ;;  %9314 = vtanh.f32 %v3124_v58  ;;  %v3134_v11 = vadd.f32 %v11505_v28, %v11185_v24 }
 0x33b   : > { %8517 = vmatprep.mubr.msk.f32.mxu1 %vm2227_vm0, %v9277_v5  ;;  %v3129_v52 = vadd.f32 %v11185_v24, %v11507_v42  ;;  %v9305_v62 = vpop.eup %9304 }
 0x33c   : > { %v9307_v9 = vpop.eup %9306 }
 0x33d   : > { %v11515_v49 = vpop.f32.mrb[28].mxu1  ;;  %9316 = vtanh.f32 %v3129_v52 }
 0x33e   : > { %v11517_v33 = vpop.f32.mrb[29].mxu1  ;;  %8518 = vmatmul.mubr.msk.f32.gmra.mrb[134].mxu1 %vm2227_vm0, %v9279_v26  ;;  %9318 = vtanh.f32 %v3134_v11  ;;  %v3144_v50 = vadd.f32 %v11515_v49, %v11185_v24  ;;  %v11623_v49 = vld [vmem:[%s13276_s4] ss:$0 sm:$0xff] }
 0x33f   : > { %8520 = vmatprep.mubr.msk.f32.mxu1 %vm2227_vm0, %v9281_v2  ;;  %v3139_v15 = vadd.f32 %v11185_v24, %v11517_v33  ;;  %v9309_v39 = vpop.eup %9308 }
 0x340   : > { %v9311_v44 = vpop.eup %9310 }
 0x341   : > { %v11525_v59 = vpop.f32.mrb[30].mxu1  ;;  %9320 = vtanh.f32 %v3139_v15 }
 0x342   : > { %v11527_v27 = vpop.f32.mrb[31].mxu1  ;;  %8521 = vmatmul.mubr.msk.f32.gmra.mrb[136].mxu1 %vm2227_vm0, %v9283_v10  ;;  %9322 = vtanh.f32 %v3144_v50  ;;  %v3154_v12 = vadd.f32 %v11525_v59, %v11185_v24 }
 0x343   : > { %8523 = vmatprep.mubr.msk.f32.mxu1 %vm2227_vm0, %v9285_v51  ;;  %v3149_v56 = vadd.f32 %v11185_v24, %v11527_v27  ;;  %v9313_v7 = vpop.eup %9312 }
 0x344   : > { %v9315_v55 = vpop.eup %9314 }
 0x345   : > { %v11535_v29 = vpop.f32.mrb[32].mxu1  ;;  %9324 = vtanh.f32 %v3149_v56 }
 0x346   : > { %v11537_v6 = vpop.f32.mrb[33].mxu1  ;;  %8524 = vmatmul.mubr.msk.f32.gmra.mrb[138].mxu1 %vm2227_vm0, %v9287_v41  ;;  %9326 = vtanh.f32 %v3154_v12  ;;  %v3164_v28 = vadd.f32 %v11535_v29, %v11185_v24 }
 0x347   : > { %8526 = vmatprep.mubr.msk.f32.mxu1 %vm2227_vm0, %v9289_v8  ;;  %v3159_v4 = vadd.f32 %v11185_v24, %v11537_v6  ;;  %v9317_v45 = vpop.eup %9316 }
 0x348   : > { %v9319_v42 = vpop.eup %9318 }
 0x349   : > { %v11545_v35 = vpop.f32.mrb[34].mxu1  ;;  %9328 = vtanh.f32 %v3159_v4 }
 0x34a   : > { %v11547_v63 = vpop.f32.mrb[35].mxu1  ;;  %8527 = vmatmul.mubr.msk.f32.gmra.mrb[140].mxu1 %vm2227_vm0, %v9291_v18  ;;  %9330 = vtanh.f32 %v3164_v28  ;;  %v3174_v2 = vadd.f32 %v11623_v49, %v11545_v35 }
 0x34b   : > { %8529 = vmatprep.mubr.msk.f32.mxu1 %vm2227_vm0, %v9293_v37  ;;  %v3169_v5 = vadd.f32 %v11185_v24, %v11547_v63  ;;  %v9321_v3 = vpop.eup %9320 }
 0x34c   : > { %v9323_v33 = vpop.eup %9322 }
 0x34d   : > { %v11555_v60 = vpop.f32.mrb[36].mxu1  ;;  %9332 = vtanh.f32 %v3169_v5 }
 0x34e   : > { %v11557_v0 = vpop.f32.mrb[37].mxu1  ;;  %8530 = vmatmul.mubr.msk.f32.gmra.mrb[142].mxu1 %vm2227_vm0, %v9295_v25  ;;  %9334 = vtanh.f32 %v3174_v2  ;;  %v3184_v59 = vadd.f32 %v11623_v49, %v11555_v60 }
 0x34f   : > { %8532 = vmatprep.mubr.msk.f32.mxu1 %vm2227_vm0, %v9297_v30  ;;  %v3179_v24 = vadd.f32 %v11623_v49, %v11557_v0  ;;  %v9325_v19 = vpop.eup %9324 }
 0x350   : > { %v9327_v27 = vpop.eup %9326 }
 0x351   : > { %v11565_v13 = vpop.f32.mrb[38].mxu1  ;;  %9336 = vtanh.f32 %v3179_v24 }
 0x352   : > { %v11567_v20 = vpop.f32.mrb[39].mxu1  ;;  %8533 = vmatmul.mubr.msk.f32.gmra.mrb[144].mxu1 %vm2227_vm0, %v9299_v43  ;;  %9338 = vtanh.f32 %v3184_v59  ;;  %v3194_v29 = vadd.f32 %v11623_v49, %v11565_v13 }
 0x353   : > { %8535 = vmatprep.mubr.msk.f32.mxu1 %vm2227_vm0, %v9301_v53  ;;  %v3189_v51 = vadd.f32 %v11623_v49, %v11567_v20  ;;  %v9329_v17 = vpop.eup %9328 }
 0x354   : > { %v9331_v6 = vpop.eup %9330 }
 0x355   : > { %v11575_v32 = vpop.f32.mrb[40].mxu1  ;;  %9340 = vtanh.f32 %v3189_v51 }
 0x356   : > { %v11577_v40 = vpop.f32.mrb[41].mxu1  ;;  %8536 = vmatmul.mubr.msk.f32.gmra.mrb[146].mxu1 %vm2227_vm0, %v9303_v31  ;;  %9342 = vtanh.f32 %v3194_v29  ;;  %v3204_v35 = vadd.f32 %v11623_v49, %v11575_v32 }
 0x357   : > { %8538 = vmatprep.mubr.msk.f32.mxu1 %vm2227_vm0, %v9305_v62  ;;  %v3199_v8 = vadd.f32 %v11623_v49, %v11577_v40  ;;  %v9333_v61 = vpop.eup %9332 }
 0x358   : > { %v9335_v63 = vpop.eup %9334 }
 0x359   : > { %v11585_v1 = vpop.f32.mrb[42].mxu1  ;;  %9344 = vtanh.f32 %v3199_v8 }
 0x35a   : > { %v11587_v21 = vpop.f32.mrb[43].mxu1  ;;  %8539 = vmatmul.mubr.msk.f32.gmra.mrb[148].mxu1 %vm2227_vm0, %v9307_v9  ;;  %9346 = vtanh.f32 %v3204_v35  ;;  %v3214_v60 = vadd.f32 %v11623_v49, %v11585_v1 }
 0x35b   : > { %8541 = vmatprep.mubr.msk.f32.mxu1 %vm2227_vm0, %v9309_v39  ;;  %v3209_v37 = vadd.f32 %v11623_v49, %v11587_v21  ;;  %v9337_v22 = vpop.eup %9336  ;;  %v11701_v39 = vld [vmem:[%s13276_s4 + $0x1] ss:$0 sm:$0xff] }
 0x35c   : > { %v9339_v0 = vpop.eup %9338 }
 0x35d   : > { %v11595_v23 = vpop.f32.mrb[44].mxu1  ;;  %9348 = vtanh.f32 %v3209_v37 }
 0x35e   : > { %v11597_v16 = vpop.f32.mrb[45].mxu1  ;;  %8542 = vmatmul.mubr.msk.f32.gmra.mrb[150].mxu1 %vm2227_vm0, %v9311_v44  ;;  %9350 = vtanh.f32 %v3214_v60  ;;  %v3224_v13 = vadd.f32 %v11623_v49, %v11595_v23 }
 0x35f   : > { %8544 = vmatprep.mubr.msk.f32.mxu1 %vm2227_vm0, %v9313_v7  ;;  %v3219_v30 = vadd.f32 %v11623_v49, %v11597_v16  ;;  %v9341_v46 = vpop.eup %9340 }
 0x360   : > { %v9343_v20 = vpop.eup %9342 }
 0x361   : > { %v11605_v48 = vpop.f32.mrb[46].mxu1  ;;  %9352 = vtanh.f32 %v3219_v30 }
 0x362   : > { %v11607_v14 = vpop.f32.mrb[47].mxu1  ;;  %8545 = vmatmul.mubr.msk.f32.gmra.mrb[152].mxu1 %vm2227_vm0, %v9315_v55  ;;  %9354 = vtanh.f32 %v3224_v13  ;;  %v3234_v32 = vadd.f32 %v11623_v49, %v11605_v48 }
 0x363   : > { %8547 = vmatprep.mubr.msk.f32.mxu1 %vm2227_vm0, %v9317_v45  ;;  %v3229_v53 = vadd.f32 %v11623_v49, %v11607_v14  ;;  %v9345_v52 = vpop.eup %9344 }
 0x364   : > { %v9347_v40 = vpop.eup %9346 }
 0x365   : > { %v11615_v36 = vpop.f32.mrb[48].mxu1  ;;  %9356 = vtanh.f32 %v3229_v53 }
 0x366   : > { %v11617_v26 = vpop.f32.mrb[49].mxu1  ;;  %8548 = vmatmul.mubr.msk.f32.gmra.mrb[154].mxu1 %vm2227_vm0, %v9319_v42  ;;  %9358 = vtanh.f32 %v3234_v32  ;;  %v3244_v1 = vadd.f32 %v11623_v49, %v11615_v36 }
 0x367   : > { %8550 = vmatprep.mubr.msk.f32.mxu1 %vm2227_vm0, %v9321_v3  ;;  %v3239_v62 = vadd.f32 %v11623_v49, %v11617_v26  ;;  %v9349_v15 = vpop.eup %9348 }
 0x368   : > { %v9351_v50 = vpop.eup %9350 }
 0x369   : > { %v11630_v57 = vpop.f32.mrb[50].mxu1  ;;  %9360 = vtanh.f32 %v3239_v62 }
 0x36a   : > { %v11632_v10 = vpop.f32.mrb[51].mxu1  ;;  %8551 = vmatmul.mubr.msk.f32.gmra.mrb[156].mxu1 %vm2227_vm0, %v9323_v33  ;;  %9362 = vtanh.f32 %v3244_v1  ;;  %v3254_v16 = vadd.f32 %v11623_v49, %v11630_v57 }
 0x36b   : > { %8553 = vmatprep.mubr.msk.f32.mxu1 %vm2227_vm0, %v9325_v19  ;;  %v3249_v21 = vadd.f32 %v11623_v49, %v11632_v10  ;;  %v9353_v44 = vpop.eup %9352 }
 0x36c   : > { %v9355_v55 = vpop.eup %9354 }
 0x36d   : > { %v11640_v47 = vpop.f32.mrb[52].mxu1  ;;  %9364 = vtanh.f32 %v3249_v21 }
 0x36e   : > { %v11642_v41 = vpop.f32.mrb[53].mxu1  ;;  %8554 = vmatmul.mubr.msk.f32.gmra.mrb[158].mxu1 %vm2227_vm0, %v9327_v27  ;;  %v3264_v5 = vadd.f32 %v11623_v49, %v11640_v47 }
 0x36f   : > { %8556 = vmatprep.mubr.msk.f32.mxu1 %vm2227_vm0, %v9329_v17  ;;  %v3259_v4 = vadd.f32 %v11623_v49, %v11642_v41  ;;  %v9357_v45 = vpop.eup %9356 }
 0x370   : > { %v9359_v3 = vpop.eup %9358 }
 0x371   : > { %v11650_v54 = vpop.f32.mrb[54].mxu1 }
 0x372   : > { %v11652_v18 = vpop.f32.mrb[55].mxu1  ;;  %8557 = vmatmul.mubr.msk.f32.gmra.mrb[160].mxu1 %vm2227_vm0, %v9331_v6  ;;  %v3274_v57 = vadd.f32 %v11623_v49, %v11650_v54 }
 0x373   : > { %8559 = vmatprep.mubr.msk.f32.mxu1 %vm2227_vm0, %v9333_v61  ;;  %v3269_v36 = vadd.f32 %v11623_v49, %v11652_v18  ;;  %v9361_v2 = vpop.eup %9360 }
 0x374   : > { %v9363_v59 = vpop.eup %9362 }
 0x375   : > { %v11660_v38 = vpop.f32.mrb[56].mxu1 }
 0x376   : > { %v11662_v25 = vpop.f32.mrb[57].mxu1  ;;  %8560 = vmatmul.mubr.msk.f32.gmra.mrb[162].mxu1 %vm2227_vm0, %v9335_v63  ;;  %v3284_v29 = vadd.f32 %v11623_v49, %v11660_v38 }
 0x377   : > { %8562 = vmatprep.mubr.msk.f32.mxu1 %vm2227_vm0, %v9337_v22  ;;  %v3279_v10 = vadd.f32 %v11623_v49, %v11662_v25  ;;  %v9365_v27 = vpop.eup %9364 }
 0x379   : > { %v11670_v34 = vpop.f32.mrb[58].mxu1 }
 0x37a   : > { %v11672_v43 = vpop.f32.mrb[59].mxu1  ;;  %8563 = vmatmul.mubr.msk.f32.gmra.mrb[164].mxu1 %vm2227_vm0, %v9339_v0  ;;  %v3294_v22 = vadd.f32 %v11623_v49, %v11670_v34 }
 0x37b   : > { %8565 = vmatprep.mubr.msk.f32.mxu1 %vm2227_vm0, %v9341_v46  ;;  %v3289_v54 = vadd.f32 %v11623_v49, %v11672_v43 }
 0x37d   : > { %v11680_v58 = vpop.f32.mrb[60].mxu1 }
 0x37e   : > { %v11682_v31 = vpop.f32.mrb[61].mxu1  ;;  %8566 = vmatmul.mubr.msk.f32.gmra.mrb[166].mxu1 %vm2227_vm0, %v9343_v20  ;;  %v3304_v20 = vadd.f32 %v11623_v49, %v11680_v58 }
 0x37f   : > { %8568 = vmatprep.mubr.msk.f32.mxu1 %vm2227_vm0, %v9345_v52  ;;  %v3299_v30 = vadd.f32 %v11623_v49, %v11682_v31 }
 0x381   : > { %v11690_v11 = vpop.f32.mrb[62].mxu1 }
 0x382   : > { %v11692_v9 = vpop.f32.mrb[63].mxu1  ;;  %8569 = vmatmul.mubr.msk.f32.gmra.mrb[168].mxu1 %vm2227_vm0, %v9347_v40 }
 0x383   : > { %8571 = vmatprep.mubr.msk.f32.mxu1 %vm2227_vm0, %v9349_v15  ;;  %v3309_v32 = vadd.f32 %v11623_v49, %v11692_v9 }
 0x385   : > { %v8414_v56 = vpop.f32.mrb[64].mxu1 }
 0x386   : > { %v3911_v23 = vadd.f32 %v8414_v56, %v11701_v39  ;;  %v3905_v7 = vpop.f32.mrb[65].mxu1  ;;  %8572 = vmatmul.mubr.msk.f32.gmra.mrb[170].mxu1 %vm2227_vm0, %v9351_v50  ;;  %v3314_v50 = vadd.f32 %v11623_v49, %v11690_v11 }
 0x387   : > { %v3906_v12 = vadd.f32 %v11701_v39, %v3905_v7  ;;  %8574 = vmatprep.mubr.msk.f32.mxu1 %vm2227_vm0, %v9353_v44 }
 0x389   : > { %9366 = vtanh.f32 %v3906_v12  ;;  %v8417_v48 = vpop.f32.mrb[66].mxu1 }
 0x38a   : > { %9368 = vtanh.f32 %v3911_v23  ;;  %v3921_v14 = vadd.f32 %v8417_v48, %v11701_v39  ;;  %v3915_v28 = vpop.f32.mrb[67].mxu1  ;;  %8575 = vmatmul.mubr.msk.f32.gmra.mrb[172].mxu1 %vm2227_vm0, %v9355_v55 }
 0x38b   : > { %9370 = vtanh.f32 %v3254_v16  ;;  %v3916_v42 = vadd.f32 %v11701_v39, %v3915_v28  ;;  %8577 = vmatprep.mubr.msk.f32.mxu1 %vm2227_vm0, %v9357_v45 }
 0x38c   : > { %9372 = vtanh.f32 %v3259_v4 }
 0x38d   : > { %9374 = vtanh.f32 %v3916_v42  ;;  %v8420_v26 = vpop.f32.mrb[68].mxu1 }
 0x38e   : > { %9376 = vtanh.f32 %v3921_v14  ;;  %v3931_v24 = vadd.f32 %v8420_v26, %v11701_v39  ;;  %v3925_v33 = vpop.f32.mrb[69].mxu1  ;;  %8578 = vmatmul.mubr.msk.f32.gmra.mrb[174].mxu1 %vm2227_vm0, %v9359_v3 }
 0x38f   : > { %9378 = vtanh.f32 %v3264_v5  ;;  %v3926_v19 = vadd.f32 %v11701_v39, %v3925_v33  ;;  %8580 = vmatprep.mubr.msk.f32.mxu1 %vm2227_vm0, %v9361_v2 }
 0x390   : > { %9380 = vtanh.f32 %v3269_v36 }
 0x391   : > { %9382 = vtanh.f32 %v3926_v19  ;;  %v8423_v51 = vpop.f32.mrb[70].mxu1 }
 0x392   : > { %9384 = vtanh.f32 %v3931_v24  ;;  %v3941_v47 = vadd.f32 %v8423_v51, %v11701_v39  ;;  %v3935_v17 = vpop.f32.mrb[71].mxu1  ;;  %8581 = vmatmul.mubr.msk.f32.gmra.mrb[176].mxu1 %vm2227_vm0, %v9363_v59 }
 0x393   : > { %v9367_v41 = vpop.eup %9366  ;;  %9386 = vtanh.f32 %v3274_v57  ;;  %v3936_v8 = vadd.f32 %v11701_v39, %v3935_v17  ;;  %8583 = vmatprep.mubr.msk.f32.mxu1 %vm2227_vm0, %v9365_v27 }
 0x394   : > { %v9369_v6 = vpop.eup %9368  ;;  %9388 = vtanh.f32 %v3279_v10  ;;  %8612 = vmatprep.mubr.msk.f32.mxu0 %vm2227_vm0, %v9367_v41 }
 0x395   : > { %v9371_v61 = vpop.eup %9370  ;;  %9390 = vtanh.f32 %v3936_v8  ;;  %v8426_v18 = vpop.f32.mrb[72].mxu1  ;;  %8613 = vmatmul.mubr.msk.f32.vlgmr.msra.gmra.mrb[64].mxu0 %vm2227_vm0, %v9369_v6 }
 0x396   : > { %v9373_v35 = vpop.eup %9372  ;;  %9392 = vtanh.f32 %v3941_v47  ;;  %v3951_v37 = vadd.f32 %v8426_v18, %v11701_v39  ;;  %v3945_v63 = vpop.f32.mrb[73].mxu1  ;;  %8584 = vmatmul.mubr.msk.f32.gmra.mrb[178].mxu1 %vm2227_vm0, %v9371_v61 }
 0x397   : > { %v9375_v38 = vpop.eup %9374  ;;  %9394 = vtanh.f32 %v3284_v29  ;;  %v3946_v25 = vadd.f32 %v11701_v39, %v3945_v63  ;;  %8586 = vmatprep.mubr.msk.f32.mxu1 %vm2227_vm0, %v9373_v35 }
 0x398   : > { %v9377_v60 = vpop.eup %9376  ;;  %9396 = vtanh.f32 %v3289_v54  ;;  %8615 = vmatprep.mubr.msk.f32.mxu0 %vm2227_vm0, %v9375_v38 }
 0x399   : > { %v9379_v0 = vpop.eup %9378  ;;  %9398 = vtanh.f32 %v3946_v25  ;;  %v8429_v46 = vpop.f32.mrb[74].mxu1  ;;  %8616 = vmatmul.mubr.msk.f32.gmra.mrb[66].mxu0 %vm2227_vm0, %v9377_v60 }
 0x39a   : > { %v9381_v43 = vpop.eup %9380  ;;  %9400 = vtanh.f32 %v3951_v37  ;;  %v3961_v34 = vadd.f32 %v8429_v46, %v11701_v39  ;;  %v3955_v13 = vpop.f32.mrb[75].mxu1  ;;  %8587 = vmatmul.mubr.msk.f32.gmra.mrb[180].mxu1 %vm2227_vm0, %v9379_v0 }
 0x39b   : > { %v9383_v53 = vpop.eup %9382  ;;  %9402 = vtanh.f32 %v3294_v22  ;;  %v3956_v52 = vadd.f32 %v11701_v39, %v3955_v13  ;;  %8589 = vmatprep.mubr.msk.f32.mxu1 %vm2227_vm0, %v9381_v43 }
 0x39c   : > { %v9385_v31 = vpop.eup %9384  ;;  %9404 = vtanh.f32 %v3299_v30  ;;  %8618 = vmatprep.mubr.msk.f32.mxu0 %vm2227_vm0, %v9383_v53 }
 0x39d   : > { %v9387_v62 = vpop.eup %9386  ;;  %9406 = vtanh.f32 %v3956_v52  ;;  %v8432_v40 = vpop.f32.mrb[76].mxu1  ;;  %8619 = vmatmul.mubr.msk.f32.gmra.mrb[68].mxu0 %vm2227_vm0, %v9385_v31 }
 0x39e   : > { %v9389_v15 = vpop.eup %9388  ;;  %9408 = vtanh.f32 %v3961_v34  ;;  %v3971_v58 = vadd.f32 %v8432_v40, %v11701_v39  ;;  %v3965_v1 = vpop.f32.mrb[77].mxu1  ;;  %8590 = vmatmul.mubr.msk.f32.gmra.mrb[182].mxu1 %vm2227_vm0, %v9387_v62 }
 0x39f   : > { %v9391_v21 = vpop.eup %9390  ;;  %9410 = vtanh.f32 %v3304_v20  ;;  %v3966_v9 = vadd.f32 %v11701_v39, %v3965_v1  ;;  %8592 = vmatprep.mubr.msk.f32.mxu1 %vm2227_vm0, %v9389_v15 }
 0x3a0   : > { %v9393_v56 = vpop.eup %9392  ;;  %9412 = vtanh.f32 %v3309_v32  ;;  %8621 = vmatprep.mubr.msk.f32.mxu0 %vm2227_vm0, %v9391_v21 }
 0x3a1   : > { %v9395_v44 = vpop.eup %9394  ;;  %9414 = vtanh.f32 %v3966_v9  ;;  %v8435_v23 = vpop.f32.mrb[78].mxu1  ;;  %8622 = vmatmul.mubr.msk.f32.gmra.mrb[70].mxu0 %vm2227_vm0, %v9393_v56 }
 0x3a2   : > { %v9397_v7 = vpop.eup %9396  ;;  %9416 = vtanh.f32 %v3971_v58  ;;  %v3981_v16 = vadd.f32 %v8435_v23, %v11701_v39  ;;  %v3975_v12 = vpop.f32.mrb[79].mxu1  ;;  %8593 = vmatmul.mubr.msk.f32.gmra.mrb[184].mxu1 %vm2227_vm0, %v9395_v44 }
 0x3a3   : > { %v9399_v49 = vpop.eup %9398  ;;  %9418 = vtanh.f32 %v3314_v50  ;;  %v3976_v11 = vadd.f32 %v11701_v39, %v3975_v12  ;;  %8595 = vmatprep.mubr.msk.f32.mxu1 %vm2227_vm0, %v9397_v7 }
 0x3a4   : > { %v9401_v4 = vpop.eup %9400  ;;  %8624 = vmatprep.mubr.msk.f32.mxu0 %vm2227_vm0, %v9399_v49 }
 0x3a5   : > { %v9403_v55 = vpop.eup %9402  ;;  %9420 = vtanh.f32 %v3976_v11  ;;  %v8438_v48 = vpop.f32.mrb[80].mxu1  ;;  %8625 = vmatmul.mubr.msk.f32.gmra.mrb[72].mxu0 %vm2227_vm0, %v9401_v4 }
 0x3a6   : > { %v9405_v45 = vpop.eup %9404  ;;  %9422 = vtanh.f32 %v3981_v16  ;;  %v3991_v14 = vadd.f32 %v8438_v48, %v11701_v39  ;;  %v3985_v28 = vpop.f32.mrb[81].mxu1  ;;  %8596 = vmatmul.mubr.msk.f32.gmra.mrb[186].mxu1 %vm2227_vm0, %v9403_v55 }
 0x3a7   : > { %v9407_v5 = vpop.eup %9406  ;;  %v3986_v42 = vadd.f32 %v11701_v39, %v3985_v28  ;;  %8598 = vmatprep.mubr.msk.f32.mxu1 %vm2227_vm0, %v9405_v45 }
 0x3a8   : > { %v9409_v36 = vpop.eup %9408  ;;  %8627 = vmatprep.mubr.msk.f32.mxu0 %vm2227_vm0, %v9407_v5 }
 0x3a9   : > { %v9411_v3 = vpop.eup %9410  ;;  %9424 = vtanh.f32 %v3986_v42  ;;  %v8441_v26 = vpop.f32.mrb[82].mxu1  ;;  %8628 = vmatmul.mubr.msk.f32.gmra.mrb[74].mxu0 %vm2227_vm0, %v9409_v36 }
 0x3aa   : > { %v9413_v2 = vpop.eup %9412  ;;  %9426 = vtanh.f32 %v3991_v14  ;;  %v4001_v24 = vadd.f32 %v8441_v26, %v11701_v39  ;;  %v3995_v33 = vpop.f32.mrb[83].mxu1  ;;  %8599 = vmatmul.mubr.msk.f32.gmra.mrb[188].mxu1 %vm2227_vm0, %v9411_v3 }
 0x3ab   : > { %v9415_v57 = vpop.eup %9414  ;;  %v3996_v19 = vadd.f32 %v11701_v39, %v3995_v33  ;;  %8601 = vmatprep.mubr.msk.f32.mxu1 %vm2227_vm0, %v9413_v2 }
 0x3ac   : > { %v9417_v10 = vpop.eup %9416  ;;  %8630 = vmatprep.mubr.msk.f32.mxu0 %vm2227_vm0, %v9415_v57 }
 0x3ad   : > { %v9419_v59 = vpop.eup %9418  ;;  %9428 = vtanh.f32 %v3996_v19  ;;  %v8444_v51 = vpop.f32.mrb[84].mxu1  ;;  %8631 = vmatmul.mubr.msk.f32.gmra.mrb[76].mxu0 %vm2227_vm0, %v9417_v10 }
 0x3ae   : > { %9430 = vtanh.f32 %v4001_v24  ;;  %v4011_v27 = vadd.f32 %v8444_v51, %v11701_v39  ;;  %v4005_v47 = vpop.f32.mrb[85].mxu1  ;;  %8602 = vmatmul.mubr.msk.f32.gmra.mrb[190].mxu1 %vm2227_vm0, %v9419_v59 }
 0x3af   : > { %v9421_v17 = vpop.eup %9420  ;;  %v4006_v41 = vadd.f32 %v11701_v39, %v4005_v47 }
 0x3b0   : > { %v9423_v29 = vpop.eup %9422  ;;  %8633 = vmatprep.mubr.msk.f32.mxu0 %vm2227_vm0, %v9421_v17 }
 0x3b1   : > { %9432 = vtanh.f32 %v4006_v41  ;;  %v8447_v8 = vpop.f32.mrb[86].mxu1  ;;  %8634 = vmatmul.mubr.msk.f32.gmra.mrb[78].mxu0 %vm2227_vm0, %v9423_v29 }
 0x3b2   : > { %9434 = vtanh.f32 %v4011_v27  ;;  %v4021_v6 = vadd.f32 %v8447_v8, %v11701_v39  ;;  %v4015_v54 = vpop.f32.mrb[87].mxu1 }
 0x3b3   : > { %v9425_v61 = vpop.eup %9424  ;;  %v4016_v18 = vadd.f32 %v11701_v39, %v4015_v54 }
 0x3b4   : > { %v9427_v35 = vpop.eup %9426  ;;  %8636 = vmatprep.mubr.msk.f32.mxu0 %vm2227_vm0, %v9425_v61 }
 0x3b5   : > { %9436 = vtanh.f32 %v4016_v18  ;;  %v8450_v37 = vpop.f32.mrb[88].mxu1  ;;  %8637 = vmatmul.mubr.msk.f32.gmra.mrb[80].mxu0 %vm2227_vm0, %v9427_v35 }
 0x3b6   : > { %9438 = vtanh.f32 %v4021_v6  ;;  %v4031_v63 = vadd.f32 %v8450_v37, %v11701_v39  ;;  %v4025_v38 = vpop.f32.mrb[89].mxu1 }
 0x3b7   : > { %v9429_v22 = vpop.eup %9428  ;;  %v4026_v25 = vadd.f32 %v11701_v39, %v4025_v38 }
 0x3b8   : > { %v9431_v60 = vpop.eup %9430  ;;  %8639 = vmatprep.mubr.msk.f32.mxu0 %vm2227_vm0, %v9429_v22 }
 0x3b9   : > { %9440 = vtanh.f32 %v4026_v25  ;;  %v8453_v30 = vpop.f32.mrb[90].mxu1  ;;  %8640 = vmatmul.mubr.msk.f32.gmra.mrb[82].mxu0 %vm2227_vm0, %v9431_v60 }
 0x3ba   : > { %9442 = vtanh.f32 %v4031_v63  ;;  %v4041_v0 = vadd.f32 %v8453_v30, %v11701_v39  ;;  %v4035_v46 = vpop.f32.mrb[91].mxu1 }
 0x3bb   : > { %v9433_v43 = vpop.eup %9432  ;;  %v4036_v34 = vadd.f32 %v11701_v39, %v4035_v46 }
 0x3bc   : > { %v9435_v13 = vpop.eup %9434  ;;  %8642 = vmatprep.mubr.msk.f32.mxu0 %vm2227_vm0, %v9433_v43 }
 0x3bd   : > { %9444 = vtanh.f32 %v4036_v34  ;;  %v8456_v53 = vpop.f32.mrb[92].mxu1  ;;  %8643 = vmatmul.mubr.msk.f32.gmra.mrb[84].mxu0 %vm2227_vm0, %v9435_v13 }
 0x3be   : > { %9446 = vtanh.f32 %v4041_v0  ;;  %v4051_v20 = vadd.f32 %v8456_v53, %v11701_v39  ;;  %v4045_v52 = vpop.f32.mrb[93].mxu1 }
 0x3bf   : > { %v9437_v31 = vpop.eup %9436  ;;  %v4046_v32 = vadd.f32 %v11701_v39, %v4045_v52 }
 0x3c0   : > { %v9439_v62 = vpop.eup %9438  ;;  %8645 = vmatprep.mubr.msk.f32.mxu0 %vm2227_vm0, %v9437_v31 }
 0x3c1   : > { %9448 = vtanh.f32 %v4046_v32  ;;  %v8459_v40 = vpop.f32.mrb[94].mxu1  ;;  %8646 = vmatmul.mubr.msk.f32.gmra.mrb[86].mxu0 %vm2227_vm0, %v9439_v62 }
 0x3c2   : > { %9450 = vtanh.f32 %v4051_v20  ;;  %v4061_v15 = vadd.f32 %v8459_v40, %v11701_v39  ;;  %v4055_v58 = vpop.f32.mrb[95].mxu1 }
 0x3c3   : > { %v9441_v1 = vpop.eup %9440  ;;  %v4056_v21 = vadd.f32 %v11701_v39, %v4055_v58 }
 0x3c4   : > { %v9443_v50 = vpop.eup %9442  ;;  %8648 = vmatprep.mubr.msk.f32.mxu0 %vm2227_vm0, %v9441_v1 }
 0x3c5   : > { %9452 = vtanh.f32 %v4056_v21  ;;  %v8462_v9 = vpop.f32.mrb[96].mxu1  ;;  %8649 = vmatmul.mubr.msk.f32.gmra.mrb[88].mxu0 %vm2227_vm0, %v9443_v50 }
 0x3c6   : > { %9454 = vtanh.f32 %v4061_v15  ;;  %v4071_v56 = vadd.f32 %v8462_v9, %v11701_v39  ;;  %v4065_v44 = vpop.f32.mrb[97].mxu1 }
 0x3c7   : > { %v9445_v23 = vpop.eup %9444  ;;  %v4066_v7 = vadd.f32 %v11701_v39, %v4065_v44 }
 0x3c8   : > { %v9447_v16 = vpop.eup %9446  ;;  %8651 = vmatprep.mubr.msk.f32.mxu0 %vm2227_vm0, %v9445_v23 }
 0x3c9   : > { %9456 = vtanh.f32 %v4066_v7  ;;  %v8465_v12 = vpop.f32.mrb[98].mxu1  ;;  %8652 = vmatmul.mubr.msk.f32.gmra.mrb[90].mxu0 %vm2227_vm0, %v9447_v16 }
 0x3ca   : > { %9458 = vtanh.f32 %v4071_v56  ;;  %v4081_v49 = vadd.f32 %v8465_v12, %v11701_v39  ;;  %v4075_v11 = vpop.f32.mrb[99].mxu1 }
 0x3cb   : > { %v9449_v4 = vpop.eup %9448  ;;  %v4076_v55 = vadd.f32 %v11701_v39, %v4075_v11 }
 0x3cc   : > { %v9451_v48 = vpop.eup %9450  ;;  %8654 = vmatprep.mubr.msk.f32.mxu0 %vm2227_vm0, %v9449_v4 }
 0x3cd   : > { %9460 = vtanh.f32 %v4076_v55  ;;  %v8468_v45 = vpop.f32.mrb[100].mxu1  ;;  %8655 = vmatmul.mubr.msk.f32.gmra.mrb[92].mxu0 %vm2227_vm0, %v9451_v48 }
 0x3ce   : > { %9462 = vtanh.f32 %v4081_v49  ;;  %v4091_v14 = vadd.f32 %v8468_v45, %v11701_v39  ;;  %v4085_v28 = vpop.f32.mrb[101].mxu1 }
 0x3cf   : > { %v9453_v5 = vpop.eup %9452  ;;  %v4086_v42 = vadd.f32 %v11701_v39, %v4085_v28 }
 0x3d0   : > { %v9455_v36 = vpop.eup %9454  ;;  %8657 = vmatprep.mubr.msk.f32.mxu0 %vm2227_vm0, %v9453_v5 }
 0x3d1   : > { %9464 = vtanh.f32 %v4086_v42  ;;  %v8471_v3 = vpop.f32.mrb[102].mxu1  ;;  %8658 = vmatmul.mubr.msk.f32.gmra.mrb[94].mxu0 %vm2227_vm0, %v9455_v36 }
 0x3d2   : > { %9466 = vtanh.f32 %v4091_v14  ;;  %v4101_v26 = vadd.f32 %v8471_v3, %v11701_v39  ;;  %v4095_v2 = vpop.f32.mrb[103].mxu1 }
 0x3d3   : > { %v9457_v24 = vpop.eup %9456  ;;  %v4096_v33 = vadd.f32 %v11701_v39, %v4095_v2 }
 0x3d4   : > { %v9459_v57 = vpop.eup %9458  ;;  %8660 = vmatprep.mubr.msk.f32.mxu0 %vm2227_vm0, %v9457_v24 }
 0x3d5   : > { %9468 = vtanh.f32 %v4096_v33  ;;  %v8474_v19 = vpop.f32.mrb[104].mxu1  ;;  %8661 = vmatmul.mubr.msk.f32.gmra.mrb[96].mxu0 %vm2227_vm0, %v9459_v57 }
 0x3d6   : > { %9470 = vtanh.f32 %v4101_v26  ;;  %v4111_v10 = vadd.f32 %v8474_v19, %v11701_v39  ;;  %v4105_v59 = vpop.f32.mrb[105].mxu1 }
 0x3d7   : > { %v9461_v51 = vpop.eup %9460  ;;  %v4106_v27 = vadd.f32 %v11701_v39, %v4105_v59 }
 0x3d8   : > { %v9463_v47 = vpop.eup %9462  ;;  %8663 = vmatprep.mubr.msk.f32.mxu0 %vm2227_vm0, %v9461_v51 }
 0x3d9   : > { %9472 = vtanh.f32 %v4106_v27  ;;  %v8477_v17 = vpop.f32.mrb[106].mxu1  ;;  %8664 = vmatmul.mubr.msk.f32.gmra.mrb[98].mxu0 %vm2227_vm0, %v9463_v47 }
 0x3da   : > { %9474 = vtanh.f32 %v4111_v10  ;;  %v4121_v41 = vadd.f32 %v8477_v17, %v11701_v39  ;;  %v4115_v29 = vpop.f32.mrb[107].mxu1 }
 0x3db   : > { %v9465_v8 = vpop.eup %9464  ;;  %v4116_v6 = vadd.f32 %v11701_v39, %v4115_v29 }
 0x3dc   : > { %v9467_v54 = vpop.eup %9466  ;;  %8666 = vmatprep.mubr.msk.f32.mxu0 %vm2227_vm0, %v9465_v8 }
 0x3dd   : > { %9476 = vtanh.f32 %v4116_v6  ;;  %v8480_v61 = vpop.f32.mrb[108].mxu1  ;;  %8667 = vmatmul.mubr.msk.f32.gmra.mrb[100].mxu0 %vm2227_vm0, %v9467_v54 }
 0x3de   : > { %9478 = vtanh.f32 %v4121_v41  ;;  %v4131_v18 = vadd.f32 %v8480_v61, %v11701_v39  ;;  %v4125_v35 = vpop.f32.mrb[109].mxu1 }
 0x3df   : > { %v9469_v37 = vpop.eup %9468  ;;  %v4126_v63 = vadd.f32 %v11701_v39, %v4125_v35 }
 0x3e0   : > { %v9471_v38 = vpop.eup %9470  ;;  %8669 = vmatprep.mubr.msk.f32.mxu0 %vm2227_vm0, %v9469_v37 }
 0x3e1   : > { %9480 = vtanh.f32 %v4126_v63  ;;  %v8483_v22 = vpop.f32.mrb[110].mxu1  ;;  %8670 = vmatmul.mubr.msk.f32.gmra.mrb[102].mxu0 %vm2227_vm0, %v9471_v38 }
 0x3e2   : > { %9482 = vtanh.f32 %v4131_v18  ;;  %v4141_v25 = vadd.f32 %v8483_v22, %v11701_v39  ;;  %v4135_v60 = vpop.f32.mrb[111].mxu1 }
 0x3e3   : > { %v9473_v30 = vpop.eup %9472  ;;  %v4136_v0 = vadd.f32 %v11701_v39, %v4135_v60 }
 0x3e4   : > { %v9475_v46 = vpop.eup %9474  ;;  %8672 = vmatprep.mubr.msk.f32.mxu0 %vm2227_vm0, %v9473_v30 }
 0x3e5   : > { %9484 = vtanh.f32 %v4136_v0  ;;  %v8486_v43 = vpop.f32.mrb[112].mxu1  ;;  %8673 = vmatmul.mubr.msk.f32.gmra.mrb[104].mxu0 %vm2227_vm0, %v9475_v46 }
 0x3e6   : > { %9486 = vtanh.f32 %v4141_v25  ;;  %v4151_v34 = vadd.f32 %v8486_v43, %v11701_v39  ;;  %v4145_v13 = vpop.f32.mrb[113].mxu1 }
 0x3e7   : > { %v9477_v53 = vpop.eup %9476  ;;  %v4146_v20 = vadd.f32 %v11701_v39, %v4145_v13 }
 0x3e8   : > { %v9479_v52 = vpop.eup %9478  ;;  %8675 = vmatprep.mubr.msk.f32.mxu0 %vm2227_vm0, %v9477_v53 }
 0x3e9   : > { %9488 = vtanh.f32 %v4146_v20  ;;  %v8489_v31 = vpop.f32.mrb[114].mxu1  ;;  %8676 = vmatmul.mubr.msk.f32.gmra.mrb[106].mxu0 %vm2227_vm0, %v9479_v52 }
 0x3ea   : > { %9490 = vtanh.f32 %v4151_v34  ;;  %v4161_v32 = vadd.f32 %v8489_v31, %v11701_v39  ;;  %v4155_v62 = vpop.f32.mrb[115].mxu1 }
 0x3eb   : > { %v9481_v40 = vpop.eup %9480  ;;  %v4156_v15 = vadd.f32 %v11701_v39, %v4155_v62 }
 0x3ec   : > { %v9483_v58 = vpop.eup %9482  ;;  %8678 = vmatprep.mubr.msk.f32.mxu0 %vm2227_vm0, %v9481_v40 }
 0x3ed   : > { %9492 = vtanh.f32 %v4156_v15  ;;  %v8492_v1 = vpop.f32.mrb[116].mxu1  ;;  %8679 = vmatmul.mubr.msk.f32.gmra.mrb[108].mxu0 %vm2227_vm0, %v9483_v58 }
 0x3ee   : > { %9494 = vtanh.f32 %v4161_v32  ;;  %v4171_v21 = vadd.f32 %v8492_v1, %v11701_v39  ;;  %v4165_v50 = vpop.f32.mrb[117].mxu1 }
 0x3ef   : > { %v9485_v9 = vpop.eup %9484  ;;  %v4166_v56 = vadd.f32 %v11701_v39, %v4165_v50 }
 0x3f0   : > { %v9487_v44 = vpop.eup %9486  ;;  %8681 = vmatprep.mubr.msk.f32.mxu0 %vm2227_vm0, %v9485_v9 }
 0x3f1   : > { %9496 = vtanh.f32 %v4166_v56  ;;  %v8495_v23 = vpop.f32.mrb[118].mxu1  ;;  %8682 = vmatmul.mubr.msk.f32.gmra.mrb[110].mxu0 %vm2227_vm0, %v9487_v44 }
 0x3f2   : > { %9498 = vtanh.f32 %v4171_v21  ;;  %v4181_v7 = vadd.f32 %v8495_v23, %v11701_v39  ;;  %v4175_v16 = vpop.f32.mrb[119].mxu1 }
 0x3f3   : > { %v9489_v12 = vpop.eup %9488  ;;  %v4176_v49 = vadd.f32 %v11701_v39, %v4175_v16 }
 0x3f4   : > { %v9491_v11 = vpop.eup %9490  ;;  %8684 = vmatprep.mubr.msk.f32.mxu0 %vm2227_vm0, %v9489_v12 }
 0x3f5   : > { %9500 = vtanh.f32 %v4176_v49  ;;  %v8498_v4 = vpop.f32.mrb[120].mxu1  ;;  %8685 = vmatmul.mubr.msk.f32.gmra.mrb[112].mxu0 %vm2227_vm0, %v9491_v11 }
 0x3f6   : > { %9502 = vtanh.f32 %v4181_v7  ;;  %v4191_v55 = vadd.f32 %v8498_v4, %v11701_v39  ;;  %v4185_v48 = vpop.f32.mrb[121].mxu1 }
 0x3f7   : > { %v9493_v45 = vpop.eup %9492  ;;  %v4186_v14 = vadd.f32 %v11701_v39, %v4185_v48 }
 0x3f8   : > { %v9495_v28 = vpop.eup %9494  ;;  %8687 = vmatprep.mubr.msk.f32.mxu0 %vm2227_vm0, %v9493_v45 }
 0x3f9   : > { %9504 = vtanh.f32 %v4186_v14  ;;  %v8501_v5 = vpop.f32.mrb[122].mxu1  ;;  %8688 = vmatmul.mubr.msk.f32.gmra.mrb[114].mxu0 %vm2227_vm0, %v9495_v28 }
 0x3fa   : > { %9506 = vtanh.f32 %v4191_v55  ;;  %v4201_v42 = vadd.f32 %v8501_v5, %v11701_v39  ;;  %v4195_v36 = vpop.f32.mrb[123].mxu1 }
 0x3fb   : > { %v9497_v3 = vpop.eup %9496  ;;  %v4196_v26 = vadd.f32 %v11701_v39, %v4195_v36 }
 0x3fc   : > { %v9499_v2 = vpop.eup %9498  ;;  %8690 = vmatprep.mubr.msk.f32.mxu0 %vm2227_vm0, %v9497_v3 }
 0x3fd   : > { %9508 = vtanh.f32 %v4196_v26  ;;  %v8504_v24 = vpop.f32.mrb[124].mxu1  ;;  %8691 = vmatmul.mubr.msk.f32.gmra.mrb[116].mxu0 %vm2227_vm0, %v9499_v2 }
 0x3fe   : > { %9510 = vtanh.f32 %v4201_v42  ;;  %v4211_v33 = vadd.f32 %v8504_v24, %v11701_v39  ;;  %v4205_v57 = vpop.f32.mrb[125].mxu1 }
 0x3ff   : > { %v9501_v19 = vpop.eup %9500  ;;  %v4206_v10 = vadd.f32 %v11701_v39, %v4205_v57 }
 0x400   : > { %v9503_v59 = vpop.eup %9502  ;;  %8693 = vmatprep.mubr.msk.f32.mxu0 %vm2227_vm0, %v9501_v19 }
 0x401   : > { %9512 = vtanh.f32 %v4206_v10  ;;  %v8507_v51 = vpop.f32.mrb[126].mxu1  ;;  %8694 = vmatmul.mubr.msk.f32.gmra.mrb[118].mxu0 %vm2227_vm0, %v9503_v59 }
 0x402   : > { %9514 = vtanh.f32 %v4211_v33  ;;  %v4221_v27 = vadd.f32 %v8507_v51, %v11701_v39  ;;  %v4215_v47 = vpop.f32.mrb[127].mxu1 }
 0x403   : > { %v9505_v17 = vpop.eup %9504  ;;  %v4216_v41 = vadd.f32 %v11701_v39, %v4215_v47 }
 0x404   : > { %v9507_v29 = vpop.eup %9506  ;;  %8696 = vmatprep.mubr.msk.f32.mxu0 %vm2227_vm0, %v9505_v17 }
 0x405   : > { %9516 = vtanh.f32 %v4216_v41  ;;  %v8510_v8 = vpop.f32.mrb[128].mxu1  ;;  %8697 = vmatmul.mubr.msk.f32.gmra.mrb[120].mxu0 %vm2227_vm0, %v9507_v29 }
 0x406   : > { %9518 = vtanh.f32 %v4221_v27  ;;  %v4231_v6 = vadd.f32 %v8510_v8, %v11701_v39  ;;  %v4225_v54 = vpop.f32.mrb[129].mxu1 }
 0x407   : > { %v9509_v61 = vpop.eup %9508  ;;  %v4226_v18 = vadd.f32 %v11701_v39, %v4225_v54 }
 0x408   : > { %v9511_v35 = vpop.eup %9510  ;;  %8699 = vmatprep.mubr.msk.f32.mxu0 %vm2227_vm0, %v9509_v61 }
 0x409   : > { %9520 = vtanh.f32 %v4226_v18  ;;  %v8513_v37 = vpop.f32.mrb[130].mxu1  ;;  %8700 = vmatmul.mubr.msk.f32.gmra.mrb[122].mxu0 %vm2227_vm0, %v9511_v35 }
 0x40a   : > { %9522 = vtanh.f32 %v4231_v6  ;;  %v4241_v63 = vadd.f32 %v8513_v37, %v11701_v39  ;;  %v4235_v38 = vpop.f32.mrb[131].mxu1 }
 0x40b   : > { %v9513_v22 = vpop.eup %9512  ;;  %v4236_v25 = vadd.f32 %v11701_v39, %v4235_v38 }
 0x40c   : > { %v9515_v60 = vpop.eup %9514  ;;  %8702 = vmatprep.mubr.msk.f32.mxu0 %vm2227_vm0, %v9513_v22 }
 0x40d   : > { %9524 = vtanh.f32 %v4236_v25  ;;  %v8516_v30 = vpop.f32.mrb[132].mxu1  ;;  %8703 = vmatmul.mubr.msk.f32.gmra.mrb[124].mxu0 %vm2227_vm0, %v9515_v60 }
 0x40e   : > { %9526 = vtanh.f32 %v4241_v63  ;;  %v4251_v0 = vadd.f32 %v8516_v30, %v11701_v39  ;;  %v4245_v46 = vpop.f32.mrb[133].mxu1 }
 0x40f   : > { %v9517_v43 = vpop.eup %9516  ;;  %v4246_v34 = vadd.f32 %v11701_v39, %v4245_v46 }
 0x410   : > { %v9519_v13 = vpop.eup %9518  ;;  %8705 = vmatprep.mubr.msk.f32.mxu0 %vm2227_vm0, %v9517_v43 }
 0x411   : > { %9528 = vtanh.f32 %v4246_v34  ;;  %v8519_v53 = vpop.f32.mrb[134].mxu1  ;;  %8706 = vmatmul.mubr.msk.f32.gmra.mrb[126].mxu0 %vm2227_vm0, %v9519_v13  ;;  %v11929_v34 = vld [vmem:[%s13276_s4 + $0x1] ss:$0 sm:$0xff] }
 0x412   : > { %9530 = vtanh.f32 %v4251_v0  ;;  %v4261_v20 = vadd.f32 %v8519_v53, %v11701_v39  ;;  %v4255_v52 = vpop.f32.mrb[135].mxu1 }
 0x413   : > { %v9521_v31 = vpop.eup %9520  ;;  %v4256_v32 = vadd.f32 %v11701_v39, %v4255_v52 }
 0x414   : > { %v9523_v62 = vpop.eup %9522  ;;  %8708 = vmatprep.mubr.msk.f32.mxu0 %vm2227_vm0, %v9521_v31 }
 0x415   : > { %9532 = vtanh.f32 %v4256_v32  ;;  %v8522_v40 = vpop.f32.mrb[136].mxu1  ;;  %8709 = vmatmul.mubr.msk.f32.gmra.mrb[128].mxu0 %vm2227_vm0, %v9523_v62 }
 0x416   : > { %9534 = vtanh.f32 %v4261_v20  ;;  %v4271_v15 = vadd.f32 %v8522_v40, %v11701_v39  ;;  %v4265_v58 = vpop.f32.mrb[137].mxu1 }
 0x417   : > { %v9525_v1 = vpop.eup %9524  ;;  %v4266_v21 = vadd.f32 %v11701_v39, %v4265_v58 }
 0x418   : > { %v9527_v50 = vpop.eup %9526  ;;  %8711 = vmatprep.mubr.msk.f32.mxu0 %vm2227_vm0, %v9525_v1 }
 0x419   : > { %9536 = vtanh.f32 %v4266_v21  ;;  %v8525_v9 = vpop.f32.mrb[138].mxu1  ;;  %8712 = vmatmul.mubr.msk.f32.gmra.mrb[130].mxu0 %vm2227_vm0, %v9527_v50 }
 0x41a   : > { %9538 = vtanh.f32 %v4271_v15  ;;  %v4281_v56 = vadd.f32 %v8525_v9, %v11701_v39  ;;  %v4275_v44 = vpop.f32.mrb[139].mxu1 }
 0x41b   : > { %v9529_v23 = vpop.eup %9528  ;;  %v4276_v7 = vadd.f32 %v11701_v39, %v4275_v44 }
 0x41c   : > { %v9531_v16 = vpop.eup %9530  ;;  %8714 = vmatprep.mubr.msk.f32.mxu0 %vm2227_vm0, %v9529_v23 }
 0x41d   : > { %9540 = vtanh.f32 %v4276_v7  ;;  %v8528_v12 = vpop.f32.mrb[140].mxu1  ;;  %8715 = vmatmul.mubr.msk.f32.gmra.mrb[132].mxu0 %vm2227_vm0, %v9531_v16 }
 0x41e   : > { %9542 = vtanh.f32 %v4281_v56  ;;  %v4291_v49 = vadd.f32 %v8528_v12, %v11701_v39  ;;  %v4285_v11 = vpop.f32.mrb[141].mxu1 }
 0x41f   : > { %v9533_v4 = vpop.eup %9532  ;;  %v4286_v55 = vadd.f32 %v11701_v39, %v4285_v11 }
 0x420   : > { %v9535_v48 = vpop.eup %9534  ;;  %8717 = vmatprep.mubr.msk.f32.mxu0 %vm2227_vm0, %v9533_v4 }
 0x421   : > { %9544 = vtanh.f32 %v4286_v55  ;;  %v8531_v45 = vpop.f32.mrb[142].mxu1  ;;  %8718 = vmatmul.mubr.msk.f32.gmra.mrb[134].mxu0 %vm2227_vm0, %v9535_v48 }
 0x422   : > { %9546 = vtanh.f32 %v4291_v49  ;;  %v4301_v14 = vadd.f32 %v8531_v45, %v11701_v39  ;;  %v4295_v28 = vpop.f32.mrb[143].mxu1 }
 0x423   : > { %v9537_v5 = vpop.eup %9536  ;;  %v4296_v42 = vadd.f32 %v11701_v39, %v4295_v28 }
 0x424   : > { %v9539_v36 = vpop.eup %9538  ;;  %8720 = vmatprep.mubr.msk.f32.mxu0 %vm2227_vm0, %v9537_v5 }
 0x425   : > { %9548 = vtanh.f32 %v4296_v42  ;;  %v8534_v3 = vpop.f32.mrb[144].mxu1  ;;  %8721 = vmatmul.mubr.msk.f32.gmra.mrb[136].mxu0 %vm2227_vm0, %v9539_v36 }
 0x426   : > { %9550 = vtanh.f32 %v4301_v14  ;;  %v4311_v26 = vadd.f32 %v8534_v3, %v11701_v39  ;;  %v4305_v2 = vpop.f32.mrb[145].mxu1 }
 0x427   : > { %v9541_v24 = vpop.eup %9540  ;;  %v4306_v33 = vadd.f32 %v11701_v39, %v4305_v2 }
 0x428   : > { %v9543_v57 = vpop.eup %9542  ;;  %8723 = vmatprep.mubr.msk.f32.mxu0 %vm2227_vm0, %v9541_v24 }
 0x429   : > { %9552 = vtanh.f32 %v4306_v33  ;;  %v8537_v19 = vpop.f32.mrb[146].mxu1  ;;  %8724 = vmatmul.mubr.msk.f32.gmra.mrb[138].mxu0 %vm2227_vm0, %v9543_v57 }
 0x42a   : > { %9554 = vtanh.f32 %v4311_v26  ;;  %v4321_v10 = vadd.f32 %v8537_v19, %v11701_v39  ;;  %v4315_v59 = vpop.f32.mrb[147].mxu1 }
 0x42b   : > { %v9545_v51 = vpop.eup %9544  ;;  %v4316_v27 = vadd.f32 %v11701_v39, %v4315_v59 }
 0x42c   : > { %v9547_v47 = vpop.eup %9546  ;;  %8726 = vmatprep.mubr.msk.f32.mxu0 %vm2227_vm0, %v9545_v51 }
 0x42d   : > { %9556 = vtanh.f32 %v4316_v27  ;;  %v8540_v17 = vpop.f32.mrb[148].mxu1  ;;  %8727 = vmatmul.mubr.msk.f32.gmra.mrb[140].mxu0 %vm2227_vm0, %v9547_v47 }
 0x42e   : > { %9558 = vtanh.f32 %v4321_v10  ;;  %v4331_v41 = vadd.f32 %v8540_v17, %v11701_v39  ;;  %v4325_v29 = vpop.f32.mrb[149].mxu1 }
 0x42f   : > { %v9549_v8 = vpop.eup %9548  ;;  %v4326_v6 = vadd.f32 %v11701_v39, %v4325_v29 }
 0x430   : > { %v9551_v54 = vpop.eup %9550  ;;  %8729 = vmatprep.mubr.msk.f32.mxu0 %vm2227_vm0, %v9549_v8 }
 0x431   : > { %9560 = vtanh.f32 %v4326_v6  ;;  %v8543_v61 = vpop.f32.mrb[150].mxu1  ;;  %8730 = vmatmul.mubr.msk.f32.gmra.mrb[142].mxu0 %vm2227_vm0, %v9551_v54 }
 0x432   : > { %9562 = vtanh.f32 %v4331_v41  ;;  %v4341_v18 = vadd.f32 %v8543_v61, %v11701_v39  ;;  %v4335_v35 = vpop.f32.mrb[151].mxu1 }
 0x433   : > { %v9553_v37 = vpop.eup %9552  ;;  %v4336_v63 = vadd.f32 %v11701_v39, %v4335_v35 }
 0x434   : > { %v9555_v38 = vpop.eup %9554  ;;  %8732 = vmatprep.mubr.msk.f32.mxu0 %vm2227_vm0, %v9553_v37 }
 0x435   : > { %9564 = vtanh.f32 %v4336_v63  ;;  %v8546_v22 = vpop.f32.mrb[152].mxu1  ;;  %8733 = vmatmul.mubr.msk.f32.gmra.mrb[144].mxu0 %vm2227_vm0, %v9555_v38 }
 0x436   : > { %9566 = vtanh.f32 %v4341_v18  ;;  %v4351_v25 = vadd.f32 %v8546_v22, %v11701_v39  ;;  %v4345_v60 = vpop.f32.mrb[153].mxu1 }
 0x437   : > { %v9557_v30 = vpop.eup %9556  ;;  %v4346_v0 = vadd.f32 %v11701_v39, %v4345_v60 }
 0x438   : > { %v9559_v46 = vpop.eup %9558  ;;  %8735 = vmatprep.mubr.msk.f32.mxu0 %vm2227_vm0, %v9557_v30 }
 0x439   : > { %9568 = vtanh.f32 %v4346_v0  ;;  %v8549_v43 = vpop.f32.mrb[154].mxu1  ;;  %8736 = vmatmul.mubr.msk.f32.gmra.mrb[146].mxu0 %vm2227_vm0, %v9559_v46 }
 0x43a   : > { %9570 = vtanh.f32 %v4351_v25  ;;  %v4361_v13 = vadd.f32 %v11929_v34, %v8549_v43  ;;  %v4355_v53 = vpop.f32.mrb[155].mxu1 }
 0x43b   : > { %v9561_v20 = vpop.eup %9560  ;;  %v4356_v52 = vadd.f32 %v11929_v34, %v4355_v53 }
 0x43c   : > { %v9563_v39 = vpop.eup %9562  ;;  %8738 = vmatprep.mubr.msk.f32.mxu0 %vm2227_vm0, %v9561_v20 }
 0x43d   : > { %9572 = vtanh.f32 %v4356_v52  ;;  %v8552_v31 = vpop.f32.mrb[156].mxu1  ;;  %8739 = vmatmul.mubr.msk.f32.gmra.mrb[148].mxu0 %vm2227_vm0, %v9563_v39 }
 0x43e   : > { %9574 = vtanh.f32 %v4361_v13  ;;  %v4371_v32 = vadd.f32 %v11929_v34, %v8552_v31  ;;  %v4365_v62 = vpop.f32.mrb[157].mxu1  ;;  %v11979_v31 = vld [vmem:[%s13276_s4 + $0x2] ss:$0 sm:$0xff] }
 0x43f   : > { %v9565_v40 = vpop.eup %9564  ;;  %v4366_v15 = vadd.f32 %v11929_v34, %v4365_v62 }
 0x440   : > { %v9567_v58 = vpop.eup %9566  ;;  %8741 = vmatprep.mubr.msk.f32.mxu0 %vm2227_vm0, %v9565_v40 }
 0x441   : > { %9576 = vtanh.f32 %v4366_v15  ;;  %v8555_v1 = vpop.f32.mrb[158].mxu1  ;;  %8742 = vmatmul.mubr.msk.f32.gmra.mrb[150].mxu0 %vm2227_vm0, %v9567_v58 }
 0x442   : > { %9578 = vtanh.f32 %v4371_v32  ;;  %v4381_v21 = vadd.f32 %v11929_v34, %v8555_v1  ;;  %v4375_v50 = vpop.f32.mrb[159].mxu1 }
 0x443   : > { %v9569_v9 = vpop.eup %9568  ;;  %v4376_v56 = vadd.f32 %v11929_v34, %v4375_v50 }
 0x444   : > { %v9571_v44 = vpop.eup %9570  ;;  %8744 = vmatprep.mubr.msk.f32.mxu0 %vm2227_vm0, %v9569_v9 }
 0x445   : > { %9580 = vtanh.f32 %v4376_v56  ;;  %v8558_v23 = vpop.f32.mrb[160].mxu1  ;;  %8745 = vmatmul.mubr.msk.f32.gmra.mrb[152].mxu0 %vm2227_vm0, %v9571_v44 }
 0x446   : > { %9582 = vtanh.f32 %v4381_v21  ;;  %v4391_v7 = vadd.f32 %v11929_v34, %v8558_v23  ;;  %v4385_v16 = vpop.f32.mrb[161].mxu1 }
 0x447   : > { %v9573_v12 = vpop.eup %9572  ;;  %v4386_v49 = vadd.f32 %v11929_v34, %v4385_v16 }
 0x448   : > { %v9575_v11 = vpop.eup %9574  ;;  %8747 = vmatprep.mubr.msk.f32.mxu0 %vm2227_vm0, %v9573_v12 }
 0x449   : > { %9584 = vtanh.f32 %v4386_v49  ;;  %v8561_v4 = vpop.f32.mrb[162].mxu1  ;;  %8748 = vmatmul.mubr.msk.f32.gmra.mrb[154].mxu0 %vm2227_vm0, %v9575_v11 }
 0x44a   : > { %9586 = vtanh.f32 %v4391_v7  ;;  %v4401_v55 = vadd.f32 %v11929_v34, %v8561_v4  ;;  %v4395_v48 = vpop.f32.mrb[163].mxu1 }
 0x44b   : > { %v9577_v45 = vpop.eup %9576  ;;  %v4396_v14 = vadd.f32 %v11929_v34, %v4395_v48 }
 0x44c   : > { %v9579_v28 = vpop.eup %9578  ;;  %8750 = vmatprep.mubr.msk.f32.mxu0 %vm2227_vm0, %v9577_v45 }
 0x44d   : > { %9588 = vtanh.f32 %v4396_v14  ;;  %v8564_v5 = vpop.f32.mrb[164].mxu1  ;;  %8751 = vmatmul.mubr.msk.f32.gmra.mrb[156].mxu0 %vm2227_vm0, %v9579_v28 }
 0x44e   : > { %9590 = vtanh.f32 %v4401_v55  ;;  %v4411_v42 = vadd.f32 %v11929_v34, %v8564_v5  ;;  %v4405_v36 = vpop.f32.mrb[165].mxu1 }
 0x44f   : > { %v9581_v3 = vpop.eup %9580  ;;  %v4406_v26 = vadd.f32 %v11929_v34, %v4405_v36 }
 0x450   : > { %v9583_v2 = vpop.eup %9582  ;;  %8753 = vmatprep.mubr.msk.f32.mxu0 %vm2227_vm0, %v9581_v3 }
 0x451   : > { %9592 = vtanh.f32 %v4406_v26  ;;  %v8567_v24 = vpop.f32.mrb[166].mxu1  ;;  %8754 = vmatmul.mubr.msk.f32.gmra.mrb[158].mxu0 %vm2227_vm0, %v9583_v2 }
 0x452   : > { %9594 = vtanh.f32 %v4411_v42  ;;  %v4421_v33 = vadd.f32 %v11929_v34, %v8567_v24  ;;  %v4415_v57 = vpop.f32.mrb[167].mxu1 }
 0x453   : > { %v9585_v19 = vpop.eup %9584  ;;  %v4416_v10 = vadd.f32 %v11929_v34, %v4415_v57 }
 0x454   : > { %v9587_v59 = vpop.eup %9586  ;;  %8756 = vmatprep.mubr.msk.f32.mxu0 %vm2227_vm0, %v9585_v19  ;;  %v12003_v19 = vld [vmem:[%s13277_s5] ss:$0 sm:$0xff] }
 0x455   : > { %9596 = vtanh.f32 %v4416_v10  ;;  %v8570_v51 = vpop.f32.mrb[168].mxu1  ;;  %8757 = vmatmul.mubr.msk.f32.gmra.mrb[160].mxu0 %vm2227_vm0, %v9587_v59 }
 0x456   : > { %9598 = vtanh.f32 %v4421_v33  ;;  %v4431_v27 = vadd.f32 %v11929_v34, %v8570_v51  ;;  %v4425_v47 = vpop.f32.mrb[169].mxu1 }
 0x457   : > { %v9589_v17 = vpop.eup %9588  ;;  %v4426_v41 = vadd.f32 %v11929_v34, %v4425_v47 }
 0x458   : > { %v9591_v29 = vpop.eup %9590  ;;  %8759 = vmatprep.mubr.msk.f32.mxu0 %vm2227_vm0, %v9589_v17 }
 0x459   : > { %9600 = vtanh.f32 %v4426_v41  ;;  %v8573_v8 = vpop.f32.mrb[170].mxu1  ;;  %8760 = vmatmul.mubr.msk.f32.gmra.mrb[162].mxu0 %vm2227_vm0, %v9591_v29 }
 0x45a   : > { %9602 = vtanh.f32 %v4431_v27  ;;  %v4441_v6 = vadd.f32 %v11929_v34, %v8573_v8  ;;  %v4435_v54 = vpop.f32.mrb[171].mxu1 }
 0x45b   : > { %v9593_v61 = vpop.eup %9592  ;;  %v4436_v18 = vadd.f32 %v11929_v34, %v4435_v54 }
 0x45c   : > { %v9595_v35 = vpop.eup %9594  ;;  %8762 = vmatprep.mubr.msk.f32.mxu0 %vm2227_vm0, %v9593_v61 }
 0x45d   : > { %9604 = vtanh.f32 %v4436_v18  ;;  %v8576_v37 = vpop.f32.mrb[172].mxu1  ;;  %8763 = vmatmul.mubr.msk.f32.gmra.mrb[164].mxu0 %vm2227_vm0, %v9595_v35 }
 0x45e   : > { %9606 = vtanh.f32 %v4441_v6  ;;  %v4451_v63 = vadd.f32 %v11929_v34, %v8576_v37  ;;  %v4445_v38 = vpop.f32.mrb[173].mxu1 }
 0x45f   : > { %v9597_v22 = vpop.eup %9596  ;;  %v4446_v25 = vadd.f32 %v11929_v34, %v4445_v38 }
 0x460   : > { %v9599_v60 = vpop.eup %9598  ;;  %8765 = vmatprep.mubr.msk.f32.mxu0 %vm2227_vm0, %v9597_v22 }
 0x461   : > { %9608 = vtanh.f32 %v4446_v25  ;;  %v8579_v30 = vpop.f32.mrb[174].mxu1  ;;  %8766 = vmatmul.mubr.msk.f32.gmra.mrb[166].mxu0 %vm2227_vm0, %v9599_v60 }
 0x462   : > { %9610 = vtanh.f32 %v4451_v63  ;;  %v4461_v0 = vadd.f32 %v11929_v34, %v8579_v30  ;;  %v4455_v46 = vpop.f32.mrb[175].mxu1 }
 0x463   : > { %v9601_v43 = vpop.eup %9600  ;;  %v4456_v13 = vadd.f32 %v11929_v34, %v4455_v46 }
 0x464   : > { %v9603_v53 = vpop.eup %9602  ;;  %8768 = vmatprep.mubr.msk.f32.mxu0 %vm2227_vm0, %v9601_v43 }
 0x465   : > { %9612 = vtanh.f32 %v4456_v13  ;;  %v8582_v20 = vpop.f32.mrb[176].mxu1  ;;  %8769 = vmatmul.mubr.msk.f32.gmra.mrb[168].mxu0 %vm2227_vm0, %v9603_v53 }
 0x466   : > { %9614 = vtanh.f32 %v4461_v0  ;;  %v4471_v52 = vadd.f32 %v11929_v34, %v8582_v20  ;;  %v4465_v39 = vpop.f32.mrb[177].mxu1 }
 0x467   : > { %v9605_v32 = vpop.eup %9604  ;;  %v4466_v62 = vadd.f32 %v11929_v34, %v4465_v39 }
 0x468   : > { %v9607_v40 = vpop.eup %9606  ;;  %v8614_v15 = vpop.f32.mrb[64].mxu0  ;;  %8771 = vmatprep.mubr.msk.f32.mxu0 %vm2227_vm0, %v9605_v32 }
 0x469   : > { %9616 = vtanh.f32 %v4466_v62  ;;  %v5138_v58 = vadd.f32 %v8614_v15, %v11979_v31  ;;  %v8585_v1 = vpop.f32.mrb[178].mxu1  ;;  %v5132_v21 = vpop.f32.mrb[65].mxu0  ;;  %8772 = vmatmul.mubr.msk.f32.gmra.mrb[170].mxu0 %vm2227_vm0, %v9607_v40 }
 0x46a   : > { %9618 = vtanh.f32 %v4471_v52  ;;  %v4481_v50 = vadd.f32 %v11929_v34, %v8585_v1  ;;  %v5133_v9 = vadd.f32 %v11979_v31, %v5132_v21  ;;  %v4475_v56 = vpop.f32.mrb[179].mxu1 }
 0x46b   : > { %v9609_v44 = vpop.eup %9608  ;;  %9620 = vtanh.f32 %v5138_v58  ;;  %v4476_v23 = vadd.f32 %v11929_v34, %v4475_v56 }
 0x46c   : > { %v9611_v7 = vpop.eup %9610  ;;  %9622 = vtanh.f32 %v4481_v50  ;;  %v8617_v16 = vpop.f32.mrb[66].mxu0  ;;  %8774 = vmatprep.mubr.msk.f32.mxu0 %vm2227_vm0, %v9609_v44 }
 0x46d   : > { %9624 = vtanh.f32 %v5133_v9  ;;  %v5148_v12 = vadd.f32 %v8617_v16, %v11979_v31  ;;  %v8588_v49 = vpop.f32.mrb[180].mxu1  ;;  %v5142_v11 = vpop.f32.mrb[67].mxu0  ;;  %8775 = vmatmul.mubr.msk.f32.gmra.mrb[172].mxu0 %vm2227_vm0, %v9611_v7 }
 0x46e   : > { %9626 = vtanh.f32 %v4476_v23  ;;  %v4491_v4 = vadd.f32 %v11929_v34, %v8588_v49  ;;  %v5143_v55 = vadd.f32 %v11979_v31, %v5142_v11  ;;  %v4485_v48 = vpop.f32.mrb[181].mxu1 }
 0x46f   : > { %v9613_v45 = vpop.eup %9612  ;;  %9628 = vtanh.f32 %v5148_v12  ;;  %v4486_v14 = vadd.f32 %v11929_v34, %v4485_v48 }
 0x470   : > { %v9615_v28 = vpop.eup %9614  ;;  %9630 = vtanh.f32 %v4491_v4  ;;  %v8620_v5 = vpop.f32.mrb[68].mxu0  ;;  %8777 = vmatprep.mubr.msk.f32.mxu0 %vm2227_vm0, %v9613_v45 }
 0x471   : > { %9632 = vtanh.f32 %v5143_v55  ;;  %v5158_v42 = vadd.f32 %v8620_v5, %v11979_v31  ;;  %v8591_v36 = vpop.f32.mrb[182].mxu1  ;;  %v5152_v3 = vpop.f32.mrb[69].mxu0  ;;  %8778 = vmatmul.mubr.msk.f32.gmra.mrb[174].mxu0 %vm2227_vm0, %v9615_v28 }
 0x472   : > { %9634 = vtanh.f32 %v4486_v14  ;;  %v4501_v26 = vadd.f32 %v11929_v34, %v8591_v36  ;;  %v5153_v2 = vadd.f32 %v11979_v31, %v5152_v3  ;;  %v4495_v24 = vpop.f32.mrb[183].mxu1 }
 0x473   : > { %v9617_v33 = vpop.eup %9616  ;;  %9636 = vtanh.f32 %v5158_v42  ;;  %v4496_v57 = vadd.f32 %v11929_v34, %v4495_v24 }
 0x474   : > { %v9619_v10 = vpop.eup %9618  ;;  %9638 = vtanh.f32 %v4501_v26  ;;  %v8623_v59 = vpop.f32.mrb[70].mxu0  ;;  %8780 = vmatprep.mubr.msk.f32.mxu0 %vm2227_vm0, %v9617_v33 }
 0x475   : > { %v9621_v51 = vpop.eup %9620  ;;  %9640 = vtanh.f32 %v5153_v2  ;;  %v5168_v27 = vadd.f32 %v8623_v59, %v11979_v31  ;;  %v8594_v47 = vpop.f32.mrb[184].mxu1  ;;  %8781 = vmatmul.mubr.msk.f32.gmra.mrb[176].mxu0 %vm2227_vm0, %v9619_v10 }
 0x476   : > { %v5162_v17 = vpop.f32.mrb[71].mxu0  ;;  %v9623_v41 = vpop.eup %9622  ;;  %9642 = vtanh.f32 %v4496_v57  ;;  %v4511_v29 = vadd.f32 %v11929_v34, %v8594_v47  ;;  %v5908_v54 = vmul.f32 %v9621_v51, %v12003_v19 }
 0x477   : > { %v5163_v8 = vadd.f32 %v11979_v31, %v5162_v17  ;;  %v4505_v6 = vpop.f32.mrb[185].mxu1  ;;  %v9625_v61 = vpop.eup %9624  ;;  %9644 = vtanh.f32 %v5168_v27 }
 0x478   : > { %v4506_v18 = vadd.f32 %v11929_v34, %v4505_v6  ;;  %v9627_v35 = vpop.eup %9626  ;;  %9646 = vtanh.f32 %v4511_v29  ;;  %v8626_v37 = vpop.f32.mrb[72].mxu0  ;;  %v6038_v63 = vsel %vm2227_vm0, %v5908_v54, 0.0  ;;  %v5907_v38 = vmul.f32 %v9625_v61, %v12003_v19 }
 0x479   : > { %v9629_v22 = vpop.eup %9628  ;;  %9648 = vtanh.f32 %v5163_v8  ;;  %v5178_v25 = vadd.f32 %v8626_v37, %v11979_v31  ;;  %8783 = vmatprep.mubr.msk.f32.mxu0 %vm2227_vm0, %v9627_v35  ;;  %v8597_v60 = vpop.f32.mrb[186].mxu1  ;;  %6039 = vadd.xlane.f32.xlu0 %v6038_v63 }
 0x47a   : > { %v5172_v30 = vpop.f32.mrb[73].mxu0  ;;  %v9631_v0 = vpop.eup %9630  ;;  %9650 = vtanh.f32 %v4506_v18  ;;  %v4521_v46 = vadd.f32 %v11929_v34, %v8597_v60  ;;  %8784 = vmatmul.mubr.msk.f32.gmra.mrb[178].mxu0 %vm2227_vm0, %v9623_v41  ;;  %v6035_v53 = vsel %vm2227_vm0, %v5907_v38, 0.0  ;;  %v5910_v39 = vmul.f32 %v9629_v22, %v12003_v19 }
 0x47b   : > { %v5173_v43 = vadd.f32 %v11979_v31, %v5172_v30  ;;  %v4515_v13 = vpop.f32.mrb[187].mxu1  ;;  %v9633_v20 = vpop.eup %9632  ;;  %9652 = vtanh.f32 %v5178_v25  ;;  %6036 = vadd.xlane.f32.xlu1 %v6035_v53 }
 0x47c   : > { %v4516_v52 = vadd.f32 %v11929_v34, %v4515_v13  ;;  %v9635_v32 = vpop.eup %9634  ;;  %9654 = vtanh.f32 %v4521_v46  ;;  %v8629_v62 = vpop.f32.mrb[74].mxu0  ;;  %v5909_v40 = vmul.f32 %v9633_v20, %v12003_v19  ;;  %v6044_v50 = vsel %vm2227_vm0, %v5910_v39, 0.0 }
 0x47d   : > { %v9637_v15 = vpop.eup %9636  ;;  %9656 = vtanh.f32 %v5173_v43  ;;  %v5188_v58 = vadd.f32 %v8629_v62, %v11979_v31  ;;  %8786 = vmatprep.mubr.msk.f32.mxu0 %vm2227_vm0, %v9635_v32  ;;  %v8600_v1 = vpop.f32.mrb[188].mxu1 }
 0x47e   : > { %v5182_v21 = vpop.f32.mrb[75].mxu0  ;;  %v9639_v9 = vpop.eup %9638  ;;  %9658 = vtanh.f32 %v4516_v52  ;;  %v4531_v56 = vadd.f32 %v11929_v34, %v8600_v1  ;;  %8787 = vmatmul.mubr.msk.f32.gmra.mrb[180].mxu0 %vm2227_vm0, %v9631_v0  ;;  %v6041_v7 = vsel %vm2227_vm0, %v5909_v40, 0.0  ;;  %v5912_v49 = vmul.f32 %v9637_v15, %v12003_v19 }
 0x47f   : > { %v5183_v44 = vadd.f32 %v11979_v31, %v5182_v21  ;;  %v4525_v23 = vpop.f32.mrb[189].mxu1  ;;  %v9641_v16 = vpop.eup %9640  ;;  %9660 = vtanh.f32 %v5188_v58  ;;  %6042 = vadd.xlane.f32.xlu0 %v6041_v7  ;;  %6045 = vadd.xlane.f32.xlu1 %v6044_v50 }
 0x480   : > { %v4526_v12 = vadd.f32 %v11929_v34, %v4525_v23  ;;  %v9643_v11 = vpop.eup %9642  ;;  %9662 = vtanh.f32 %v4531_v56  ;;  %v8632_v4 = vpop.f32.mrb[76].mxu0  ;;  %v5911_v55 = vmul.f32 %v9641_v16, %v12003_v19  ;;  %v6050_v5 = vsel %vm2227_vm0, %v5912_v49, 0.0 }
 0x481   : > { %v9645_v48 = vpop.eup %9644  ;;  %9664 = vtanh.f32 %v5183_v44  ;;  %v5198_v45 = vadd.f32 %v8632_v4, %v11979_v31  ;;  %8789 = vmatprep.mubr.msk.f32.mxu0 %vm2227_vm0, %v9643_v11  ;;  %v8603_v14 = vpop.f32.mrb[190].mxu1 }
 0x482   : > { %v5192_v28 = vpop.f32.mrb[77].mxu0  ;;  %v9647_v42 = vpop.eup %9646  ;;  %9666 = vtanh.f32 %v4526_v12  ;;  %v4541_v36 = vadd.f32 %v11929_v34, %v8603_v14  ;;  %8790 = vmatmul.mubr.msk.f32.gmra.mrb[182].mxu0 %vm2227_vm0, %v9639_v9  ;;  %v6047_v26 = vsel %vm2227_vm0, %v5911_v55, 0.0  ;;  %v5914_v57 = vmul.f32 %v9645_v48, %v12003_v19 }
 0x483   : > { %v5193_v3 = vadd.f32 %v11979_v31, %v5192_v28  ;;  %v4535_v2 = vpop.f32.mrb[191].mxu1  ;;  %v9649_v24 = vpop.eup %9648  ;;  %9668 = vtanh.f32 %v5198_v45  ;;  %6048 = vadd.xlane.f32.xlu0 %v6047_v26  ;;  %6051 = vadd.xlane.f32.xlu1 %v6050_v5 }
 0x484   : > { %v4536_v33 = vadd.f32 %v11929_v34, %v4535_v2  ;;  %v9651_v10 = vpop.eup %9650  ;;  %9670 = vtanh.f32 %v4541_v36  ;;  %v8635_v59 = vpop.f32.mrb[78].mxu0  ;;  %v5913_v51 = vmul.f32 %v9649_v24, %v12003_v19  ;;  %v6056_v41 = vsel %vm2227_vm0, %v5914_v57, 0.0 }
 0x485   : > { %v9653_v27 = vpop.eup %9652  ;;  %9672 = vtanh.f32 %v5193_v3  ;;  %v5208_v47 = vadd.f32 %v8635_v59, %v11979_v31  ;;  %8792 = vmatprep.mubr.msk.f32.mxu0 %vm2227_vm0, %v9651_v10  ;;  %v5202_v17 = vpop.f32.mrb[79].mxu0 }
 0x486   : > { %v9655_v29 = vpop.eup %9654  ;;  %9674 = vtanh.f32 %v4536_v33  ;;  %v5203_v34 = vadd.f32 %v11979_v31, %v5202_v17  ;;  %8793 = vmatmul.mubr.msk.f32.gmra.mrb[184].mxu0 %vm2227_vm0, %v9647_v42  ;;  %v6053_v8 = vsel %vm2227_vm0, %v5913_v51, 0.0  ;;  %v5916_v6 = vmul.f32 %v9653_v27, %v12003_v19 }
 0x487   : > { %v9657_v54 = vpop.eup %9656  ;;  %9676 = vtanh.f32 %v5208_v47  ;;  %6054 = vadd.xlane.f32.xlu0 %v6053_v8  ;;  %6057 = vadd.xlane.f32.xlu1 %v6056_v41 }
 0x488   : > { %v9659_v61 = vpop.eup %9658  ;;  %9678 = vtanh.f32 %v5203_v34  ;;  %v8638_v18 = vpop.f32.mrb[80].mxu0  ;;  %v5915_v35 = vmul.f32 %v9657_v54, %v12003_v19  ;;  %v6062_v37 = vsel %vm2227_vm0, %v5916_v6, 0.0 }
 0x489   : > { %v9661_v63 = vpop.eup %9660  ;;  %v5218_v38 = vadd.f32 %v8638_v18, %v11979_v31  ;;  %8795 = vmatprep.mubr.msk.f32.mxu0 %vm2227_vm0, %v9659_v61  ;;  %v5212_v22 = vpop.f32.mrb[81].mxu0 }
 0x48a   : > { %v9663_v25 = vpop.eup %9662  ;;  %v5213_v60 = vadd.f32 %v11979_v31, %v5212_v22  ;;  %8796 = vmatmul.mubr.msk.f32.gmra.mrb[186].mxu0 %vm2227_vm0, %v9655_v29  ;;  %v6059_v30 = vsel %vm2227_vm0, %v5915_v35, 0.0  ;;  %v5918_v0 = vmul.f32 %v9661_v63, %v12003_v19 }
 0x48b   : > { %v9665_v46 = vpop.eup %9664  ;;  %9680 = vtanh.f32 %v5218_v38  ;;  %6060 = vadd.xlane.f32.xlu0 %v6059_v30  ;;  %6063 = vadd.xlane.f32.xlu1 %v6062_v37 }
 0x48c   : > { %v9667_v43 = vpop.eup %9666  ;;  %9682 = vtanh.f32 %v5213_v60  ;;  %v8641_v13 = vpop.f32.mrb[82].mxu0  ;;  %v5917_v53 = vmul.f32 %v9665_v46, %v12003_v19  ;;  %v6068_v20 = vsel %vm2227_vm0, %v5918_v0, 0.0 }
 0x48d   : > { %v9669_v52 = vpop.eup %9668  ;;  %v5228_v39 = vadd.f32 %v8641_v13, %v11979_v31  ;;  %8798 = vmatprep.mubr.msk.f32.mxu0 %vm2227_vm0, %v9667_v43  ;;  %v5222_v32 = vpop.f32.mrb[83].mxu0 }
 0x48e   : > { %v9671_v62 = vpop.eup %9670  ;;  %v5223_v40 = vadd.f32 %v11979_v31, %v5222_v32  ;;  %8799 = vmatmul.mubr.msk.f32.gmra.mrb[188].mxu0 %vm2227_vm0, %v9663_v25  ;;  %v6065_v15 = vsel %vm2227_vm0, %v5917_v53, 0.0  ;;  %v5920_v58 = vmul.f32 %v9669_v52, %v12003_v19 }
 0x48f   : > { %v9673_v1 = vpop.eup %9672  ;;  %9684 = vtanh.f32 %v5228_v39  ;;  %6066 = vadd.xlane.f32.xlu0 %v6065_v15  ;;  %6069 = vadd.xlane.f32.xlu1 %v6068_v20 }
 0x490   : > { %v9675_v21 = vpop.eup %9674  ;;  %9686 = vtanh.f32 %v5223_v40  ;;  %v8644_v50 = vpop.f32.mrb[84].mxu0  ;;  %v5919_v9 = vmul.f32 %v9673_v1, %v12003_v19  ;;  %v6074_v56 = vsel %vm2227_vm0, %v5920_v58, 0.0 }
 0x491   : > { %v9677_v44 = vpop.eup %9676  ;;  %v5238_v23 = vadd.f32 %v8644_v50, %v11979_v31  ;;  %8801 = vmatprep.mubr.msk.f32.mxu0 %vm2227_vm0, %v9675_v21  ;;  %v5232_v7 = vpop.f32.mrb[85].mxu0 }
 0x492   : > { %v9679_v16 = vpop.eup %9678  ;;  %v5233_v12 = vadd.f32 %v11979_v31, %v5232_v7  ;;  %8802 = vmatmul.mubr.msk.f32.gmra.mrb[190].mxu0 %vm2227_vm0, %v9671_v62  ;;  %v6071_v49 = vsel %vm2227_vm0, %v5919_v9, 0.0  ;;  %v5922_v11 = vmul.f32 %v9677_v44, %v12003_v19 }
 0x493   : > { %9688 = vtanh.f32 %v5238_v23  ;;  %6072 = vadd.xlane.f32.xlu0 %v6071_v49  ;;  %6075 = vadd.xlane.f32.xlu1 %v6074_v56  ;;  %v5921_v4 = vmul.f32 %v9679_v16, %v12003_v19 }
 0x494   : > { %9690 = vtanh.f32 %v5233_v12  ;;  %v8647_v55 = vpop.f32.mrb[86].mxu0  ;;  %v6080_v48 = vsel %vm2227_vm0, %v5922_v11, 0.0 }
 0x495   : > { %v9681_v45 = vpop.eup %9680  ;;  %v5248_v14 = vadd.f32 %v8647_v55, %v11979_v31  ;;  %v5242_v28 = vpop.f32.mrb[87].mxu0  ;;  %v6077_v5 = vsel %vm2227_vm0, %v5921_v4, 0.0 }
 0x496   : > { %v9683_v42 = vpop.eup %9682  ;;  %v5243_v36 = vadd.f32 %v11979_v31, %v5242_v28  ;;  %v5924_v3 = vmul.f32 %v9681_v45, %v12003_v19 }
 0x497   : > { %9692 = vtanh.f32 %v5248_v14  ;;  %6078 = vadd.xlane.f32.xlu0 %v6077_v5  ;;  %6081 = vadd.xlane.f32.xlu1 %v6080_v48  ;;  %v5923_v26 = vmul.f32 %v9683_v42, %v12003_v19 }
 0x498   : > { %9694 = vtanh.f32 %v5243_v36  ;;  %v8650_v2 = vpop.f32.mrb[88].mxu0  ;;  %v6086_v24 = vsel %vm2227_vm0, %v5924_v3, 0.0 }
 0x499   : > { %v9685_v33 = vpop.eup %9684  ;;  %v5258_v57 = vadd.f32 %v8650_v2, %v11979_v31  ;;  %v5252_v10 = vpop.f32.mrb[89].mxu0  ;;  %v6083_v59 = vsel %vm2227_vm0, %v5923_v26, 0.0 }
 0x49a   : > { %v9687_v51 = vpop.eup %9686  ;;  %v5253_v27 = vadd.f32 %v11979_v31, %v5252_v10  ;;  %v5926_v47 = vmul.f32 %v9685_v33, %v12003_v19 }
 0x49b   : > { %9696 = vtanh.f32 %v5258_v57  ;;  %6084 = vadd.xlane.f32.xlu0 %v6083_v59  ;;  %6087 = vadd.xlane.f32.xlu1 %v6086_v24  ;;  %v5925_v17 = vmul.f32 %v9687_v51, %v12003_v19 }
 0x49c   : > { %9698 = vtanh.f32 %v5253_v27  ;;  %v8653_v41 = vpop.f32.mrb[90].mxu0  ;;  %v6092_v29 = vsel %vm2227_vm0, %v5926_v47, 0.0 }
 0x49d   : > { %v9689_v34 = vpop.eup %9688  ;;  %v5268_v8 = vadd.f32 %v8653_v41, %v11979_v31  ;;  %v5262_v6 = vpop.f32.mrb[91].mxu0  ;;  %v6089_v54 = vsel %vm2227_vm0, %v5925_v17, 0.0 }
 0x49e   : > { %v9691_v61 = vpop.eup %9690  ;;  %v5263_v18 = vadd.f32 %v11979_v31, %v5262_v6  ;;  %v5928_v35 = vmul.f32 %v9689_v34, %v12003_v19 }
 0x49f   : > { %9700 = vtanh.f32 %v5268_v8  ;;  %6090 = vadd.xlane.f32.xlu0 %v6089_v54  ;;  %6093 = vadd.xlane.f32.xlu1 %v6092_v29  ;;  %v5927_v37 = vmul.f32 %v9691_v61, %v12003_v19 }
 0x4a0   : > { %9702 = vtanh.f32 %v5263_v18  ;;  %v8656_v63 = vpop.f32.mrb[92].mxu0  ;;  %v6098_v38 = vsel %vm2227_vm0, %v5928_v35, 0.0 }
 0x4a1   : > { %v9693_v22 = vpop.eup %9692  ;;  %v5278_v25 = vadd.f32 %v8656_v63, %v11979_v31  ;;  %v5272_v60 = vpop.f32.mrb[93].mxu0  ;;  %v6095_v30 = vsel %vm2227_vm0, %v5927_v37, 0.0 }
 0x4a2   : > { %v9695_v0 = vpop.eup %9694  ;;  %v5273_v46 = vadd.f32 %v11979_v31, %v5272_v60  ;;  %v5930_v43 = vmul.f32 %v9693_v22, %v12003_v19 }
 0x4a3   : > { %9704 = vtanh.f32 %v5278_v25  ;;  %6096 = vadd.xlane.f32.xlu0 %v6095_v30  ;;  %6099 = vadd.xlane.f32.xlu1 %v6098_v38  ;;  %v5929_v13 = vmul.f32 %v9695_v0, %v12003_v19 }
 0x4a4   : > { %9706 = vtanh.f32 %v5273_v46  ;;  %v8659_v53 = vpop.f32.mrb[94].mxu0  ;;  %v6104_v20 = vsel %vm2227_vm0, %v5930_v43, 0.0 }
 0x4a5   : > { %v9697_v52 = vpop.eup %9696  ;;  %v5288_v39 = vadd.f32 %v8659_v53, %v11979_v31  ;;  %v5282_v32 = vpop.f32.mrb[95].mxu0  ;;  %v6101_v62 = vsel %vm2227_vm0, %v5929_v13, 0.0 }
 0x4a6   : > { %v9699_v40 = vpop.eup %9698  ;;  %v5283_v15 = vadd.f32 %v11979_v31, %v5282_v32  ;;  %v5932_v58 = vmul.f32 %v9697_v52, %v12003_v19 }
 0x4a7   : > { %9708 = vtanh.f32 %v5288_v39  ;;  %6102 = vadd.xlane.f32.xlu0 %v6101_v62  ;;  %6105 = vadd.xlane.f32.xlu1 %v6104_v20  ;;  %v5931_v1 = vmul.f32 %v9699_v40, %v12003_v19 }
 0x4a8   : > { %9710 = vtanh.f32 %v5283_v15  ;;  %v8662_v21 = vpop.f32.mrb[96].mxu0  ;;  %v6110_v50 = vsel %vm2227_vm0, %v5932_v58, 0.0 }
 0x4a9   : > { %v9701_v9 = vpop.eup %9700  ;;  %v5298_v56 = vadd.f32 %v8662_v21, %v11979_v31  ;;  %v5292_v44 = vpop.f32.mrb[97].mxu0  ;;  %v6107_v23 = vsel %vm2227_vm0, %v5931_v1, 0.0 }
 0x4aa   : > { %v9703_v7 = vpop.eup %9702  ;;  %v5293_v16 = vadd.f32 %v11979_v31, %v5292_v44  ;;  %v5934_v12 = vmul.f32 %v9701_v9, %v12003_v19 }
 0x4ab   : > { %9712 = vtanh.f32 %v5298_v56  ;;  %6108 = vadd.xlane.f32.xlu0 %v6107_v23  ;;  %6111 = vadd.xlane.f32.xlu1 %v6110_v50  ;;  %v5933_v49 = vmul.f32 %v9703_v7, %v12003_v19 }
 0x4ac   : > { %9714 = vtanh.f32 %v5293_v16  ;;  %v8665_v11 = vpop.f32.mrb[98].mxu0  ;;  %v6116_v4 = vsel %vm2227_vm0, %v5934_v12, 0.0 }
 0x4ad   : > { %v9705_v55 = vpop.eup %9704  ;;  %v5308_v48 = vadd.f32 %v8665_v11, %v11979_v31  ;;  %v5302_v45 = vpop.f32.mrb[99].mxu0  ;;  %v6113_v14 = vsel %vm2227_vm0, %v5933_v49, 0.0 }
 0x4ae   : > { %v9707_v28 = vpop.eup %9706  ;;  %v5303_v5 = vadd.f32 %v11979_v31, %v5302_v45  ;;  %v5936_v42 = vmul.f32 %v9705_v55, %v12003_v19 }
 0x4af   : > { %9716 = vtanh.f32 %v5308_v48  ;;  %6114 = vadd.xlane.f32.xlu0 %v6113_v14  ;;  %6117 = vadd.xlane.f32.xlu1 %v6116_v4  ;;  %v5935_v36 = vmul.f32 %v9707_v28, %v12003_v19 }
 0x4b0   : > { %9718 = vtanh.f32 %v5303_v5  ;;  %v8668_v3 = vpop.f32.mrb[100].mxu0  ;;  %v6122_v26 = vsel %vm2227_vm0, %v5936_v42, 0.0 }
 0x4b1   : > { %v9709_v2 = vpop.eup %9708  ;;  %v5318_v24 = vadd.f32 %v8668_v3, %v11979_v31  ;;  %v5312_v33 = vpop.f32.mrb[101].mxu0  ;;  %v6119_v57 = vsel %vm2227_vm0, %v5935_v36, 0.0 }
 0x4b2   : > { %v9711_v10 = vpop.eup %9710  ;;  %v5313_v59 = vadd.f32 %v11979_v31, %v5312_v33  ;;  %v5938_v51 = vmul.f32 %v9709_v2, %v12003_v19 }
 0x4b3   : > { %9720 = vtanh.f32 %v5318_v24  ;;  %6120 = vadd.xlane.f32.xlu0 %v6119_v57  ;;  %6123 = vadd.xlane.f32.xlu1 %v6122_v26  ;;  %v5937_v27 = vmul.f32 %v9711_v10, %v12003_v19 }
 0x4b4   : > { %9722 = vtanh.f32 %v5313_v59  ;;  %v8671_v47 = vpop.f32.mrb[102].mxu0  ;;  %v6128_v17 = vsel %vm2227_vm0, %v5938_v51, 0.0 }
 0x4b5   : > { %v9713_v41 = vpop.eup %9712  ;;  %v5328_v29 = vadd.f32 %v8671_v47, %v11979_v31  ;;  %v5322_v34 = vpop.f32.mrb[103].mxu0  ;;  %v6125_v8 = vsel %vm2227_vm0, %v5937_v27, 0.0 }
 0x4b6   : > { %v9715_v6 = vpop.eup %9714  ;;  %v5323_v54 = vadd.f32 %v11979_v31, %v5322_v34  ;;  %v5940_v61 = vmul.f32 %v9713_v41, %v12003_v19 }
 0x4b7   : > { %9724 = vtanh.f32 %v5328_v29  ;;  %6126 = vadd.xlane.f32.xlu0 %v6125_v8  ;;  %6129 = vadd.xlane.f32.xlu1 %v6128_v17  ;;  %v5939_v18 = vmul.f32 %v9715_v6, %v12003_v19 }
 0x4b8   : > { %9726 = vtanh.f32 %v5323_v54  ;;  %v8674_v35 = vpop.f32.mrb[104].mxu0  ;;  %v6134_v37 = vsel %vm2227_vm0, %v5940_v61, 0.0 }
 0x4b9   : > { %v9717_v63 = vpop.eup %9716  ;;  %v5338_v38 = vadd.f32 %v8674_v35, %v11979_v31  ;;  %v5332_v22 = vpop.f32.mrb[105].mxu0  ;;  %v6131_v25 = vsel %vm2227_vm0, %v5939_v18, 0.0 }
 0x4ba   : > { %v9719_v60 = vpop.eup %9718  ;;  %v5333_v30 = vadd.f32 %v11979_v31, %v5332_v22  ;;  %v5942_v0 = vmul.f32 %v9717_v63, %v12003_v19 }
 0x4bb   : > { %9728 = vtanh.f32 %v5338_v38  ;;  %6132 = vadd.xlane.f32.xlu0 %v6131_v25  ;;  %6135 = vadd.xlane.f32.xlu1 %v6134_v37  ;;  %v5941_v46 = vmul.f32 %v9719_v60, %v12003_v19 }
 0x4bc   : > { %9730 = vtanh.f32 %v5333_v30  ;;  %v8677_v43 = vpop.f32.mrb[106].mxu0  ;;  %v6140_v13 = vsel %vm2227_vm0, %v5942_v0, 0.0 }
 0x4bd   : > { %v9721_v53 = vpop.eup %9720  ;;  %v5348_v20 = vadd.f32 %v8677_v43, %v11979_v31  ;;  %v5342_v52 = vpop.f32.mrb[107].mxu0  ;;  %v6137_v39 = vsel %vm2227_vm0, %v5941_v46, 0.0 }
 0x4be   : > { %v9723_v32 = vpop.eup %9722  ;;  %v5343_v62 = vadd.f32 %v11979_v31, %v5342_v52  ;;  %v5944_v40 = vmul.f32 %v9721_v53, %v12003_v19 }
 0x4bf   : > { %9732 = vtanh.f32 %v5348_v20  ;;  %6138 = vadd.xlane.f32.xlu0 %v6137_v39  ;;  %6141 = vadd.xlane.f32.xlu1 %v6140_v13  ;;  %v5943_v15 = vmul.f32 %v9723_v32, %v12003_v19 }
 0x4c0   : > { %9734 = vtanh.f32 %v5343_v62  ;;  %v8680_v58 = vpop.f32.mrb[108].mxu0  ;;  %v6146_v1 = vsel %vm2227_vm0, %v5944_v40, 0.0 }
 0x4c1   : > { %v9725_v21 = vpop.eup %9724  ;;  %v5358_v50 = vadd.f32 %v8680_v58, %v11979_v31  ;;  %v5352_v9 = vpop.f32.mrb[109].mxu0  ;;  %v6143_v56 = vsel %vm2227_vm0, %v5943_v15, 0.0 }
 0x4c2   : > { %v9727_v44 = vpop.eup %9726  ;;  %v5353_v23 = vadd.f32 %v11979_v31, %v5352_v9  ;;  %v5946_v7 = vmul.f32 %v9725_v21, %v12003_v19 }
 0x4c3   : > { %9736 = vtanh.f32 %v5358_v50  ;;  %6144 = vadd.xlane.f32.xlu0 %v6143_v56  ;;  %6147 = vadd.xlane.f32.xlu1 %v6146_v1  ;;  %v5945_v16 = vmul.f32 %v9727_v44, %v12003_v19 }
 0x4c4   : > { %9738 = vtanh.f32 %v5353_v23  ;;  %v8683_v12 = vpop.f32.mrb[110].mxu0  ;;  %v6152_v49 = vsel %vm2227_vm0, %v5946_v7, 0.0 }
 0x4c5   : > { %v9729_v11 = vpop.eup %9728  ;;  %v5368_v4 = vadd.f32 %v8683_v12, %v11979_v31  ;;  %v5362_v55 = vpop.f32.mrb[111].mxu0  ;;  %v6149_v48 = vsel %vm2227_vm0, %v5945_v16, 0.0 }
 0x4c6   : > { %v9731_v45 = vpop.eup %9730  ;;  %v5363_v14 = vadd.f32 %v11979_v31, %v5362_v55  ;;  %v5948_v28 = vmul.f32 %v9729_v11, %v12003_v19 }
 0x4c7   : > { %9740 = vtanh.f32 %v5368_v4  ;;  %6150 = vadd.xlane.f32.xlu0 %v6149_v48  ;;  %6153 = vadd.xlane.f32.xlu1 %v6152_v49  ;;  %v5947_v5 = vmul.f32 %v9731_v45, %v12003_v19 }
 0x4c8   : > { %9742 = vtanh.f32 %v5363_v14  ;;  %v8686_v42 = vpop.f32.mrb[112].mxu0  ;;  %v6158_v36 = vsel %vm2227_vm0, %v5948_v28, 0.0 }
 0x4c9   : > { %v9733_v3 = vpop.eup %9732  ;;  %v5378_v26 = vadd.f32 %v8686_v42, %v11979_v31  ;;  %v5372_v2 = vpop.f32.mrb[113].mxu0  ;;  %v6155_v24 = vsel %vm2227_vm0, %v5947_v5, 0.0 }
 0x4ca   : > { %v9735_v33 = vpop.eup %9734  ;;  %v5373_v57 = vadd.f32 %v11979_v31, %v5372_v2  ;;  %v5950_v10 = vmul.f32 %v9733_v3, %v12003_v19 }
 0x4cb   : > { %9744 = vtanh.f32 %v5378_v26  ;;  %6156 = vadd.xlane.f32.xlu0 %v6155_v24  ;;  %6159 = vadd.xlane.f32.xlu1 %v6158_v36  ;;  %v5949_v59 = vmul.f32 %v9735_v33, %v12003_v19 }
 0x4cc   : > { %9746 = vtanh.f32 %v5373_v57  ;;  %v8689_v51 = vpop.f32.mrb[114].mxu0  ;;  %v6164_v27 = vsel %vm2227_vm0, %v5950_v10, 0.0 }
 0x4cd   : > { %v9737_v47 = vpop.eup %9736  ;;  %v5388_v17 = vadd.f32 %v8689_v51, %v11979_v31  ;;  %v5382_v41 = vpop.f32.mrb[115].mxu0  ;;  %v6161_v29 = vsel %vm2227_vm0, %v5949_v59, 0.0 }
 0x4ce   : > { %v9739_v34 = vpop.eup %9738  ;;  %v5383_v8 = vadd.f32 %v11979_v31, %v5382_v41  ;;  %v5952_v6 = vmul.f32 %v9737_v47, %v12003_v19 }
 0x4cf   : > { %9748 = vtanh.f32 %v5388_v17  ;;  %6162 = vadd.xlane.f32.xlu0 %v6161_v29  ;;  %6165 = vadd.xlane.f32.xlu1 %v6164_v27  ;;  %v5951_v54 = vmul.f32 %v9739_v34, %v12003_v19 }
 0x4d0   : > { %9750 = vtanh.f32 %v5383_v8  ;;  %v8692_v61 = vpop.f32.mrb[116].mxu0  ;;  %v6170_v18 = vsel %vm2227_vm0, %v5952_v6, 0.0 }
 0x4d1   : > { %v9741_v35 = vpop.eup %9740  ;;  %v5398_v37 = vadd.f32 %v8692_v61, %v11979_v31  ;;  %v5392_v63 = vpop.f32.mrb[117].mxu0  ;;  %v6167_v38 = vsel %vm2227_vm0, %v5951_v54, 0.0 }
 0x4d2   : > { %v9743_v22 = vpop.eup %9742  ;;  %v5393_v25 = vadd.f32 %v11979_v31, %v5392_v63  ;;  %v5954_v60 = vmul.f32 %v9741_v35, %v12003_v19 }
 0x4d3   : > { %9752 = vtanh.f32 %v5398_v37  ;;  %6168 = vadd.xlane.f32.xlu0 %v6167_v38  ;;  %6171 = vadd.xlane.f32.xlu1 %v6170_v18  ;;  %v5953_v30 = vmul.f32 %v9743_v22, %v12003_v19  ;;  %v12205_v18 = vld [vmem:[%s13276_s4 + $0x2] ss:$0 sm:$0xff] }
 0x4d4   : > { %9754 = vtanh.f32 %v5393_v25  ;;  %v8695_v0 = vpop.f32.mrb[118].mxu0  ;;  %v6176_v46 = vsel %vm2227_vm0, %v5954_v60, 0.0 }
 0x4d5   : > { %v9745_v43 = vpop.eup %9744  ;;  %v5408_v13 = vadd.f32 %v8695_v0, %v11979_v31  ;;  %v5402_v53 = vpop.f32.mrb[119].mxu0  ;;  %v6173_v20 = vsel %vm2227_vm0, %v5953_v30, 0.0 }
 0x4d6   : > { %v9747_v52 = vpop.eup %9746  ;;  %v5403_v39 = vadd.f32 %v11979_v31, %v5402_v53  ;;  %v5956_v32 = vmul.f32 %v9745_v43, %v12003_v19 }
 0x4d7   : > { %9756 = vtanh.f32 %v5408_v13  ;;  %6174 = vadd.xlane.f32.xlu0 %v6173_v20  ;;  %6177 = vadd.xlane.f32.xlu1 %v6176_v46  ;;  %v5955_v62 = vmul.f32 %v9747_v52, %v12003_v19 }
 0x4d8   : > { %9758 = vtanh.f32 %v5403_v39  ;;  %v8698_v40 = vpop.f32.mrb[120].mxu0  ;;  %v6182_v15 = vsel %vm2227_vm0, %v5956_v32, 0.0 }
 0x4d9   : > { %v9749_v58 = vpop.eup %9748  ;;  %v5418_v1 = vadd.f32 %v8698_v40, %v11979_v31  ;;  %v5412_v21 = vpop.f32.mrb[121].mxu0  ;;  %v6179_v50 = vsel %vm2227_vm0, %v5955_v62, 0.0 }
 0x4da   : > { %v9751_v9 = vpop.eup %9750  ;;  %v5413_v56 = vadd.f32 %v11979_v31, %v5412_v21  ;;  %v5958_v44 = vmul.f32 %v9749_v58, %v12003_v19 }
 0x4db   : > { %9760 = vtanh.f32 %v5418_v1  ;;  %6180 = vadd.xlane.f32.xlu0 %v6179_v50  ;;  %6183 = vadd.xlane.f32.xlu1 %v6182_v15  ;;  %v5957_v23 = vmul.f32 %v9751_v9, %v12003_v19 }
 0x4dc   : > { %9762 = vtanh.f32 %v5413_v56  ;;  %v8701_v7 = vpop.f32.mrb[122].mxu0  ;;  %v6188_v16 = vsel %vm2227_vm0, %v5958_v44, 0.0 }
 0x4dd   : > { %v9753_v12 = vpop.eup %9752  ;;  %v5428_v49 = vadd.f32 %v8701_v7, %v11979_v31  ;;  %v5422_v11 = vpop.f32.mrb[123].mxu0  ;;  %v6185_v4 = vsel %vm2227_vm0, %v5957_v23, 0.0 }
 0x4de   : > { %v9755_v55 = vpop.eup %9754  ;;  %v5423_v48 = vadd.f32 %v11979_v31, %v5422_v11  ;;  %v5960_v45 = vmul.f32 %v9753_v12, %v12003_v19 }
 0x4df   : > { %9764 = vtanh.f32 %v5428_v49  ;;  %6186 = vadd.xlane.f32.xlu0 %v6185_v4  ;;  %6189 = vadd.xlane.f32.xlu1 %v6188_v16  ;;  %v5959_v14 = vmul.f32 %v9755_v55, %v12003_v19 }
 0x4e0   : > { %9766 = vtanh.f32 %v5423_v48  ;;  %v8704_v28 = vpop.f32.mrb[124].mxu0  ;;  %v6194_v5 = vsel %vm2227_vm0, %v5960_v45, 0.0  ;;  %v12232_v48 = vld [vmem:[%s13277_s5] ss:$0 sm:$0xff] }
 0x4e1   : > { %v9757_v42 = vpop.eup %9756  ;;  %v5438_v36 = vadd.f32 %v8704_v28, %v11979_v31  ;;  %v5432_v3 = vpop.f32.mrb[125].mxu0  ;;  %v6191_v26 = vsel %vm2227_vm0, %v5959_v14, 0.0 }
 0x4e2   : > { %v9759_v2 = vpop.eup %9758  ;;  %v5433_v24 = vadd.f32 %v11979_v31, %v5432_v3  ;;  %v5962_v33 = vmul.f32 %v9757_v42, %v12003_v19 }
 0x4e3   : > { %9768 = vtanh.f32 %v5438_v36  ;;  %6192 = vadd.xlane.f32.xlu0 %v6191_v26  ;;  %6195 = vadd.xlane.f32.xlu1 %v6194_v5  ;;  %v5961_v57 = vmul.f32 %v9759_v2, %v12003_v19 }
 0x4e4   : > { %9770 = vtanh.f32 %v5433_v24  ;;  %v8707_v10 = vpop.f32.mrb[126].mxu0  ;;  %v6200_v59 = vsel %vm2227_vm0, %v5962_v33, 0.0 }
 0x4e5   : > { %v9761_v51 = vpop.eup %9760  ;;  %v5448_v27 = vadd.f32 %v8707_v10, %v11979_v31  ;;  %v5442_v47 = vpop.f32.mrb[127].mxu0  ;;  %v6197_v17 = vsel %vm2227_vm0, %v5961_v57, 0.0 }
 0x4e6   : > { %v9763_v41 = vpop.eup %9762  ;;  %v5443_v29 = vadd.f32 %v11979_v31, %v5442_v47  ;;  %v5964_v34 = vmul.f32 %v9761_v51, %v12003_v19 }
 0x4e7   : > { %9772 = vtanh.f32 %v5448_v27  ;;  %6198 = vadd.xlane.f32.xlu0 %v6197_v17  ;;  %6201 = vadd.xlane.f32.xlu1 %v6200_v59  ;;  %v5963_v8 = vmul.f32 %v9763_v41, %v12003_v19 }
 0x4e8   : > { %9774 = vtanh.f32 %v5443_v29  ;;  %v8710_v6 = vpop.f32.mrb[128].mxu0  ;;  %v6206_v54 = vsel %vm2227_vm0, %v5964_v34, 0.0 }
 0x4e9   : > { %v9765_v61 = vpop.eup %9764  ;;  %v5458_v35 = vadd.f32 %v12205_v18, %v8710_v6  ;;  %v5452_v31 = vpop.f32.mrb[129].mxu0  ;;  %v6203_v37 = vsel %vm2227_vm0, %v5963_v8, 0.0 }
 0x4ea   : > { %v9767_v63 = vpop.eup %9766  ;;  %v5453_v38 = vadd.f32 %v12205_v18, %v5452_v31  ;;  %v5966_v22 = vmul.f32 %v9765_v61, %v12003_v19 }
 0x4eb   : > { %9776 = vtanh.f32 %v5458_v35  ;;  %6204 = vadd.xlane.f32.xlu0 %v6203_v37  ;;  %6207 = vadd.xlane.f32.xlu1 %v6206_v54  ;;  %v5965_v25 = vmul.f32 %v9767_v63, %v12003_v19 }
 0x4ec   : > { %9778 = vtanh.f32 %v5453_v38  ;;  %v8713_v60 = vpop.f32.mrb[130].mxu0  ;;  %v6212_v30 = vsel %vm2227_vm0, %v5966_v22, 0.0 }
 0x4ed   : > { %v9769_v0 = vpop.eup %9768  ;;  %v5468_v46 = vadd.f32 %v12205_v18, %v8713_v60  ;;  %v5462_v43 = vpop.f32.mrb[131].mxu0  ;;  %v6209_v13 = vsel %vm2227_vm0, %v5965_v25, 0.0 }
 0x4ee   : > { %v9771_v53 = vpop.eup %9770  ;;  %v5463_v20 = vadd.f32 %v12205_v18, %v5462_v43  ;;  %v5968_v52 = vmul.f32 %v9769_v0, %v12003_v19 }
 0x4ef   : > { %9780 = vtanh.f32 %v5468_v46  ;;  %6210 = vadd.xlane.f32.xlu0 %v6209_v13  ;;  %6213 = vadd.xlane.f32.xlu1 %v6212_v30  ;;  %v5967_v39 = vmul.f32 %v9771_v53, %v12003_v19 }
 0x4f0   : > { %9782 = vtanh.f32 %v5463_v20  ;;  %v8716_v32 = vpop.f32.mrb[132].mxu0  ;;  %v6218_v62 = vsel %vm2227_vm0, %v5968_v52, 0.0 }
 0x4f1   : > { %v9773_v40 = vpop.eup %9772  ;;  %v5478_v15 = vadd.f32 %v12205_v18, %v8716_v32  ;;  %v5472_v58 = vpop.f32.mrb[133].mxu0  ;;  %v6215_v1 = vsel %vm2227_vm0, %v5967_v39, 0.0 }
 0x4f2   : > { %v9775_v21 = vpop.eup %9774  ;;  %v5473_v50 = vadd.f32 %v12205_v18, %v5472_v58  ;;  %v5970_v9 = vmul.f32 %v9773_v40, %v12003_v19 }
 0x4f3   : > { %9784 = vtanh.f32 %v5478_v15  ;;  %6216 = vadd.xlane.f32.xlu0 %v6215_v1  ;;  %6219 = vadd.xlane.f32.xlu1 %v6218_v62  ;;  %v5969_v56 = vmul.f32 %v9775_v21, %v12003_v19 }
 0x4f4   : > { %9786 = vtanh.f32 %v5473_v50  ;;  %v8719_v44 = vpop.f32.mrb[134].mxu0  ;;  %v6224_v23 = vsel %vm2227_vm0, %v5970_v9, 0.0 }
 0x4f5   : > { %v9777_v7 = vpop.eup %9776  ;;  %v5488_v16 = vadd.f32 %v12205_v18, %v8719_v44  ;;  %v5482_v12 = vpop.f32.mrb[135].mxu0  ;;  %v6221_v49 = vsel %vm2227_vm0, %v5969_v56, 0.0  ;;  %v12295_v44 = vld [vmem:[#allocation2] ss:$0 sm:$0xff] }
 0x4f6   : > { %v9779_v11 = vpop.eup %9778  ;;  %v5483_v4 = vadd.f32 %v12205_v18, %v5482_v12  ;;  %v5972_v55 = vmul.f32 %v9777_v7, %v12003_v19 }
 0x4f7   : > { %9788 = vtanh.f32 %v5488_v16  ;;  %6222 = vadd.xlane.f32.xlu0 %v6221_v49  ;;  %6225 = vadd.xlane.f32.xlu1 %v6224_v23  ;;  %v5971_v45 = vmul.f32 %v12232_v48, %v9779_v11 }
 0x4f8   : > { %9790 = vtanh.f32 %v5483_v4  ;;  %v8722_v14 = vpop.f32.mrb[136].mxu0  ;;  %v6230_v28 = vsel %vm2227_vm0, %v5972_v55, 0.0 }
 0x4f9   : > { %v9781_v5 = vpop.eup %9780  ;;  %v5498_v42 = vadd.f32 %v12205_v18, %v8722_v14  ;;  %v5492_v36 = vpop.f32.mrb[137].mxu0  ;;  %v6227_v19 = vsel %vm2227_vm0, %v5971_v45, 0.0 }
 0x4fa   : > { %v9783_v3 = vpop.eup %9782  ;;  %v5493_v26 = vadd.f32 %v12205_v18, %v5492_v36  ;;  %v5974_v2 = vmul.f32 %v12232_v48, %v9781_v5 }
 0x4fb   : > { %9792 = vtanh.f32 %v5498_v42  ;;  %6228 = vadd.xlane.f32.xlu0 %v6227_v19  ;;  %6231 = vadd.xlane.f32.xlu1 %v6230_v28  ;;  %v5973_v24 = vmul.f32 %v12232_v48, %v9783_v3 }
 0x4fc   : > { %9794 = vtanh.f32 %v5493_v26  ;;  %v12241_v33 = vpop.f32.mrb[138].mxu0  ;;  %v6236_v57 = vsel %vm2227_vm0, %v5974_v2, 0.0 }
 0x4fd   : > { %v9785_v10 = vpop.eup %9784  ;;  %v12244_v59 = vpop.f32.mrb[139].mxu0  ;;  %v6233_v51 = vsel %vm2227_vm0, %v5973_v24, 0.0 }
 0x4fe   : > { %v9787_v27 = vpop.eup %9786  ;;  %v5976_v47 = vmul.f32 %v12232_v48, %v9785_v10  ;;  %v5508_v10 = vadd.f32 %v12205_v18, %v12241_v33 }
 0x4ff   : > { %6234 = vadd.xlane.f32.xlu0 %v6233_v51  ;;  %6237 = vadd.xlane.f32.xlu1 %v6236_v57  ;;  %v5975_v17 = vmul.f32 %v12232_v48, %v9787_v27  ;;  %v5503_v27 = vadd.f32 %v12205_v18, %v12244_v59 }
 0x500   : > { %v12249_v41 = vpop.f32.mrb[140].mxu0  ;;  %v6242_v29 = vsel %vm2227_vm0, %v5976_v47, 0.0  ;;  %9796 = vtanh.f32 %v5508_v10 }
 0x501   : > { %v9789_v34 = vpop.eup %9788  ;;  %v12252_v8 = vpop.f32.mrb[141].mxu0  ;;  %v6239_v6 = vsel %vm2227_vm0, %v5975_v17, 0.0  ;;  %9798 = vtanh.f32 %v5503_v27 }
 0x502   : > { %v9791_v54 = vpop.eup %9790  ;;  %v5978_v61 = vmul.f32 %v12232_v48, %v9789_v34 }
 0x503   : > { %6240 = vadd.xlane.f32.xlu0 %v6239_v6  ;;  %6243 = vadd.xlane.f32.xlu1 %v6242_v29  ;;  %v5977_v35 = vmul.f32 %v12232_v48, %v9791_v54  ;;  %v5513_v6 = vadd.f32 %v12205_v18, %v12252_v8 }
 0x504   : > { %v12257_v31 = vpop.f32.mrb[142].mxu0  ;;  %v6248_v37 = vsel %vm2227_vm0, %v5978_v61, 0.0 }
 0x505   : > { %v9793_v63 = vpop.eup %9792  ;;  %v12260_v38 = vpop.f32.mrb[143].mxu0  ;;  %v6245_v22 = vsel %vm2227_vm0, %v5977_v35, 0.0  ;;  %9800 = vtanh.f32 %v5513_v6 }
 0x506   : > { %v9795_v25 = vpop.eup %9794  ;;  %v6040_v60 = vpop.xlane.xlu0 %6039  ;;  %v5980_v30 = vmul.f32 %v12232_v48, %v9793_v63  ;;  %v5523_v35 = vadd.f32 %v12205_v18, %v12260_v38 }
 0x507   : > { %6246 = vadd.xlane.f32.xlu0 %v6245_v22  ;;  %6249 = vadd.xlane.f32.xlu1 %v6248_v37  ;;  %v5979_v0 = vmul.f32 %v12232_v48, %v9795_v25  ;;  %v6426_v12 = vadd.f32 %v12295_v44, %v6040_v60 }
 0x508   : > { %v6037_v46 = vpop.xlane.xlu1 %6036  ;;  %v12265_v43 = vpop.f32.mrb[144].mxu0  ;;  %v6254_v13 = vsel %vm2227_vm0, %v5980_v30, 0.0  ;;  %9802 = vtanh.f32 %v5523_v35 }
 0x509   : > { %v12268_v53 = vpop.f32.mrb[145].mxu0  ;;  %v6251_v20 = vsel %vm2227_vm0, %v5979_v0, 0.0  ;;  %v6425_v14 = vadd.f32 %v12295_v44, %v6037_v46 }
 0x50a   : > { %v9797_v60 = vpop.eup %9796 }
 0x50b   : > { %6252 = vadd.xlane.f32.xlu0 %v6251_v20  ;;  %6255 = vadd.xlane.f32.xlu1 %v6254_v13  ;;  %v9799_v30 = vpop.eup %9798  ;;  %v5982_v20 = vmul.f32 %v12232_v48, %v9797_v60 }
 0x50c   : > { %v12271_v52 = vpop.xlane.xlu0 %6042  ;;  %v12273_v39 = vpop.xlane.xlu1 %6045 }
 0x50d   : > { %v12275_v32 = vpop.f32.mrb[146].mxu0 }
 0x50e   : > { %v12277_v62 = vpop.f32.mrb[147].mxu0 }
 0x510   : > { %v12279_v40 = vpop.xlane.xlu0 %6048  ;;  %v12281_v15 = vpop.xlane.xlu1 %6051 }
 0x511   : > { %v12283_v58 = vpop.f32.mrb[148].mxu0 }
 0x512   : > { %v12285_v1 = vpop.f32.mrb[149].mxu0 }
 0x514   : > { %v12287_v21 = vpop.xlane.xlu0 %6054  ;;  %v12289_v50 = vpop.xlane.xlu1 %6057 }
 0x515   : > { %v12291_v9 = vpop.f32.mrb[150].mxu0 }
 0x516   : > { %v12293_v56 = vpop.f32.mrb[151].mxu0 }
 0x518   : > { %v12297_v23 = vpop.xlane.xlu0 %6060  ;;  %v12299_v7 = vpop.xlane.xlu1 %6063 }
 0x519   : > { %v12301_v16 = vpop.f32.mrb[152].mxu0 }
 0x51a   : > { %v12304_v49 = vpop.f32.mrb[153].mxu0 }
 0x51c   : > { %v12306_v11 = vpop.xlane.xlu0 %6066  ;;  %6560 = vperm.xlu1 %8879, %v6426_v12   ;;  %v12308_v4 = vpop.xlane.xlu1 %6069  ;;  %v5981_v12 = vmul.f32 %v12232_v48, %v9799_v30 }
 0x51d   : > { %v12310_v55 = vpop.f32.mrb[154].mxu0 }
 0x51e   : > { %v12312_v45 = vpop.f32.mrb[155].mxu0 }
 0x520   : > { %v12315_v28 = vpop.xlane.xlu0 %6072  ;;  %v12317_v5 = vpop.xlane.xlu1 %6075 }
 0x521   : > { %v12319_v42 = vpop.f32.mrb[156].mxu0  ;;  %6555 = vperm.xlu0 %8878, %v6425_v14   ;;  %v9801_v14 = vpop.eup %9800 }
 0x522   : > { %v12321_v36 = vpop.f32.mrb[157].mxu0 }
 0x524   : > { %v12323_v19 = vpop.xlane.xlu0 %6078  ;;  %v12325_v3 = vpop.xlane.xlu1 %6081 }
 0x525   : > { %v12327_v26 = vpop.f32.mrb[158].mxu0 }
 0x526   : > { %v12329_v2 = vpop.f32.mrb[159].mxu0 }
 0x528   : > { %v12331_v24 = vpop.xlane.xlu0 %6084  ;;  %v12333_v57 = vpop.xlane.xlu1 %6087 }
 0x529   : > { %v12337_v51 = vpop.f32.mrb[160].mxu0 }
 0x52a   : > { %v12341_v47 = vpop.f32.mrb[161].mxu0 }
 0x52c   : > { %v12343_v17 = vpop.xlane.xlu0 %6090  ;;  %v12345_v29 = vpop.xlane.xlu1 %6093 }
 0x52d   : > { %v12347_v34 = vpop.f32.mrb[162].mxu0 }
 0x52e   : > { %13450 = vst [vmem:[#allocation7_spill] sm:$0xff] %v12347_v34  ;;  %v12351_v54 = vpop.f32.mrb[163].mxu0 }
 0x530   : > { %v12353_v33 = vpop.xlane.xlu0 %6096  ;;  %v12355_v61 = vpop.xlane.xlu1 %6099 }
 0x531   : > { %v12357_v59 = vpop.f32.mrb[164].mxu0 }
 0x532   : > { %13451 = vst [vmem:[#allocation6_spill] sm:$0xff] %v12357_v59  ;;  %v12361_v37 = vpop.f32.mrb[165].mxu0  ;;  %v6257_v59 = vsel %vm2227_vm0, %v5981_v12, 0.0 }
 0x534   : > { %v12363_v63 = vpop.xlane.xlu0 %6102  ;;  %v12365_v22 = vpop.xlane.xlu1 %6105 }
 0x535   : > { %v12367_v25 = vpop.f32.mrb[166].mxu0 }
 0x536   : > { %13452 = vst [vmem:[#allocation9_spill] sm:$0xff] %v12367_v25  ;;  %v12369_v8 = vpop.f32.mrb[167].mxu0  ;;  %v6260_v25 = vsel %vm2227_vm0, %v5982_v20, 0.0 }
 0x538   : > { %v12371_v0 = vpop.xlane.xlu0 %6108  ;;  %v12373_v46 = vpop.xlane.xlu1 %6111 }
 0x539   : > { %v12375_v13 = vpop.f32.mrb[168].mxu0 }
 0x53a   : > { %13453 = vst [vmem:[#allocation8_spill] sm:$0xff] %v12375_v13  ;;  %v12377_v38 = vpop.f32.mrb[169].mxu0  ;;  %v5983_v13 = vmul.f32 %v12232_v48, %v9801_v14 }
 0x53b   : > { %13454 = vst [vmem:[#allocation11_spill] sm:$0xff] %v12377_v38  ;;  %v9803_v38 = vpop.eup %9802 }
 0x53c   : > { %v12381_v10 = vpop.xlane.xlu0 %6114  ;;  %v12383_v27 = vpop.xlane.xlu1 %6117 }
 0x53d   : > { %13455 = vst [vmem:[#allocation10_spill] sm:$0xff] %v12381_v10  ;;  %v12385_v6 = vpop.f32.mrb[170].mxu0 }
 0x53e   : > { %13456 = vst [vmem:[#allocation13_spill] sm:$0xff] %v12385_v6  ;;  %v12387_v35 = vpop.f32.mrb[171].mxu0  ;;  %v6263_v6 = vsel %vm2227_vm0, %v5983_v13, 0.0 }
 0x53f   : > { %13457 = vst [vmem:[#allocation12_spill] sm:$0xff] %v12387_v35  ;;  %v5985_v35 = vmul.f32 %v12232_v48, %v9803_v38 }
 0x540   : > { %v12392_v34 = vpop.xlane.xlu0 %6120  ;;  %6261 = vadd.xlane.f32.xlu1 %v6260_v25  ;;  %6258 = vadd.xlane.f32.xlu0 %v6257_v59  ;;  %v12394_v60 = vpop.xlane.xlu1 %6123 }
 0x541   : > { %13458 = vst [vmem:[#allocation15_spill] sm:$0xff] %v12392_v34  ;;  %v12396_v30 = vpop.f32.mrb[172].mxu0  ;;  %v6269_v59 = vsel %vm2227_vm0, %v5985_v35, 0.0  ;;  %v6428_v35 = vadd.f32 %v12295_v44, %v12273_v39 }
 0x542   : > { %13459 = vst [vmem:[#allocation14_spill] sm:$0xff] %v12396_v30  ;;  %v12398_v10 = vpop.f32.mrb[173].mxu0 }
 0x543   : > { %13460 = vst [vmem:[#allocation17_spill] sm:$0xff] %v12398_v10 }
 0x544   : > { %v12402_v20 = vpop.xlane.xlu0 %6126  ;;  %6264 = vadd.xlane.f32.xlu0 %v6263_v6  ;;  %v12404_v12 = vpop.xlane.xlu1 %6129 }
 0x545   : > { %13461 = vst [vmem:[#allocation16_spill] sm:$0xff] %v12402_v20  ;;  %v12406_v14 = vpop.f32.mrb[174].mxu0 }
 0x546   : > { %13462 = vst [vmem:[#allocation19_spill] sm:$0xff] %v12406_v14  ;;  %v12408_v34 = vpop.f32.mrb[175].mxu0 }
 0x547   : > { %13463 = vst [vmem:[#allocation18_spill] sm:$0xff] %v12408_v34 }
 0x548   : > { %v12411_v25 = vpop.xlane.xlu0 %6132  ;;  %6270 = vadd.xlane.f32.xlu0 %v6269_v59  ;;  %v12413_v30 = vpop.xlane.xlu1 %6135 }
 0x549   : > { %13464 = vst [vmem:[#allocation21_spill] sm:$0xff] %v12411_v25  ;;  %v12415_v10 = vpop.f32.mrb[176].mxu0 }
 0x54a   : > { %13465 = vst [vmem:[#allocation20_spill] sm:$0xff] %v12415_v10  ;;  %v12417_v13 = vpop.f32.mrb[177].mxu0 }
 0x54b   : > { %13466 = vst [vmem:[#allocation23_spill] sm:$0xff] %v12417_v13  ;;  %v6427_v13 = vadd.f32 %v12295_v44, %v12271_v52  ;;  %v6434_v52 = vadd.f32 %v12295_v44, %v12299_v7  ;;  %v5518_v7 = vadd.f32 %v12205_v18, %v12249_v41 }
 0x54c   : > { %v12419_v38 = vpop.xlane.xlu0 %6138  ;;  %v12421_v6 = vpop.xlane.xlu1 %6141 }
 0x54d   : > { %13467 = vst [vmem:[#allocation22_spill] sm:$0xff] %v12419_v38  ;;  %v12423_v20 = vpop.f32.mrb[178].mxu0  ;;  %9804 = vtanh.f32 %v5518_v7 }
 0x54e   : > { %13468 = vst [vmem:[#allocation25_spill] sm:$0xff] %v12423_v20  ;;  %v12425_v14 = vpop.f32.mrb[179].mxu0 }
 0x54f   : > { %13469 = vst [vmem:[#allocation24_spill] sm:$0xff] %v12425_v14 }
 0x550   : > { %v12429_v34 = vpop.xlane.xlu0 %6144  ;;  %v12431_v59 = vpop.xlane.xlu1 %6147 }
 0x551   : > { %13470 = vst [vmem:[#allocation27_spill] sm:$0xff] %v12429_v34  ;;  %13471 = vst [vmem:[#allocation26_spill] sm:$0xff] %v12431_v59  ;;  %v12433_v25 = vpop.f32.mrb[180].mxu0  ;;  %6570 = vperm.xlu1 %8879, %v6428_v35  }
 0x552   : > { %13472 = vst [vmem:[#allocation29_spill] sm:$0xff] %v12433_v25  ;;  %v12435_v10 = vpop.f32.mrb[181].mxu0 }
 0x553   : > { %13473 = vst [vmem:[#allocation28_spill] sm:$0xff] %v12435_v10 }
 0x554   : > { %v12439_v38 = vpop.xlane.xlu0 %6150  ;;  %v12441_v20 = vpop.xlane.xlu1 %6153 }
 0x555   : > { %13474 = vst [vmem:[#allocation31_spill] sm:$0xff] %v12439_v38  ;;  %13475 = vst [vmem:[#allocation30_spill] sm:$0xff] %v12441_v20  ;;  %v12443_v14 = vpop.f32.mrb[182].mxu0  ;;  %6565 = vperm.xlu1 %8879, %v6427_v13  }
 0x556   : > { %13476 = vst [vmem:[#allocation33_spill] sm:$0xff] %v12443_v14  ;;  %v12445_v39 = vpop.f32.mrb[183].mxu0 }
 0x557   : > { %13477 = vst [vmem:[#allocation32_spill] sm:$0xff] %v12445_v39 }
 0x558   : > { %v12447_v34 = vpop.xlane.xlu0 %6156  ;;  %v12449_v59 = vpop.xlane.xlu1 %6159 }
 0x559   : > { %13478 = vst [vmem:[#allocation35_spill] sm:$0xff] %v12447_v34  ;;  %v12451_v25 = vpop.f32.mrb[184].mxu0 }
 0x55a   : > { %13479 = vst [vmem:[#allocation34_spill] sm:$0xff] %v12451_v25  ;;  %v12453_v35 = vpop.f32.mrb[185].mxu0 }
 0x55b   : > { %13480 = vst [vmem:[#allocation37_spill] sm:$0xff] %v12453_v35 }
 0x55c   : > { %v12457_v10 = vpop.xlane.xlu0 %6162  ;;  %v12459_v38 = vpop.xlane.xlu1 %6165 }
 0x55d   : > { %13481 = vst [vmem:[#allocation36_spill] sm:$0xff] %v12457_v10  ;;  %13482 = vst [vmem:[#allocation39_spill] sm:$0xff] %v12459_v38  ;;  %v12461_v20 = vpop.f32.mrb[186].mxu0 }
 0x55e   : > { %13483 = vst [vmem:[#allocation38_spill] sm:$0xff] %v12461_v20  ;;  %v12463_v13 = vpop.f32.mrb[187].mxu0  ;;  %6600 = vperm.xlu0 %8878, %v6434_v52   ;;  %v5533_v52 = vadd.f32 %v12205_v18, %v12268_v53 }
 0x55f   : > { %13484 = vst [vmem:[#allocation41_spill] sm:$0xff] %v12463_v13 }
 0x560   : > { %v12465_v14 = vpop.xlane.xlu0 %6168  ;;  %v12467_v39 = vpop.xlane.xlu1 %6171  ;;  %9806 = vtanh.f32 %v5533_v52 }
 0x561   : > { %13485 = vst [vmem:[#allocation40_spill] sm:$0xff] %v12465_v14  ;;  %v12469_v34 = vpop.f32.mrb[188].mxu0 }
 0x562   : > { %13486 = vst [vmem:[#allocation43_spill] sm:$0xff] %v12469_v34  ;;  %v12471_v25 = vpop.f32.mrb[189].mxu0 }
 0x563   : > { %13487 = vst [vmem:[#allocation42_spill] sm:$0xff] %v12471_v25 }
 0x564   : > { %v12475_v35 = vpop.xlane.xlu0 %6174  ;;  %v12477_v10 = vpop.xlane.xlu1 %6177 }
 0x565   : > { %13488 = vst [vmem:[#allocation45_spill] sm:$0xff] %v12475_v35  ;;  %13489 = vst [vmem:[#allocation44_spill] sm:$0xff] %v12477_v10  ;;  %v12479_v38 = vpop.f32.mrb[190].mxu0 }
 0x566   : > { %13490 = vst [vmem:[#allocation47_spill] sm:$0xff] %v12479_v38  ;;  %v12481_v20 = vpop.f32.mrb[191].mxu0  ;;  %v9805_v38 = vpop.eup %9804 }
 0x567   : > { %13491 = vst [vmem:[#allocation46_spill] sm:$0xff] %v12481_v20  ;;  %v5984_v53 = vmul.f32 %v12232_v48, %v9805_v38 }
 0x568   : > { %v12485_v13 = vpop.xlane.xlu0 %6180  ;;  %v12487_v34 = vpop.xlane.xlu1 %6183 }
 0x569   : > { %13492 = vst [vmem:[#allocation49_spill] sm:$0xff] %v12485_v13  ;;  %13493 = vst [vmem:[#allocation48_spill] sm:$0xff] %v12487_v34  ;;  %v6266_v52 = vsel %vm2227_vm0, %v5984_v53, 0.0 }
 0x56a   : > { %v9807_v20 = vpop.eup %9806 }
 0x56c   : > { %v12489_v25 = vpop.xlane.xlu0 %6186  ;;  %v12491_v41 = vpop.xlane.xlu1 %6189 }
 0x56d   : > { %13494 = vst [vmem:[#allocation51_spill] sm:$0xff] %v12489_v25  ;;  %v5987_v25 = vmul.f32 %v12232_v48, %v9807_v20  ;;  %v6430_v20 = vadd.f32 %v12295_v44, %v12281_v15  ;;  %v6436_v15 = vadd.f32 %v12295_v44, %v12308_v4 }
 0x570   : > { %v12493_v35 = vpop.xlane.xlu0 %6192  ;;  %v12495_v14 = vpop.xlane.xlu1 %6195 }
 0x571   : > { %13495 = vst [vmem:[#allocation50_spill] sm:$0xff] %v12493_v35  ;;  %13496 = vst [vmem:[#allocation53_spill] sm:$0xff] %v12495_v14 }
 0x574   : > { %v12497_v10 = vpop.xlane.xlu0 %6198  ;;  %v12499_v7 = vpop.xlane.xlu1 %6201 }
 0x575   : > { %13497 = vst [vmem:[#allocation52_spill] sm:$0xff] %v12497_v10  ;;  %13498 = vst [vmem:[#allocation55_spill] sm:$0xff] %v12499_v7  ;;  %v6275_v10 = vsel %vm2227_vm0, %v5987_v25, 0.0 }
 0x578   : > { %v12502_v13 = vpop.xlane.xlu0 %6204  ;;  %v12504_v34 = vpop.xlane.xlu1 %6207 }
 0x579   : > { %13499 = vst [vmem:[#allocation54_spill] sm:$0xff] %v12502_v13  ;;  %13500 = vst [vmem:[#allocation57_spill] sm:$0xff] %v12504_v34  ;;  %6267 = vadd.xlane.f32.xlu1 %v6266_v52 }
 0x57c   : > { %v12508_v35 = vpop.xlane.xlu0 %6210  ;;  %v12510_v14 = vpop.xlane.xlu1 %6213 }
 0x57d   : > { %13501 = vst [vmem:[#allocation56_spill] sm:$0xff] %v12508_v35  ;;  %6276 = vadd.xlane.f32.xlu0 %v6275_v10  ;;  %v6429_v10 = vadd.f32 %v12295_v44, %v12279_v40 }
 0x580   : > { %v12513_v7 = vpop.xlane.xlu0 %6216  ;;  %v12515_v38 = vpop.xlane.xlu1 %6219 }
 0x581   : > { %13502 = vst [vmem:[#allocation59_spill] sm:$0xff] %v12513_v7 }
 0x584   : > { %v12517_v13 = vpop.xlane.xlu0 %6222  ;;  %v12519_v34 = vpop.xlane.xlu1 %6225 }
 0x585   : > { %13503 = vst [vmem:[#allocation58_spill] sm:$0xff] %v12517_v13 }
 0x588   : > { %v12523_v53 = vpop.xlane.xlu0 %6228  ;;  %v12525_v52 = vpop.xlane.xlu1 %6231 }
 0x589   : > { %13504 = vst [vmem:[#allocation61_spill] sm:$0xff] %v12523_v53 }
 0x58a   : > { %6580 = vperm.xlu1 %8879, %v6430_v20  }
 0x58c   : > { %v12529_v25 = vpop.xlane.xlu0 %6234  ;;  %v12531_v7 = vpop.xlane.xlu1 %6237 }
 0x58d   : > { %13505 = vst [vmem:[#allocation60_spill] sm:$0xff] %v12529_v25 }
 0x58e   : > { %6575 = vperm.xlu1 %8879, %v6429_v10   ;;  %v5528_v10 = vadd.f32 %v12205_v18, %v12257_v31 }
 0x590   : > { %v12533_v13 = vpop.xlane.xlu0 %6240  ;;  %v12535_v35 = vpop.xlane.xlu1 %6243  ;;  %9808 = vtanh.f32 %v5528_v10  ;;  %v6438_v10 = vadd.f32 %v12295_v44, %v12317_v5 }
 0x591   : > { %13506 = vst [vmem:[#allocation63_spill] sm:$0xff] %v12533_v13  ;;  %13507 = vst [vmem:[#allocation62_spill] sm:$0xff] %v12535_v35  ;;  %v5543_v13 = vadd.f32 %v12205_v18, %v12277_v62 }
 0x593   : > { %6610 = vperm.xlu0 %8878, %v6436_v15   ;;  %9810 = vtanh.f32 %v5543_v13  ;;  %v6431_v13 = vadd.f32 %v12295_v44, %v12287_v21  ;;  %v5538_v21 = vadd.f32 %v12205_v18, %v12265_v43 }
 0x594   : > { %v12539_v53 = vpop.xlane.xlu1 %6249  ;;  %v12542_v20 = vpop.xlane.xlu0 %6246 }
 0x595   : > { %13508 = vst [vmem:[#allocation65_spill] sm:$0xff] %v12542_v20 }
 0x598   : > { %v12546_v40 = vpop.xlane.xlu1 %6255  ;;  %v12552_v25 = vpop.xlane.xlu0 %6252 }
 0x599   : > { %13509 = vst [vmem:[#allocation64_spill] sm:$0xff] %v12546_v40  ;;  %13510 = vst [vmem:[#allocation67_spill] sm:$0xff] %v12552_v25 }
 0x59a   : > { %v9809_v15 = vpop.eup %9808 }
 0x59b   : > { %v5986_v40 = vmul.f32 %v12232_v48, %v9809_v15 }
 0x59c   : > { %v6561_v35 = vpop.permute.xlu1 %6560 }
 0x59d   : > { %7194 = vst [vmem:[%s12554_s24 + $0x8] sm:$0xff] %v6561_v35  ;;  %v9811_v20 = vpop.eup %9810  ;;  %v6272_v62 = vsel %vm2227_vm0, %v5986_v40, 0.0  ;;  %v6432_v35 = vadd.f32 %v12295_v44, %v12289_v50 }
 0x59e   : > { %v5989_v31 = vmul.f32 %v12232_v48, %v9811_v20 }
 0x5a0   : > { %v6556_v4 = vpop.permute.xlu0 %6555  ;;  %v6281_v25 = vsel %vm2227_vm0, %v5989_v31, 0.0 }
 0x5a1   : > { %7193 = vst [vmem:[%s12554_s24] sm:$0xff] %v6556_v4 }
 0x5b2   : > { %6273 = vadd.xlane.f32.xlu1 %v6272_v62  ;;  %6282 = vadd.xlane.f32.xlu0 %v6281_v25  ;;  %v5553_v25 = vadd.f32 %v12205_v18, %v12285_v1 }
 0x5b4   : > { %9812 = vtanh.f32 %v5553_v25  ;;  %v6433_v25 = vadd.f32 %v12295_v44, %v12297_v23 }
 0x5b5   : > { %9814 = vtanh.f32 %v5538_v21  ;;  %v5563_v21 = vadd.f32 %v12205_v18, %v12293_v56 }
 0x5b7   : > { %9816 = vtanh.f32 %v5563_v21  ;;  %v5573_v21 = vadd.f32 %v12205_v18, %v12304_v49 }
 0x5be   : > { %v9813_v62 = vpop.eup %9812 }
 0x5bf   : > { %v9815_v1 = vpop.eup %9814 }
 0x5c3   : > { %6590 = vperm.xlu1 %8879, %v6432_v35   ;;  %v5991_v35 = vmul.f32 %v12232_v48, %v9813_v62 }
 0x5c7   : > { %6585 = vperm.xlu1 %8879, %v6431_v13   ;;  %v6287_v13 = vsel %vm2227_vm0, %v5991_v35, 0.0 }
 0x5c8   : > { %6620 = vperm.xlu0 %8878, %v6438_v10   ;;  %v5988_v10 = vmul.f32 %v12232_v48, %v9815_v1 }
 0x5ca   : > { %v6278_v43 = vsel %vm2227_vm0, %v5988_v10, 0.0 }
 0x5cd   : > { %v12568_v20 = vpop.xlane.xlu0 %6258  ;;  %v12570_v40 = vpop.xlane.xlu1 %6261 }
 0x5d1   : > { %v6571_v4 = vpop.permute.xlu1 %6570  ;;  %v12575_v50 = vpop.xlane.xlu0 %6264 }
 0x5d2   : > { %7196 = vst [vmem:[%s12554_s24 + $0x18] sm:$0xff] %v6571_v4  ;;  %v6440_v4 = vadd.f32 %v12295_v44, %v12325_v3  ;;  %v9817_v3 = vpop.eup %9816 }
 0x5d5   : > { %v6566_v15 = vpop.permute.xlu1 %6565  ;;  %v12580_v5 = vpop.xlane.xlu0 %6270 }
 0x5d6   : > { %7195 = vst [vmem:[%s12554_s24 + $0x10] sm:$0xff] %v6566_v15 }
 0x5dd   : > { %v6601_v31 = vpop.permute.xlu0 %6600 }
 0x5de   : > { %7202 = vst [vmem:[%s12554_s24 + $0x48] sm:$0xff] %v6601_v31  ;;  %v5548_v31 = vadd.f32 %v12205_v18, %v12275_v32 }
 0x5e0   : > { %9818 = vtanh.f32 %v5548_v31  ;;  %v5558_v31 = vadd.f32 %v12205_v18, %v12283_v58 }
 0x5e1   : > { %9820 = vtanh.f32 %v5573_v21 }
 0x5e2   : > { %9822 = vtanh.f32 %v5558_v31 }
 0x5e7   : > { %6288 = vadd.xlane.f32.xlu0 %v6287_v13  ;;  %v5993_v13 = vmul.f32 %v12232_v48, %v9817_v3 }
 0x5e9   : > { %v6293_v56 = vsel %vm2227_vm0, %v5993_v13, 0.0 }
 0x5ea   : > { %v9819_v10 = vpop.eup %9818 }
 0x5eb   : > { %6279 = vadd.xlane.f32.xlu1 %v6278_v43  ;;  %v5990_v43 = vmul.f32 %v12232_v48, %v9819_v10 }
 0x5ed   : > { %v6284_v32 = vsel %vm2227_vm0, %v5990_v43, 0.0  ;;  %v6437_v43 = vadd.f32 %v12295_v44, %v12315_v28 }
 0x5fc   : > { %6595 = vperm.xlu1 %8879, %v6433_v25   ;;  %v6435_v25 = vadd.f32 %v12295_v44, %v12306_v11 }
 0x5fd   : > { %6630 = vperm.xlu0 %8878, %v6440_v4   ;;  %v6442_v4 = vadd.f32 %v12295_v44, %v12333_v57  ;;  %v9821_v57 = vpop.eup %9820 }
 0x5fe   : > { %v5995_v13 = vmul.f32 %v12232_v48, %v9821_v57  ;;  %v9823_v10 = vpop.eup %9822 }
 0x5ff   : > { %v5992_v58 = vmul.f32 %v12232_v48, %v9823_v10  ;;  %v6446_v10 = vadd.f32 %v12295_v44, %v12355_v61 }
 0x600   : > { %v6299_v49 = vsel %vm2227_vm0, %v5995_v13, 0.0  ;;  %v6439_v13 = vadd.f32 %v12295_v44, %v12323_v19 }
 0x606   : > { %v12593_v15 = vpop.xlane.xlu1 %6267 }
 0x60a   : > { %v6581_v62 = vpop.permute.xlu1 %6580  ;;  %v12598_v35 = vpop.xlane.xlu0 %6276 }
 0x60b   : > { %7198 = vst [vmem:[%s12554_s24 + $0x28] sm:$0xff] %v6581_v62 }
 0x60e   : > { %v6576_v23 = vpop.permute.xlu1 %6575 }
 0x60f   : > { %7197 = vst [vmem:[%s12554_s24 + $0x20] sm:$0xff] %v6576_v23 }
 0x612   : > { %v6611_v1 = vpop.permute.xlu0 %6610 }
 0x613   : > { %7204 = vst [vmem:[%s12554_s24 + $0x58] sm:$0xff] %v6611_v1 }
 0x61c   : > { %6294 = vadd.xlane.f32.xlu0 %v6293_v56  ;;  %v6290_v56 = vsel %vm2227_vm0, %v5992_v58, 0.0  ;;  %v5578_v58 = vadd.f32 %v12205_v18, %v12301_v16 }
 0x620   : > { %6285 = vadd.xlane.f32.xlu1 %v6284_v32  ;;  %v6444_v32 = vadd.f32 %v12295_v44, %v12345_v29 }
 0x631   : > { %6605 = vperm.xlu1 %8879, %v6435_v25   ;;  %v5583_v25 = vadd.f32 %v12205_v18, %v12312_v45 }
 0x632   : > { %6640 = vperm.xlu0 %8878, %v6442_v4   ;;  %v5568_v4 = vadd.f32 %v12205_v18, %v12291_v9 }
 0x633   : > { %9824 = vtanh.f32 %v5583_v25 }
 0x634   : > { %9826 = vtanh.f32 %v5568_v4 }
 0x63d   : > { %v9825_v28 = vpop.eup %9824 }
 0x63e   : > { %v5997_v29 = vmul.f32 %v12232_v48, %v9825_v28  ;;  %v6448_v28 = vadd.f32 %v12295_v44, %v12365_v22 }
 0x63f   : > { %v12614_v62 = vpop.xlane.xlu1 %6273  ;;  %v12616_v23 = vpop.xlane.xlu0 %6282 }
 0x640   : > { %v6305_v57 = vsel %vm2227_vm0, %v5997_v29, 0.0  ;;  %v5603_v29 = vadd.f32 %v12205_v18, %v12329_v2 }
 0x643   : > { %v6591_v1 = vpop.permute.xlu1 %6590 }
 0x644   : > { %7200 = vst [vmem:[%s12554_s24 + $0x38] sm:$0xff] %v6591_v1 }
 0x647   : > { %v6621_v11 = vpop.permute.xlu0 %6620  ;;  %v6586_v3 = vpop.permute.xlu1 %6585 }
 0x648   : > { %7206 = vst [vmem:[%s12554_s24 + $0x68] sm:$0xff] %v6621_v11  ;;  %7199 = vst [vmem:[%s12554_s24 + $0x30] sm:$0xff] %v6586_v3  ;;  %v9827_v3 = vpop.eup %9826 }
 0x649   : > { %v5994_v45 = vmul.f32 %v12232_v48, %v9827_v3  ;;  %v5588_v3 = vadd.f32 %v12205_v18, %v12310_v55 }
 0x64b   : > { %v6296_v9 = vsel %vm2227_vm0, %v5994_v45, 0.0 }
 0x651   : > { %6300 = vadd.xlane.f32.xlu0 %v6299_v49  ;;  %v5593_v49 = vadd.f32 %v12205_v18, %v12321_v36 }
 0x653   : > { %9828 = vtanh.f32 %v5593_v49 }
 0x654   : > { %9830 = vtanh.f32 %v5578_v58  ;;  %v6443_v58 = vadd.f32 %v12295_v44, %v12343_v17 }
 0x655   : > { %6291 = vadd.xlane.f32.xlu1 %v6290_v56  ;;  %9832 = vtanh.f32 %v5603_v29  ;;  %v6452_v29 = vadd.f32 %v12295_v44, %v12383_v27 }
 0x656   : > { %9834 = vtanh.f32 %v5588_v3  ;;  %v5623_v3 = vadd.f32 %v12205_v18, %v12351_v54 }
 0x65d   : > { %v9829_v19 = vpop.eup %9828 }
 0x65e   : > { %v5999_v61 = vmul.f32 %v12232_v48, %v9829_v19  ;;  %v9831_v4 = vpop.eup %9830  ;;  %v5598_v19 = vadd.f32 %v12205_v18, %v12319_v42 }
 0x65f   : > { %v5996_v36 = vmul.f32 %v12232_v48, %v9831_v4 }
 0x661   : > { %v6302_v16 = vsel %vm2227_vm0, %v5996_v36, 0.0 }
 0x666   : > { %6615 = vperm.xlu1 %8879, %v6437_v43  }
 0x667   : > { %6650 = vperm.xlu0 %8878, %v6444_v32  }
 0x674   : > { %v12633_v21 = vpop.xlane.xlu0 %6288 }
 0x678   : > { %v12635_v31 = vpop.xlane.xlu1 %6279 }
 0x67c   : > { %v6631_v1 = vpop.permute.xlu0 %6630  ;;  %v6596_v11 = vpop.permute.xlu1 %6595 }
 0x67d   : > { %7208 = vst [vmem:[%s12554_s24 + $0x78] sm:$0xff] %v6631_v1  ;;  %7201 = vst [vmem:[%s12554_s24 + $0x40] sm:$0xff] %v6596_v11  ;;  %v6311_v1 = vsel %vm2227_vm0, %v5999_v61, 0.0  ;;  %v6441_v11 = vadd.f32 %v12295_v44, %v12331_v24  ;;  %v9833_v24 = vpop.eup %9832 }
 0x67e   : > { %v6001_v22 = vmul.f32 %v12232_v48, %v9833_v24 }
 0x680   : > { %v6317_v49 = vsel %vm2227_vm0, %v6001_v22, 0.0 }
 0x686   : > { %6306 = vadd.xlane.f32.xlu0 %v6305_v57 }
 0x68a   : > { %6297 = vadd.xlane.f32.xlu1 %v6296_v9 }
 0x69b   : > { %6625 = vperm.xlu1 %8879, %v6439_v13  }
 0x69c   : > { %6660 = vperm.xlu0 %8878, %v6446_v10   ;;  %v9835_v10 = vpop.eup %9834 }
 0x69d   : > { %v5998_v2 = vmul.f32 %v12232_v48, %v9835_v10 }
 0x69f   : > { %v6308_v55 = vsel %vm2227_vm0, %v5998_v2, 0.0 }
 0x6a9   : > { %v12651_v56 = vpop.xlane.xlu0 %6294 }
 0x6ad   : > { %v12653_v43 = vpop.xlane.xlu1 %6285 }
 0x6b1   : > { %v6641_v32 = vpop.permute.xlu0 %6640  ;;  %v6606_v25 = vpop.permute.xlu1 %6605 }
 0x6b2   : > { %7210 = vst [vmem:[%s12554_s24 + $0x88] sm:$0xff] %v6641_v32  ;;  %7203 = vst [vmem:[%s12554_s24 + $0x50] sm:$0xff] %v6606_v25  ;;  %v6450_v32 = vadd.f32 %v12295_v44, %v12373_v46  ;;  %v5613_v25 = vadd.f32 %v12205_v18, %v12341_v47 }
 0x6b4   : > { %9836 = vtanh.f32 %v5613_v25  ;;  %v5618_v25 = vadd.f32 %v12205_v18, %v12337_v51 }
 0x6b5   : > { %9838 = vtanh.f32 %v5598_v19 }
 0x6b6   : > { %9840 = vtanh.f32 %v5623_v3 }
 0x6bb   : > { %6312 = vadd.xlane.f32.xlu0 %v6311_v1 }
 0x6be   : > { %v9837_v17 = vpop.eup %9836 }
 0x6bf   : > { %6303 = vadd.xlane.f32.xlu1 %v6302_v16  ;;  %v6003_v46 = vmul.f32 %v12232_v48, %v9837_v17  ;;  %v9839_v16 = vpop.eup %9838 }
 0x6c0   : > { %v6000_v47 = vmul.f32 %v12232_v48, %v9839_v16 }
 0x6c2   : > { %v6314_v42 = vsel %vm2227_vm0, %v6000_v47, 0.0  ;;  %v6456_v47 = vadd.f32 %v12295_v44, %v12404_v12 }
 0x6d0   : > { %6635 = vperm.xlu1 %8879, %v6441_v11   ;;  %v6323_v11 = vsel %vm2227_vm0, %v6003_v46, 0.0 }
 0x6d1   : > { %6670 = vperm.xlu0 %8878, %v6448_v28   ;;  %v6445_v28 = vadd.f32 %v12295_v44, %v12353_v33  ;;  %v9841_v33 = vpop.eup %9840 }
 0x6d2   : > { %v6005_v27 = vmul.f32 %v12232_v48, %v9841_v33 }
 0x6d4   : > { %v6329_v2 = vsel %vm2227_vm0, %v6005_v27, 0.0 }
 0x6de   : > { %v12669_v57 = vpop.xlane.xlu0 %6300 }
 0x6e2   : > { %v12671_v45 = vpop.xlane.xlu1 %6291 }
 0x6e6   : > { %v6651_v9 = vpop.permute.xlu0 %6650  ;;  %v6616_v13 = vpop.permute.xlu1 %6615 }
 0x6e7   : > { %7212 = vst [vmem:[%s12554_s24 + $0x98] sm:$0xff] %v6651_v9  ;;  %7205 = vst [vmem:[%s12554_s24 + $0x60] sm:$0xff] %v6616_v13  ;;  %v5608_v9 = vadd.f32 %v12205_v18, %v12327_v26 }
 0x6e9   : > { %9842 = vtanh.f32 %v5608_v9 }
 0x6f0   : > { %6318 = vadd.xlane.f32.xlu0 %v6317_v49 }
 0x6f3   : > { %v9843_v49 = vpop.eup %9842 }
 0x6f4   : > { %6309 = vadd.xlane.f32.xlu1 %v6308_v55  ;;  %v6002_v54 = vmul.f32 %v12232_v48, %v9843_v49  ;;  %v6447_v55 = vadd.f32 %v12295_v44, %v12363_v63  ;;  %v13512_v49 = vld [vmem:[#allocation10_spill] sm:$0xff] }
 0x6f6   : > { %v6320_v26 = vsel %vm2227_vm0, %v6002_v54, 0.0  ;;  %v6458_v54 = vadd.f32 %v12295_v44, %v12413_v30 }
 0x705   : > { %6645 = vperm.xlu1 %8879, %v6443_v58   ;;  %v6454_v58 = vadd.f32 %v12295_v44, %v12394_v60 }
 0x706   : > { %6680 = vperm.xlu0 %8878, %v6450_v32   ;;  %v5633_v32 = vadd.f32 %v12205_v18, %v12361_v37 }
 0x708   : > { %9844 = vtanh.f32 %v5633_v32  ;;  %v13514_v32 = vld [vmem:[#allocation6_spill] sm:$0xff] }
 0x709   : > { %9846 = vtanh.f32 %v5618_v25 }
 0x712   : > { %v9845_v63 = vpop.eup %9844 }
 0x713   : > { %v12687_v61 = vpop.xlane.xlu0 %6306  ;;  %v6007_v60 = vmul.f32 %v12232_v48, %v9845_v63  ;;  %v9847_v46 = vpop.eup %9846 }
 0x714   : > { %v6004_v37 = vmul.f32 %v12232_v48, %v9847_v46 }
 0x715   : > { %v6335_v16 = vsel %vm2227_vm0, %v6007_v60, 0.0 }
 0x716   : > { %v6326_v51 = vsel %vm2227_vm0, %v6004_v37, 0.0 }
 0x717   : > { %v12689_v4 = vpop.xlane.xlu1 %6297 }
 0x71b   : > { %v6661_v1 = vpop.permute.xlu0 %6660  ;;  %v6626_v36 = vpop.permute.xlu1 %6625 }
 0x71c   : > { %7214 = vst [vmem:[%s12554_s24 + $0xa8] sm:$0xff] %v6661_v1  ;;  %7207 = vst [vmem:[%s12554_s24 + $0x70] sm:$0xff] %v6626_v36 }
 0x725   : > { %6324 = vadd.xlane.f32.xlu0 %v6323_v11  ;;  %v6449_v11 = vadd.f32 %v12295_v44, %v12371_v0 }
 0x729   : > { %6315 = vadd.xlane.f32.xlu1 %v6314_v42  ;;  %v5643_v42 = vadd.f32 %v12205_v18, %v12369_v8 }
 0x72b   : > { %9848 = vtanh.f32 %v5643_v42 }
 0x735   : > { %v9849_v0 = vpop.eup %9848 }
 0x736   : > { %v6009_v12 = vmul.f32 %v12232_v48, %v9849_v0 }
 0x738   : > { %v6341_v27 = vsel %vm2227_vm0, %v6009_v12, 0.0 }
 0x73a   : > { %6655 = vperm.xlu1 %8879, %v6445_v28   ;;  %v13511_v28 = vld [vmem:[#allocation7_spill] sm:$0xff] }
 0x73b   : > { %6690 = vperm.xlu0 %8878, %v6452_v29   ;;  %v5628_v29 = vadd.f32 %v12205_v18, %v13511_v28  ;;  %v6460_v28 = vadd.f32 %v12295_v44, %v12421_v6 }
 0x73d   : > { %9850 = vtanh.f32 %v5628_v29  ;;  %v13516_v29 = vld [vmem:[#allocation12_spill] sm:$0xff] }
 0x747   : > { %v9851_v33 = vpop.eup %9850 }
 0x748   : > { %v12705_v13 = vpop.xlane.xlu0 %6312  ;;  %v6006_v8 = vmul.f32 %v12232_v48, %v9851_v33 }
 0x74a   : > { %v6332_v18 = vsel %vm2227_vm0, %v6006_v8, 0.0 }
 0x74c   : > { %v12707_v24 = vpop.xlane.xlu1 %6303 }
 0x750   : > { %v6671_v22 = vpop.permute.xlu0 %6670  ;;  %v6636_v10 = vpop.permute.xlu1 %6635 }
 0x751   : > { %7216 = vst [vmem:[%s12554_s24 + $0xb8] sm:$0xff] %v6671_v22  ;;  %7209 = vst [vmem:[%s12554_s24 + $0x80] sm:$0xff] %v6636_v10 }
 0x75a   : > { %6330 = vadd.xlane.f32.xlu0 %v6329_v2  ;;  %v6451_v2 = vadd.f32 %v12295_v44, %v13512_v49 }
 0x75e   : > { %6321 = vadd.xlane.f32.xlu1 %v6320_v26  ;;  %v12758_v26 = vld [vmem:[%s13276_s4 + $0x2] ss:$0 sm:$0xff] }
 0x75f   : > { %v5638_v25 = vadd.f32 %v12758_v26, %v13514_v32  ;;  %v13518_v32 = vld [vmem:[#allocation16_spill] sm:$0xff] }
 0x76f   : > { %6665 = vperm.xlu1 %8879, %v6447_v55   ;;  %v13513_v55 = vld [vmem:[#allocation11_spill] sm:$0xff] }
 0x770   : > { %6700 = vperm.xlu0 %8878, %v6454_v58   ;;  %v5653_v58 = vadd.f32 %v12758_v26, %v13513_v55 }
 0x772   : > { %9852 = vtanh.f32 %v5653_v58 }
 0x773   : > { %9854 = vtanh.f32 %v5638_v25  ;;  %v6455_v25 = vadd.f32 %v12295_v44, %v13518_v32 }
 0x77c   : > { %v9853_v60 = vpop.eup %9852 }
 0x77d   : > { %v12723_v19 = vpop.xlane.xlu0 %6318  ;;  %v6011_v46 = vmul.f32 %v12232_v48, %v9853_v60 }
 0x77f   : > { %v6347_v37 = vsel %vm2227_vm0, %v6011_v46, 0.0  ;;  %v13521_v46 = vld [vmem:[#allocation8_spill] sm:$0xff] }
 0x781   : > { %v12725_v1 = vpop.xlane.xlu1 %6309 }
 0x785   : > { %v6681_v36 = vpop.permute.xlu0 %6680  ;;  %v6646_v17 = vpop.permute.xlu1 %6645 }
 0x786   : > { %7218 = vst [vmem:[%s12554_s24 + $0xc8] sm:$0xff] %v6681_v36  ;;  %7211 = vst [vmem:[%s12554_s24 + $0x90] sm:$0xff] %v6646_v17 }
 0x78f   : > { %6336 = vadd.xlane.f32.xlu0 %v6335_v16  ;;  %v9855_v16 = vpop.eup %9854 }
 0x793   : > { %6327 = vadd.xlane.f32.xlu1 %v6326_v51  ;;  %v6008_v51 = vmul.f32 %v12232_v48, %v9855_v16  ;;  %v5658_v16 = vadd.f32 %v12758_v26, %v13521_v46 }
 0x7a4   : > { %6675 = vperm.xlu1 %8879, %v6449_v11   ;;  %v6338_v11 = vsel %vm2227_vm0, %v6008_v51, 0.0 }
 0x7a5   : > { %6710 = vperm.xlu0 %8878, %v6456_v47   ;;  %v13515_v47 = vld [vmem:[#allocation15_spill] sm:$0xff] }
 0x7a6   : > { %v6453_v42 = vadd.f32 %v12295_v44, %v13515_v47 }
 0x7b2   : > { %v12741_v3 = vpop.xlane.xlu0 %6324 }
 0x7b6   : > { %v12743_v9 = vpop.xlane.xlu1 %6315 }
 0x7ba   : > { %v6691_v22 = vpop.permute.xlu0 %6690  ;;  %v6656_v10 = vpop.permute.xlu1 %6655 }
 0x7bb   : > { %7220 = vst [vmem:[%s12554_s24 + $0xd8] sm:$0xff] %v6691_v22  ;;  %7213 = vst [vmem:[%s12554_s24 + $0xa0] sm:$0xff] %v6656_v10  ;;  %v5663_v22 = vadd.f32 %v12758_v26, %v13516_v29  ;;  %v13517_v10 = vld [vmem:[#allocation9_spill] sm:$0xff] }
 0x7bc   : > { %v5648_v0 = vadd.f32 %v12758_v26, %v13517_v10 }
 0x7bd   : > { %9856 = vtanh.f32 %v5663_v22 }
 0x7be   : > { %9858 = vtanh.f32 %v5648_v0 }
 0x7c4   : > { %6342 = vadd.xlane.f32.xlu0 %v6341_v27 }
 0x7c8   : > { %6333 = vadd.xlane.f32.xlu1 %v6332_v18  ;;  %v9857_v18 = vpop.eup %9856 }
 0x7c9   : > { %v6013_v6 = vmul.f32 %v12232_v48, %v9857_v18  ;;  %v9859_v49 = vpop.eup %9858  ;;  %v13519_v48 = vld [vmem:[#allocation26_spill] sm:$0xff] }
 0x7ca   : > { %v13523_v18 = vld [vmem:[#allocation30_spill] sm:$0xff] }
 0x7d9   : > { %6685 = vperm.xlu1 %8879, %v6451_v2   ;;  %v6353_v2 = vsel %vm2227_vm0, %v6013_v6, 0.0  ;;  %v6464_v6 = vadd.f32 %v12295_v44, %v13523_v18 }
 0x7da   : > { %6720 = vperm.xlu0 %8878, %v6458_v54   ;;  %v12793_v54 = vld [vmem:[%s13277_s5] ss:$0 sm:$0xff] }
 0x7db   : > { %v6010_v55 = vmul.f32 %v12793_v54, %v9859_v49  ;;  %v13524_v49 = vld [vmem:[#allocation18_spill] sm:$0xff] }
 0x7dd   : > { %v6344_v58 = vsel %vm2227_vm0, %v6010_v55, 0.0  ;;  %v13525_v55 = vld [vmem:[#allocation13_spill] sm:$0xff] }
 0x7e7   : > { %v12764_v36 = vpop.xlane.xlu0 %6330 }
 0x7eb   : > { %v12766_v17 = vpop.xlane.xlu1 %6321 }
 0x7ef   : > { %v6701_v30 = vpop.permute.xlu0 %6700  ;;  %v6666_v63 = vpop.permute.xlu1 %6665 }
 0x7f0   : > { %7222 = vst [vmem:[%s12554_s24 + $0xe8] sm:$0xff] %v6701_v30  ;;  %7215 = vst [vmem:[%s12554_s24 + $0xb0] sm:$0xff] %v6666_v63  ;;  %v6462_v30 = vadd.f32 %v12295_v44, %v13519_v48  ;;  %v13520_v63 = vld [vmem:[#allocation17_spill] sm:$0xff] }
 0x7f1   : > { %v5673_v60 = vadd.f32 %v12758_v26, %v13520_v63 }
 0x7f3   : > { %9860 = vtanh.f32 %v5673_v60 }
 0x7f4   : > { %9862 = vtanh.f32 %v5658_v16 }
 0x7f9   : > { %6348 = vadd.xlane.f32.xlu0 %v6347_v37 }
 0x7fd   : > { %6339 = vadd.xlane.f32.xlu1 %v6338_v11 }
 0x80e   : > { %6695 = vperm.xlu1 %8879, %v6453_v42   ;;  %v9861_v42 = vpop.eup %9860 }
 0x80f   : > { %6730 = vperm.xlu0 %8878, %v6460_v28   ;;  %v6015_v28 = vmul.f32 %v12793_v54, %v9861_v42  ;;  %v9863_v29 = vpop.eup %9862  ;;  %v13526_v42 = vld [vmem:[#allocation22_spill] sm:$0xff] }
 0x810   : > { %v6012_v10 = vmul.f32 %v12793_v54, %v9863_v29  ;;  %v6466_v29 = vadd.f32 %v12295_v44, %v12449_v59 }
 0x811   : > { %v6359_v22 = vsel %vm2227_vm0, %v6015_v28, 0.0  ;;  %v6459_v28 = vadd.f32 %v12295_v44, %v13526_v42  ;;  %v13532_v42 = vld [vmem:[#allocation19_spill] sm:$0xff] }
 0x812   : > { %v6350_v0 = vsel %vm2227_vm0, %v6012_v10, 0.0 }
 0x81c   : > { %v12782_v12 = vpop.xlane.xlu0 %6336 }
 0x820   : > { %v12784_v33 = vpop.xlane.xlu1 %6327 }
 0x824   : > { %v6711_v27 = vpop.permute.xlu0 %6710  ;;  %v6676_v8 = vpop.permute.xlu1 %6675 }
 0x825   : > { %7224 = vst [vmem:[%s12554_s24 + $0xf8] sm:$0xff] %v6711_v27  ;;  %7217 = vst [vmem:[%s12554_s24 + $0xc0] sm:$0xff] %v6676_v8  ;;  %v13522_v27 = vld [vmem:[#allocation21_spill] sm:$0xff] }
 0x826   : > { %v6457_v8 = vadd.f32 %v12295_v44, %v13522_v27 }
 0x82e   : > { %6354 = vadd.xlane.f32.xlu0 %v6353_v2  ;;  %v5683_v2 = vadd.f32 %v12758_v26, %v13524_v49 }
 0x830   : > { %9864 = vtanh.f32 %v5683_v2 }
 0x832   : > { %6345 = vadd.xlane.f32.xlu1 %v6344_v58  ;;  %v5668_v58 = vadd.f32 %v12758_v26, %v13525_v55 }
 0x834   : > { %9866 = vtanh.f32 %v5668_v58 }
 0x83a   : > { %v9865_v63 = vpop.eup %9864 }
 0x83b   : > { %v6017_v60 = vmul.f32 %v12793_v54, %v9865_v63  ;;  %v13529_v63 = vld [vmem:[#allocation27_spill] sm:$0xff] }
 0x83d   : > { %v6365_v16 = vsel %vm2227_vm0, %v6017_v60, 0.0 }
 0x83e   : > { %v9867_v46 = vpop.eup %9866 }
 0x843   : > { %6705 = vperm.xlu1 %8879, %v6455_v25  }
 0x844   : > { %6740 = vperm.xlu0 %8878, %v6462_v30  }
 0x851   : > { %v12805_v37 = vpop.xlane.xlu0 %6342 }
 0x855   : > { %v12807_v51 = vpop.xlane.xlu1 %6333 }
 0x859   : > { %v6721_v11 = vpop.permute.xlu0 %6720  ;;  %v6686_v47 = vpop.permute.xlu1 %6685 }
 0x85a   : > { %7226 = vst [vmem:[%s12554_s24 + $0x108] sm:$0xff] %v6721_v11  ;;  %7219 = vst [vmem:[%s12554_s24 + $0xd0] sm:$0xff] %v6686_v47  ;;  %v6014_v11 = vmul.f32 %v12793_v54, %v9867_v46  ;;  %v13530_v46 = vld [vmem:[#allocation39_spill] sm:$0xff] }
 0x85c   : > { %v6356_v47 = vsel %vm2227_vm0, %v6014_v11, 0.0  ;;  %v13531_v11 = vld [vmem:[#allocation24_spill] sm:$0xff] }
 0x863   : > { %6360 = vadd.xlane.f32.xlu0 %v6359_v22  ;;  %v13527_v22 = vld [vmem:[#allocation23_spill] sm:$0xff] }
 0x864   : > { %v5693_v10 = vadd.f32 %v12758_v26, %v13527_v22 }
 0x866   : > { %9868 = vtanh.f32 %v5693_v10 }
 0x867   : > { %6351 = vadd.xlane.f32.xlu1 %v6350_v0  ;;  %v13528_v0 = vld [vmem:[#allocation14_spill] sm:$0xff] }
 0x868   : > { %v5678_v27 = vadd.f32 %v12758_v26, %v13528_v0 }
 0x86a   : > { %9870 = vtanh.f32 %v5678_v27 }
 0x870   : > { %v9869_v2 = vpop.eup %9868 }
 0x871   : > { %v6019_v44 = vmul.f32 %v12793_v54, %v9869_v2 }
 0x873   : > { %v6371_v55 = vsel %vm2227_vm0, %v6019_v44, 0.0 }
 0x874   : > { %v9871_v59 = vpop.eup %9870 }
 0x875   : > { %v6016_v58 = vmul.f32 %v12793_v54, %v9871_v59 }
 0x878   : > { %6715 = vperm.xlu1 %8879, %v6457_v8  }
 0x879   : > { %6750 = vperm.xlu0 %8878, %v6464_v6  }
 0x886   : > { %v12823_v32 = vpop.xlane.xlu0 %6348 }
 0x88a   : > { %v12825_v25 = vpop.xlane.xlu1 %6339 }
 0x88e   : > { %v6731_v48 = vpop.permute.xlu0 %6730  ;;  %v6696_v30 = vpop.permute.xlu1 %6695 }
 0x88f   : > { %7228 = vst [vmem:[%s12554_s24 + $0x118] sm:$0xff] %v6731_v48  ;;  %7221 = vst [vmem:[%s12554_s24 + $0xe0] sm:$0xff] %v6696_v30  ;;  %v6362_v48 = vsel %vm2227_vm0, %v6016_v58, 0.0  ;;  %v12851_v30 = vld [vmem:[#allocation2] ss:$0 sm:$0xff] }
 0x890   : > { %v6461_v60 = vadd.f32 %v12851_v30, %v13529_v63  ;;  %v13534_v63 = vld [vmem:[#allocation28_spill] sm:$0xff] }
 0x898   : > { %6366 = vadd.xlane.f32.xlu0 %v6365_v16  ;;  %v6468_v16 = vadd.f32 %v12851_v30, %v13530_v46  ;;  %v13535_v46 = vld [vmem:[#allocation20_spill] sm:$0xff] }
 0x89c   : > { %6357 = vadd.xlane.f32.xlu1 %v6356_v47  ;;  %v5703_v47 = vadd.f32 %v12758_v26, %v13531_v11 }
 0x89e   : > { %9872 = vtanh.f32 %v5703_v47 }
 0x8a8   : > { %v9873_v27 = vpop.eup %9872 }
 0x8ad   : > { %6725 = vperm.xlu1 %8879, %v6459_v28   ;;  %v5688_v28 = vadd.f32 %v12758_v26, %v13532_v42 }
 0x8ae   : > { %6760 = vperm.xlu0 %8878, %v6466_v29  }
 0x8af   : > { %9874 = vtanh.f32 %v5688_v28 }
 0x8bb   : > { %v12841_v8 = vpop.xlane.xlu0 %6354 }
 0x8bf   : > { %v12843_v18 = vpop.xlane.xlu1 %6345 }
 0x8c3   : > { %v6741_v6 = vpop.permute.xlu0 %6740  ;;  %v6706_v49 = vpop.permute.xlu1 %6705 }
 0x8c4   : > { %7230 = vst [vmem:[%s12554_s24 + $0x128] sm:$0xff] %v6741_v6  ;;  %7223 = vst [vmem:[%s12554_s24 + $0xf0] sm:$0xff] %v6706_v49  ;;  %v6021_v6 = vmul.f32 %v12793_v54, %v9873_v27  ;;  %v9875_v49 = vpop.eup %9874 }
 0x8c5   : > { %v6018_v44 = vmul.f32 %v12793_v54, %v9875_v49 }
 0x8c6   : > { %v6377_v2 = vsel %vm2227_vm0, %v6021_v6, 0.0 }
 0x8c7   : > { %v6368_v59 = vsel %vm2227_vm0, %v6018_v44, 0.0 }
 0x8cd   : > { %6372 = vadd.xlane.f32.xlu0 %v6371_v55  ;;  %v13533_v55 = vld [vmem:[#allocation31_spill] sm:$0xff] }
 0x8ce   : > { %v6463_v58 = vadd.f32 %v12851_v30, %v13533_v55 }
 0x8d1   : > { %6363 = vadd.xlane.f32.xlu1 %v6362_v48  ;;  %v6470_v48 = vadd.f32 %v12851_v30, %v12467_v39 }
 0x8e2   : > { %6735 = vperm.xlu1 %8879, %v6461_v60   ;;  %v5713_v60 = vadd.f32 %v12758_v26, %v13534_v63  ;;  %v13539_v63 = vld [vmem:[#allocation25_spill] sm:$0xff] }
 0x8e3   : > { %6770 = vperm.xlu0 %8878, %v6468_v16   ;;  %v5698_v16 = vadd.f32 %v12758_v26, %v13535_v46 }
 0x8e4   : > { %9876 = vtanh.f32 %v5713_v60  ;;  %v5708_v60 = vadd.f32 %v12758_v26, %v13539_v63  ;;  %v13543_v63 = vld [vmem:[#allocation29_spill] sm:$0xff] }
 0x8e5   : > { %9878 = vtanh.f32 %v5698_v16 }
 0x8f0   : > { %v12861_v29 = vpop.xlane.xlu0 %6360 }
 0x8f4   : > { %v12863_v22 = vpop.xlane.xlu1 %6351 }
 0x8f8   : > { %v6751_v10 = vpop.permute.xlu0 %6750  ;;  %v6716_v0 = vpop.permute.xlu1 %6715 }
 0x8f9   : > { %7232 = vst [vmem:[%s12554_s24 + $0x138] sm:$0xff] %v6751_v10  ;;  %7225 = vst [vmem:[%s12554_s24 + $0x100] sm:$0xff] %v6716_v0  ;;  %v9877_v10 = vpop.eup %9876 }
 0x8fa   : > { %v6023_v39 = vmul.f32 %v12793_v54, %v9877_v10  ;;  %v9879_v0 = vpop.eup %9878 }
 0x8fb   : > { %v6020_v6 = vmul.f32 %v12793_v54, %v9879_v0 }
 0x8fc   : > { %v6383_v27 = vsel %vm2227_vm0, %v6023_v39, 0.0 }
 0x8fd   : > { %v6374_v49 = vsel %vm2227_vm0, %v6020_v6, 0.0 }
 0x902   : > { %6378 = vadd.xlane.f32.xlu0 %v6377_v2  ;;  %v13536_v2 = vld [vmem:[#allocation35_spill] sm:$0xff] }
 0x903   : > { %v6465_v44 = vadd.f32 %v12851_v30, %v13536_v2  ;;  %v13540_v2 = vld [vmem:[#allocation36_spill] sm:$0xff] }
 0x906   : > { %6369 = vadd.xlane.f32.xlu1 %v6368_v59  ;;  %v13537_v59 = vld [vmem:[#allocation44_spill] sm:$0xff] }
 0x907   : > { %v6472_v55 = vadd.f32 %v12851_v30, %v13537_v59  ;;  %v13541_v59 = vld [vmem:[#allocation48_spill] sm:$0xff] }
 0x917   : > { %6745 = vperm.xlu1 %8879, %v6463_v58   ;;  %v13538_v58 = vld [vmem:[#allocation32_spill] sm:$0xff] }
 0x918   : > { %6780 = vperm.xlu0 %8878, %v6470_v48   ;;  %v5723_v48 = vadd.f32 %v12758_v26, %v13538_v58  ;;  %v13542_v58 = vld [vmem:[#allocation37_spill] sm:$0xff] }
 0x91a   : > { %9880 = vtanh.f32 %v5723_v48  ;;  %v5733_v48 = vadd.f32 %v12758_v26, %v13542_v58  ;;  %v6476_v58 = vadd.f32 %v12851_v30, %v12491_v41 }
 0x91b   : > { %9882 = vtanh.f32 %v5708_v60  ;;  %v5718_v60 = vadd.f32 %v12758_v26, %v13543_v63 }
 0x91c   : > { %9884 = vtanh.f32 %v5733_v48  ;;  %v13545_v48 = vld [vmem:[#allocation41_spill] sm:$0xff] }
 0x91d   : > { %9886 = vtanh.f32 %v5718_v60  ;;  %v5743_v63 = vadd.f32 %v12758_v26, %v13545_v48  ;;  %v13546_v60 = vld [vmem:[#allocation33_spill] sm:$0xff] }
 0x91f   : > { %9888 = vtanh.f32 %v5743_v63  ;;  %v13549_v63 = vld [vmem:[#allocation53_spill] sm:$0xff] }
 0x924   : > { %v9881_v10 = vpop.eup %9880 }
 0x925   : > { %v12879_v11 = vpop.xlane.xlu0 %6366  ;;  %v6025_v39 = vmul.f32 %v12793_v54, %v9881_v10  ;;  %v9883_v0 = vpop.eup %9882 }
 0x926   : > { %v6022_v6 = vmul.f32 %v12793_v54, %v9883_v0  ;;  %v9885_v0 = vpop.eup %9884 }
 0x929   : > { %v12881_v47 = vpop.xlane.xlu1 %6357 }
 0x92d   : > { %v6761_v42 = vpop.permute.xlu0 %6760  ;;  %v6726_v28 = vpop.permute.xlu1 %6725 }
 0x92e   : > { %7234 = vst [vmem:[%s12554_s24 + $0x148] sm:$0xff] %v6761_v42  ;;  %7227 = vst [vmem:[%s12554_s24 + $0x110] sm:$0xff] %v6726_v28 }
 0x937   : > { %6384 = vadd.xlane.f32.xlu0 %v6383_v27  ;;  %v6389_v27 = vsel %vm2227_vm0, %v6025_v39, 0.0 }
 0x93b   : > { %6375 = vadd.xlane.f32.xlu1 %v6374_v49  ;;  %v6380_v49 = vsel %vm2227_vm0, %v6022_v6, 0.0  ;;  %v9887_v6 = vpop.eup %9886 }
 0x94c   : > { %6755 = vperm.xlu1 %8879, %v6465_v44   ;;  %v6467_v44 = vadd.f32 %v12851_v30, %v13540_v2  ;;  %v6024_v2 = vmul.f32 %v12793_v54, %v9887_v6 }
 0x94d   : > { %6790 = vperm.xlu0 %8878, %v6472_v55   ;;  %v6474_v55 = vadd.f32 %v12851_v30, %v13541_v59  ;;  %v13544_v59 = vld [vmem:[#allocation40_spill] sm:$0xff] }
 0x95a   : > { %v12897_v46 = vpop.xlane.xlu0 %6372 }
 0x95e   : > { %v12899_v16 = vpop.xlane.xlu1 %6363 }
 0x962   : > { %v6771_v42 = vpop.permute.xlu0 %6770  ;;  %v6736_v28 = vpop.permute.xlu1 %6735 }
 0x963   : > { %7236 = vst [vmem:[%s12554_s24 + $0x158] sm:$0xff] %v6771_v42  ;;  %7229 = vst [vmem:[%s12554_s24 + $0x120] sm:$0xff] %v6736_v28 }
 0x96c   : > { %6390 = vadd.xlane.f32.xlu0 %v6389_v27  ;;  %v6027_v27 = vmul.f32 %v12793_v54, %v9885_v0 }
 0x970   : > { %6381 = vadd.xlane.f32.xlu1 %v6380_v49  ;;  %v6395_v49 = vsel %vm2227_vm0, %v6027_v27, 0.0 }
 0x981   : > { %6765 = vperm.xlu1 %8879, %v6467_v44   ;;  %v6386_v44 = vsel %vm2227_vm0, %v6024_v2, 0.0 }
 0x982   : > { %6800 = vperm.xlu0 %8878, %v6474_v55   ;;  %v6469_v55 = vadd.f32 %v12851_v30, %v13544_v59 }
 0x98f   : > { %v12915_v42 = vpop.xlane.xlu0 %6378 }
 0x993   : > { %v12917_v28 = vpop.xlane.xlu1 %6369 }
 0x997   : > { %v6781_v10 = vpop.permute.xlu0 %6780  ;;  %v6746_v39 = vpop.permute.xlu1 %6745 }
 0x998   : > { %7238 = vst [vmem:[%s12554_s24 + $0x168] sm:$0xff] %v6781_v10  ;;  %7231 = vst [vmem:[%s12554_s24 + $0x130] sm:$0xff] %v6746_v39  ;;  %v5728_v10 = vadd.f32 %v12758_v26, %v13546_v60  ;;  %v6478_v60 = vadd.f32 %v12851_v30, %v13549_v63 }
 0x99a   : > { %9890 = vtanh.f32 %v5728_v10  ;;  %v13550_v10 = vld [vmem:[#allocation42_spill] sm:$0xff] }
 0x9a1   : > { %6396 = vadd.xlane.f32.xlu0 %v6395_v49  ;;  %v9889_v49 = vpop.eup %9888 }
 0x9a2   : > { %v6029_v41 = vmul.f32 %v12793_v54, %v9889_v49 }
 0x9a4   : > { %v9891_v2 = vpop.eup %9890 }
 0x9a5   : > { %6387 = vadd.xlane.f32.xlu1 %v6386_v44  ;;  %v6401_v44 = vsel %vm2227_vm0, %v6029_v41, 0.0  ;;  %v6026_v59 = vmul.f32 %v12793_v54, %v9891_v2 }
 0x9b6   : > { %6775 = vperm.xlu1 %8879, %v6469_v55   ;;  %v6392_v55 = vsel %vm2227_vm0, %v6026_v59, 0.0 }
 0x9b7   : > { %6810 = vperm.xlu0 %8878, %v6476_v58   ;;  %v13548_v58 = vld [vmem:[#allocation45_spill] sm:$0xff] }
 0x9b8   : > { %v6471_v48 = vadd.f32 %v12851_v30, %v13548_v58 }
 0x9c4   : > { %v12933_v39 = vpop.xlane.xlu0 %6384 }
 0x9c5   : > { %13547 = vst [vmem:[#allocation66_spill] sm:$0xff] %v12933_v39 }
 0x9c8   : > { %v12935_v0 = vpop.xlane.xlu1 %6375 }
 0x9cc   : > { %v6791_v27 = vpop.permute.xlu0 %6790  ;;  %v6756_v6 = vpop.permute.xlu1 %6755 }
 0x9cd   : > { %7240 = vst [vmem:[%s12554_s24 + $0x178] sm:$0xff] %v6791_v27  ;;  %7233 = vst [vmem:[%s12554_s24 + $0x140] sm:$0xff] %v6756_v6  ;;  %v5753_v27 = vadd.f32 %v12758_v26, %v13550_v10  ;;  %v13551_v6 = vld [vmem:[#allocation34_spill] sm:$0xff] }
 0x9ce   : > { %v5738_v49 = vadd.f32 %v12758_v26, %v13551_v6 }
 0x9cf   : > { %9892 = vtanh.f32 %v5753_v27  ;;  %v13553_v27 = vld [vmem:[#allocation49_spill] sm:$0xff] }
 0x9d0   : > { %9894 = vtanh.f32 %v5738_v49  ;;  %v6473_v6 = vadd.f32 %v12851_v30, %v13553_v27  ;;  %v13554_v49 = vld [vmem:[#allocation55_spill] sm:$0xff] }
 0x9d6   : > { %6402 = vadd.xlane.f32.xlu0 %v6401_v44 }
 0x9da   : > { %6393 = vadd.xlane.f32.xlu1 %v6392_v55  ;;  %v9893_v55 = vpop.eup %9892 }
 0x9db   : > { %v6031_v58 = vmul.f32 %v12793_v54, %v9893_v55 }
 0x9dd   : > { %v6407_v63 = vsel %vm2227_vm0, %v6031_v58, 0.0  ;;  %v13556_v58 = vld [vmem:[#allocation38_spill] sm:$0xff] }
 0x9eb   : > { %6785 = vperm.xlu1 %8879, %v6471_v48   ;;  %v9895_v48 = vpop.eup %9894 }
 0x9ec   : > { %6820 = vperm.xlu0 %8878, %v6478_v60   ;;  %v6028_v60 = vmul.f32 %v12793_v54, %v9895_v48  ;;  %v5748_v48 = vadd.f32 %v12758_v26, %v13556_v58  ;;  %v13558_v58 = vld [vmem:[#allocation51_spill] sm:$0xff] }
 0x9ee   : > { %v6398_v10 = vsel %vm2227_vm0, %v6028_v60, 0.0 }
 0x9f9   : > { %v12951_v41 = vpop.xlane.xlu0 %6390 }
 0x9fa   : > { %13552 = vst [vmem:[#allocation69_spill] sm:$0xff] %v12951_v41 }
 0x9fd   : > { %v12953_v2 = vpop.xlane.xlu1 %6381 }
 0xa01   : > { %v6801_v44 = vpop.permute.xlu0 %6800  ;;  %v6766_v59 = vpop.permute.xlu1 %6765 }
 0xa02   : > { %7242 = vst [vmem:[%s12554_s24 + $0x188] sm:$0xff] %v6801_v44  ;;  %7235 = vst [vmem:[%s12554_s24 + $0x150] sm:$0xff] %v6766_v59  ;;  %v6480_v44 = vadd.f32 %v12851_v30, %v13554_v49  ;;  %v13555_v59 = vld [vmem:[#allocation46_spill] sm:$0xff] }
 0xa03   : > { %v5763_v55 = vadd.f32 %v12758_v26, %v13555_v59 }
 0xa05   : > { %9896 = vtanh.f32 %v5763_v55 }
 0xa06   : > { %9898 = vtanh.f32 %v5748_v48  ;;  %v6475_v48 = vadd.f32 %v12851_v30, %v13558_v58 }
 0xa0b   : > { %6408 = vadd.xlane.f32.xlu0 %v6407_v63 }
 0xa0f   : > { %6399 = vadd.xlane.f32.xlu1 %v6398_v10  ;;  %v9897_v27 = vpop.eup %9896 }
 0xa10   : > { %v9899_v49 = vpop.eup %9898 }
 0xa11   : > { %v6030_v59 = vmul.f32 %v12793_v54, %v9899_v49 }
 0xa13   : > { %v6404_v55 = vsel %vm2227_vm0, %v6030_v59, 0.0 }
 0xa20   : > { %6795 = vperm.xlu1 %8879, %v6473_v6   ;;  %v6033_v6 = vmul.f32 %v12793_v54, %v9897_v27  ;;  %v6488_v27 = vadd.f32 %v12851_v30, %v12519_v34  ;;  %v13561_v34 = vld [vmem:[#allocation62_spill] sm:$0xff] }
 0xa21   : > { %6830 = vperm.xlu0 %8878, %v6480_v44  }
 0xa22   : > { %v6413_v44 = vsel %vm2227_vm0, %v6033_v6, 0.0  ;;  %v13560_v6 = vld [vmem:[#allocation43_spill] sm:$0xff] }
 0xa23   : > { %v5758_v49 = vadd.f32 %v12758_v26, %v13560_v6  ;;  %v6502_v6 = vadd.f32 %v12851_v30, %v12593_v15  ;;  %v6510_v15 = vadd.f32 %v12851_v30, %v12671_v45  ;;  %v6518_v45 = vadd.f32 %v12851_v30, %v12743_v9 }
 0xa24   : > { %v6524_v9 = vadd.f32 %v12851_v30, %v12807_v51  ;;  %v6532_v51 = vadd.f32 %v12851_v30, %v12881_v47  ;;  %v13567_v47 = vld [vmem:[#allocation56_spill] sm:$0xff] }
 0xa25   : > { %9900 = vtanh.f32 %v5758_v49  ;;  %v6506_v49 = vadd.f32 %v12851_v30, %v12635_v31  ;;  %v6514_v31 = vadd.f32 %v12851_v30, %v12707_v24 }
 0xa2e   : > { %v12969_v63 = vpop.xlane.xlu0 %6396 }
 0xa2f   : > { %13557 = vst [vmem:[#allocation68_spill] sm:$0xff] %v12969_v63  ;;  %v13559_v63 = vld [vmem:[#allocation57_spill] sm:$0xff]  ;;  %v9901_v58 = vpop.eup %9900 }
 0xa30   : > { %v6482_v39 = vadd.f32 %v12851_v30, %v13559_v63 }
 0xa32   : > { %v12971_v60 = vpop.xlane.xlu1 %6387 }
 0xa36   : > { %v6811_v10 = vpop.permute.xlu0 %6810  ;;  %v6776_v41 = vpop.permute.xlu1 %6775 }
 0xa37   : > { %7244 = vst [vmem:[%s12554_s24 + $0x198] sm:$0xff] %v6811_v10  ;;  %7237 = vst [vmem:[%s12554_s24 + $0x160] sm:$0xff] %v6776_v41  ;;  %v6484_v41 = vadd.f32 %v12851_v30, %v12510_v14  ;;  %v6486_v10 = vadd.f32 %v12851_v30, %v12515_v38  ;;  %v6492_v38 = vadd.f32 %v12851_v30, %v12531_v7 }
 0xa38   : > { %v6500_v7 = vadd.f32 %v12851_v30, %v12570_v40  ;;  %v6508_v40 = vadd.f32 %v12851_v30, %v12653_v43  ;;  %v6516_v43 = vadd.f32 %v12851_v30, %v12725_v1  ;;  %v6522_v1 = vadd.f32 %v12851_v30, %v12784_v33 }
 0xa39   : > { %v6530_v33 = vadd.f32 %v12851_v30, %v12863_v22  ;;  %v6538_v22 = vadd.f32 %v12851_v30, %v12935_v0 }
 0xa40   : > { %6414 = vadd.xlane.f32.xlu0 %v6413_v44 }
 0xa44   : > { %6405 = vadd.xlane.f32.xlu1 %v6404_v55  ;;  %v6494_v55 = vadd.f32 %v12851_v30, %v13561_v34 }
 0xa55   : > { %6805 = vperm.xlu1 %8879, %v6475_v48   ;;  %v13562_v48 = vld [vmem:[#allocation64_spill] sm:$0xff] }
 0xa56   : > { %6840 = vperm.xlu0 %8878, %v6482_v39   ;;  %v6490_v39 = vadd.f32 %v12851_v30, %v12525_v52  ;;  %v6496_v52 = vadd.f32 %v12851_v30, %v12539_v53  ;;  %v6504_v53 = vadd.f32 %v12851_v30, %v12614_v62  ;;  %v6512_v62 = vadd.f32 %v12851_v30, %v12689_v4 }
 0xa5a   : > { %6850 = vperm.xlu0 %8878, %v6484_v41   ;;  %v6498_v41 = vadd.f32 %v12851_v30, %v13562_v48  ;;  %v6526_v48 = vadd.f32 %v12851_v30, %v12825_v25  ;;  %v13565_v25 = vld [vmem:[#allocation52_spill] sm:$0xff] }
 0xa5e   : > { %6860 = vperm.xlu0 %8878, %v6486_v10   ;;  %v6032_v10 = vmul.f32 %v12793_v54, %v9901_v58 }
 0xa62   : > { %6870 = vperm.xlu0 %8878, %v6488_v27   ;;  %v6410_v27 = vsel %vm2227_vm0, %v6032_v10, 0.0  ;;  %v6479_v10 = vadd.f32 %v12851_v30, %v13565_v25 }
 0xa63   : > { %v12993_v14 = vpop.xlane.xlu0 %6402 }
 0xa66   : > { %6880 = vperm.xlu0 %8878, %v6490_v39   ;;  %v13563_v39 = vld [vmem:[#allocation50_spill] sm:$0xff] }
 0xa67   : > { %v12995_v63 = vpop.xlane.xlu1 %6393 }
 0xa6a   : > { %6890 = vperm.xlu0 %8878, %v6492_v38   ;;  %v6477_v38 = vadd.f32 %v12851_v30, %v13563_v39  ;;  %v13569_v39 = vld [vmem:[#allocation58_spill] sm:$0xff] }
 0xa6b   : > { %v6821_v44 = vpop.permute.xlu0 %6820  ;;  %v6786_v59 = vpop.permute.xlu1 %6785  ;;  %v6487_v0 = vadd.f32 %v12851_v30, %v13569_v39 }
 0xa6c   : > { %7246 = vst [vmem:[%s12554_s24 + $0x1a8] sm:$0xff] %v6821_v44  ;;  %7239 = vst [vmem:[%s12554_s24 + $0x170] sm:$0xff] %v6786_v59  ;;  %v13564_v44 = vld [vmem:[#allocation47_spill] sm:$0xff] }
 0xa6d   : > { %v5768_v59 = vadd.f32 %v12758_v26, %v13564_v44 }
 0xa6e   : > { %6900 = vperm.xlu0 %8878, %v6494_v55   ;;  %v6520_v55 = vadd.f32 %v12851_v30, %v12766_v17 }
 0xa6f   : > { %9902 = vtanh.f32 %v5768_v59 }
 0xa72   : > { %6910 = vperm.xlu0 %8878, %v6496_v52  }
 0xa76   : > { %6920 = vperm.xlu0 %8878, %v6498_v41   ;;  %v6528_v41 = vadd.f32 %v12851_v30, %v12843_v18  ;;  %v6536_v18 = vadd.f32 %v12851_v30, %v12917_v28  ;;  %v6542_v28 = vadd.f32 %v12851_v30, %v12971_v60  ;;  %v13571_v60 = vld [vmem:[#allocation60_spill] sm:$0xff] }
 0xa77   : > { %v6491_v44 = vadd.f32 %v12851_v30, %v13571_v60 }
 0xa79   : > { %6411 = vadd.xlane.f32.xlu1 %v6410_v27  ;;  %v9903_v26 = vpop.eup %9902 }
 0xa7a   : > { %6930 = vperm.xlu0 %8878, %v6500_v7   ;;  %v6034_v58 = vmul.f32 %v12793_v54, %v9903_v26  ;;  %v6534_v54 = vadd.f32 %v12851_v30, %v12899_v16  ;;  %v13566_v7 = vld [vmem:[#allocation54_spill] sm:$0xff]  ;;  %v6540_v16 = vadd.f32 %v12851_v30, %v12953_v2  ;;  %v13574_v26 = vld [vmem:[#allocation67_spill] sm:$0xff] }
 0xa7b   : > { %v6481_v27 = vadd.f32 %v12851_v30, %v13566_v7 }
 0xa7c   : > { %v6416_v17 = vsel %vm2227_vm0, %v6034_v58, 0.0 }
 0xa7e   : > { %6940 = vperm.xlu0 %8878, %v6502_v6   ;;  %v6483_v6 = vadd.f32 %v12851_v30, %v13567_v47 }
 0xa82   : > { %6950 = vperm.xlu0 %8878, %v6504_v53   ;;  %v13568_v53 = vld [vmem:[#allocation59_spill] sm:$0xff] }
 0xa86   : > { %6960 = vperm.xlu0 %8878, %v6506_v49   ;;  %v6485_v49 = vadd.f32 %v12851_v30, %v13568_v53 }
 0xa8a   : > { %6815 = vperm.xlu1 %8879, %v6477_v38   ;;  %6970 = vperm.xlu0 %8878, %v6508_v40   ;;  %v6544_v38 = vadd.f32 %v12851_v30, %v12995_v63  ;;  %v13570_v40 = vld [vmem:[#allocation61_spill] sm:$0xff] }
 0xa8b   : > { %v6489_v2 = vadd.f32 %v12851_v30, %v13570_v40 }
 0xa8e   : > { %6980 = vperm.xlu0 %8878, %v6510_v15  }
 0xa92   : > { %6990 = vperm.xlu0 %8878, %v6512_v62  }
 0xa96   : > { %7000 = vperm.xlu0 %8878, %v6514_v31  }
 0xa98   : > { %v13033_v34 = vpop.xlane.xlu0 %6408 }
 0xa9a   : > { %7010 = vperm.xlu0 %8878, %v6516_v43  }
 0xa9c   : > { %v6400_v4 = vpop.xlane.xlu1 %6399 }
 0xa9d   : > { %v6546_v31 = vadd.f32 %v12851_v30, %v6400_v4  ;;  %v13573_v4 = vld [vmem:[#allocation65_spill] sm:$0xff] }
 0xa9e   : > { %7020 = vperm.xlu0 %8878, %v6518_v45   ;;  %v13572_v45 = vld [vmem:[#allocation63_spill] sm:$0xff] }
 0xaa0   : > { %v6831_v24 = vpop.permute.xlu0 %6830  ;;  %v6796_v52 = vpop.permute.xlu1 %6795 }
 0xaa1   : > { %7248 = vst [vmem:[%s12554_s24 + $0x1b8] sm:$0xff] %v6831_v24  ;;  %7241 = vst [vmem:[%s12554_s24 + $0x180] sm:$0xff] %v6796_v52  ;;  %v6495_v52 = vadd.f32 %v12851_v30, %v13573_v4  ;;  %v13577_v4 = vld [vmem:[#allocation68_spill] sm:$0xff] }
 0xaa2   : > { %7030 = vperm.xlu0 %8878, %v6520_v55   ;;  %v6493_v55 = vadd.f32 %v12851_v30, %v13572_v45  ;;  %v13576_v45 = vld [vmem:[#allocation69_spill] sm:$0xff] }
 0xaa6   : > { %7040 = vperm.xlu0 %8878, %v6522_v1  }
 0xaaa   : > { %7050 = vperm.xlu0 %8878, %v6524_v9   ;;  %v6497_v9 = vadd.f32 %v12851_v30, %v13574_v26 }
 0xaae   : > { %6417 = vadd.xlane.f32.xlu1 %v6416_v17  ;;  %7060 = vperm.xlu0 %8878, %v6526_v48   ;;  %v6499_v48 = vadd.f32 %v12851_v30, %v12568_v20  ;;  %v6505_v20 = vadd.f32 %v12851_v30, %v12598_v35  ;;  %v6511_v35 = vadd.f32 %v12851_v30, %v12651_v56 }
 0xab2   : > { %7070 = vperm.xlu0 %8878, %v6528_v41   ;;  %v6501_v41 = vadd.f32 %v12851_v30, %v12575_v50  ;;  %v6507_v50 = vadd.f32 %v12851_v30, %v12616_v23  ;;  %v6513_v23 = vadd.f32 %v12851_v30, %v12669_v57 }
 0xab6   : > { %7080 = vperm.xlu0 %8878, %v6530_v33  }
 0xaba   : > { %7090 = vperm.xlu0 %8878, %v6532_v51   ;;  %v6503_v51 = vadd.f32 %v12851_v30, %v12580_v5  ;;  %v6509_v5 = vadd.f32 %v12851_v30, %v12633_v21  ;;  %v6515_v21 = vadd.f32 %v12851_v30, %v12687_v61  ;;  %v6519_v61 = vadd.f32 %v12851_v30, %v12723_v19 }
 0xabb   : > { %v6525_v19 = vadd.f32 %v12851_v30, %v12782_v12  ;;  %v6531_v12 = vadd.f32 %v12851_v30, %v12841_v8  ;;  %v6537_v8 = vadd.f32 %v12851_v30, %v12897_v46 }
 0xabe   : > { %7100 = vperm.xlu0 %8878, %v6534_v54  }
 0xabf   : > { %6825 = vperm.xlu1 %8879, %v6479_v10  }
 0xac2   : > { %7110 = vperm.xlu0 %8878, %v6536_v18  }
 0xac3   : > { %6835 = vperm.xlu1 %8879, %v6481_v27  }
 0xac6   : > { %7120 = vperm.xlu0 %8878, %v6538_v22  }
 0xac7   : > { %6845 = vperm.xlu1 %8879, %v6483_v6   ;;  %v6517_v6 = vadd.f32 %v12851_v30, %v12705_v13  ;;  %v6523_v13 = vadd.f32 %v12851_v30, %v12764_v36  ;;  %v6529_v36 = vadd.f32 %v12851_v30, %v12823_v32  ;;  %v6535_v32 = vadd.f32 %v12851_v30, %v12879_v11 }
 0xaca   : > { %7130 = vperm.xlu0 %8878, %v6540_v16  }
 0xacb   : > { %6855 = vperm.xlu1 %8879, %v6485_v49   ;;  %v6521_v49 = vadd.f32 %v12851_v30, %v12741_v3  ;;  %v6527_v3 = vadd.f32 %v12851_v30, %v12805_v37  ;;  %v6533_v37 = vadd.f32 %v12851_v30, %v12861_v29  ;;  %v6539_v29 = vadd.f32 %v12851_v30, %v12915_v42 }
 0xacd   : > { %v13077_v15 = vpop.xlane.xlu0 %6414 }
 0xace   : > { %7140 = vperm.xlu0 %8878, %v6542_v28  }
 0xacf   : > { %6865 = vperm.xlu1 %8879, %v6487_v0  }
 0xad1   : > { %v6406_v62 = vpop.xlane.xlu1 %6405 }
 0xad2   : > { %7150 = vperm.xlu0 %8878, %v6544_v38   ;;  %v6548_v63 = vadd.f32 %v12851_v30, %v6406_v62 }
 0xad3   : > { %6875 = vperm.xlu1 %8879, %v6489_v2  }
 0xad5   : > { %v6806_v59 = vpop.permute.xlu1 %6805  ;;  %v6841_v43 = vpop.permute.xlu0 %6840 }
 0xad6   : > { %7243 = vst [vmem:[%s12554_s24 + $0x190] sm:$0xff] %v6806_v59  ;;  %7250 = vst [vmem:[%s12554_s24 + $0x1c8] sm:$0xff] %v6841_v43  ;;  %7160 = vperm.xlu0 %8878, %v6546_v31   ;;  %v13575_v59 = vld [vmem:[#allocation66_spill] sm:$0xff] }
 0xad7   : > { %6885 = vperm.xlu1 %8879, %v6491_v44   ;;  %v6541_v11 = vadd.f32 %v12851_v30, %v13575_v59 }
 0xad9   : > { %v6851_v24 = vpop.permute.xlu0 %6850 }
 0xada   : > { %7252 = vst [vmem:[%s12554_s24 + $0x1d8] sm:$0xff] %v6851_v24  ;;  %7170 = vperm.xlu0 %8878, %v6548_v63  }
 0xadb   : > { %6895 = vperm.xlu1 %8879, %v6493_v55   ;;  %v6543_v55 = vadd.f32 %v12851_v30, %v13576_v45 }
 0xadd   : > { %v6861_v1 = vpop.permute.xlu0 %6860 }
 0xade   : > { %7254 = vst [vmem:[%s12554_s24 + $0x1e8] sm:$0xff] %v6861_v1 }
 0xadf   : > { %6905 = vperm.xlu1 %8879, %v6495_v52   ;;  %v6545_v52 = vadd.f32 %v12851_v30, %v13577_v4 }
 0xae1   : > { %v6871_v58 = vpop.permute.xlu0 %6870 }
 0xae2   : > { %7256 = vst [vmem:[%s12554_s24 + $0x1f8] sm:$0xff] %v6871_v58 }
 0xae3   : > { %6915 = vperm.xlu1 %8879, %v6497_v9   ;;  %v6547_v9 = vadd.f32 %v12851_v30, %v12993_v14  ;;  %v6551_v14 = vadd.f32 %v12851_v30, %v13077_v15 }
 0xae5   : > { %v6881_v17 = vpop.permute.xlu0 %6880 }
 0xae6   : > { %7258 = vst [vmem:[%s12554_s24 + $0x208] sm:$0xff] %v6881_v17  ;;  %v6549_v17 = vadd.f32 %v12851_v30, %v13033_v34 }
 0xae7   : > { %6925 = vperm.xlu1 %8879, %v6499_v48  }
 0xae9   : > { %v6891_v33 = vpop.permute.xlu0 %6890 }
 0xaea   : > { %7260 = vst [vmem:[%s12554_s24 + $0x218] sm:$0xff] %v6891_v33 }
 0xaeb   : > { %6935 = vperm.xlu1 %8879, %v6501_v41  }
 0xaed   : > { %v6901_v54 = vpop.permute.xlu0 %6900 }
 0xaee   : > { %7262 = vst [vmem:[%s12554_s24 + $0x228] sm:$0xff] %v6901_v54 }
 0xaef   : > { %6945 = vperm.xlu1 %8879, %v6503_v51  }
 0xaf1   : > { %v6911_v25 = vpop.permute.xlu0 %6910 }
 0xaf2   : > { %7264 = vst [vmem:[%s12554_s24 + $0x238] sm:$0xff] %v6911_v25 }
 0xaf3   : > { %6955 = vperm.xlu1 %8879, %v6505_v20  }
 0xaf5   : > { %v6921_v10 = vpop.permute.xlu0 %6920 }
 0xaf6   : > { %7266 = vst [vmem:[%s12554_s24 + $0x248] sm:$0xff] %v6921_v10 }
 0xaf7   : > { %6965 = vperm.xlu1 %8879, %v6507_v50  }
 0xaf9   : > { %v6931_v18 = vpop.permute.xlu0 %6930 }
 0xafa   : > { %7268 = vst [vmem:[%s12554_s24 + $0x258] sm:$0xff] %v6931_v18 }
 0xafb   : > { %6975 = vperm.xlu1 %8879, %v6509_v5  }
 0xafd   : > { %v6941_v7 = vpop.permute.xlu0 %6940 }
 0xafe   : > { %7270 = vst [vmem:[%s12554_s24 + $0x268] sm:$0xff] %v6941_v7 }
 0xaff   : > { %6985 = vperm.xlu1 %8879, %v6511_v35  }
 0xb01   : > { %v6951_v27 = vpop.permute.xlu0 %6950 }
 0xb02   : > { %7272 = vst [vmem:[%s12554_s24 + $0x278] sm:$0xff] %v6951_v27 }
 0xb03   : > { %6995 = vperm.xlu1 %8879, %v6513_v23  }
 0xb05   : > { %v6961_v22 = vpop.permute.xlu0 %6960 }
 0xb06   : > { %7274 = vst [vmem:[%s12554_s24 + $0x288] sm:$0xff] %v6961_v22  ;;  %v6412_v47 = vpop.xlane.xlu1 %6411 }
 0xb07   : > { %v6550_v56 = vadd.f32 %v12851_v30, %v6412_v47  ;;  %7005 = vperm.xlu1 %8879, %v6515_v21  }
 0xb09   : > { %7180 = vperm.xlu0 %8878, %v6550_v56   ;;  %v6971_v57 = vpop.permute.xlu0 %6970 }
 0xb0a   : > { %7276 = vst [vmem:[%s12554_s24 + $0x298] sm:$0xff] %v6971_v57  ;;  %v6816_v16 = vpop.permute.xlu1 %6815 }
 0xb0b   : > { %7245 = vst [vmem:[%s12554_s24 + $0x1a0] sm:$0xff] %v6816_v16  ;;  %7015 = vperm.xlu1 %8879, %v6517_v6  }
 0xb0d   : > { %v6981_v53 = vpop.permute.xlu0 %6980 }
 0xb0e   : > { %7278 = vst [vmem:[%s12554_s24 + $0x2a8] sm:$0xff] %v6981_v53 }
 0xb0f   : > { %7025 = vperm.xlu1 %8879, %v6519_v61  }
 0xb11   : > { %v6991_v28 = vpop.permute.xlu0 %6990 }
 0xb12   : > { %7280 = vst [vmem:[%s12554_s24 + $0x2b8] sm:$0xff] %v6991_v28 }
 0xb13   : > { %7035 = vperm.xlu1 %8879, %v6521_v49  }
 0xb15   : > { %v7001_v39 = vpop.permute.xlu0 %7000 }
 0xb16   : > { %7282 = vst [vmem:[%s12554_s24 + $0x2c8] sm:$0xff] %v7001_v39 }
 0xb17   : > { %7045 = vperm.xlu1 %8879, %v6523_v13  }
 0xb19   : > { %v7011_v0 = vpop.permute.xlu0 %7010 }
 0xb1a   : > { %7284 = vst [vmem:[%s12554_s24 + $0x2d8] sm:$0xff] %v7011_v0 }
 0xb1b   : > { %7055 = vperm.xlu1 %8879, %v6525_v19  }
 0xb1d   : > { %v7021_v38 = vpop.permute.xlu0 %7020 }
 0xb1e   : > { %7286 = vst [vmem:[%s12554_s24 + $0x2e8] sm:$0xff] %v7021_v38 }
 0xb1f   : > { %7065 = vperm.xlu1 %8879, %v6527_v3  }
 0xb21   : > { %v7031_v40 = vpop.permute.xlu0 %7030 }
 0xb22   : > { %7288 = vst [vmem:[%s12554_s24 + $0x2f8] sm:$0xff] %v7031_v40 }
 0xb23   : > { %7075 = vperm.xlu1 %8879, %v6529_v36  }
 0xb25   : > { %v7041_v2 = vpop.permute.xlu0 %7040 }
 0xb26   : > { %7290 = vst [vmem:[%s12554_s24 + $0x308] sm:$0xff] %v7041_v2 }
 0xb27   : > { %7085 = vperm.xlu1 %8879, %v6531_v12  }
 0xb29   : > { %v7051_v62 = vpop.permute.xlu0 %7050 }
 0xb2a   : > { %7292 = vst [vmem:[%s12554_s24 + $0x318] sm:$0xff] %v7051_v62 }
 0xb2b   : > { %7095 = vperm.xlu1 %8879, %v6533_v37  }
 0xb2d   : > { %v7061_v31 = vpop.permute.xlu0 %7060 }
 0xb2e   : > { %7294 = vst [vmem:[%s12554_s24 + $0x328] sm:$0xff] %v7061_v31 }
 0xb2f   : > { %7105 = vperm.xlu1 %8879, %v6535_v32  }
 0xb31   : > { %v7071_v60 = vpop.permute.xlu0 %7070 }
 0xb32   : > { %7296 = vst [vmem:[%s12554_s24 + $0x338] sm:$0xff] %v7071_v60 }
 0xb33   : > { %7115 = vperm.xlu1 %8879, %v6537_v8  }
 0xb35   : > { %v7081_v44 = vpop.permute.xlu0 %7080 }
 0xb36   : > { %7298 = vst [vmem:[%s12554_s24 + $0x348] sm:$0xff] %v7081_v44 }
 0xb37   : > { %7125 = vperm.xlu1 %8879, %v6539_v29  }
 0xb39   : > { %v7091_v43 = vpop.permute.xlu0 %7090 }
 0xb3a   : > { %7300 = vst [vmem:[%s12554_s24 + $0x358] sm:$0xff] %v7091_v43 }
 0xb3b   : > { %7135 = vperm.xlu1 %8879, %v6541_v11   ;;  %v6418_v46 = vpop.xlane.xlu1 %6417 }
 0xb3c   : > { %v6552_v63 = vadd.f32 %v12851_v30, %v6418_v46 }
 0xb3d   : > { %v7101_v42 = vpop.permute.xlu0 %7100 }
 0xb3e   : > { %7302 = vst [vmem:[%s12554_s24 + $0x368] sm:$0xff] %v7101_v42  ;;  %7190 = vperm.xlu0 %8878, %v6552_v63  }
 0xb3f   : > { %7145 = vperm.xlu1 %8879, %v6543_v55   ;;  %v6826_v24 = vpop.permute.xlu1 %6825 }
 0xb40   : > { %7247 = vst [vmem:[%s12554_s24 + $0x1b0] sm:$0xff] %v6826_v24 }
 0xb41   : > { %v7111_v1 = vpop.permute.xlu0 %7110 }
 0xb42   : > { %7304 = vst [vmem:[%s12554_s24 + $0x378] sm:$0xff] %v7111_v1 }
 0xb43   : > { %7155 = vperm.xlu1 %8879, %v6545_v52   ;;  %v6836_v26 = vpop.permute.xlu1 %6835 }
 0xb44   : > { %7249 = vst [vmem:[%s12554_s24 + $0x1c0] sm:$0xff] %v6836_v26 }
 0xb45   : > { %v7121_v58 = vpop.permute.xlu0 %7120 }
 0xb46   : > { %7306 = vst [vmem:[%s12554_s24 + $0x388] sm:$0xff] %v7121_v58 }
 0xb47   : > { %7165 = vperm.xlu1 %8879, %v6547_v9   ;;  %v6846_v48 = vpop.permute.xlu1 %6845 }
 0xb48   : > { %7251 = vst [vmem:[%s12554_s24 + $0x1d0] sm:$0xff] %v6846_v48 }
 0xb49   : > { %v7131_v41 = vpop.permute.xlu0 %7130 }
 0xb4a   : > { %7308 = vst [vmem:[%s12554_s24 + $0x398] sm:$0xff] %v7131_v41 }
 0xb4b   : > { %7175 = vperm.xlu1 %8879, %v6549_v17   ;;  %v6856_v33 = vpop.permute.xlu1 %6855 }
 0xb4c   : > { %7253 = vst [vmem:[%s12554_s24 + $0x1e0] sm:$0xff] %v6856_v33 }
 0xb4d   : > { %v7141_v51 = vpop.permute.xlu0 %7140 }
 0xb4e   : > { %7310 = vst [vmem:[%s12554_s24 + $0x3a8] sm:$0xff] %v7141_v51 }
 0xb4f   : > { %v6866_v54 = vpop.permute.xlu1 %6865  ;;  %7185 = vperm.xlu1 %8879, %v6551_v14  }
 0xb50   : > { %7255 = vst [vmem:[%s12554_s24 + $0x1f0] sm:$0xff] %v6866_v54 }
 0xb51   : > { %v7151_v34 = vpop.permute.xlu0 %7150 }
 0xb52   : > { %7312 = vst [vmem:[%s12554_s24 + $0x3b8] sm:$0xff] %v7151_v34 }
 0xb53   : > { %v6876_v20 = vpop.permute.xlu1 %6875 }
 0xb54   : > { %7257 = vst [vmem:[%s12554_s24 + $0x200] sm:$0xff] %v6876_v20 }
 0xb55   : > { %v7161_v25 = vpop.permute.xlu0 %7160 }
 0xb56   : > { %7314 = vst [vmem:[%s12554_s24 + $0x3c8] sm:$0xff] %v7161_v25 }
 0xb57   : > { %v6886_v50 = vpop.permute.xlu1 %6885 }
 0xb58   : > { %7259 = vst [vmem:[%s12554_s24 + $0x210] sm:$0xff] %v6886_v50 }
 0xb59   : > { %v7171_v30 = vpop.permute.xlu0 %7170 }
 0xb5a   : > { %7316 = vst [vmem:[%s12554_s24 + $0x3d8] sm:$0xff] %v7171_v30 }
 0xb5b   : > { %v6896_v15 = vpop.permute.xlu1 %6895 }
 0xb5c   : > { %7261 = vst [vmem:[%s12554_s24 + $0x220] sm:$0xff] %v6896_v15 }
 0xb5f   : > { %v6906_v10 = vpop.permute.xlu1 %6905 }
 0xb60   : > { %7263 = vst [vmem:[%s12554_s24 + $0x230] sm:$0xff] %v6906_v10 }
 0xb63   : > { %v6916_v5 = vpop.permute.xlu1 %6915 }
 0xb64   : > { %7265 = vst [vmem:[%s12554_s24 + $0x240] sm:$0xff] %v6916_v5 }
 0xb67   : > { %v6926_v18 = vpop.permute.xlu1 %6925 }
 0xb68   : > { %7267 = vst [vmem:[%s12554_s24 + $0x250] sm:$0xff] %v6926_v18 }
 0xb6b   : > { %v6936_v35 = vpop.permute.xlu1 %6935 }
 0xb6c   : > { %7269 = vst [vmem:[%s12554_s24 + $0x260] sm:$0xff] %v6936_v35 }
 0xb6f   : > { %v6946_v7 = vpop.permute.xlu1 %6945 }
 0xb70   : > { %7271 = vst [vmem:[%s12554_s24 + $0x270] sm:$0xff] %v6946_v7 }
 0xb73   : > { %v6956_v23 = vpop.permute.xlu1 %6955 }
 0xb74   : > { %7273 = vst [vmem:[%s12554_s24 + $0x280] sm:$0xff] %v6956_v23 }
 0xb77   : > { %v6966_v27 = vpop.permute.xlu1 %6965 }
 0xb78   : > { %7275 = vst [vmem:[%s12554_s24 + $0x290] sm:$0xff] %v6966_v27 }
 0xb7b   : > { %v6976_v21 = vpop.permute.xlu1 %6975 }
 0xb7c   : > { %7277 = vst [vmem:[%s12554_s24 + $0x2a0] sm:$0xff] %v6976_v21 }
 0xb7f   : > { %v6986_v22 = vpop.permute.xlu1 %6985 }
 0xb80   : > { %7279 = vst [vmem:[%s12554_s24 + $0x2b0] sm:$0xff] %v6986_v22 }
 0xb83   : > { %v6996_v47 = vpop.permute.xlu1 %6995 }
 0xb84   : > { %7281 = vst [vmem:[%s12554_s24 + $0x2c0] sm:$0xff] %v6996_v47 }
 0xb87   : > { %v7006_v56 = vpop.permute.xlu1 %7005 }
 0xb88   : > { %7283 = vst [vmem:[%s12554_s24 + $0x2d0] sm:$0xff] %v7006_v56  ;;  %v7181_v6 = vpop.permute.xlu0 %7180 }
 0xb89   : > { %7318 = vst [vmem:[%s12554_s24 + $0x3e8] sm:$0xff] %v7181_v6 }
 0xb8b   : > { %v7016_v57 = vpop.permute.xlu1 %7015 }
 0xb8c   : > { %7285 = vst [vmem:[%s12554_s24 + $0x2e0] sm:$0xff] %v7016_v57 }
 0xb8f   : > { %v7026_v16 = vpop.permute.xlu1 %7025 }
 0xb90   : > { %7287 = vst [vmem:[%s12554_s24 + $0x2f0] sm:$0xff] %v7026_v16 }
 0xb93   : > { %v7036_v61 = vpop.permute.xlu1 %7035 }
 0xb94   : > { %7289 = vst [vmem:[%s12554_s24 + $0x300] sm:$0xff] %v7036_v61 }
 0xb97   : > { %v7046_v53 = vpop.permute.xlu1 %7045 }
 0xb98   : > { %7291 = vst [vmem:[%s12554_s24 + $0x310] sm:$0xff] %v7046_v53 }
 0xb9b   : > { %v7056_v49 = vpop.permute.xlu1 %7055 }
 0xb9c   : > { %7293 = vst [vmem:[%s12554_s24 + $0x320] sm:$0xff] %v7056_v49 }
 0xb9f   : > { %v7066_v28 = vpop.permute.xlu1 %7065 }
 0xba0   : > { %7295 = vst [vmem:[%s12554_s24 + $0x330] sm:$0xff] %v7066_v28 }
 0xba3   : > { %v7076_v13 = vpop.permute.xlu1 %7075 }
 0xba4   : > { %7297 = vst [vmem:[%s12554_s24 + $0x340] sm:$0xff] %v7076_v13 }
 0xba7   : > { %v7086_v39 = vpop.permute.xlu1 %7085 }
 0xba8   : > { %7299 = vst [vmem:[%s12554_s24 + $0x350] sm:$0xff] %v7086_v39 }
 0xbab   : > { %v7096_v19 = vpop.permute.xlu1 %7095 }
 0xbac   : > { %7301 = vst [vmem:[%s12554_s24 + $0x360] sm:$0xff] %v7096_v19 }
 0xbaf   : > { %v7106_v0 = vpop.permute.xlu1 %7105 }
 0xbb0   : > { %7303 = vst [vmem:[%s12554_s24 + $0x370] sm:$0xff] %v7106_v0 }
 0xbb3   : > { %v7116_v3 = vpop.permute.xlu1 %7115 }
 0xbb4   : > { %7305 = vst [vmem:[%s12554_s24 + $0x380] sm:$0xff] %v7116_v3 }
 0xbb7   : > { %v7126_v38 = vpop.permute.xlu1 %7125 }
 0xbb8   : > { %7307 = vst [vmem:[%s12554_s24 + $0x390] sm:$0xff] %v7126_v38 }
 0xbbb   : > { %v7136_v36 = vpop.permute.xlu1 %7135 }
 0xbbc   : > { %7309 = vst [vmem:[%s12554_s24 + $0x3a0] sm:$0xff] %v7136_v36 }
 0xbbd   : > { %v7191_v40 = vpop.permute.xlu0 %7190 }
 0xbbe   : > { %7320 = vst [vmem:[%s12554_s24 + $0x3f8] sm:$0xff] %v7191_v40 }
 0xbbf   : > { %v7146_v12 = vpop.permute.xlu1 %7145 }
 0xbc0   : > { %7311 = vst [vmem:[%s12554_s24 + $0x3b0] sm:$0xff] %v7146_v12 }
 0xbc3   : > { %v7156_v2 = vpop.permute.xlu1 %7155 }
 0xbc4   : > { %7313 = vst [vmem:[%s12554_s24 + $0x3c0] sm:$0xff] %v7156_v2 }
 0xbc7   : > { %v7166_v37 = vpop.permute.xlu1 %7165 }
 0xbc8   : > { %7315 = vst [vmem:[%s12554_s24 + $0x3d0] sm:$0xff] %v7166_v37 }
 0xbcb   : > { %v7176_v62 = vpop.permute.xlu1 %7175 }
 0xbcc   : > { %7317 = vst [vmem:[%s12554_s24 + $0x3e0] sm:$0xff] %v7176_v62 }
 0xbcf   : > { %v7186_v32 = vpop.permute.xlu1 %7185 }
 0xbd0   : > { %7319 = vst [vmem:[%s12554_s24 + $0x3f0] sm:$0xff] %v7186_v32 }
 0xbd1   : > { %9926 = shalt.err (!%p9923_p3)
}
 0xbd2   : > { %s9927_s18 = scalar_lea.hbm %s13224_s19, 16384  ;;  %s9931_s30 = scalar_lea.hbm %s13279_s7, 32768 }
 0xbd3   : > { %p9928_p4 = scmp.ne.s32.totalorder %s13224_s19, %s9927_s18  ;;  %p9932_p9 = scmp.lt.u32.totalorder %s13224_s19, %s13279_s7 }
 0xbd4   : > { %p9933_p10 = scmp.lt.u32.totalorder %s9931_s30, %s9927_s18  ;;  %p9935_p12 = scmp.lt.u32.totalorder %s9927_s18, %s13224_s19 }
 0xbd5   : > { %p9929_p7 = pnand %p9928_p4, %p10063_p5 }
 0xbd6   : > { %p9934_p11 = por %p9933_p10, %p9932_p9 }
 0xbd7   : > { %p9930_p8 = pneg %p9929_p7 }
 0xbd8   : > { %p9936_p13 = por %p9935_p12, %p9934_p11 }
 0xbda   : > { %p9937_p0 = pnand %p9936_p13, %p9930_p8 }
 0xbdc   : > { %9940 = shalt.err (!%p9937_p0)
}
 0xbdd   : > { %s9980_s14 = smov 128   ;;  %s9981_s16 = smov 8  }
 0xbde   : > { %8832 = dma.vmem_to_hbm [thread:$0]  (%p10063_p5), %s13226_s15, 16384, %s13224_s19, %s13231_s20, %s9980_s14, %s9980_s14, %s9981_s16  }
 0xbdf PF: > { %p8838_p1 = scmp.ge.s32.totalorder %s9975_s29, 2  ;;  %s7350_s17 = sand.u32 1, %s9963_s26  }
 0xbe0   : > { %s7351_s21 = scalar_lea.sflag [#allocation4], %s7350_s17 }
 0xbe1   : > { %p8835_p2 = pnand %p8838_p1, %p10067_p6 }
 0xbe3   : > { %9958 = dma.done.wait (!%p8835_p2), %s7351_s21, 16384  }
 0xbe4   : > { %9960 = vsyncadd (!%p8835_p2), %s7351_s21, 4294950912  ;;  %p19_p3 = scmp.ge.s32.totalorder %s10050_s8, 4   ;;  %s13578_s26 = smov %s9967_s27 }
 0xbe5   : > { %s13579_s27 = smov %s9971_s28  ;;  %s13580_s28 = smov %s10061_s11 }
 0xbe6   : > { %s13581_s29 = smov %s10050_s8  ;;  %21 = sbr.rel (!%p19_p3) target bundleno = 6 (0x6), region = 85 }
 0xbed   :  { %7356 = vsyncpa [#allocation4], 1 }
 0xbee   :  { %7358 = vsyncpa [#allocation4 + $0x1], 1 }

</bundles_post_ra>
